<compile_context>
chip_gen: v7x
topology: tpu7x:2x2x1
jax: 0.10.0
libtpu: 0.0.40
codegen_flags: <defaults>
</compile_context>

<pallas_src>
import functools
import math

import numpy as np
import jax
import jax.numpy as jnp
from jax import lax
from jax.experimental import pallas as pl
from jax.experimental.pallas import tpu as pltpu


# Fixed decoder geometry (the PyTorch module hard-codes 289 = 17*17, i.e. 4x4 input maps).
_L1 = dict(cin=64, cout=16, k=2, s=2, hin=4)    # 4  -> 8
_L2 = dict(cin=16, cout=16, k=5, s=4, hin=8)    # 8  -> 33
_L3 = dict(cin=16, cout=1,  k=4, s=2, hin=33)   # 33 -> 68


def _out_size(hin, k, s):
    return (hin - 1) * s + k


# ------------------- ConvTranspose2d  ->  (R_kh, G_kh) matmul pre-transform ------------------- #
#
#   Out[oh, ow*Cout+co] = sum_kh sum_ih [oh == s*ih+kh] * sum_{iw,kw,ci} X[ih, iw*Cin+ci]
#                          * W[ci,co,kh,kw] * [ow == s*iw+kw]
#   =>  Out = sum_kh  R_kh @ X @ G_kh
def _build_g(w_t, k, s, win, cin, cout):
    wo = _out_size(win, k, s)
    g = np.zeros((k, win * cin, wo * cout), np.float32)
    w = np.asarray(w_t, np.float32)
    for kh in range(k):
        for iw in range(win):
            for kw in range(k):
                ow = s * iw + kw
                g[kh, iw * cin:(iw + 1) * cin, ow * cout:(ow + 1) * cout] = w[:, :, kh, kw]
    return jnp.asarray(g)


def _build_r(k, s, hin):
    ho = _out_size(hin, k, s)
    r = np.zeros((k, ho, hin), np.float32)
    for kh in range(k):
        for ih in range(hin):
            r[kh, s * ih + kh, ih] = 1.0
    return jnp.asarray(r)


def _block_diag(r, nb):
    """I_nb (x) r  along the last two axes of r:(k, Ho, Hin) -> (k, nb*Ho, nb*Hin)."""
    if nb == 1:
        return r
    k, ho, hi = r.shape
    eye = jnp.eye(nb, dtype=r.dtype)
    return jnp.einsum("ij,kab->kiajb", eye, r).reshape(k, nb * ho, nb * hi)


# ------------------------------------- parameter init ---------------------------------------- #

def _init_conv_transpose(key, cin, cout, k):
    # PyTorch ConvTranspose2d default init: U(-1/sqrt(fan_in), 1/sqrt(fan_in)),
    # fan_in = cout * k * k for the (cin, cout, kh, kw) weight layout.
    kw_key, b_key = jax.random.split(key)
    bound = 1.0 / math.sqrt(cout * k * k)
    w_t = jax.random.uniform(kw_key, (cin, cout, k, k), jnp.float32, -bound, bound)
    bias = jax.random.uniform(b_key, (cout,), jnp.float32, -bound, bound)
    return w_t, bias


def init_params(key):
    keys = jax.random.split(key, 3)
    p = {}
    for name, kk, cfg in (("1", keys[0], _L1), ("2", keys[1], _L2), ("3", keys[2], _L3)):
        w_t, bias = _init_conv_transpose(kk, cfg["cin"], cfg["cout"], cfg["k"])
        wo = _out_size(cfg["hin"], cfg["k"], cfg["s"])
        p["w" + name] = w_t                     # raw weights: used only by the f32 reference
        p["b" + name] = bias
        p["g" + name] = _build_g(w_t, cfg["k"], cfg["s"], cfg["hin"], cfg["cin"], cfg["cout"])
        p["r" + name] = _build_r(cfg["k"], cfg["s"], cfg["hin"])
        p["brow" + name] = jnp.tile(bias, wo).reshape(1, wo * cfg["cout"])
    # AvgPool2d(4, stride=4) on the fixed 68x68 map: pooled = P @ Y @ P^T.
    pmat = np.zeros((17, 68), np.float32)
    for r in range(17):
        pmat[r, 4 * r:4 * r + 4] = 0.25
    p["pool_p"] = jnp.asarray(pmat)
    p["pool_pt"] = jnp.asarray(pmat.T)
    return p


# ----------------------------------------- kernel -------------------------------------------- #

def _decoder_kernel(x_ref,
                    g1_ref, r1_ref, b1_ref,
                    g2_ref, r2_ref, b2_ref,
                    g3_ref, r3_ref, b3_ref,
                    p_ref, pt_ref,
                    y_ref, pool_ref,
                    *, nb):
    f32 = jnp.float32

    def conv_t(a, g_ref, r_ref, b_ref, k, relu):
        acc = None
        for kh in range(k):                       # static unroll, k in {2, 4, 5}
            t = jnp.dot(a, g_ref[kh], preferred_element_type=f32)
            t = jnp.dot(r_ref[kh], t, preferred_element_type=f32)
            acc = t if acc is None else acc + t
        acc = acc + b_ref[...]
        return jnp.maximum(acc, 0.0) if relu else acc

    x = x_ref[...]                                          # (nb*4, 256)
    a1 = conv_t(x,  g1_ref, r1_ref, b1_ref, 2, True)        # (nb*8, 128)
    a2 = conv_t(a1, g2_ref, r2_ref, b2_ref, 5, True)        # (nb*33, 528)
    y = conv_t(a2, g3_ref, r3_ref, b3_ref, 4, False)        # (nb*68, 68)
    y_ref[...] = y

    p = p_ref[...]                                          # (17, 68)
    pt = pt_ref[...]                                        # (68, 17)
    for i in range(nb):                                     # static unroll; tiny per-image pool
        yi = y[i * 68:(i + 1) * 68, :]
        pool_ref[i] = jnp.dot(jnp.dot(p, yi, preferred_element_type=f32), pt,
                              preferred_element_type=f32)   # (17, 17)


# ---------------------------------------- forward -------------------------------------------- #

def net_decoder(params, state_matrix):
    """state_matrix: (B, T, 64, 4, 4) f32.  Returns ((B,T,289), (B,T,1,68,68))."""
    B, T, C, H, W = state_matrix.shape
    assert (C, H, W) == (64, 4, 4), (C, H, W)
    bt = B * T

    # NCHW -> NHWC once (tiny), then the fused 2-D  rows=(image,h), cols=(w*C + c)  layout.
    x = state_matrix.reshape(bt, C, H, W).transpose(0, 2, 3, 1).astype(jnp.float32)

    bt_pad = bt if (bt == 1 or bt % 2 == 0) else bt + 1     # rare odd-BT case: pad one image
    if bt_pad != bt:
        x = jnp.pad(x, ((0, bt_pad - bt), (0, 0), (0, 0), (0, 0)))
    nb = 1 if bt_pad == 1 else (8 if bt_pad % 8 == 0 else (4 if bt_pad % 4 == 0 else 2))
    x2d = x.reshape(bt_pad * 4, 4 * 64)                     # (bt_pad*4, 256)

    r1 = _block_diag(params["r1"], nb)
    r2 = _block_diag(params["r2"], nb)
    r3 = _block_diag(params["r3"], nb)

    def const3(i):
        return (0, 0, 0)

    def const2(i):
        return (0, 0)

    y2d, pooled = pl.pallas_call(
        functools.partial(_decoder_kernel, nb=nb),
        out_shape=(jax.ShapeDtypeStruct((bt_pad * 68, 68), jnp.float32),
                   jax.ShapeDtypeStruct((bt_pad, 17, 17), jnp.float32)),
        grid=(bt_pad // nb,),
        in_specs=[
            pl.BlockSpec((nb * 4, 256), lambda i: (i, 0)),
            pl.BlockSpec(params["g1"].shape, const3),
            pl.BlockSpec(r1.shape, const3),
            pl.BlockSpec(params["brow1"].shape, const2),
            pl.BlockSpec(params["g2"].shape, const3),
            pl.BlockSpec(r2.shape, const3),
            pl.BlockSpec(params["brow2"].shape, const2),
            pl.BlockSpec(params["g3"].shape, const3),
            pl.BlockSpec(r3.shape, const3),
            pl.BlockSpec(params["brow3"].shape, const2),
            pl.BlockSpec(params["pool_p"].shape, const2),
            pl.BlockSpec(params["pool_pt"].shape, const2),
        ],
        out_specs=(pl.BlockSpec((nb * 68, 68), lambda i: (i, 0)),
                   pl.BlockSpec((nb, 17, 17), lambda i: (i, 0, 0))),
        compiler_params=pltpu.CompilerParams(
            dimension_semantics=("parallel",),
            vmem_limit_bytes=32 * 1024 * 1024),
    )(x2d, params["g1"], r1, params["brow1"],
      params["g2"], r2, params["brow2"],
      params["g3"], r3, params["brow3"],
      params["pool_p"], params["pool_pt"])

    if bt_pad != bt:
        y2d = y2d[: bt * 68]
        pooled = pooled[:bt]

    state_out = pooled.reshape(B, T, 289)           # contiguous reshape
    pool_out = y2d.reshape(B, T, 1, 68, 68)         # contiguous reshape (single channel)
    return state_out, pool_out


# ----------------------------- pure-JAX reference (raw f32 weights) --------------------------- #

def net_decoder_reference(params, state_matrix):
    B, T, C, H, W = state_matrix.shape
    x = state_matrix.reshape(B * T, C, H, W).transpose(0, 2, 3, 1).astype(jnp.float32)

    def conv_t(x, w_t, b, k, s, relu):
        w_hwio = jnp.flip(w_t, axis=(2, 3)).transpose(2, 3, 0, 1)      # (k,k,cin,cout)
        y = lax.conv_general_dilated(
            x, w_hwio, window_strides=(1, 1),
            padding=((k - 1, k - 1), (k - 1, k - 1)), lhs_dilation=(s, s),
            dimension_numbers=("NHWC", "HWIO", "NHWC"))
        y = y + b
        return jnp.maximum(y, 0.0) if relu else y

    x = conv_t(x, params["w1"], params["b1"], 2, 2, True)
    x = conv_t(x, params["w2"], params["b2"], 5, 4, True)
    y = conv_t(x, params["w3"], params["b3"], 4, 2, False)
    bt, ho, wo, _ = y.shape
    pooled = y.reshape(bt, ho // 4, 4, wo // 4, 4, 1).mean(axis=(2, 4))
    return pooled.reshape(B, T, 289), y.reshape(B, T, 1, ho, wo)


# ------------------------------------------- main --------------------------------------------- #

if __name__ == "__main__":
    key = jax.random.PRNGKey(0)
    k_param, k_in = jax.random.split(key)

    B, T = 2, 2
    params = init_params(k_param)
    state_matrix = jax.random.normal(k_in, (B, T, 64, 4, 4), dtype=jnp.float32)

    fwd = jax.jit(net_decoder)
    sm, sm_pool = fwd(params, state_matrix)
    sm = jax.block_until_ready(sm)
    sm_pool = jax.block_until_ready(sm_pool)

    assert sm.shape == (B, T, 289), sm.shape
    assert sm_pool.shape == (B, T, 1, 68, 68), sm_pool.shape
    assert bool(jnp.all(jnp.isfinite(sm)))
    assert bool(jnp.all(jnp.isfinite(sm_pool)))

    ref_sm, ref_pool = jax.jit(net_decoder_reference)(params, state_matrix)
    err1 = float(jnp.max(jnp.abs(sm - ref_sm)))
    err2 = float(jnp.max(jnp.abs(sm_pool - ref_pool)))
    assert err1 < 2e-2, err1
    assert err2 < 2e-2, err2

    print("KERNEL_OK")
</pallas_src>

<mosaic_0001>
module attributes {stable_mosaic.version = 11 : i64} {
  func.func @_decoder_kernel(%arg0: i32, %arg1: memref<16x256xf32, #tpu.memory_space<vmem>>, %arg2: memref<2x256x128xf32, #tpu.memory_space<vmem>>, %arg3: memref<2x32x16xf32, #tpu.memory_space<vmem>>, %arg4: memref<1x128xf32, #tpu.memory_space<vmem>>, %arg5: memref<5x128x528xf32, #tpu.memory_space<vmem>>, %arg6: memref<5x132x32xf32, #tpu.memory_space<vmem>>, %arg7: memref<1x528xf32, #tpu.memory_space<vmem>>, %arg8: memref<4x528x68xf32, #tpu.memory_space<vmem>>, %arg9: memref<4x272x132xf32, #tpu.memory_space<vmem>>, %arg10: memref<1x68xf32, #tpu.memory_space<vmem>>, %arg11: memref<17x68xf32, #tpu.memory_space<vmem>>, %arg12: memref<68x17xf32, #tpu.memory_space<vmem>>, %arg13: memref<272x68xf32, #tpu.memory_space<vmem>>, %arg14: memref<4x17x17xf32, #tpu.memory_space<vmem>>) attributes {dimension_semantics = [#tpu.dimension_semantics<parallel>], iteration_bounds = array<i64: 1>, scalar_prefetch = 0 : i64, scratch_operands = 0 : i64, tpu.core_type = #tpu.core_type<tc>, window_params = [{transform_indices = @transform_0, window_bounds = array<i64: 16, 256>}, {pipeline_mode = #tpu.pipeline_mode<synchronous>, transform_indices = @transform_1, window_bounds = array<i64: 2, 256, 128>}, {pipeline_mode = #tpu.pipeline_mode<synchronous>, transform_indices = @transform_2, window_bounds = array<i64: 2, 32, 16>}, {pipeline_mode = #tpu.pipeline_mode<synchronous>, transform_indices = @transform_3, window_bounds = array<i64: 1, 128>}, {pipeline_mode = #tpu.pipeline_mode<synchronous>, transform_indices = @transform_4, window_bounds = array<i64: 5, 128, 528>}, {pipeline_mode = #tpu.pipeline_mode<synchronous>, transform_indices = @transform_5, window_bounds = array<i64: 5, 132, 32>}, {pipeline_mode = #tpu.pipeline_mode<synchronous>, transform_indices = @transform_6, window_bounds = array<i64: 1, 528>}, {pipeline_mode = #tpu.pipeline_mode<synchronous>, transform_indices = @transform_7, window_bounds = array<i64: 4, 528, 68>}, {pipeline_mode = #tpu.pipeline_mode<synchronous>, transform_indices = @transform_8, window_bounds = array<i64: 4, 272, 132>}, {pipeline_mode = #tpu.pipeline_mode<synchronous>, transform_indices = @transform_9, window_bounds = array<i64: 1, 68>}, {pipeline_mode = #tpu.pipeline_mode<synchronous>, transform_indices = @transform_10, window_bounds = array<i64: 17, 68>}, {pipeline_mode = #tpu.pipeline_mode<synchronous>, transform_indices = @transform_11, window_bounds = array<i64: 68, 17>}, {transform_indices = @transform_12, window_bounds = array<i64: 272, 68>}, {transform_indices = @transform_13, window_bounds = array<i64: 4, 17, 17>}]} {
    %c0 = arith.constant 0 : index
    %c0_0 = arith.constant 0 : index
    %0 = vector.load %arg1[%c0, %c0_0] : memref<16x256xf32, #tpu.memory_space<vmem>>, vector<16x256xf32>
    %c0_1 = arith.constant 0 : index
    %c0_2 = arith.constant 0 : index
    %c0_3 = arith.constant 0 : index
    %1 = vector.load %arg2[%c0_1, %c0_2, %c0_3] : memref<2x256x128xf32, #tpu.memory_space<vmem>>, vector<1x256x128xf32>
    %2 = vector.shape_cast %1 : vector<1x256x128xf32> to vector<256x128xf32>
    %cst = arith.constant dense<0.000000e+00> : vector<16x128xf32>
    %3 = tpu.matmul %0, %2, %cst {dimension_numbers = #tpu.dot_dimension_numbers<[1], [0], [0], [1], [0, 0, 1, 1], [], []>} : vector<16x256xf32>, vector<256x128xf32>, vector<16x128xf32> -> vector<16x128xf32>
    %c0_4 = arith.constant 0 : index
    %c0_5 = arith.constant 0 : index
    %c0_6 = arith.constant 0 : index
    %4 = vector.load %arg3[%c0_4, %c0_5, %c0_6] : memref<2x32x16xf32, #tpu.memory_space<vmem>>, vector<1x32x16xf32>
    %5 = vector.shape_cast %4 : vector<1x32x16xf32> to vector<32x16xf32>
    %cst_7 = arith.constant dense<0.000000e+00> : vector<32x128xf32>
    %6 = tpu.matmul %5, %3, %cst_7 {dimension_numbers = #tpu.dot_dimension_numbers<[1], [0], [0], [1], [0, 0, 1, 1], [], []>} : vector<32x16xf32>, vector<16x128xf32>, vector<32x128xf32> -> vector<32x128xf32>
    %c1 = arith.constant 1 : index
    %c0_8 = arith.constant 0 : index
    %c0_9 = arith.constant 0 : index
    %7 = vector.load %arg2[%c1, %c0_8, %c0_9] : memref<2x256x128xf32, #tpu.memory_space<vmem>>, vector<1x256x128xf32>
    %8 = vector.shape_cast %7 : vector<1x256x128xf32> to vector<256x128xf32>
    %cst_10 = arith.constant dense<0.000000e+00> : vector<16x128xf32>
    %9 = tpu.matmul %0, %8, %cst_10 {dimension_numbers = #tpu.dot_dimension_numbers<[1], [0], [0], [1], [0, 0, 1, 1], [], []>} : vector<16x256xf32>, vector<256x128xf32>, vector<16x128xf32> -> vector<16x128xf32>
    %c1_11 = arith.constant 1 : index
    %c0_12 = arith.constant 0 : index
    %c0_13 = arith.constant 0 : index
    %10 = vector.load %arg3[%c1_11, %c0_12, %c0_13] : memref<2x32x16xf32, #tpu.memory_space<vmem>>, vector<1x32x16xf32>
    %11 = vector.shape_cast %10 : vector<1x32x16xf32> to vector<32x16xf32>
    %cst_14 = arith.constant dense<0.000000e+00> : vector<32x128xf32>
    %12 = tpu.matmul %11, %9, %cst_14 {dimension_numbers = #tpu.dot_dimension_numbers<[1], [0], [0], [1], [0, 0, 1, 1], [], []>} : vector<32x16xf32>, vector<16x128xf32>, vector<32x128xf32> -> vector<32x128xf32>
    %13 = arith.addf %6, %12 : vector<32x128xf32>
    %c0_15 = arith.constant 0 : index
    %c0_16 = arith.constant 0 : index
    %14 = vector.load %arg4[%c0_15, %c0_16] : memref<1x128xf32, #tpu.memory_space<vmem>>, vector<1x128xf32>
    %15 = vector.broadcast %14 : vector<1x128xf32> to vector<32x128xf32>
    %16 = arith.addf %13, %15 : vector<32x128xf32>
    %cst_17 = arith.constant 0.000000e+00 : f32
    %17 = vector.broadcast %cst_17 : f32 to vector<32x128xf32>
    %18 = arith.maximumf %16, %17 : vector<32x128xf32>
    %c0_18 = arith.constant 0 : index
    %c0_19 = arith.constant 0 : index
    %c0_20 = arith.constant 0 : index
    %19 = vector.load %arg5[%c0_18, %c0_19, %c0_20] : memref<5x128x528xf32, #tpu.memory_space<vmem>>, vector<1x128x528xf32>
    %20 = vector.shape_cast %19 : vector<1x128x528xf32> to vector<128x528xf32>
    %cst_21 = arith.constant dense<0.000000e+00> : vector<32x528xf32>
    %21 = tpu.matmul %18, %20, %cst_21 {dimension_numbers = #tpu.dot_dimension_numbers<[1], [0], [0], [1], [0, 0, 1, 1], [], []>} : vector<32x128xf32>, vector<128x528xf32>, vector<32x528xf32> -> vector<32x528xf32>
    %c0_22 = arith.constant 0 : index
    %c0_23 = arith.constant 0 : index
    %c0_24 = arith.constant 0 : index
    %22 = vector.load %arg6[%c0_22, %c0_23, %c0_24] : memref<5x132x32xf32, #tpu.memory_space<vmem>>, vector<1x132x32xf32>
    %23 = vector.shape_cast %22 : vector<1x132x32xf32> to vector<132x32xf32>
    %cst_25 = arith.constant dense<0.000000e+00> : vector<132x528xf32>
    %24 = tpu.matmul %23, %21, %cst_25 {dimension_numbers = #tpu.dot_dimension_numbers<[1], [0], [0], [1], [0, 0, 1, 1], [], []>} : vector<132x32xf32>, vector<32x528xf32>, vector<132x528xf32> -> vector<132x528xf32>
    %c1_26 = arith.constant 1 : index
    %c0_27 = arith.constant 0 : index
    %c0_28 = arith.constant 0 : index
    %25 = vector.load %arg5[%c1_26, %c0_27, %c0_28] : memref<5x128x528xf32, #tpu.memory_space<vmem>>, vector<1x128x528xf32>
    %26 = vector.shape_cast %25 : vector<1x128x528xf32> to vector<128x528xf32>
    %cst_29 = arith.constant dense<0.000000e+00> : vector<32x528xf32>
    %27 = tpu.matmul %18, %26, %cst_29 {dimension_numbers = #tpu.dot_dimension_numbers<[1], [0], [0], [1], [0, 0, 1, 1], [], []>} : vector<32x128xf32>, vector<128x528xf32>, vector<32x528xf32> -> vector<32x528xf32>
    %c1_30 = arith.constant 1 : index
    %c0_31 = arith.constant 0 : index
    %c0_32 = arith.constant 0 : index
    %28 = vector.load %arg6[%c1_30, %c0_31, %c0_32] : memref<5x132x32xf32, #tpu.memory_space<vmem>>, vector<1x132x32xf32>
    %29 = vector.shape_cast %28 : vector<1x132x32xf32> to vector<132x32xf32>
    %cst_33 = arith.constant dense<0.000000e+00> : vector<132x528xf32>
    %30 = tpu.matmul %29, %27, %cst_33 {dimension_numbers = #tpu.dot_dimension_numbers<[1], [0], [0], [1], [0, 0, 1, 1], [], []>} : vector<132x32xf32>, vector<32x528xf32>, vector<132x528xf32> -> vector<132x528xf32>
    %31 = arith.addf %24, %30 : vector<132x528xf32>
    %c2 = arith.constant 2 : index
    %c0_34 = arith.constant 0 : index
    %c0_35 = arith.constant 0 : index
    %32 = vector.load %arg5[%c2, %c0_34, %c0_35] : memref<5x128x528xf32, #tpu.memory_space<vmem>>, vector<1x128x528xf32>
    %33 = vector.shape_cast %32 : vector<1x128x528xf32> to vector<128x528xf32>
    %cst_36 = arith.constant dense<0.000000e+00> : vector<32x528xf32>
    %34 = tpu.matmul %18, %33, %cst_36 {dimension_numbers = #tpu.dot_dimension_numbers<[1], [0], [0], [1], [0, 0, 1, 1], [], []>} : vector<32x128xf32>, vector<128x528xf32>, vector<32x528xf32> -> vector<32x528xf32>
    %c2_37 = arith.constant 2 : index
    %c0_38 = arith.constant 0 : index
    %c0_39 = arith.constant 0 : index
    %35 = vector.load %arg6[%c2_37, %c0_38, %c0_39] : memref<5x132x32xf32, #tpu.memory_space<vmem>>, vector<1x132x32xf32>
    %36 = vector.shape_cast %35 : vector<1x132x32xf32> to vector<132x32xf32>
    %cst_40 = arith.constant dense<0.000000e+00> : vector<132x528xf32>
    %37 = tpu.matmul %36, %34, %cst_40 {dimension_numbers = #tpu.dot_dimension_numbers<[1], [0], [0], [1], [0, 0, 1, 1], [], []>} : vector<132x32xf32>, vector<32x528xf32>, vector<132x528xf32> -> vector<132x528xf32>
    %38 = arith.addf %31, %37 : vector<132x528xf32>
    %c3 = arith.constant 3 : index
    %c0_41 = arith.constant 0 : index
    %c0_42 = arith.constant 0 : index
    %39 = vector.load %arg5[%c3, %c0_41, %c0_42] : memref<5x128x528xf32, #tpu.memory_space<vmem>>, vector<1x128x528xf32>
    %40 = vector.shape_cast %39 : vector<1x128x528xf32> to vector<128x528xf32>
    %cst_43 = arith.constant dense<0.000000e+00> : vector<32x528xf32>
    %41 = tpu.matmul %18, %40, %cst_43 {dimension_numbers = #tpu.dot_dimension_numbers<[1], [0], [0], [1], [0, 0, 1, 1], [], []>} : vector<32x128xf32>, vector<128x528xf32>, vector<32x528xf32> -> vector<32x528xf32>
    %c3_44 = arith.constant 3 : index
    %c0_45 = arith.constant 0 : index
    %c0_46 = arith.constant 0 : index
    %42 = vector.load %arg6[%c3_44, %c0_45, %c0_46] : memref<5x132x32xf32, #tpu.memory_space<vmem>>, vector<1x132x32xf32>
    %43 = vector.shape_cast %42 : vector<1x132x32xf32> to vector<132x32xf32>
    %cst_47 = arith.constant dense<0.000000e+00> : vector<132x528xf32>
    %44 = tpu.matmul %43, %41, %cst_47 {dimension_numbers = #tpu.dot_dimension_numbers<[1], [0], [0], [1], [0, 0, 1, 1], [], []>} : vector<132x32xf32>, vector<32x528xf32>, vector<132x528xf32> -> vector<132x528xf32>
    %45 = arith.addf %38, %44 : vector<132x528xf32>
    %c4 = arith.constant 4 : index
    %c0_48 = arith.constant 0 : index
    %c0_49 = arith.constant 0 : index
    %46 = vector.load %arg5[%c4, %c0_48, %c0_49] : memref<5x128x528xf32, #tpu.memory_space<vmem>>, vector<1x128x528xf32>
    %47 = vector.shape_cast %46 : vector<1x128x528xf32> to vector<128x528xf32>
    %cst_50 = arith.constant dense<0.000000e+00> : vector<32x528xf32>
    %48 = tpu.matmul %18, %47, %cst_50 {dimension_numbers = #tpu.dot_dimension_numbers<[1], [0], [0], [1], [0, 0, 1, 1], [], []>} : vector<32x128xf32>, vector<128x528xf32>, vector<32x528xf32> -> vector<32x528xf32>
    %c4_51 = arith.constant 4 : index
    %c0_52 = arith.constant 0 : index
    %c0_53 = arith.constant 0 : index
    %49 = vector.load %arg6[%c4_51, %c0_52, %c0_53] : memref<5x132x32xf32, #tpu.memory_space<vmem>>, vector<1x132x32xf32>
    %50 = vector.shape_cast %49 : vector<1x132x32xf32> to vector<132x32xf32>
    %cst_54 = arith.constant dense<0.000000e+00> : vector<132x528xf32>
    %51 = tpu.matmul %50, %48, %cst_54 {dimension_numbers = #tpu.dot_dimension_numbers<[1], [0], [0], [1], [0, 0, 1, 1], [], []>} : vector<132x32xf32>, vector<32x528xf32>, vector<132x528xf32> -> vector<132x528xf32>
    %52 = arith.addf %45, %51 : vector<132x528xf32>
    %c0_55 = arith.constant 0 : index
    %c0_56 = arith.constant 0 : index
    %53 = vector.load %arg7[%c0_55, %c0_56] : memref<1x528xf32, #tpu.memory_space<vmem>>, vector<1x528xf32>
    %54 = vector.broadcast %53 : vector<1x528xf32> to vector<132x528xf32>
    %55 = arith.addf %52, %54 : vector<132x528xf32>
    %cst_57 = arith.constant 0.000000e+00 : f32
    %56 = vector.broadcast %cst_57 : f32 to vector<132x528xf32>
    %57 = arith.maximumf %55, %56 : vector<132x528xf32>
    %c0_58 = arith.constant 0 : index
    %c0_59 = arith.constant 0 : index
    %c0_60 = arith.constant 0 : index
    %58 = vector.load %arg8[%c0_58, %c0_59, %c0_60] : memref<4x528x68xf32, #tpu.memory_space<vmem>>, vector<1x528x68xf32>
    %59 = vector.shape_cast %58 : vector<1x528x68xf32> to vector<528x68xf32>
    %cst_61 = arith.constant dense<0.000000e+00> : vector<132x68xf32>
    %60 = tpu.matmul %57, %59, %cst_61 {dimension_numbers = #tpu.dot_dimension_numbers<[1], [0], [0], [1], [0, 0, 1, 1], [], []>} : vector<132x528xf32>, vector<528x68xf32>, vector<132x68xf32> -> vector<132x68xf32>
    %c0_62 = arith.constant 0 : index
    %c0_63 = arith.constant 0 : index
    %c0_64 = arith.constant 0 : index
    %61 = vector.load %arg9[%c0_62, %c0_63, %c0_64] : memref<4x272x132xf32, #tpu.memory_space<vmem>>, vector<1x272x132xf32>
    %62 = vector.shape_cast %61 : vector<1x272x132xf32> to vector<272x132xf32>
    %cst_65 = arith.constant dense<0.000000e+00> : vector<272x68xf32>
    %63 = tpu.matmul %62, %60, %cst_65 {dimension_numbers = #tpu.dot_dimension_numbers<[1], [0], [0], [1], [0, 0, 1, 1], [], []>} : vector<272x132xf32>, vector<132x68xf32>, vector<272x68xf32> -> vector<272x68xf32>
    %c1_66 = arith.constant 1 : index
    %c0_67 = arith.constant 0 : index
    %c0_68 = arith.constant 0 : index
    %64 = vector.load %arg8[%c1_66, %c0_67, %c0_68] : memref<4x528x68xf32, #tpu.memory_space<vmem>>, vector<1x528x68xf32>
    %65 = vector.shape_cast %64 : vector<1x528x68xf32> to vector<528x68xf32>
    %cst_69 = arith.constant dense<0.000000e+00> : vector<132x68xf32>
    %66 = tpu.matmul %57, %65, %cst_69 {dimension_numbers = #tpu.dot_dimension_numbers<[1], [0], [0], [1], [0, 0, 1, 1], [], []>} : vector<132x528xf32>, vector<528x68xf32>, vector<132x68xf32> -> vector<132x68xf32>
    %c1_70 = arith.constant 1 : index
    %c0_71 = arith.constant 0 : index
    %c0_72 = arith.constant 0 : index
    %67 = vector.load %arg9[%c1_70, %c0_71, %c0_72] : memref<4x272x132xf32, #tpu.memory_space<vmem>>, vector<1x272x132xf32>
    %68 = vector.shape_cast %67 : vector<1x272x132xf32> to vector<272x132xf32>
    %cst_73 = arith.constant dense<0.000000e+00> : vector<272x68xf32>
    %69 = tpu.matmul %68, %66, %cst_73 {dimension_numbers = #tpu.dot_dimension_numbers<[1], [0], [0], [1], [0, 0, 1, 1], [], []>} : vector<272x132xf32>, vector<132x68xf32>, vector<272x68xf32> -> vector<272x68xf32>
    %70 = arith.addf %63, %69 : vector<272x68xf32>
    %c2_74 = arith.constant 2 : index
    %c0_75 = arith.constant 0 : index
    %c0_76 = arith.constant 0 : index
    %71 = vector.load %arg8[%c2_74, %c0_75, %c0_76] : memref<4x528x68xf32, #tpu.memory_space<vmem>>, vector<1x528x68xf32>
    %72 = vector.shape_cast %71 : vector<1x528x68xf32> to vector<528x68xf32>
    %cst_77 = arith.constant dense<0.000000e+00> : vector<132x68xf32>
    %73 = tpu.matmul %57, %72, %cst_77 {dimension_numbers = #tpu.dot_dimension_numbers<[1], [0], [0], [1], [0, 0, 1, 1], [], []>} : vector<132x528xf32>, vector<528x68xf32>, vector<132x68xf32> -> vector<132x68xf32>
    %c2_78 = arith.constant 2 : index
    %c0_79 = arith.constant 0 : index
    %c0_80 = arith.constant 0 : index
    %74 = vector.load %arg9[%c2_78, %c0_79, %c0_80] : memref<4x272x132xf32, #tpu.memory_space<vmem>>, vector<1x272x132xf32>
    %75 = vector.shape_cast %74 : vector<1x272x132xf32> to vector<272x132xf32>
    %cst_81 = arith.constant dense<0.000000e+00> : vector<272x68xf32>
    %76 = tpu.matmul %75, %73, %cst_81 {dimension_numbers = #tpu.dot_dimension_numbers<[1], [0], [0], [1], [0, 0, 1, 1], [], []>} : vector<272x132xf32>, vector<132x68xf32>, vector<272x68xf32> -> vector<272x68xf32>
    %77 = arith.addf %70, %76 : vector<272x68xf32>
    %c3_82 = arith.constant 3 : index
    %c0_83 = arith.constant 0 : index
    %c0_84 = arith.constant 0 : index
    %78 = vector.load %arg8[%c3_82, %c0_83, %c0_84] : memref<4x528x68xf32, #tpu.memory_space<vmem>>, vector<1x528x68xf32>
    %79 = vector.shape_cast %78 : vector<1x528x68xf32> to vector<528x68xf32>
    %cst_85 = arith.constant dense<0.000000e+00> : vector<132x68xf32>
    %80 = tpu.matmul %57, %79, %cst_85 {dimension_numbers = #tpu.dot_dimension_numbers<[1], [0], [0], [1], [0, 0, 1, 1], [], []>} : vector<132x528xf32>, vector<528x68xf32>, vector<132x68xf32> -> vector<132x68xf32>
    %c3_86 = arith.constant 3 : index
    %c0_87 = arith.constant 0 : index
    %c0_88 = arith.constant 0 : index
    %81 = vector.load %arg9[%c3_86, %c0_87, %c0_88] : memref<4x272x132xf32, #tpu.memory_space<vmem>>, vector<1x272x132xf32>
    %82 = vector.shape_cast %81 : vector<1x272x132xf32> to vector<272x132xf32>
    %cst_89 = arith.constant dense<0.000000e+00> : vector<272x68xf32>
    %83 = tpu.matmul %82, %80, %cst_89 {dimension_numbers = #tpu.dot_dimension_numbers<[1], [0], [0], [1], [0, 0, 1, 1], [], []>} : vector<272x132xf32>, vector<132x68xf32>, vector<272x68xf32> -> vector<272x68xf32>
    %84 = arith.addf %77, %83 : vector<272x68xf32>
    %c0_90 = arith.constant 0 : index
    %c0_91 = arith.constant 0 : index
    %85 = vector.load %arg10[%c0_90, %c0_91] : memref<1x68xf32, #tpu.memory_space<vmem>>, vector<1x68xf32>
    %86 = vector.broadcast %85 : vector<1x68xf32> to vector<272x68xf32>
    %87 = arith.addf %84, %86 : vector<272x68xf32>
    %c0_92 = arith.constant 0 : index
    %c0_93 = arith.constant 0 : index
    %88 = vector.load %arg13[%c0_92, %c0_93] : memref<272x68xf32, #tpu.memory_space<vmem>>, vector<272x68xf32>
    tpu.vector_store %arg13[%c0_92, %c0_93], %87 {strides = array<i32>} : memref<272x68xf32, #tpu.memory_space<vmem>>, vector<272x68xf32>,
    %c0_94 = arith.constant 0 : index
    %c0_95 = arith.constant 0 : index
    %89 = vector.load %arg11[%c0_94, %c0_95] : memref<17x68xf32, #tpu.memory_space<vmem>>, vector<17x68xf32>
    %c0_96 = arith.constant 0 : index
    %c0_97 = arith.constant 0 : index
    %90 = vector.load %arg12[%c0_96, %c0_97] : memref<68x17xf32, #tpu.memory_space<vmem>>, vector<68x17xf32>
    %91 = vector.extract_strided_slice %87 {offsets = [0, 0], sizes = [68, 68], strides = [1, 1]} : vector<272x68xf32> to vector<68x68xf32>
    %cst_98 = arith.constant dense<0.000000e+00> : vector<17x68xf32>
    %92 = tpu.matmul %89, %91, %cst_98 {dimension_numbers = #tpu.dot_dimension_numbers<[1], [0], [0], [1], [0, 0, 1, 1], [], []>} : vector<17x68xf32>, vector<68x68xf32>, vector<17x68xf32> -> vector<17x68xf32>
    %cst_99 = arith.constant dense<0.000000e+00> : vector<17x17xf32>
    %93 = tpu.matmul %92, %90, %cst_99 {dimension_numbers = #tpu.dot_dimension_numbers<[1], [0], [0], [1], [0, 0, 1, 1], [], []>} : vector<17x68xf32>, vector<68x17xf32>, vector<17x17xf32> -> vector<17x17xf32>
    %c0_100 = arith.constant 0 : index
    %c0_101 = arith.constant 0 : index
    %c0_102 = arith.constant 0 : index
    %94 = vector.load %arg14[%c0_100, %c0_101, %c0_102] : memref<4x17x17xf32, #tpu.memory_space<vmem>>, vector<1x17x17xf32>
    %95 = vector.shape_cast %94 : vector<1x17x17xf32> to vector<17x17xf32>
    %96 = vector.shape_cast %93 : vector<17x17xf32> to vector<1x17x17xf32>
    tpu.vector_store %arg14[%c0_100, %c0_101, %c0_102], %96 {strides = array<i32>} : memref<4x17x17xf32, #tpu.memory_space<vmem>>, vector<1x17x17xf32>,
    %97 = vector.extract_strided_slice %87 {offsets = [68, 0], sizes = [68, 68], strides = [1, 1]} : vector<272x68xf32> to vector<68x68xf32>
    %cst_103 = arith.constant dense<0.000000e+00> : vector<17x68xf32>
    %98 = tpu.matmul %89, %97, %cst_103 {dimension_numbers = #tpu.dot_dimension_numbers<[1], [0], [0], [1], [0, 0, 1, 1], [], []>} : vector<17x68xf32>, vector<68x68xf32>, vector<17x68xf32> -> vector<17x68xf32>
    %cst_104 = arith.constant dense<0.000000e+00> : vector<17x17xf32>
    %99 = tpu.matmul %98, %90, %cst_104 {dimension_numbers = #tpu.dot_dimension_numbers<[1], [0], [0], [1], [0, 0, 1, 1], [], []>} : vector<17x68xf32>, vector<68x17xf32>, vector<17x17xf32> -> vector<17x17xf32>
    %c1_105 = arith.constant 1 : index
    %c0_106 = arith.constant 0 : index
    %c0_107 = arith.constant 0 : index
    %100 = vector.load %arg14[%c1_105, %c0_106, %c0_107] : memref<4x17x17xf32, #tpu.memory_space<vmem>>, vector<1x17x17xf32>
    %101 = vector.shape_cast %100 : vector<1x17x17xf32> to vector<17x17xf32>
    %102 = vector.shape_cast %99 : vector<17x17xf32> to vector<1x17x17xf32>
    tpu.vector_store %arg14[%c1_105, %c0_106, %c0_107], %102 {strides = array<i32>} : memref<4x17x17xf32, #tpu.memory_space<vmem>>, vector<1x17x17xf32>,
    %103 = vector.extract_strided_slice %87 {offsets = [136, 0], sizes = [68, 68], strides = [1, 1]} : vector<272x68xf32> to vector<68x68xf32>
    %cst_108 = arith.constant dense<0.000000e+00> : vector<17x68xf32>
    %104 = tpu.matmul %89, %103, %cst_108 {dimension_numbers = #tpu.dot_dimension_numbers<[1], [0], [0], [1], [0, 0, 1, 1], [], []>} : vector<17x68xf32>, vector<68x68xf32>, vector<17x68xf32> -> vector<17x68xf32>
    %cst_109 = arith.constant dense<0.000000e+00> : vector<17x17xf32>
    %105 = tpu.matmul %104, %90, %cst_109 {dimension_numbers = #tpu.dot_dimension_numbers<[1], [0], [0], [1], [0, 0, 1, 1], [], []>} : vector<17x68xf32>, vector<68x17xf32>, vector<17x17xf32> -> vector<17x17xf32>
    %c2_110 = arith.constant 2 : index
    %c0_111 = arith.constant 0 : index
    %c0_112 = arith.constant 0 : index
    %106 = vector.load %arg14[%c2_110, %c0_111, %c0_112] : memref<4x17x17xf32, #tpu.memory_space<vmem>>, vector<1x17x17xf32>
    %107 = vector.shape_cast %106 : vector<1x17x17xf32> to vector<17x17xf32>
    %108 = vector.shape_cast %105 : vector<17x17xf32> to vector<1x17x17xf32>
    tpu.vector_store %arg14[%c2_110, %c0_111, %c0_112], %108 {strides = array<i32>} : memref<4x17x17xf32, #tpu.memory_space<vmem>>, vector<1x17x17xf32>,
    %109 = vector.extract_strided_slice %87 {offsets = [204, 0], sizes = [68, 68], strides = [1, 1]} : vector<272x68xf32> to vector<68x68xf32>
    %cst_113 = arith.constant dense<0.000000e+00> : vector<17x68xf32>
    %110 = tpu.matmul %89, %109, %cst_113 {dimension_numbers = #tpu.dot_dimension_numbers<[1], [0], [0], [1], [0, 0, 1, 1], [], []>} : vector<17x68xf32>, vector<68x68xf32>, vector<17x68xf32> -> vector<17x68xf32>
    %cst_114 = arith.constant dense<0.000000e+00> : vector<17x17xf32>
    %111 = tpu.matmul %110, %90, %cst_114 {dimension_numbers = #tpu.dot_dimension_numbers<[1], [0], [0], [1], [0, 0, 1, 1], [], []>} : vector<17x68xf32>, vector<68x17xf32>, vector<17x17xf32> -> vector<17x17xf32>
    %c3_115 = arith.constant 3 : index
    %c0_116 = arith.constant 0 : index
    %c0_117 = arith.constant 0 : index
    %112 = vector.load %arg14[%c3_115, %c0_116, %c0_117] : memref<4x17x17xf32, #tpu.memory_space<vmem>>, vector<1x17x17xf32>
    %113 = vector.shape_cast %112 : vector<1x17x17xf32> to vector<17x17xf32>
    %114 = vector.shape_cast %111 : vector<17x17xf32> to vector<1x17x17xf32>
    tpu.vector_store %arg14[%c3_115, %c0_116, %c0_117], %114 {strides = array<i32>} : memref<4x17x17xf32, #tpu.memory_space<vmem>>, vector<1x17x17xf32>,
    return
  }
  func.func @transform_0(%arg0: i32) -> (i32, i32) {
    %c0_i32 = arith.constant 0 : i32
    %c0_i32_0 = arith.constant 0 : i32
    return %arg0, %c0_i32 : i32, i32
  }
  func.func @transform_1(%arg0: i32) -> (i32, i32, i32) {
    %c0_i32 = arith.constant 0 : i32
    %c0_i32_0 = arith.constant 0 : i32
    %c0_i32_1 = arith.constant 0 : i32
    %c0_i32_2 = arith.constant 0 : i32
    return %c0_i32, %c0_i32_0, %c0_i32_1 : i32, i32, i32
  }
  func.func @transform_2(%arg0: i32) -> (i32, i32, i32) {
    %c0_i32 = arith.constant 0 : i32
    %c0_i32_0 = arith.constant 0 : i32
    %c0_i32_1 = arith.constant 0 : i32
    %c0_i32_2 = arith.constant 0 : i32
    return %c0_i32, %c0_i32_0, %c0_i32_1 : i32, i32, i32
  }
  func.func @transform_3(%arg0: i32) -> (i32, i32) {
    %c0_i32 = arith.constant 0 : i32
    %c0_i32_0 = arith.constant 0 : i32
    %c0_i32_1 = arith.constant 0 : i32
    return %c0_i32, %c0_i32_0 : i32, i32
  }
  func.func @transform_4(%arg0: i32) -> (i32, i32, i32) {
    %c0_i32 = arith.constant 0 : i32
    %c0_i32_0 = arith.constant 0 : i32
    %c0_i32_1 = arith.constant 0 : i32
    %c0_i32_2 = arith.constant 0 : i32
    return %c0_i32, %c0_i32_0, %c0_i32_1 : i32, i32, i32
  }
  func.func @transform_5(%arg0: i32) -> (i32, i32, i32) {
    %c0_i32 = arith.constant 0 : i32
    %c0_i32_0 = arith.constant 0 : i32
    %c0_i32_1 = arith.constant 0 : i32
    %c0_i32_2 = arith.constant 0 : i32
    return %c0_i32, %c0_i32_0, %c0_i32_1 : i32, i32, i32
  }
  func.func @transform_6(%arg0: i32) -> (i32, i32) {
    %c0_i32 = arith.constant 0 : i32
    %c0_i32_0 = arith.constant 0 : i32
    %c0_i32_1 = arith.constant 0 : i32
    return %c0_i32, %c0_i32_0 : i32, i32
  }
  func.func @transform_7(%arg0: i32) -> (i32, i32, i32) {
    %c0_i32 = arith.constant 0 : i32
    %c0_i32_0 = arith.constant 0 : i32
    %c0_i32_1 = arith.constant 0 : i32
    %c0_i32_2 = arith.constant 0 : i32
    return %c0_i32, %c0_i32_0, %c0_i32_1 : i32, i32, i32
  }
  func.func @transform_8(%arg0: i32) -> (i32, i32, i32) {
    %c0_i32 = arith.constant 0 : i32
    %c0_i32_0 = arith.constant 0 : i32
    %c0_i32_1 = arith.constant 0 : i32
    %c0_i32_2 = arith.constant 0 : i32
    return %c0_i32, %c0_i32_0, %c0_i32_1 : i32, i32, i32
  }
  func.func @transform_9(%arg0: i32) -> (i32, i32) {
    %c0_i32 = arith.constant 0 : i32
    %c0_i32_0 = arith.constant 0 : i32
    %c0_i32_1 = arith.constant 0 : i32
    return %c0_i32, %c0_i32_0 : i32, i32
  }
  func.func @transform_10(%arg0: i32) -> (i32, i32) {
    %c0_i32 = arith.constant 0 : i32
    %c0_i32_0 = arith.constant 0 : i32
    %c0_i32_1 = arith.constant 0 : i32
    return %c0_i32, %c0_i32_0 : i32, i32
  }
  func.func @transform_11(%arg0: i32) -> (i32, i32) {
    %c0_i32 = arith.constant 0 : i32
    %c0_i32_0 = arith.constant 0 : i32
    %c0_i32_1 = arith.constant 0 : i32
    return %c0_i32, %c0_i32_0 : i32, i32
  }
  func.func @transform_12(%arg0: i32) -> (i32, i32) {
    %c0_i32 = arith.constant 0 : i32
    %c0_i32_0 = arith.constant 0 : i32
    return %arg0, %c0_i32 : i32, i32
  }
  func.func @transform_13(%arg0: i32) -> (i32, i32, i32) {
    %c0_i32 = arith.constant 0 : i32
    %c0_i32_0 = arith.constant 0 : i32
    %c0_i32_1 = arith.constant 0 : i32
    return %arg0, %c0_i32, %c0_i32_0 : i32, i32, i32
  }
}

</mosaic_0001>

<bundles_post_ra>
// kernel: net_decoder.1
= control target key start
LH: loop header
LB: loop body
LE: loop exit
PB: predicated region body
PF: predicated region fallthrough
CT: control target
= control target key end

     0   :  { %s21447_s0 = inlined_call_operand.vmem [shape: f32[16,256], index: 0, kind: input, shape index: {}]   ;;  %s21448_s1 = inlined_call_operand.vmem [shape: f32[2,256,128], index: 1, kind: input, shape index: {}]   ;;  %s21449_s2 = inlined_call_operand.vmem [shape: f32[2,32,16], index: 2, kind: input, shape index: {}]   ;;  %s21450_s3 = inlined_call_operand.vmem [shape: f32[1,128], index: 3, kind: input, shape index: {}]   ;;  %s21451_s4 = inlined_call_operand.vmem [shape: f32[5,128,528], index: 4, kind: input, shape index: {}]   ;;  %s21452_s5 = inlined_call_operand.vmem [shape: f32[5,132,32], index: 5, kind: input, shape index: {}]   ;;  %s21453_s6 = inlined_call_operand.vmem [shape: f32[1,528], index: 6, kind: input, shape index: {}]   ;;  %s21454_s7 = inlined_call_operand.vmem [shape: f32[4,528,68], index: 7, kind: input, shape index: {}]   ;;  %s21455_s8 = inlined_call_operand.vmem [shape: f32[4,272,132], index: 8, kind: input, shape index: {}]   ;;  %s21456_s9 = inlined_call_operand.vmem [shape: f32[1,68], index: 9, kind: input, shape index: {}]   ;;  %s21457_s10 = inlined_call_operand.vmem [shape: f32[17,68], index: 10, kind: input, shape index: {}]   ;;  %s21458_s11 = inlined_call_operand.vmem [shape: f32[68,17], index: 11, kind: input, shape index: {}]   ;;  %s21459_s12 = inlined_call_operand.hbm [shape: f32[272,68], index: 12, kind: output, shape index: {0}]   ;;  %s21460_s13 = inlined_call_operand.vmem [shape: f32[4,17,17], index: 13, kind: output, shape index: {1}]  }
   0x1   :  { %v64_v0 = vld [vmem:[%s21448_s1 + $0x80] sm:$0xff]  ;;  %v65_v1 = vld [vmem:[%s21448_s1 + $0x88] sm:$0xff]  ;;  %v66_v11 = vld [vmem:[%s21448_s1 + $0x90] sm:$0xff] }
   0x2   :  { %v10146_v2 = vld [vmem:[%s21448_s1 + $0x180] sm:$0xff]  ;;  %v12876_v3 = vpack.c.bf16 %v65_v1, %v64_v0  ;;  %v10147_v4 = vld [vmem:[%s21448_s1 + $0x188] sm:$0xff]  ;;  %v67_v13 = vld [vmem:[%s21448_s1 + $0x98] sm:$0xff] }
   0x3   :  { %v48_v5 = vld [vmem:[%s21448_s1] sm:$0xff]  ;;  %v49_v6 = vld [vmem:[%s21448_s1 + $0x8] sm:$0xff]  ;;  %v12908_v7 = vpack.c.bf16 %v10147_v4, %v10146_v2  ;;  %v10148_v14 = vld [vmem:[%s21448_s1 + $0x190] sm:$0xff]  ;;  %v12880_v16 = vpack.c.bf16 %v67_v13, %v66_v11 }
   0x4   :  { %v12878_v8 = vpack.c.bf16 %v49_v6, %v48_v5  ;;  %v10130_v9 = vld [vmem:[%s21448_s1 + $0x100] sm:$0xff]  ;;  %v10131_v10 = vld [vmem:[%s21448_s1 + $0x108] sm:$0xff]  ;;  %12877 = vmatprep.subr.bf16.mxu0 %v12876_v3  ;;  %v10149_v15 = vld [vmem:[%s21448_s1 + $0x198] sm:$0xff] }
   0x5   :  { %v12910_v12 = vpack.c.bf16 %v10131_v10, %v10130_v9  ;;  %12909 = vmatprep.subr.bf16.mxu1 %v12908_v7  ;;  %v12912_v17 = vpack.c.bf16 %v10149_v15, %v10148_v14  ;;  %v50_v18 = vld [vmem:[%s21448_s1 + $0x10] sm:$0xff]  ;;  %v51_v19 = vld [vmem:[%s21448_s1 + $0x18] sm:$0xff]  ;;  %v68_v23 = vld [vmem:[%s21448_s1 + $0xa0] sm:$0xff] }
   0x6   :  { %12879 = vmatpush3.bf16.msra.mxu0 %v12878_v8  ;;  %v10132_v20 = vld [vmem:[%s21448_s1 + $0x110] sm:$0xff]  ;;  %v12882_v21 = vpack.c.bf16 %v51_v19, %v50_v18  ;;  %v10133_v22 = vld [vmem:[%s21448_s1 + $0x118] sm:$0xff]  ;;  %v69_v24 = vld [vmem:[%s21448_s1 + $0xa8] sm:$0xff] }
   0x7   :  { %12911 = vmatpush3.bf16.msra.mxu1 %v12910_v12  ;;  %12881 = vmatprep.subr.bf16.mxu0 %v12880_v16  ;;  %v12914_v25 = vpack.c.bf16 %v10133_v22, %v10132_v20  ;;  %v12884_v26 = vpack.c.bf16 %v69_v24, %v68_v23  ;;  %v10150_v27 = vld [vmem:[%s21448_s1 + $0x1a0] sm:$0xff]  ;;  %v10151_v28 = vld [vmem:[%s21448_s1 + $0x1a8] sm:$0xff]  ;;  %v70_v35 = vld [vmem:[%s21448_s1 + $0xb0] sm:$0xff] }
   0x8   :  { %12913 = vmatprep.subr.bf16.mxu1 %v12912_v17  ;;  %v52_v29 = vld [vmem:[%s21448_s1 + $0x20] sm:$0xff]  ;;  %v12916_v30 = vpack.c.bf16 %v10151_v28, %v10150_v27  ;;  %v53_v31 = vld [vmem:[%s21448_s1 + $0x28] sm:$0xff]  ;;  %v71_v36 = vld [vmem:[%s21448_s1 + $0xb8] sm:$0xff] }
   0x9   :  { %v10134_v32 = vld [vmem:[%s21448_s1 + $0x120] sm:$0xff]  ;;  %v10135_v33 = vld [vmem:[%s21448_s1 + $0x128] sm:$0xff]  ;;  %v12886_v34 = vpack.c.bf16 %v53_v31, %v52_v29  ;;  %v10152_v37 = vld [vmem:[%s21448_s1 + $0x1b0] sm:$0xff]  ;;  %v12888_v39 = vpack.c.bf16 %v71_v36, %v70_v35 }
   0xa   :  { %12883 = vmatpush3.bf16.msra.mxu0 %v12882_v21  ;;  %v12918_v38 = vpack.c.bf16 %v10135_v33, %v10134_v32  ;;  %v10153_v40 = vld [vmem:[%s21448_s1 + $0x1b8] sm:$0xff]  ;;  %v54_v41 = vld [vmem:[%s21448_s1 + $0x30] sm:$0xff]  ;;  %v72_v46 = vld [vmem:[%s21448_s1 + $0xc0] sm:$0xff] }
   0xb   :  { %12915 = vmatpush3.bf16.msra.mxu1 %v12914_v25  ;;  %12885 = vmatprep.subr.bf16.mxu0 %v12884_v26  ;;  %v55_v42 = vld [vmem:[%s21448_s1 + $0x38] sm:$0xff]  ;;  %v12920_v43 = vpack.c.bf16 %v10153_v40, %v10152_v37  ;;  %v10136_v44 = vld [vmem:[%s21448_s1 + $0x130] sm:$0xff]  ;;  %v73_v47 = vld [vmem:[%s21448_s1 + $0xc8] sm:$0xff] }
   0xc   :  { %12917 = vmatprep.subr.bf16.mxu1 %v12916_v30  ;;  %v10137_v45 = vld [vmem:[%s21448_s1 + $0x138] sm:$0xff]  ;;  %v10154_v48 = vld [vmem:[%s21448_s1 + $0x1c0] sm:$0xff]  ;;  %v10155_v49 = vld [vmem:[%s21448_s1 + $0x1c8] sm:$0xff]  ;;  %v12890_v50 = vpack.c.bf16 %v55_v42, %v54_v41  ;;  %v12892_v52 = vpack.c.bf16 %v73_v47, %v72_v46 }
   0xd   :  { %v12922_v51 = vpack.c.bf16 %v10137_v45, %v10136_v44  ;;  %v56_v53 = vld [vmem:[%s21448_s1 + $0x40] sm:$0xff]  ;;  %v57_v54 = vld [vmem:[%s21448_s1 + $0x48] sm:$0xff]  ;;  %v12924_v56 = vpack.c.bf16 %v10155_v49, %v10154_v48  ;;  %v74_v58 = vld [vmem:[%s21448_s1 + $0xd0] sm:$0xff] }
   0xe   :  { %12887 = vmatpush3.bf16.msra.mxu0 %v12886_v34  ;;  %v10138_v55 = vld [vmem:[%s21448_s1 + $0x140] sm:$0xff]  ;;  %v10139_v57 = vld [vmem:[%s21448_s1 + $0x148] sm:$0xff]  ;;  %v75_v59 = vld [vmem:[%s21448_s1 + $0xd8] sm:$0xff]  ;;  %v12894_v62 = vpack.c.bf16 %v57_v54, %v56_v53 }
   0xf   :  { %12919 = vmatpush3.bf16.msra.mxu1 %v12918_v38  ;;  %12889 = vmatprep.subr.bf16.mxu0 %v12888_v39  ;;  %v10156_v60 = vld [vmem:[%s21448_s1 + $0x1d0] sm:$0xff]  ;;  %v10157_v61 = vld [vmem:[%s21448_s1 + $0x1d8] sm:$0xff]  ;;  %v12926_v63 = vpack.c.bf16 %v10139_v57, %v10138_v55  ;;  %v12896_v0 = vpack.c.bf16 %v75_v59, %v74_v58  ;;  %v76_v6 = vld [vmem:[%s21448_s1 + $0xe0] sm:$0xff] }
  0x10   :  { %12921 = vmatprep.subr.bf16.mxu1 %v12920_v43  ;;  %v58_v1 = vld [vmem:[%s21448_s1 + $0x50] sm:$0xff]  ;;  %v59_v2 = vld [vmem:[%s21448_s1 + $0x58] sm:$0xff]  ;;  %v12928_v4 = vpack.c.bf16 %v10157_v61, %v10156_v60  ;;  %v77_v7 = vld [vmem:[%s21448_s1 + $0xe8] sm:$0xff] }
  0x11   :  { %v10140_v3 = vld [vmem:[%s21448_s1 + $0x150] sm:$0xff]  ;;  %v10141_v5 = vld [vmem:[%s21448_s1 + $0x158] sm:$0xff]  ;;  %v10158_v8 = vld [vmem:[%s21448_s1 + $0x1e0] sm:$0xff]  ;;  %v12898_v10 = vpack.c.bf16 %v59_v2, %v58_v1  ;;  %v12900_v14 = vpack.c.bf16 %v77_v7, %v76_v6 }
  0x12   :  { %12891 = vmatpush3.bf16.msra.mxu0 %v12890_v50  ;;  %v10159_v9 = vld [vmem:[%s21448_s1 + $0x1e8] sm:$0xff]  ;;  %v60_v11 = vld [vmem:[%s21448_s1 + $0x60] sm:$0xff]  ;;  %v12930_v13 = vpack.c.bf16 %v10141_v5, %v10140_v3  ;;  %v78_v19 = vld [vmem:[%s21448_s1 + $0xf0] sm:$0xff] }
  0x13   :  { %12923 = vmatpush3.bf16.msra.mxu1 %v12922_v51  ;;  %12893 = vmatprep.subr.bf16.mxu0 %v12892_v52  ;;  %v61_v12 = vld [vmem:[%s21448_s1 + $0x68] sm:$0xff]  ;;  %v10142_v15 = vld [vmem:[%s21448_s1 + $0x160] sm:$0xff]  ;;  %v12932_v18 = vpack.c.bf16 %v10159_v9, %v10158_v8  ;;  %v79_v20 = vld [vmem:[%s21448_s1 + $0xf8] sm:$0xff] }
  0x14   :  { %12925 = vmatprep.subr.bf16.mxu1 %v12924_v56  ;;  %v10143_v16 = vld [vmem:[%s21448_s1 + $0x168] sm:$0xff] }
  0x15   :  { %v45_v17 = vld [vmem:[%s21447_s0 + $0x8] sm:$0xff] }
  0x16   :  { %12895 = vmatpush3.bf16.msra.mxu0 %v12894_v62  ;;  %144 = vmatprep.mubr.f32.mxu0 %v45_v17 }
  0x17   :  { %12927 = vmatpush3.bf16.msra.mxu1 %v12926_v63  ;;  %12897 = vmatprep.subr.bf16.mxu0 %v12896_v0 }
  0x18   :  { %12929 = vmatprep.subr.bf16.mxu1 %v12928_v4 }
  0x19   :  { %19 = vsyncpa [#allocation3], 0  ;;  %v10160_v21 = vld [vmem:[%s21448_s1 + $0x1f0] sm:$0xff]  ;;  %v10161_v22 = vld [vmem:[%s21448_s1 + $0x1f8] sm:$0xff]  ;;  %256 = vmatprep.mubr.f32.mxu1 %v45_v17  ;;  %v12902_v23 = vpack.c.bf16 %v61_v12, %v60_v11  ;;  %v12934_v24 = vpack.c.bf16 %v10143_v16, %v10142_v15  ;;  %v12904_v25 = vpack.c.bf16 %v79_v20, %v78_v19  ;;  %vm272_vm0 = vcmask 130048  }
  0x1a   :  { %12899 = vmatpush3.bf16.msra.mxu0 %v12898_v10  ;;  %v62_v26 = vld [vmem:[%s21448_s1 + $0x70] sm:$0xff]  ;;  %v63_v27 = vld [vmem:[%s21448_s1 + $0x78] sm:$0xff]  ;;  %v12936_v28 = vpack.c.bf16 %v10161_v22, %v10160_v21  ;;  %v44_v33 = vld [vmem:[%s21447_s0] sm:$0xff]  ;;  %vm1204_vm1 = vcmask 261120   ;;  %vm14707_vm2 = vmmov 0   ;;  %vm6639_vm3 = vcmask 31744  }
  0x1b   :  { %12931 = vmatpush3.bf16.msra.mxu1 %v12930_v13  ;;  %12901 = vmatprep.subr.bf16.mxu0 %v12900_v14  ;;  %v10144_v29 = vld [vmem:[%s21448_s1 + $0x170] sm:$0xff]  ;;  %v10145_v30 = vld [vmem:[%s21448_s1 + $0x178] sm:$0xff]  ;;  %v12906_v31 = vpack.c.bf16 %v63_v27, %v62_v26  ;;  %v10162_v36 = vld [vmem:[%s21449_s2 + $0x20] sm:$0xff]  ;;  %vm6742_vm4 = vcmask 1043456   ;;  %vm9282_vm5 = vcmask 556032   ;;  %vm9513_vm6 = vcmask 138240  }
  0x1c   :  { %12933 = vmatprep.subr.bf16.mxu1 %v12932_v18  ;;  %v12938_v32 = vpack.c.bf16 %v10145_v30, %v10144_v29  ;;  %v47_v34 = vld [vmem:[%s21447_s0 + $0x18] sm:$0xff]  ;;  %v46_v35 = vld [vmem:[%s21447_s0 + $0x10] sm:$0xff]  ;;  %v155_v37 = vld [vmem:[%s21449_s2] sm:$0xff]  ;;  %vm9516_vm7 = vcmask 131072  }
  0x1d   :  { %v485_v47 = vld [vmem:[%s21451_s4 + $0x18] sm:$0xff]  ;;  %v490_v48 = vld [vmem:[%s21451_s4 + $0x40] sm:$0xff]  ;;  %v483_v51 = vld [vmem:[%s21451_s4 + $0x8] sm:$0xff] }
  0x1e   :  { %12903 = vmatpush3.bf16.msra.mxu0 %v12902_v23  ;;  %v488_v52 = vld [vmem:[%s21451_s4 + $0x30] sm:$0xff]  ;;  %v12980_v55 = vpack.c.bf16 %v490_v48, %v485_v47  ;;  %v482_v58 = vld [vmem:[%s21451_s4] sm:$0xff]  ;;  %v487_v59 = vld [vmem:[%s21451_s4 + $0x28] sm:$0xff] }
  0x1f   :  { %12935 = vmatpush3.bf16.msra.mxu1 %v12934_v24  ;;  %12905 = vmatprep.subr.bf16.mxu0 %v12904_v25  ;;  %v12948_v57 = vpack.c.bf16 %v488_v52, %v483_v51  ;;  %v484_v60 = vld [vmem:[%s21451_s4 + $0x10] sm:$0xff]  ;;  %v489_v61 = vld [vmem:[%s21451_s4 + $0x38] sm:$0xff]  ;;  %v498_v63 = vld [vmem:[%s21451_s4 + $0x80] sm:$0xff]  ;;  %v12950_v6 = vpack.c.bf16 %v487_v59, %v482_v58 }
  0x20   :  { %12937 = vmatprep.subr.bf16.mxu1 %v12936_v28  ;;  %v493_v62 = vld [vmem:[%s21451_s4 + $0x58] sm:$0xff]  ;;  %v156_v0 = vld [vmem:[%s21449_s2 + $0x8] sm:$0xff]  ;;  %v500_v2 = vld [vmem:[%s21451_s4 + $0x90] sm:$0xff]  ;;  %v12982_v7 = vpack.c.bf16 %v489_v61, %v484_v60 }
  0x21   :  { %v495_v1 = vld [vmem:[%s21451_s4 + $0x68] sm:$0xff]  ;;  %v10164_v4 = vld [vmem:[%s21449_s2 + $0x30] sm:$0xff]  ;;  %v12952_v8 = vpack.c.bf16 %v498_v63, %v493_v62  ;;  %v497_v10 = vld [vmem:[%s21451_s4 + $0x78] sm:$0xff] }
  0x22   :  { %12907 = vmatpush3.bf16.msra.mxu0 %v12906_v31  ;;  %v10163_v3 = vld [vmem:[%s21449_s2 + $0x28] sm:$0xff]  ;;  %v157_v5 = vld [vmem:[%s21449_s2 + $0x10] sm:$0xff]  ;;  %v494_v11 = vld [vmem:[%s21451_s4 + $0x60] sm:$0xff]  ;;  %v12984_v12 = vpack.c.bf16 %v500_v2, %v495_v1 }
  0x23   :  { %12939 = vmatpush3.bf16.msra.mxu1 %v12938_v32  ;;  %v492_v9 = vld [vmem:[%s21451_s4 + $0x50] sm:$0xff]  ;;  %v499_v13 = vld [vmem:[%s21451_s4 + $0x88] sm:$0xff]  ;;  %v158_v16 = vld [vmem:[%s21449_s2 + $0x18] sm:$0xff] }
  0x24   :  { %v503_v14 = vld [vmem:[%s21451_s4 + $0xa8] sm:$0xff]  ;;  %v508_v15 = vld [vmem:[%s21451_s4 + $0xd0] sm:$0xff]  ;;  %v505_v17 = vld [vmem:[%s21451_s4 + $0xb8] sm:$0xff]  ;;  %v12954_v20 = vpack.c.bf16 %v497_v10, %v492_v9  ;;  %v12986_v21 = vpack.c.bf16 %v499_v13, %v494_v11 }
  0x25   :  { %145 = vmatmul.mubr.f32.vlgmr.msra.gmra.mrb[0].mxu0 %v44_v33  ;;  %v510_v18 = vld [vmem:[%s21451_s4 + $0xe0] sm:$0xff]  ;;  %v10165_v19 = vld [vmem:[%s21449_s2 + $0x38] sm:$0xff]  ;;  %v12956_v22 = vpack.c.bf16 %v508_v15, %v503_v14  ;;  %v507_v24 = vld [vmem:[%s21451_s4 + $0xc8] sm:$0xff] }
  0x26   :  { %257 = vmatmul.mubr.f32.vlgmr.msra.gmra.mrb[0].mxu1 %v44_v33  ;;  %149 = vmatprep.mubr.f32.mxu0 %v47_v34  ;;  %v502_v23 = vld [vmem:[%s21451_s4 + $0xa0] sm:$0xff]  ;;  %v504_v25 = vld [vmem:[%s21451_s4 + $0xb0] sm:$0xff]  ;;  %v12988_v26 = vpack.c.bf16 %v510_v18, %v505_v17  ;;  %v509_v27 = vld [vmem:[%s21451_s4 + $0xd8] sm:$0xff] }
  0x27   :  { %261 = vmatprep.mubr.f32.mxu1 %v47_v34  ;;  %v513_v28 = vld [vmem:[%s21451_s4 + $0xf8] sm:$0xff]  ;;  %v518_v29 = vld [vmem:[%s21451_s4 + $0x120] sm:$0xff]  ;;  %v515_v30 = vld [vmem:[%s21451_s4 + $0x108] sm:$0xff]  ;;  %v12958_v32 = vpack.c.bf16 %v507_v24, %v502_v23  ;;  %v12990_v33 = vpack.c.bf16 %v509_v27, %v504_v25 }
  0x28   :  { %v520_v31 = vld [vmem:[%s21451_s4 + $0x130] sm:$0xff]  ;;  %v12960_v34 = vpack.c.bf16 %v518_v29, %v513_v28  ;;  %v522_v47 = vld [vmem:[%s21451_s4 + $0x140] sm:$0xff]  ;;  %v527_v48 = vld [vmem:[%s21451_s4 + $0x168] sm:$0xff] }
  0x29   :  { %150 = vmatmul.mubr.f32.gmra.mrb[2].mxu0 %v46_v35  ;;  %v529_v51 = vld [vmem:[%s21451_s4 + $0x178] sm:$0xff]  ;;  %v532_v59 = vld [vmem:[%s21451_s4 + $0x190] sm:$0xff]  ;;  %v534_v61 = vld [vmem:[%s21451_s4 + $0x1a0] sm:$0xff] }
  0x2a   :  { %262 = vmatmul.mubr.f32.gmra.mrb[2].mxu1 %v46_v35  ;;  %11949 = vmatprep.mubr.msk.f32.mxu0 %vm272_vm0, %v155_v37  ;;  %v512_v35 = vld [vmem:[%s21451_s4 + $0xf0] sm:$0xff]  ;;  %v514_v37 = vld [vmem:[%s21451_s4 + $0x100] sm:$0xff]  ;;  %v533_v52 = vld [vmem:[%s21451_s4 + $0x198] sm:$0xff] }
  0x2b   :  { %11939 = vmatprep.mubr.msk.f32.mxu1 %vm272_vm0, %v10162_v36  ;;  %v517_v36 = vld [vmem:[%s21451_s4 + $0x118] sm:$0xff]  ;;  %v539_v63 = vld [vmem:[%s21451_s4 + $0x1c8] sm:$0xff]  ;;  %v548_v1 = vld [vmem:[%s21451_s4 + $0x210] sm:$0xff] }
  0x2c   :  { %v537_v60 = vld [vmem:[%s21451_s4 + $0x1b8] sm:$0xff]  ;;  %v547_v9 = vld [vmem:[%s21451_s4 + $0x208] sm:$0xff]  ;;  %v544_v10 = vld [vmem:[%s21451_s4 + $0x1f0] sm:$0xff] }
  0x2d   :  { %v545_v2 = vld [vmem:[%s21451_s4 + $0x1f8] sm:$0xff]  ;;  %v558_v15 = vld [vmem:[%s21451_s4 + $0x260] sm:$0xff]  ;;  %v560_v18 = vld [vmem:[%s21451_s4 + $0x270] sm:$0xff] }
  0x2e   :  { %v553_v14 = vld [vmem:[%s21451_s4 + $0x238] sm:$0xff]  ;;  %v559_v23 = vld [vmem:[%s21451_s4 + $0x268] sm:$0xff] }
  0x2f   :  { %v12976_v17 = vpack.c.bf16 %v558_v15, %v553_v14  ;;  %v491_v27 = vld [vmem:[%s21451_s4 + $0x48] sm:$0xff]  ;;  %v10205_v15 = vld [vmem:[%s21451_s4 + $0x370] sm:$0xff] }
  0x30   :  { %v10176_v28 = vld [vmem:[%s21451_s4 + $0x288] sm:$0xff] }
  0xf8   :  { %v11502_v38 = vpop.f32.mrb[0].mxu0 }
  0xf9   :  { %v11540_v39 = vpop.f32.mrb[0].mxu1  ;;  %v11503_v40 = vpop.f32.mrb[1].mxu0 }
  0xfa   :  { %v11504_v41 = vadd.f32 %v11503_v40, %v11502_v38  ;;  %v11541_v42 = vpop.f32.mrb[1].mxu1  ;;  %v12992_v38 = vpack.c.bf16 %v520_v31, %v515_v30  ;;  %v523_v40 = vld [vmem:[%s21451_s4 + $0x148] sm:$0xff]  ;;  %v10181_v30 = vld [vmem:[%s21451_s4 + $0x2b0] sm:$0xff] }
  0xfb   :  { %v11542_v43 = vadd.f32 %v11541_v42, %v11540_v39  ;;  %v519_v39 = vld [vmem:[%s21451_s4 + $0x128] sm:$0xff]  ;;  %v525_v42 = vld [vmem:[%s21451_s4 + $0x158] sm:$0xff]  ;;  %v13044_v31 = vpack.c.bf16 %v10181_v30, %v10176_v28 }
  0xfc   :  { %v11505_v44 = vpop.f32.mrb[2].mxu0  ;;  %v10226_v30 = vld [vmem:[%s21451_s4 + $0x418] sm:$0xff] }
  0xfd   :  { %v11543_v45 = vpop.f32.mrb[2].mxu1  ;;  %v11506_v46 = vpop.f32.mrb[3].mxu0 }
  0xfe   :  { %v11507_v49 = vadd.f32 %v11506_v46, %v11505_v44  ;;  %v11544_v50 = vpop.f32.mrb[3].mxu1  ;;  %v12962_v44 = vpack.c.bf16 %v517_v36, %v512_v35 }
  0xff   :  { %v11545_v53 = vadd.f32 %v11544_v50, %v11543_v45  ;;  %v12994_v45 = vpack.c.bf16 %v519_v39, %v514_v37  ;;  %v10174_v37 = vld [vmem:[%s21450_s3] ss:$0 sm:$0xff] }
 0x100   :  { %v12944_v54 = vpack.c.bf16 %v11507_v49, %v11504_v41  ;;  %v528_v41 = vld [vmem:[%s21451_s4 + $0x170] sm:$0xff] }
 0x101   :  { %v12940_v56 = vpack.c.bf16 %v11545_v53, %v11542_v43  ;;  %v530_v43 = vld [vmem:[%s21451_s4 + $0x180] sm:$0xff]  ;;  %v12964_v46 = vpack.c.bf16 %v528_v41, %v523_v40  ;;  %v524_v49 = vld [vmem:[%s21451_s4 + $0x150] sm:$0xff]  ;;  %v10180_v41 = vld [vmem:[%s21451_s4 + $0x2a8] sm:$0xff] }
 0x102   :  { %12945 = vmatprep.subr.bf16.mxu0 %v12944_v54  ;;  %v12996_v50 = vpack.c.bf16 %v530_v43, %v525_v42  ;;  %v538_v53 = vld [vmem:[%s21451_s4 + $0x1c0] sm:$0xff]  ;;  %v496_v43 = vld [vmem:[%s21451_s4 + $0x70] sm:$0xff] }
 0x103   :  { %12941 = vmatprep.subr.bf16.mxu1 %v12940_v56  ;;  %12947 = vmatpush3.bf16.msra.mxu0 %v12944_v54  ;;  %v535_v54 = vld [vmem:[%s21451_s4 + $0x1a8] sm:$0xff]  ;;  %v12968_v58 = vpack.c.bf16 %v538_v53, %v533_v52  ;;  %v10175_v40 = vld [vmem:[%s21451_s4 + $0x280] sm:$0xff] }
 0x104   :  { %12943 = vmatpush3.bf16.msra.mxu1 %v12940_v56  ;;  %12981 = vmatprep.subr.bf16.mxu0 %v12980_v55  ;;  %v540_v55 = vld [vmem:[%s21451_s4 + $0x1d0] sm:$0xff]  ;;  %v12966_v56 = vpack.c.bf16 %v527_v48, %v522_v47  ;;  %v501_v47 = vld [vmem:[%s21451_s4 + $0x98] sm:$0xff] }
 0x105   :  { %12949 = vmatprep.subr.bf16.mxu1 %v12948_v57  ;;  %v12998_v57 = vpack.c.bf16 %v529_v51, %v524_v49  ;;  %v13000_v62 = vpack.c.bf16 %v540_v55, %v535_v54  ;;  %v10186_v48 = vld [vmem:[%s21451_s4 + $0x2d8] sm:$0xff]  ;;  %v10191_v49 = vld [vmem:[%s21451_s4 + $0x300] sm:$0xff]  ;;  %v13046_v51 = vpack.c.bf16 %v10180_v41, %v10175_v40  ;;  %v10236_v40 = vld [vmem:[%s21451_s4 + $0x468] sm:$0xff] }
 0x106   :  { %11950 = vmatmul.mubr.msk.f32.vlgmr.msra.gmra.mrb[4].mxu0 %vm272_vm0, %v156_v0  ;;  %v543_v0 = vld [vmem:[%s21451_s4 + $0x1e8] sm:$0xff]  ;;  %v10241_v41 = vld [vmem:[%s21451_s4 + $0x490] sm:$0xff] }
 0x107   :  { %11940 = vmatmul.mubr.msk.f32.vlgmr.msra.gmra.mrb[4].mxu1 %vm272_vm0, %v10163_v3  ;;  %11952 = vmatprep.mubr.msk.f32.mxu0 %vm272_vm0, %v157_v5  ;;  %v550_v3 = vld [vmem:[%s21451_s4 + $0x220] sm:$0xff]  ;;  %v13002_v5 = vpack.c.bf16 %v539_v63, %v534_v61  ;;  %v511_v61 = vld [vmem:[%s21451_s4 + $0xe8] sm:$0xff] }
 0x108   :  { %11942 = vmatprep.mubr.msk.f32.mxu1 %vm272_vm0, %v10164_v4  ;;  %12951 = vmatpush1.bf16.msra.mxu1 %v12950_v6  ;;  %v12970_v4 = vpack.c.bf16 %v537_v60, %v532_v59  ;;  %v12972_v6 = vpack.c.bf16 %v548_v1, %v543_v0  ;;  %v13048_v59 = vpack.c.bf16 %v10191_v49, %v10186_v48  ;;  %v506_v60 = vld [vmem:[%s21451_s4 + $0xc0] sm:$0xff]  ;;  %v10196_v63 = vld [vmem:[%s21451_s4 + $0x328] sm:$0xff]  ;;  %v10201_v0 = vld [vmem:[%s21451_s4 + $0x350] sm:$0xff] }
 0x109   :  { %12983 = vmatpush1.bf16.msra.mxu0 %v12982_v7  ;;  %12953 = vmatprep.subr.bf16.mxu1 %v12952_v8  ;;  %v13004_v7 = vpack.c.bf16 %v550_v3, %v545_v2  ;;  %v542_v8 = vld [vmem:[%s21451_s4 + $0x1e0] sm:$0xff]  ;;  %v13020_v3 = vpack.c.bf16 %v511_v61, %v506_v60  ;;  %v561_v48 = vld [vmem:[%s21451_s4 + $0x278] sm:$0xff]  ;;  %v10184_v60 = vld [vmem:[%s21451_s4 + $0x2c8] sm:$0xff] }
 0x10a   :  { %11953 = vmatmul.mubr.msk.f32.gmra.mrb[6].mxu0 %vm272_vm0, %v158_v16  ;;  %12985 = vmatprep.subr.bf16.mxu0 %v12984_v12  ;;  %v12974_v11 = vpack.c.bf16 %v547_v9, %v542_v8  ;;  %v549_v12 = vld [vmem:[%s21451_s4 + $0x218] sm:$0xff]  ;;  %v555_v16 = vld [vmem:[%s21451_s4 + $0x248] sm:$0xff] }
 0x10b   :  { %11943 = vmatmul.mubr.msk.f32.gmra.mrb[6].mxu1 %vm272_vm0, %v10165_v19  ;;  %v13006_v13 = vpack.c.bf16 %v549_v12, %v544_v10  ;;  %v552_v19 = vld [vmem:[%s21451_s4 + $0x230] sm:$0xff]  ;;  %v521_v8 = vld [vmem:[%s21451_s4 + $0x138] sm:$0xff]  ;;  %v10211_v12 = vld [vmem:[%s21451_s4 + $0x3a0] sm:$0xff] }
 0x10c   :  { %12955 = vmatpush1.bf16.msra.mxu1 %v12954_v20  ;;  %v13008_v20 = vpack.c.bf16 %v560_v18, %v555_v16  ;;  %v10210_v16 = vld [vmem:[%s21451_s4 + $0x398] sm:$0xff]  ;;  %v526_v18 = vld [vmem:[%s21451_s4 + $0x160] sm:$0xff] }
 0x10d   :  { %12987 = vmatpush1.bf16.msra.mxu0 %v12986_v21  ;;  %12957 = vmatprep.subr.bf16.mxu1 %v12956_v22  ;;  %v557_v21 = vld [vmem:[%s21451_s4 + $0x258] sm:$0xff]  ;;  %v554_v22 = vld [vmem:[%s21451_s4 + $0x240] sm:$0xff] }
 0x10e   :  { %12989 = vmatprep.subr.bf16.mxu0 %v12988_v26  ;;  %v12978_v24 = vpack.c.bf16 %v557_v21, %v552_v19  ;;  %v13010_v25 = vpack.c.bf16 %v559_v23, %v554_v22  ;;  %v486_v26 = vld [vmem:[%s21451_s4 + $0x20] sm:$0xff]  ;;  %v531_v19 = vld [vmem:[%s21451_s4 + $0x188] sm:$0xff]  ;;  %v10221_v22 = vld [vmem:[%s21451_s4 + $0x3f0] sm:$0xff]  ;;  %v13058_v23 = vpack.c.bf16 %v10210_v16, %v10205_v15 }
 0x10f   :  { %v13012_v29 = vpack.c.bf16 %v491_v27, %v486_v26  ;;  %v10216_v21 = vld [vmem:[%s21451_s4 + $0x3c8] sm:$0xff]  ;;  %v536_v27 = vld [vmem:[%s21451_s4 + $0x1b0] sm:$0xff]  ;;  %v10246_v49 = vld [vmem:[%s21451_s4 + $0x4b8] sm:$0xff] }
 0x110   :  { %12959 = vmatpush1.bf16.msra.mxu1 %v12958_v32  ;;  %v21461_v32 = vmov 0.0   ;;  %v10220_v26 = vld [vmem:[%s21451_s4 + $0x3e8] sm:$0xff]  ;;  %v13060_v28 = vpack.c.bf16 %v10221_v22, %v10216_v21  ;;  %v10199_v15 = vld [vmem:[%s21451_s4 + $0x340] sm:$0xff]  ;;  %v10202_v21 = vld [vmem:[%s21451_s4 + $0x358] sm:$0xff] }
 0x111   :  { %12991 = vmatpush1.bf16.msra.mxu0 %v12990_v33  ;;  %12961 = vmatprep.subr.bf16.mxu1 %v12960_v34  ;;  %v10204_v16 = vld [vmem:[%s21451_s4 + $0x368] sm:$0xff] }
 0x112   :  { %12993 = vmatprep.subr.bf16.mxu0 %v12992_v38  ;;  %626 = vmatprep.mubr.f32.mxu1 %v21461_v32  ;;  %v13116_v22 = vpack.c.bf16 %v10204_v16, %v10199_v15 }
 0x113   :  { %715 = vmatprep.mubr.f32.mxu0 %v21461_v32 }
 0x114   :  { %12963 = vmatpush1.bf16.msra.mxu1 %v12962_v44 }
 0x115   :  { %12995 = vmatpush1.bf16.msra.mxu0 %v12994_v45  ;;  %12965 = vmatprep.subr.bf16.mxu1 %v12964_v46 }
 0x116   :  { %12997 = vmatprep.subr.bf16.mxu0 %v12996_v50 }
 0x118   :  { %12967 = vmatpush1.bf16.msra.mxu1 %v12966_v56  ;;  %v10185_v56 = vld [vmem:[%s21451_s4 + $0x2d0] sm:$0xff] }
 0x119   :  { %12999 = vmatpush1.bf16.msra.mxu0 %v12998_v57  ;;  %12969 = vmatprep.subr.bf16.mxu1 %v12968_v58  ;;  %v10190_v57 = vld [vmem:[%s21451_s4 + $0x2f8] sm:$0xff]  ;;  %v13016_v58 = vpack.c.bf16 %v501_v47, %v496_v43  ;;  %v556_v47 = vld [vmem:[%s21451_s4 + $0x250] sm:$0xff] }
 0x11a   :  { %13001 = vmatprep.subr.bf16.mxu0 %v13000_v62  ;;  %v13050_v1 = vpack.c.bf16 %v10190_v57, %v10185_v56  ;;  %v10250_v56 = vld [vmem:[%s21451_s4 + $0x4d8] sm:$0xff] }
 0x11b   :  { %v10178_v57 = vld [vmem:[%s21451_s4 + $0x298] sm:$0xff] }
 0x11c   :  { %12971 = vmatpush1.bf16.msra.mxu1 %v12970_v4  ;;  %v10195_v4 = vld [vmem:[%s21451_s4 + $0x320] sm:$0xff] }
 0x11d   :  { %13003 = vmatpush1.bf16.msra.mxu0 %v13002_v5  ;;  %12973 = vmatprep.subr.bf16.mxu1 %v12972_v6  ;;  %v10200_v5 = vld [vmem:[%s21451_s4 + $0x348] sm:$0xff]  ;;  %v13052_v6 = vpack.c.bf16 %v10201_v0, %v10196_v63  ;;  %v10177_v0 = vld [vmem:[%s21451_s4 + $0x290] sm:$0xff] }
 0x11e   :  { %13005 = vmatprep.subr.bf16.mxu0 %v13004_v7  ;;  %v516_v7 = vld [vmem:[%s21451_s4 + $0x110] sm:$0xff] }
 0x11f   :  { %v13024_v14 = vpack.c.bf16 %v521_v8, %v516_v7  ;;  %v10187_v8 = vld [vmem:[%s21451_s4 + $0x2e0] sm:$0xff] }
 0x120   :  { %12975 = vmatpush1.bf16.msra.mxu1 %v12974_v11  ;;  %v10206_v11 = vld [vmem:[%s21451_s4 + $0x378] sm:$0xff] }
 0x121   :  { %13007 = vmatpush1.bf16.msra.mxu0 %v13006_v13  ;;  %12977 = vmatprep.subr.bf16.mxu1 %v12976_v17  ;;  %v13054_v13 = vpack.c.bf16 %v10200_v5, %v10195_v4  ;;  %v13056_v17 = vpack.c.bf16 %v10211_v12, %v10206_v11  ;;  %v10193_v4 = vld [vmem:[%s21451_s4 + $0x310] sm:$0xff] }
 0x122   :  { %13009 = vmatprep.subr.bf16.mxu0 %v13008_v20  ;;  %v10189_v5 = vld [vmem:[%s21451_s4 + $0x2f0] sm:$0xff] }
 0x124   :  { %12979 = vmatpush1.bf16.msra.mxu1 %v12978_v24  ;;  %v13028_v24 = vpack.c.bf16 %v531_v19, %v526_v18  ;;  %v10197_v19 = vld [vmem:[%s21451_s4 + $0x330] sm:$0xff] }
 0x125   :  { %13011 = vmatpush1.bf16.msra.mxu0 %v13010_v25  ;;  %13013 = vmatprep.subr.bf16.mxu1 %v13012_v29  ;;  %v10215_v25 = vld [vmem:[%s21451_s4 + $0x3c0] sm:$0xff] }
 0x126   :  { %13045 = vmatprep.subr.bf16.mxu0 %v13044_v31  ;;  %v10231_v31 = vld [vmem:[%s21451_s4 + $0x440] sm:$0xff] }
 0x1d9   :  { %v11951_v33 = vpop.f32.mrb[4].mxu0 }
 0x1da   :  { %v11941_v34 = vpop.f32.mrb[4].mxu1  ;;  %v448_v35 = vpop.f32.mrb[5].mxu0 }
 0x1db   :  { %v454_v36 = vadd.f32 %v11951_v33, %v11941_v34  ;;  %v351_v38 = vpop.f32.mrb[5].mxu1  ;;  %v13062_v33 = vpack.c.bf16 %v10220_v26, %v10215_v25  ;;  %v10209_v25 = vld [vmem:[%s21451_s4 + $0x390] sm:$0xff]  ;;  %v10214_v26 = vld [vmem:[%s21451_s4 + $0x3b8] sm:$0xff] }
 0x1dc   :  { %v449_v39 = vadd.f32 %v448_v35, %v351_v38  ;;  %v13064_v35 = vpack.c.bf16 %v10231_v31, %v10226_v30  ;;  %v546_v38 = vld [vmem:[%s21451_s4 + $0x200] sm:$0xff]  ;;  %v10212_v30 = vld [vmem:[%s21451_s4 + $0x3a8] sm:$0xff]  ;;  %v13120_v31 = vpack.c.bf16 %v10214_v26, %v10209_v25 }
 0x1dd   :  { %v11954_v42 = vpop.f32.mrb[6].mxu0  ;;  %v475_v53 = vadd.f32 %v10174_v37, %v454_v36  ;;  %v10225_v36 = vld [vmem:[%s21451_s4 + $0x410] sm:$0xff] }
 0x1de   :  { %v474_v44 = vadd.f32 %v10174_v37, %v449_v39  ;;  %v11944_v45 = vpop.f32.mrb[6].mxu1  ;;  %v458_v46 = vpop.f32.mrb[7].mxu0  ;;  %v551_v39 = vld [vmem:[%s21451_s4 + $0x228] sm:$0xff] }
 0x1df   :  { %v464_v50 = vadd.f32 %v11954_v42, %v11944_v45  ;;  %v361_v52 = vpop.f32.mrb[7].mxu1  ;;  %v15266_v2 = vmax.f32 %v475_v53, 0.0  ;;  %v13036_v43 = vpack.c.bf16 %v551_v39, %v546_v38  ;;  %v10235_v45 = vld [vmem:[%s21451_s4 + $0x460] sm:$0xff]  ;;  %v10217_v39 = vld [vmem:[%s21451_s4 + $0x3d0] sm:$0xff] }
 0x1e0   :  { %v15244_v54 = vmax.f32 %v474_v44, 0.0  ;;  %v459_v55 = vadd.f32 %v458_v46, %v361_v52  ;;  %v13068_v44 = vpack.c.bf16 %v10241_v41, %v10236_v40  ;;  %v10240_v46 = vld [vmem:[%s21451_s4 + $0x488] sm:$0xff]  ;;  %v13040_v52 = vpack.c.bf16 %v561_v48, %v556_v47  ;;  %v10222_v40 = vld [vmem:[%s21451_s4 + $0x3f8] sm:$0xff]  ;;  %v10227_v48 = vld [vmem:[%s21451_s4 + $0x420] sm:$0xff] }
 0x1e1   :  { %v477_v9 = vadd.f32 %v10174_v37, %v464_v50  ;;  %v10251_v50 = vld [vmem:[%s21451_s4 + $0x4e0] sm:$0xff] }
 0x1e2   :  { %627 = vmatmul.mubr.f32.vlgmr.msra.gmra.mrb[8].mxu1 %v15244_v54  ;;  %716 = vmatmul.mubr.f32.vlgmr.msra.gmra.mrb[8].mxu0 %v15244_v54  ;;  %v476_v62 = vadd.f32 %v10174_v37, %v459_v55  ;;  %v10230_v37 = vld [vmem:[%s21451_s4 + $0x438] sm:$0xff]  ;;  %v13072_v53 = vpack.c.bf16 %v10251_v50, %v10246_v49  ;;  %v10245_v55 = vld [vmem:[%s21451_s4 + $0x4b0] sm:$0xff]  ;;  %v10232_v49 = vld [vmem:[%s21451_s4 + $0x448] sm:$0xff] }
 0x1e3   :  { %13015 = vmatpush3.bf16.msra.mxu1 %v13012_v29  ;;  %13047 = vmatpush1.bf16.msra.mxu0 %v13046_v51  ;;  %v15306_v20 = vmax.f32 %v477_v9, 0.0  ;;  %v541_v29 = vld [vmem:[%s21451_s4 + $0x1d8] sm:$0xff]  ;;  %v13066_v42 = vpack.c.bf16 %v10230_v37, %v10225_v36  ;;  %v13070_v51 = vpack.c.bf16 %v10240_v46, %v10235_v45  ;;  %v13074_v61 = vpack.c.bf16 %v10250_v56, %v10245_v55  ;;  %v10192_v9 = vld [vmem:[%s21451_s4 + $0x308] sm:$0xff] }
 0x1e4   :  { %632 = vmatprep.mubr.f32.mxu1 %v21461_v32  ;;  %721 = vmatprep.mubr.f32.mxu0 %v21461_v32  ;;  %v15282_v10 = vmax.f32 %v476_v62, 0.0  ;;  %v13032_v34 = vpack.c.bf16 %v541_v29, %v536_v27  ;;  %v13086_v27 = vpack.c.bf16 %v10202_v21, %v10197_v19  ;;  %v10207_v29 = vld [vmem:[%s21451_s4 + $0x380] sm:$0xff]  ;;  %v10224_v36 = vld [vmem:[%s21451_s4 + $0x408] sm:$0xff]  ;;  %v10234_v45 = vld [vmem:[%s21451_s4 + $0x458] sm:$0xff]  ;;  %v13094_v46 = vpack.c.bf16 %v10222_v40, %v10217_v39 }
 0x1e5   :  { %13017 = vmatprep.subr.bf16.mxu1 %v13016_v58  ;;  %13049 = vmatprep.subr.bf16.mxu0 %v13048_v59  ;;  %v10179_v59 = vld [vmem:[%s21451_s4 + $0x2a0] sm:$0xff]  ;;  %v13090_v37 = vpack.c.bf16 %v10212_v30, %v10207_v29  ;;  %v10244_v55 = vld [vmem:[%s21451_s4 + $0x4a8] sm:$0xff]  ;;  %v13098_v56 = vpack.c.bf16 %v10232_v49, %v10227_v48 }
 0x1e6   :  { %633 = vmatmul.mubr.f32.gmra.mrb[10].mxu1 %v15266_v2  ;;  %722 = vmatmul.mubr.f32.gmra.mrb[10].mxu0 %v15266_v2  ;;  %v13108_v63 = vpack.c.bf16 %v10184_v60, %v10179_v59  ;;  %v10242_v59 = vld [vmem:[%s21451_s4 + $0x498] sm:$0xff] }
 0x1e7   :  { %13019 = vmatpush3.bf16.msra.mxu1 %v13016_v58  ;;  %13051 = vmatpush1.bf16.msra.mxu0 %v13050_v1  ;;  %v10183_v58 = vld [vmem:[%s21451_s4 + $0x2c0] sm:$0xff]  ;;  %v10182_v1 = vld [vmem:[%s21451_s4 + $0x2b8] sm:$0xff] }
 0x1e8   :  { %638 = vmatprep.mubr.f32.mxu1 %v21461_v32  ;;  %13021 = vmatprep.subr.bf16.mxu1 %v13020_v3  ;;  %v13076_v62 = vpack.c.bf16 %v10183_v58, %v10178_v57  ;;  %v13078_v7 = vpack.c.bf16 %v10182_v1, %v10177_v0  ;;  %v10237_v58 = vld [vmem:[%s21451_s4 + $0x470] sm:$0xff]  ;;  %v10254_v0 = vld [vmem:[%s21451_s4 + $0x4f8] sm:$0xff] }
 0x1e9   :  { %13053 = vmatprep.subr.bf16.mxu0 %v13052_v6  ;;  %727 = vmatprep.mubr.f32.mxu0 %v21461_v32  ;;  %v10194_v6 = vld [vmem:[%s21451_s4 + $0x318] sm:$0xff]  ;;  %v13102_v1 = vpack.c.bf16 %v10242_v59, %v10237_v58  ;;  %v15638_v58 = vld [vmem:[%s21452_s5 + $0xa0] sm:$0xff] }
 0x1ea   :  { %639 = vmatmul.mubr.f32.gmra.mrb[12].mxu1 %v15282_v10  ;;  %728 = vmatmul.mubr.f32.gmra.mrb[12].mxu0 %v15282_v10  ;;  %v13112_v12 = vpack.c.bf16 %v10194_v6, %v10189_v5  ;;  %v10252_v5 = vld [vmem:[%s21451_s4 + $0x4e8] sm:$0xff] }
 0x1eb   :  { %13023 = vmatpush3.bf16.msra.mxu1 %v13020_v3  ;;  %13055 = vmatpush1.bf16.msra.mxu0 %v13054_v13  ;;  %v10188_v3 = vld [vmem:[%s21451_s4 + $0x2e8] sm:$0xff]  ;;  %v10198_v13 = vld [vmem:[%s21451_s4 + $0x338] sm:$0xff] }
 0x1ec   :  { %644 = vmatprep.mubr.f32.mxu1 %v21461_v32  ;;  %13025 = vmatprep.subr.bf16.mxu1 %v13024_v14  ;;  %v13080_v11 = vpack.c.bf16 %v10193_v4, %v10188_v3  ;;  %v10247_v4 = vld [vmem:[%s21451_s4 + $0x4c0] sm:$0xff] }
 0x1ed   :  { %13057 = vmatprep.subr.bf16.mxu0 %v13056_v17  ;;  %733 = vmatprep.mubr.f32.mxu0 %v21461_v32  ;;  %v13082_v17 = vpack.c.bf16 %v10192_v9, %v10187_v8 }
 0x1ee   :  { %645 = vmatmul.mubr.f32.gmra.mrb[14].mxu1 %v15306_v20  ;;  %734 = vmatmul.mubr.f32.gmra.mrb[14].mxu0 %v15306_v20 }
 0x1ef   :  { %13027 = vmatpush3.bf16.msra.mxu1 %v13024_v14  ;;  %13059 = vmatpush1.bf16.msra.mxu0 %v13058_v23  ;;  %v10203_v14 = vld [vmem:[%s21451_s4 + $0x360] sm:$0xff]  ;;  %v10208_v23 = vld [vmem:[%s21451_s4 + $0x388] sm:$0xff] }
 0x1f0   :  { %11987 = vmatprep.mubr.f32.mxu1 %v15244_v54  ;;  %13029 = vmatprep.subr.bf16.mxu1 %v13028_v24  ;;  %v13084_v18 = vpack.c.bf16 %v10203_v14, %v10198_v13 }
 0x1f1   :  { %13061 = vmatprep.subr.bf16.mxu0 %v13060_v28  ;;  %987 = vmatprep.mubr.f32.mxu0 %v21461_v32 }
 0x1f3   :  { %13031 = vmatpush3.bf16.msra.mxu1 %v13028_v24  ;;  %13063 = vmatpush1.bf16.msra.mxu0 %v13062_v33  ;;  %v10213_v24 = vld [vmem:[%s21451_s4 + $0x3b0] sm:$0xff]  ;;  %v10218_v33 = vld [vmem:[%s21451_s4 + $0x3d8] sm:$0xff] }
 0x1f4   :  { %13033 = vmatprep.subr.bf16.mxu1 %v13032_v34  ;;  %13065 = vmatprep.subr.bf16.mxu0 %v13064_v35  ;;  %v13088_v28 = vpack.c.bf16 %v10213_v24, %v10208_v23  ;;  %v10219_v35 = vld [vmem:[%s21451_s4 + $0x3e0] sm:$0xff] }
 0x1f5   :  { %v13124_v41 = vpack.c.bf16 %v10224_v36, %v10219_v35 }
 0x1f7   :  { %13035 = vmatpush3.bf16.msra.mxu1 %v13032_v34  ;;  %13067 = vmatpush1.bf16.msra.mxu0 %v13066_v42  ;;  %v10223_v34 = vld [vmem:[%s21451_s4 + $0x400] sm:$0xff]  ;;  %v10228_v42 = vld [vmem:[%s21451_s4 + $0x428] sm:$0xff] }
 0x1f8   :  { %13037 = vmatprep.subr.bf16.mxu1 %v13036_v43  ;;  %13069 = vmatprep.subr.bf16.mxu0 %v13068_v44  ;;  %v13092_v38 = vpack.c.bf16 %v10223_v34, %v10218_v33  ;;  %v10229_v44 = vld [vmem:[%s21451_s4 + $0x430] sm:$0xff] }
 0x1f9   :  { %v13128_v50 = vpack.c.bf16 %v10234_v45, %v10229_v44 }
 0x1fb   :  { %13039 = vmatpush3.bf16.msra.mxu1 %v13036_v43  ;;  %13071 = vmatpush1.bf16.msra.mxu0 %v13070_v51  ;;  %v10233_v43 = vld [vmem:[%s21451_s4 + $0x450] sm:$0xff]  ;;  %v10238_v51 = vld [vmem:[%s21451_s4 + $0x478] sm:$0xff] }
 0x1fc   :  { %13041 = vmatprep.subr.bf16.mxu1 %v13040_v52  ;;  %13073 = vmatprep.subr.bf16.mxu0 %v13072_v53  ;;  %v13096_v47 = vpack.c.bf16 %v10233_v43, %v10228_v42  ;;  %v10239_v53 = vld [vmem:[%s21451_s4 + $0x480] sm:$0xff] }
 0x1fd   :  { %v13132_v60 = vpack.c.bf16 %v10244_v55, %v10239_v53  ;;  %v15613_v53 = vld [vmem:[%s21452_s5 + $0x88] sm:$0xff]  ;;  %v21463_v55 = vmov 0.0|0.0  }
 0x1ff   :  { %13043 = vmatpush3.bf16.msra.mxu1 %v13040_v52  ;;  %13075 = vmatpush1.bf16.msra.mxu0 %v13074_v61  ;;  %v10243_v52 = vld [vmem:[%s21451_s4 + $0x4a0] sm:$0xff]  ;;  %v10248_v61 = vld [vmem:[%s21451_s4 + $0x4c8] sm:$0xff] }
 0x200   :  { %13077 = vmatprep.subr.bf16.mxu1 %v13076_v62  ;;  %13109 = vmatprep.subr.bf16.mxu0 %v13108_v63  ;;  %v13100_v57 = vpack.c.bf16 %v10243_v52, %v10238_v51  ;;  %v10253_v62 = vld [vmem:[%s21451_s4 + $0x4f0] sm:$0xff] }
 0x201   :  { %v13104_v3 = vpack.c.bf16 %v10253_v62, %v10248_v61  ;;  %v15646_v62 = vld [vmem:[%s21452_s5 + $0xa8] sm:$0xff] }
 0x202   :  { %11988 = vmatmul.mubr.f32.vlgmr.msra.gmra.mrb[16].mxu1 %v15266_v2  ;;  %988 = vmatmul.mubr.f32.vlgmr.msra.gmra.mrb[16].mxu0 %v15244_v54 }
 0x203   :  { %11990 = vmatprep.mubr.f32.mxu1 %v15282_v10  ;;  %13079 = vmatpush1.bf16.msra.mxu1 %v13078_v7  ;;  %v13106_v7 = vpack.c.bf16 %v10252_v5, %v10247_v4  ;;  %v15654_v5 = vld [vmem:[%s21452_s5 + $0xb0] sm:$0xff] }
 0x204   :  { %13111 = vmatpush3.bf16.msra.mxu0 %v13108_v63  ;;  %993 = vmatprep.mubr.f32.mxu0 %v21461_v32  ;;  %v10249_v63 = vld [vmem:[%s21451_s4 + $0x4d0] sm:$0xff] }
 0x205   :  { %13081 = vmatprep.subr.bf16.mxu1 %v13080_v11  ;;  %13113 = vmatprep.subr.bf16.mxu0 %v13112_v12  ;;  %v13136_v6 = vpack.c.bf16 %v10254_v0, %v10249_v63 }
 0x206   :  { %11991 = vmatmul.mubr.f32.gmra.mrb[18].mxu1 %v15306_v20  ;;  %994 = vmatmul.mubr.f32.gmra.mrb[18].mxu0 %v15266_v2 }
 0x207   :  { %13083 = vmatpush1.bf16.msra.mxu1 %v13082_v17  ;;  %999 = vmatprep.mubr.f32.mxu0 %v21461_v32 }
 0x208   :  { %13115 = vmatpush3.bf16.msra.mxu0 %v13112_v12  ;;  %13085 = vmatprep.subr.bf16.mxu1 %v13084_v18 }
 0x209   :  { %13117 = vmatprep.subr.bf16.mxu0 %v13116_v22  ;;  %1076 = vmatprep.mubr.f32.mxu1 %v21461_v32 }
 0x20a   :  { %1000 = vmatmul.mubr.f32.gmra.mrb[20].mxu0 %v15282_v10 }
 0x20b   :  { %13087 = vmatpush1.bf16.msra.mxu1 %v13086_v27  ;;  %1005 = vmatprep.mubr.f32.mxu0 %v21461_v32 }
 0x20c   :  { %13119 = vmatpush3.bf16.msra.mxu0 %v13116_v22  ;;  %13089 = vmatprep.subr.bf16.mxu1 %v13088_v28 }
 0x20d   :  { %13121 = vmatprep.subr.bf16.mxu0 %v13120_v31 }
 0x20e   :  { %1006 = vmatmul.mubr.f32.gmra.mrb[22].mxu0 %v15306_v20 }
 0x20f   :  { %13091 = vmatpush1.bf16.msra.mxu1 %v13090_v37  ;;  %12025 = vmatprep.mubr.f32.mxu0 %v15244_v54 }
 0x210   :  { %13123 = vmatpush3.bf16.msra.mxu0 %v13120_v31  ;;  %13093 = vmatprep.subr.bf16.mxu1 %v13092_v38 }
 0x211   :  { %13125 = vmatprep.subr.bf16.mxu0 %v13124_v41 }
 0x213   :  { %13095 = vmatpush1.bf16.msra.mxu1 %v13094_v46 }
 0x214   :  { %13127 = vmatpush3.bf16.msra.mxu0 %v13124_v41  ;;  %13097 = vmatprep.subr.bf16.mxu1 %v13096_v47 }
 0x215   :  { %13129 = vmatprep.subr.bf16.mxu0 %v13128_v50 }
 0x217   :  { %13099 = vmatpush1.bf16.msra.mxu1 %v13098_v56  ;;  %v15622_v56 = vld [vmem:[%s21452_s5 + $0x90] sm:$0xff] }
 0x218   :  { %13131 = vmatpush3.bf16.msra.mxu0 %v13128_v50  ;;  %13101 = vmatprep.subr.bf16.mxu1 %v13100_v57  ;;  %v15630_v57 = vld [vmem:[%s21452_s5 + $0x98] sm:$0xff] }
 0x219   :  { %13133 = vmatprep.subr.bf16.mxu0 %v13132_v60 }
 0x21b   :  { %13103 = vmatpush1.bf16.msra.mxu1 %v13102_v1 }
 0x21c   :  { %13135 = vmatpush3.bf16.msra.mxu0 %v13132_v60  ;;  %13105 = vmatprep.subr.bf16.mxu1 %v13104_v3 }
 0x21d   :  { %13137 = vmatprep.subr.bf16.mxu0 %v13136_v6 }
 0x21f   :  { %13107 = vmatpush1.bf16.msra.mxu1 %v13106_v7 }
 0x220   :  { %13139 = vmatpush3.bf16.msra.mxu0 %v13136_v6 }
 0x222   :  { %1077 = vmatmul.mubr.f32.vlgmr.msra.gmra.mrb[20].mxu1 %v15244_v54 }
 0x223   :  { %12026 = vmatmul.mubr.f32.vlgmr.msra.gmra.mrb[24].mxu0 %v15266_v2  ;;  %1082 = vmatprep.mubr.f32.mxu1 %v21461_v32 }
 0x224   :  { %12028 = vmatprep.mubr.f32.mxu0 %v15282_v10 }
 0x226   :  { %1083 = vmatmul.mubr.f32.gmra.mrb[22].mxu1 %v15266_v2 }
 0x227   :  { %12029 = vmatmul.mubr.f32.gmra.mrb[26].mxu0 %v15306_v20  ;;  %1088 = vmatprep.mubr.f32.mxu1 %v21461_v32 }
 0x228   :  { %1487 = vmatprep.mubr.f32.mxu0 %v21461_v32 }
 0x22a   :  { %1089 = vmatmul.mubr.f32.gmra.mrb[24].mxu1 %v15282_v10 }
 0x22b   :  { %1094 = vmatprep.mubr.f32.mxu1 %v21461_v32 }
 0x22e   :  { %1095 = vmatmul.mubr.f32.gmra.mrb[26].mxu1 %v15306_v20 }
 0x22f   :  { %1320 = vmatprep.mubr.f32.mxu1 %v21461_v32 }
 0x2b5   :  { %v15550_v8 = vpop.f32.mrb[8].mxu1  ;;  %v15552_v9 = vpop.f32.mrb[8].mxu0 }
 0x2b6   :  { %v15554_v11 = vpop.f32.mrb[9].mxu1  ;;  %v15556_v12 = vpop.f32.mrb[9].mxu0 }
 0x2b9   :  { %v15558_v13 = vpop.f32.mrb[10].mxu1  ;;  %v15560_v14 = vpop.f32.mrb[10].mxu0 }
 0x2ba   :  { %v13172_v15 = vpack.c.bf16 %v15560_v14, %v15552_v9  ;;  %v15564_v16 = vpop.f32.mrb[11].mxu1  ;;  %v15566_v17 = vpop.f32.mrb[11].mxu0  ;;  %v13164_v18 = vpack.c.bf16 %v15558_v13, %v15550_v8  ;;  %v15715_v9 = vld [vmem:[%s21452_s5 + $0xd8] sm:$0xff]  ;;  %v15739_v14 = vld [vmem:[%s21452_s5 + $0xe8] sm:$0xff]  ;;  %v15866_v8 = vld [vmem:[%s21452_s5] sm:$0xff] }
 0x2bb   :  { %v13170_v19 = vpack.c.bf16 %v15566_v17, %v15556_v12  ;;  %v13162_v21 = vpack.c.bf16 %v15564_v16, %v15554_v11  ;;  %v15682_v11 = vld [vmem:[%s21452_s5 + $0xc8] sm:$0xff]  ;;  %v15698_v16 = vld [vmem:[%s21452_s5 + $0xd0] sm:$0xff]  ;;  %v15728_v12 = vld [vmem:[%s21452_s5 + $0xe0] sm:$0xff] }
 0x2bc   :  { %v15761_v17 = vld [vmem:[%s21452_s5 + $0xf8] sm:$0xff] }
 0x2bd   :  { %v15574_v22 = vpop.f32.mrb[12].mxu1  ;;  %v15576_v23 = vpop.f32.mrb[12].mxu0  ;;  %v10377_v13 = vld [vmem:[%s21451_s4 + $0x518] sm:$0xff] }
 0x2be   :  { %v15578_v24 = vpop.f32.mrb[13].mxu1  ;;  %v15580_v25 = vpop.f32.mrb[13].mxu0 }
 0x2c1   :  { %v15582_v26 = vpop.f32.mrb[14].mxu1  ;;  %v15584_v27 = vpop.f32.mrb[14].mxu0 }
 0x2c2   :  { %v13176_v28 = vpack.c.bf16 %v15584_v27, %v15576_v23  ;;  %v15588_v29 = vpop.f32.mrb[15].mxu1  ;;  %v15590_v30 = vpop.f32.mrb[15].mxu0  ;;  %v13168_v31 = vpack.c.bf16 %v15582_v26, %v15574_v22  ;;  %v10375_v23 = vld [vmem:[%s21451_s4 + $0x508] sm:$0xff]  ;;  %v15902_v26 = vld [vmem:[%s21452_s5 + $0x10] sm:$0xff] }
 0x2c3   :  { %v13174_v33 = vpack.c.bf16 %v15590_v30, %v15580_v25  ;;  %v13166_v34 = vpack.c.bf16 %v15588_v29, %v15578_v24  ;;  %v10380_v25 = vld [vmem:[%s21451_s4 + $0x530] sm:$0xff]  ;;  %v15886_v22 = vld [vmem:[%s21452_s5 + $0x8] sm:$0xff]  ;;  %v15927_v29 = vld [vmem:[%s21452_s5 + $0x20] sm:$0xff] }
 0x2c4   :  { %v13184_v27 = vpack.c.bf16 %v10380_v25, %v10375_v23  ;;  %v15939_v30 = vld [vmem:[%s21452_s5 + $0x28] sm:$0xff]  ;;  %v10445_v25 = vld [vmem:[%s21451_s4 + $0x738] sm:$0xff] }
 0x2c5   :  { %v10439_v23 = vld [vmem:[%s21451_s4 + $0x708] sm:$0xff] }
 0x2d5   :  { %v15598_v35 = vpop.f32.mrb[16].mxu1  ;;  %v989_v36 = vpop.f32.mrb[16].mxu0 }
 0x2d6   :  { %v15600_v37 = vpop.f32.mrb[17].mxu1  ;;  %v991_v38 = vpop.f32.mrb[17].mxu0 }
 0x2d7   :  { %v13179_v39 = vpack.c.bf16 %v15598_v35, %v15600_v37  ;;  %v10374_v35 = vld [vmem:[%s21451_s4 + $0x500] sm:$0xff]  ;;  %v10379_v37 = vld [vmem:[%s21451_s4 + $0x528] sm:$0xff] }
 0x2d9   :  { %v15604_v40 = vpop.f32.mrb[18].mxu1  ;;  %v995_v41 = vpop.f32.mrb[18].mxu0 }
 0x2da   :  { %v13142_v42 = vpack.c.bf16 %v995_v41, %v989_v36  ;;  %v15606_v43 = vpop.f32.mrb[19].mxu1  ;;  %v997_v44 = vpop.f32.mrb[19].mxu0 }
 0x2db   :  { %v13140_v45 = vpack.c.bf16 %v997_v44, %v991_v38  ;;  %v13182_v46 = vpack.c.bf16 %v15604_v40, %v15606_v43  ;;  %v15662_v44 = vld [vmem:[%s21452_s5 + $0xb8] sm:$0xff]  ;;  %v10390_v40 = vld [vmem:[%s21451_s4 + $0x580] sm:$0xff]  ;;  %v15998_v43 = vld [vmem:[%s21452_s5 + $0x48] sm:$0xff] }
 0x2dd   :  { %v1001_v47 = vpop.f32.mrb[20].mxu0  ;;  %13141 = vmatprep.subr.bf16.mxu1 %v13140_v45 }
 0x2de   :  { %v1003_v48 = vpop.f32.mrb[21].mxu0  ;;  %13143 = vmatpush1.bf16.msra.mxu1 %v13142_v42 }
 0x2e1   :  { %v1007_v49 = vpop.f32.mrb[22].mxu0 }
 0x2e2   :  { %v13146_v50 = vpack.c.bf16 %v1007_v49, %v1001_v47  ;;  %v1009_v51 = vpop.f32.mrb[23].mxu0 }
 0x2e3   :  { %v13144_v52 = vpack.c.bf16 %v1009_v51, %v1003_v48  ;;  %v15674_v48 = vld [vmem:[%s21452_s5 + $0xc0] sm:$0xff] }
 0x2e5   :  { %13145 = vmatprep.subr.bf16.mxu1 %v13144_v52  ;;  %v10384_v52 = vld [vmem:[%s21451_s4 + $0x550] sm:$0xff] }
 0x2e6   :  { %13147 = vmatpush1.bf16.msra.mxu1 %v13146_v50 }
 0x2e7   :  { %13156 = vmatprep.subr.bf16.mxu1 %v21463_v55 }
 0x2e9   :  { %10272 = vmatmul.mubr.msk.f32.vlgmr.msra.gmra.mrb[28].mxu1 %vm1204_vm1, %v15613_v53 }
 0x2ea   :  { %1326 = vmatprep.mubr.f32.mxu1 %v21461_v32 }
 0x2ed   :  { %10273 = vmatmul.mubr.msk.f32.gmra.mrb[30].mxu1 %vm1204_vm1, %v15622_v56 }
 0x2ee   :  { %1332 = vmatprep.mubr.f32.mxu1 %v21461_v32 }
 0x2f1   :  { %10274 = vmatmul.mubr.msk.f32.gmra.mrb[32].mxu1 %vm1204_vm1, %v15630_v57 }
 0x2f2   :  { %1338 = vmatprep.mubr.f32.mxu1 %v21461_v32 }
 0x2f5   :  { %v1078_v59 = vpop.f32.mrb[20].mxu1  ;;  %10275 = vmatmul.mubr.msk.f32.gmra.mrb[34].mxu1 %vm1204_vm1, %v15638_v58 }
 0x2f6   :  { %v12027_v60 = vpop.f32.mrb[24].mxu0  ;;  %v1080_v61 = vpop.f32.mrb[21].mxu1  ;;  %1344 = vmatprep.mubr.f32.mxu1 %v21461_v32 }
 0x2f7   :  { %v1167_v63 = vpop.f32.mrb[25].mxu0 }
 0x2f8   :  { %v13157_v0 = vpack.c.bf16 %v12027_v60, %v1167_v63  ;;  %v10405_v63 = vld [vmem:[%s21451_s4 + $0x5f8] sm:$0xff] }
 0x2f9   :  { %v1084_v1 = vpop.f32.mrb[22].mxu1  ;;  %10276 = vmatmul.mubr.msk.f32.gmra.mrb[36].mxu1 %vm1204_vm1, %v15646_v62 }
 0x2fa   :  { %v12030_v3 = vpop.f32.mrb[26].mxu0  ;;  %13158 = vmatpush3.bf16.msra.mxu1 %v13157_v0  ;;  %v1086_v4 = vpop.f32.mrb[23].mxu1  ;;  %1350 = vmatprep.mubr.f32.mxu1 %v21461_v32  ;;  %v13150_v6 = vpack.c.bf16 %v1084_v1, %v1078_v59  ;;  %v10410_v0 = vld [vmem:[%s21451_s4 + $0x620] sm:$0xff]  ;;  %v16044_v1 = vld [vmem:[%s21452_s5 + $0x58] sm:$0xff] }
 0x2fb   :  { %v1177_v7 = vpop.f32.mrb[27].mxu0  ;;  %13159 = vmatprep.subr.bf16.mxu1 %v21463_v55  ;;  %v13148_v36 = vpack.c.bf16 %v1086_v4, %v1080_v61  ;;  %v10394_v61 = vld [vmem:[%s21451_s4 + $0x5a0] sm:$0xff]  ;;  %v13196_v4 = vpack.c.bf16 %v10410_v0, %v10405_v63  ;;  %v10391_v63 = vld [vmem:[%s21451_s4 + $0x588] sm:$0xff]  ;;  %v10397_v0 = vld [vmem:[%s21451_s4 + $0x5b8] sm:$0xff] }
 0x2fc   :  { %v13160_v38 = vpack.c.bf16 %v12030_v3, %v1177_v7  ;;  %v10415_v7 = vld [vmem:[%s21451_s4 + $0x648] sm:$0xff] }
 0x2fd   :  { %v1090_v41 = vpop.f32.mrb[24].mxu1  ;;  %10277 = vmatmul.mubr.msk.f32.gmra.mrb[38].mxu1 %vm1204_vm1, %v15654_v5  ;;  %13149 = vmatprep.subr.bf16.mxu0 %v13148_v36  ;;  %v10420_v36 = vld [vmem:[%s21451_s4 + $0x670] sm:$0xff] }
 0x2fe   :  { %13161 = vmatpush3.bf16.msra.mxu1 %v13160_v38  ;;  %v1092_v42 = vpop.f32.mrb[25].mxu1  ;;  %13151 = vmatpush1.bf16.msra.mxu0 %v13150_v6  ;;  %v10409_v6 = vld [vmem:[%s21451_s4 + $0x618] sm:$0xff]  ;;  %v16067_v38 = vld [vmem:[%s21452_s5 + $0x60] sm:$0xff] }
 0x2ff   :  { %13163 = vmatprep.subr.bf16.mxu1 %v13162_v21  ;;  %1356 = vmatprep.mubr.f32.mxu1 %v21461_v32  ;;  %v15783_v21 = vld [vmem:[%s21452_s5 + $0x108] sm:$0xf] }
 0x301   :  { %v1096_v45 = vpop.f32.mrb[26].mxu1  ;;  %10278 = vmatmul.mubr.msk.f32.gmra.mrb[40].mxu1 %vm1204_vm1, %v15662_v44 }
 0x302   :  { %v1098_v47 = vpop.f32.mrb[27].mxu1  ;;  %1362 = vmatprep.mubr.f32.mxu1 %v21461_v32  ;;  %v13154_v49 = vpack.c.bf16 %v1096_v45, %v1090_v41  ;;  %v10419_v45 = vld [vmem:[%s21451_s4 + $0x668] sm:$0xff] }
 0x303   :  { %v13152_v50 = vpack.c.bf16 %v1098_v47, %v1092_v42  ;;  %v13200_v42 = vpack.c.bf16 %v10420_v36, %v10415_v7  ;;  %v10425_v47 = vld [vmem:[%s21451_s4 + $0x698] sm:$0xff]  ;;  %v10407_v7 = vld [vmem:[%s21451_s4 + $0x608] sm:$0xff]  ;;  %v10412_v36 = vld [vmem:[%s21451_s4 + $0x630] sm:$0xff] }
 0x305   :  { %10279 = vmatmul.mubr.msk.f32.gmra.mrb[42].mxu1 %vm1204_vm1, %v15674_v48  ;;  %13153 = vmatprep.subr.bf16.mxu0 %v13152_v50 }
 0x306   :  { %13155 = vmatpush1.bf16.msra.mxu0 %v13154_v49  ;;  %1368 = vmatprep.mubr.f32.mxu1 %v21461_v32  ;;  %v16090_v49 = vld [vmem:[%s21452_s5 + $0x68] sm:$0xff] }
 0x307   :  { %13171 = vmatprep.subr.bf16.mxu0 %v13170_v19  ;;  %v15772_v19 = vld [vmem:[%s21452_s5 + $0x100] sm:$0xff] }
 0x309   :  { %10280 = vmatmul.mubr.msk.f32.gmra.mrb[44].mxu1 %vm1204_vm1, %v15682_v11  ;;  %10289 = vmatmul.mubr.msk.f32.vlgmr.msra.gmra.mrb[28].mxu0 %vm1204_vm1, %v15613_v53 }
 0x30a   :  { %13173 = vmatpush1.bf16.msra.mxu0 %v13172_v15  ;;  %1374 = vmatprep.mubr.f32.mxu1 %v21461_v32  ;;  %v15750_v15 = vld [vmem:[%s21452_s5 + $0xf0] sm:$0xff] }
 0x30b   :  { %13175 = vmatprep.subr.bf16.mxu0 %v13174_v33  ;;  %1493 = vmatprep.mubr.f32.mxu0 %v21461_v32  ;;  %v15963_v33 = vld [vmem:[%s21452_s5 + $0x38] sm:$0xff] }
 0x30d   :  { %10281 = vmatmul.mubr.msk.f32.gmra.mrb[46].mxu1 %vm1204_vm1, %v15698_v16  ;;  %10290 = vmatmul.mubr.msk.f32.gmra.mrb[30].mxu0 %vm1204_vm1, %v15622_v56 }
 0x30e   :  { %13177 = vmatpush1.bf16.msra.mxu0 %v13176_v28  ;;  %1380 = vmatprep.mubr.f32.mxu1 %v21461_v32  ;;  %v15915_v28 = vld [vmem:[%s21452_s5 + $0x18] sm:$0xff] }
 0x30f   :  { %1499 = vmatprep.mubr.f32.mxu0 %v21461_v32  ;;  %13178 = vmatprep.subr.bf16.mxu0 %v21463_v55 }
 0x311   :  { %10282 = vmatmul.mubr.msk.f32.gmra.mrb[48].mxu1 %vm1204_vm1, %v15715_v9  ;;  %10291 = vmatmul.mubr.msk.f32.gmra.mrb[32].mxu0 %vm1204_vm1, %v15630_v57 }
 0x312   :  { %1386 = vmatprep.mubr.f32.mxu1 %v21461_v32  ;;  %1505 = vmatprep.mubr.f32.mxu0 %v21461_v32 }
 0x315   :  { %10283 = vmatmul.mubr.msk.f32.gmra.mrb[50].mxu1 %vm1204_vm1, %v15728_v12  ;;  %10292 = vmatmul.mubr.msk.f32.gmra.mrb[34].mxu0 %vm1204_vm1, %v15638_v58 }
 0x316   :  { %1392 = vmatprep.mubr.f32.mxu1 %v21461_v32  ;;  %1511 = vmatprep.mubr.f32.mxu0 %v21461_v32 }
 0x319   :  { %10284 = vmatmul.mubr.msk.f32.gmra.mrb[52].mxu1 %vm1204_vm1, %v15739_v14  ;;  %10293 = vmatmul.mubr.msk.f32.gmra.mrb[36].mxu0 %vm1204_vm1, %v15646_v62 }
 0x31a   :  { %1398 = vmatprep.mubr.f32.mxu1 %v21461_v32  ;;  %1517 = vmatprep.mubr.f32.mxu0 %v21461_v32 }
 0x31d   :  { %10285 = vmatmul.mubr.msk.f32.gmra.mrb[54].mxu1 %vm1204_vm1, %v15750_v15  ;;  %10294 = vmatmul.mubr.msk.f32.gmra.mrb[38].mxu0 %vm1204_vm1, %v15654_v5 }
 0x31e   :  { %1404 = vmatprep.mubr.f32.mxu1 %v21461_v32  ;;  %1523 = vmatprep.mubr.f32.mxu0 %v21461_v32 }
 0x321   :  { %10286 = vmatmul.mubr.msk.f32.gmra.mrb[56].mxu1 %vm1204_vm1, %v15761_v17  ;;  %10295 = vmatmul.mubr.msk.f32.gmra.mrb[40].mxu0 %vm1204_vm1, %v15662_v44 }
 0x322   :  { %1410 = vmatprep.mubr.f32.mxu1 %v21461_v32  ;;  %1529 = vmatprep.mubr.f32.mxu0 %v21461_v32 }
 0x325   :  { %10287 = vmatmul.mubr.msk.f32.gmra.mrb[58].mxu1 %vm1204_vm1, %v15772_v19  ;;  %10296 = vmatmul.mubr.msk.f32.gmra.mrb[42].mxu0 %vm1204_vm1, %v15674_v48 }
 0x326   :  { %1416 = vmatprep.mubr.f32.mxu1 %v21461_v32  ;;  %1535 = vmatprep.mubr.f32.mxu0 %v21461_v32 }
 0x329   :  { %10288 = vmatmul.mubr.msk.f32.gmra.mrb[60].mxu1 %vm1204_vm1, %v15783_v21  ;;  %10297 = vmatmul.mubr.msk.f32.gmra.mrb[44].mxu0 %vm1204_vm1, %v15682_v11 }
 0x32a   :  { %1541 = vmatprep.mubr.f32.mxu0 %v21461_v32  ;;  %12039 = vmatprep.mubr.msk.f32.mxu1 %vm14707_vm2, %v21461_v32 }
 0x32d   :  { %10298 = vmatmul.mubr.msk.f32.gmra.mrb[46].mxu0 %vm1204_vm1, %v15698_v16  ;;  %12040 = vmatmul.mubr.msk.f32.vlgmr.msra.gmra.mrb[62].mxu1 %vm1204_vm1, %v15613_v53  ;;  %v10389_v53 = vld [vmem:[%s21451_s4 + $0x578] sm:$0xff] }
 0x32e   :  { %13165 = vmatpush1.bf16.msra.mxu1 %v13164_v18  ;;  %1547 = vmatprep.mubr.f32.mxu0 %v21461_v32  ;;  %v10382_v18 = vld [vmem:[%s21451_s4 + $0x540] sm:$0xff]  ;;  %v13190_v59 = vpack.c.bf16 %v10389_v53, %v10384_v52  ;;  %v10376_v53 = vld [vmem:[%s21451_s4 + $0x510] sm:$0xff] }
 0x32f   :  { %13167 = vmatprep.subr.bf16.mxu1 %v13166_v34  ;;  %12042 = vmatprep.mubr.msk.f32.mxu1 %vm14707_vm2, %v21461_v32  ;;  %v13216_v24 = vpack.c.bf16 %v10382_v18, %v10377_v13  ;;  %v15975_v34 = vld [vmem:[%s21452_s5 + $0x40] sm:$0xff]  ;;  %v16136_v13 = vld [vmem:[%s21452_s5 + $0x78] sm:$0xff] }
 0x331   :  { %10299 = vmatmul.mubr.msk.f32.gmra.mrb[48].mxu0 %vm1204_vm1, %v15715_v9  ;;  %12043 = vmatmul.mubr.msk.f32.gmra.mrb[64].mxu1 %vm1204_vm1, %v15622_v56  ;;  %v10395_v56 = vld [vmem:[%s21451_s4 + $0x5a8] sm:$0xff] }
 0x332   :  { %13169 = vmatpush1.bf16.msra.mxu1 %v13168_v31  ;;  %1553 = vmatprep.mubr.f32.mxu0 %v21461_v32  ;;  %v15951_v31 = vld [vmem:[%s21452_s5 + $0x30] sm:$0xff] }
 0x333   :  { %12045 = vmatprep.mubr.msk.f32.mxu1 %vm14707_vm2, %v21461_v32  ;;  %13185 = vmatprep.subr.bf16.mxu1 %v13184_v27  ;;  %v10450_v27 = vld [vmem:[%s21451_s4 + $0x760] sm:$0xff] }
 0x335   :  { %10300 = vmatmul.mubr.msk.f32.gmra.mrb[50].mxu0 %vm1204_vm1, %v15728_v12  ;;  %12046 = vmatmul.mubr.msk.f32.gmra.mrb[66].mxu1 %vm1204_vm1, %v15630_v57  ;;  %v10400_v57 = vld [vmem:[%s21451_s4 + $0x5d0] sm:$0xff] }
 0x336   :  { %1559 = vmatprep.mubr.f32.mxu0 %v21461_v32  ;;  %12048 = vmatprep.mubr.msk.f32.mxu1 %vm14707_vm2, %v21461_v32  ;;  %v13192_v60 = vpack.c.bf16 %v10400_v57, %v10395_v56  ;;  %v10381_v56 = vld [vmem:[%s21451_s4 + $0x538] sm:$0xff]  ;;  %v10387_v57 = vld [vmem:[%s21451_s4 + $0x568] sm:$0xff] }
 0x339   :  { %10301 = vmatmul.mubr.msk.f32.gmra.mrb[52].mxu0 %vm1204_vm1, %v15739_v14  ;;  %12049 = vmatmul.mubr.msk.f32.gmra.mrb[68].mxu1 %vm1204_vm1, %v15638_v58  ;;  %v16021_v58 = vld [vmem:[%s21452_s5 + $0x50] sm:$0xff] }
 0x33a   :  { %1565 = vmatprep.mubr.f32.mxu0 %v21461_v32  ;;  %12051 = vmatprep.mubr.msk.f32.mxu1 %vm14707_vm2, %v21461_v32 }
 0x33d   :  { %10302 = vmatmul.mubr.msk.f32.gmra.mrb[54].mxu0 %vm1204_vm1, %v15750_v15  ;;  %12052 = vmatmul.mubr.msk.f32.gmra.mrb[70].mxu1 %vm1204_vm1, %v15646_v62  ;;  %v10399_v62 = vld [vmem:[%s21451_s4 + $0x5c8] sm:$0xff] }
 0x33e   :  { %1571 = vmatprep.mubr.f32.mxu0 %v21461_v32  ;;  %12054 = vmatprep.mubr.msk.f32.mxu1 %vm14707_vm2, %v21461_v32  ;;  %v13194_v3 = vpack.c.bf16 %v10399_v62, %v10394_v61  ;;  %v10386_v62 = vld [vmem:[%s21451_s4 + $0x560] sm:$0xff] }
 0x341   :  { %10303 = vmatmul.mubr.msk.f32.gmra.mrb[56].mxu0 %vm1204_vm1, %v15761_v17  ;;  %12055 = vmatmul.mubr.msk.f32.gmra.mrb[72].mxu1 %vm1204_vm1, %v15654_v5  ;;  %v10404_v5 = vld [vmem:[%s21451_s4 + $0x5f0] sm:$0xff] }
 0x342   :  { %1577 = vmatprep.mubr.f32.mxu0 %v21461_v32  ;;  %12057 = vmatprep.mubr.msk.f32.mxu1 %vm14707_vm2, %v21461_v32  ;;  %v13198_v41 = vpack.c.bf16 %v10409_v6, %v10404_v5  ;;  %v10401_v6 = vld [vmem:[%s21451_s4 + $0x5d8] sm:$0xff] }
 0x345   :  { %10304 = vmatmul.mubr.msk.f32.gmra.mrb[58].mxu0 %vm1204_vm1, %v15772_v19  ;;  %12058 = vmatmul.mubr.msk.f32.gmra.mrb[74].mxu1 %vm1204_vm1, %v15662_v44  ;;  %v10414_v44 = vld [vmem:[%s21451_s4 + $0x640] sm:$0xff] }
 0x346   :  { %1583 = vmatprep.mubr.f32.mxu0 %v21461_v32  ;;  %12060 = vmatprep.mubr.msk.f32.mxu1 %vm14707_vm2, %v21461_v32  ;;  %v13202_v50 = vpack.c.bf16 %v10419_v45, %v10414_v44  ;;  %v10411_v44 = vld [vmem:[%s21451_s4 + $0x628] sm:$0xff]  ;;  %v10417_v45 = vld [vmem:[%s21451_s4 + $0x658] sm:$0xff] }
 0x349   :  { %10305 = vmatmul.mubr.msk.f32.gmra.mrb[60].mxu0 %vm1204_vm1, %v15783_v21  ;;  %12061 = vmatmul.mubr.msk.f32.gmra.mrb[76].mxu1 %vm1204_vm1, %v15674_v48  ;;  %v10430_v48 = vld [vmem:[%s21451_s4 + $0x6c0] sm:$0xff] }
 0x34a   :  { %12063 = vmatprep.mubr.msk.f32.mxu1 %vm14707_vm2, %v21461_v32  ;;  %2022 = vmatprep.mubr.f32.mxu0 %v21461_v32 }
 0x34d   :  { %12064 = vmatmul.mubr.msk.f32.gmra.mrb[78].mxu1 %vm1204_vm1, %v15682_v11  ;;  %10340 = vmatmul.mubr.msk.f32.vlgmr.msra.gmra.mrb[28].mxu0 %vm1204_vm1, %v15866_v8  ;;  %v13204_v11 = vpack.c.bf16 %v10430_v48, %v10425_v47  ;;  %v10422_v47 = vld [vmem:[%s21451_s4 + $0x680] sm:$0xff] }
 0x34e   :  { %13180 = vmatpush3.bf16.msra.mxu0 %v13179_v39  ;;  %12066 = vmatprep.mubr.msk.f32.mxu1 %vm14707_vm2, %v21461_v32  ;;  %v10385_v39 = vld [vmem:[%s21451_s4 + $0x558] sm:$0xff] }
 0x34f   :  { %2028 = vmatprep.mubr.f32.mxu0 %v21461_v32  ;;  %13181 = vmatprep.subr.bf16.mxu0 %v21463_v55  ;;  %v13188_v51 = vpack.c.bf16 %v10390_v40, %v10385_v39  ;;  %v10378_v39 = vld [vmem:[%s21451_s4 + $0x520] sm:$0xff]  ;;  %v10383_v40 = vld [vmem:[%s21451_s4 + $0x548] sm:$0xff] }
 0x350   :  { %v16161_v52 = vpack.c.bf16 %v10383_v40, %v10378_v39  ;;  %v10451_v39 = vld [vmem:[%s21451_s4 + $0x768] sm:$0xff] }
 0x351   :  { %12067 = vmatmul.mubr.msk.f32.gmra.mrb[80].mxu1 %vm1204_vm1, %v15698_v16  ;;  %10341 = vmatmul.mubr.msk.f32.gmra.mrb[30].mxu0 %vm1204_vm1, %v15886_v22  ;;  %v10424_v16 = vld [vmem:[%s21451_s4 + $0x690] sm:$0xff] }
 0x352   :  { %13183 = vmatpush3.bf16.msra.mxu0 %v13182_v46  ;;  %12069 = vmatprep.mubr.msk.f32.mxu1 %vm14707_vm2, %v21461_v32  ;;  %v13186_v46 = vpack.c.bf16 %v10379_v37, %v10374_v35  ;;  %v10444_v35 = vld [vmem:[%s21451_s4 + $0x730] sm:$0xff]  ;;  %v10449_v37 = vld [vmem:[%s21451_s4 + $0x758] sm:$0xff] }
 0x353   :  { %2034 = vmatprep.mubr.f32.mxu0 %v21461_v32  ;;  %13217 = vmatprep.subr.bf16.mxu0 %v13216_v24  ;;  %v13212_v24 = vpack.c.bf16 %v10450_v27, %v10445_v25  ;;  %v10441_v27 = vld [vmem:[%s21451_s4 + $0x718] sm:$0xff] }
 0x355   :  { %12070 = vmatmul.mubr.msk.f32.gmra.mrb[82].mxu1 %vm1204_vm1, %v15715_v9  ;;  %10342 = vmatmul.mubr.msk.f32.gmra.mrb[32].mxu0 %vm1204_vm1, %v15902_v26  ;;  %v10429_v9 = vld [vmem:[%s21451_s4 + $0x6b8] sm:$0xff] }
 0x356   :  { %12072 = vmatprep.mubr.msk.f32.mxu1 %vm14707_vm2, %v21461_v32  ;;  %2040 = vmatprep.mubr.f32.mxu0 %v21461_v32 }
 0x359   :  { %12073 = vmatmul.mubr.msk.f32.gmra.mrb[84].mxu1 %vm1204_vm1, %v15728_v12  ;;  %10343 = vmatmul.mubr.msk.f32.gmra.mrb[34].mxu0 %vm1204_vm1, %v15915_v28  ;;  %v10435_v12 = vld [vmem:[%s21451_s4 + $0x6e8] sm:$0xff] }
 0x35a   :  { %12075 = vmatprep.mubr.msk.f32.mxu1 %vm14707_vm2, %v21461_v32  ;;  %2046 = vmatprep.mubr.f32.mxu0 %v21461_v32 }
 0x35d   :  { %12076 = vmatmul.mubr.msk.f32.gmra.mrb[86].mxu1 %vm1204_vm1, %v15739_v14  ;;  %10344 = vmatmul.mubr.msk.f32.gmra.mrb[36].mxu0 %vm1204_vm1, %v15927_v29  ;;  %v10440_v14 = vld [vmem:[%s21451_s4 + $0x710] sm:$0xff] }
 0x35e   :  { %12078 = vmatprep.mubr.msk.f32.mxu1 %vm14707_vm2, %v21461_v32  ;;  %2052 = vmatprep.mubr.f32.mxu0 %v21461_v32 }
 0x361   :  { %12079 = vmatmul.mubr.msk.f32.gmra.mrb[88].mxu1 %vm1204_vm1, %v15750_v15  ;;  %10345 = vmatmul.mubr.msk.f32.gmra.mrb[38].mxu0 %vm1204_vm1, %v15939_v30  ;;  %v16113_v15 = vld [vmem:[%s21452_s5 + $0x70] sm:$0xff] }
 0x362   :  { %12081 = vmatprep.mubr.msk.f32.mxu1 %vm14707_vm2, %v21461_v32  ;;  %2058 = vmatprep.mubr.f32.mxu0 %v21461_v32 }
 0x365   :  { %12082 = vmatmul.mubr.msk.f32.gmra.mrb[90].mxu1 %vm1204_vm1, %v15761_v17  ;;  %10346 = vmatmul.mubr.msk.f32.gmra.mrb[40].mxu0 %vm1204_vm1, %v15951_v31  ;;  %v13206_v17 = vpack.c.bf16 %v10429_v9, %v10424_v16  ;;  %v10427_v16 = vld [vmem:[%s21451_s4 + $0x6a8] sm:$0xff]  ;;  %v10432_v9 = vld [vmem:[%s21451_s4 + $0x6d0] sm:$0xff] }
 0x366   :  { %12084 = vmatprep.mubr.msk.f32.mxu1 %vm14707_vm2, %v21461_v32  ;;  %2064 = vmatprep.mubr.f32.mxu0 %v21461_v32 }
 0x369   :  { %12085 = vmatmul.mubr.msk.f32.gmra.mrb[92].mxu1 %vm1204_vm1, %v15772_v19  ;;  %10347 = vmatmul.mubr.msk.f32.gmra.mrb[42].mxu0 %vm1204_vm1, %v15963_v33  ;;  %v13208_v19 = vpack.c.bf16 %v10440_v14, %v10435_v12  ;;  %v13236_v14 = vpack.c.bf16 %v10432_v9, %v10427_v16 }
 0x36a   :  { %12087 = vmatprep.mubr.msk.f32.mxu1 %vm14707_vm2, %v21461_v32  ;;  %2070 = vmatprep.mubr.f32.mxu0 %v21461_v32 }
 0x36d   :  { %12088 = vmatmul.mubr.msk.f32.gmra.mrb[94].mxu1 %vm1204_vm1, %v15783_v21  ;;  %10348 = vmatmul.mubr.msk.f32.gmra.mrb[44].mxu0 %vm1204_vm1, %v15975_v34  ;;  %v10434_v21 = vld [vmem:[%s21451_s4 + $0x6e0] sm:$0xff] }
 0x36e   :  { %1855 = vmatprep.mubr.f32.mxu1 %v21461_v32  ;;  %2076 = vmatprep.mubr.f32.mxu0 %v21461_v32  ;;  %v13210_v18 = vpack.c.bf16 %v10439_v23, %v10434_v21  ;;  %v10442_v21 = vld [vmem:[%s21451_s4 + $0x720] sm:$0xff] }
 0x371   :  { %10323 = vmatmul.mubr.msk.f32.vlgmr.msra.gmra.mrb[28].mxu1 %vm1204_vm1, %v15866_v8  ;;  %10349 = vmatmul.mubr.msk.f32.gmra.mrb[46].mxu0 %vm1204_vm1, %v15998_v43 }
 0x372   :  { %1861 = vmatprep.mubr.f32.mxu1 %v21461_v32  ;;  %2082 = vmatprep.mubr.f32.mxu0 %v21461_v32 }
 0x373   :  { %13187 = vmatpush1.bf16.msra.mxu1 %v13186_v46  ;;  %v16159_v46 = vld [vmem:[%s21452_s5 + $0x80] sm:$0xf] }
 0x374   :  { %13189 = vmatprep.subr.bf16.mxu1 %v13188_v51  ;;  %v13214_v51 = vpack.c.bf16 %v10449_v37, %v10444_v35 }
 0x375   :  { %10324 = vmatmul.mubr.msk.f32.gmra.mrb[30].mxu1 %vm1204_vm1, %v15886_v22  ;;  %10350 = vmatmul.mubr.msk.f32.gmra.mrb[48].mxu0 %vm1204_vm1, %v16021_v58 }
 0x376   :  { %1867 = vmatprep.mubr.f32.mxu1 %v21461_v32  ;;  %2088 = vmatprep.mubr.f32.mxu0 %v21461_v32 }
 0x377   :  { %13191 = vmatpush1.bf16.msra.mxu1 %v13190_v59  ;;  %v10392_v59 = vld [vmem:[%s21451_s4 + $0x590] sm:$0xff] }
 0x378   :  { %13193 = vmatprep.subr.bf16.mxu1 %v13192_v60  ;;  %v13218_v60 = vpack.c.bf16 %v10381_v56, %v10376_v53  ;;  %v13220_v61 = vpack.c.bf16 %v10392_v59, %v10387_v57  ;;  %v10398_v53 = vld [vmem:[%s21451_s4 + $0x5c0] sm:$0xff]  ;;  %v10403_v56 = vld [vmem:[%s21451_s4 + $0x5e8] sm:$0xff]  ;;  %v10408_v57 = vld [vmem:[%s21451_s4 + $0x610] sm:$0xff] }
 0x379   :  { %10325 = vmatmul.mubr.msk.f32.gmra.mrb[32].mxu1 %vm1204_vm1, %v15902_v26  ;;  %10351 = vmatmul.mubr.msk.f32.gmra.mrb[50].mxu0 %vm1204_vm1, %v16044_v1  ;;  %v10413_v59 = vld [vmem:[%s21451_s4 + $0x638] sm:$0xff] }
 0x37a   :  { %1873 = vmatprep.mubr.f32.mxu1 %v21461_v32  ;;  %2094 = vmatprep.mubr.f32.mxu0 %v21461_v32 }
 0x37b   :  { %13195 = vmatpush1.bf16.msra.mxu1 %v13194_v3  ;;  %v10402_v3 = vld [vmem:[%s21451_s4 + $0x5e0] sm:$0xff] }
 0x37c   :  { %13197 = vmatprep.subr.bf16.mxu1 %v13196_v4  ;;  %v13222_v4 = vpack.c.bf16 %v10391_v63, %v10386_v62  ;;  %v13224_v5 = vpack.c.bf16 %v10402_v3, %v10397_v0  ;;  %v10433_v62 = vld [vmem:[%s21451_s4 + $0x6d8] sm:$0xff]  ;;  %v10438_v63 = vld [vmem:[%s21451_s4 + $0x700] sm:$0xff]  ;;  %v10443_v0 = vld [vmem:[%s21451_s4 + $0x728] sm:$0xff] }
 0x37d   :  { %10326 = vmatmul.mubr.msk.f32.gmra.mrb[34].mxu1 %vm1204_vm1, %v15915_v28  ;;  %10352 = vmatmul.mubr.msk.f32.gmra.mrb[52].mxu0 %vm1204_vm1, %v16067_v38  ;;  %v10448_v3 = vld [vmem:[%s21451_s4 + $0x750] sm:$0xff] }
 0x37e   :  { %1879 = vmatprep.mubr.f32.mxu1 %v21461_v32  ;;  %2100 = vmatprep.mubr.f32.mxu0 %v21461_v32 }
 0x37f   :  { %13199 = vmatpush1.bf16.msra.mxu1 %v13198_v41 }
 0x380   :  { %13201 = vmatprep.subr.bf16.mxu1 %v13200_v42  ;;  %v13228_v42 = vpack.c.bf16 %v10412_v36, %v10407_v7 }
 0x381   :  { %10327 = vmatmul.mubr.msk.f32.gmra.mrb[36].mxu1 %vm1204_vm1, %v15927_v29  ;;  %10353 = vmatmul.mubr.msk.f32.gmra.mrb[54].mxu0 %vm1204_vm1, %v16090_v49 }
 0x382   :  { %1885 = vmatprep.mubr.f32.mxu1 %v21461_v32  ;;  %2106 = vmatprep.mubr.f32.mxu0 %v21461_v32 }
 0x383   :  { %13203 = vmatpush1.bf16.msra.mxu1 %v13202_v50  ;;  %v13232_v50 = vpack.c.bf16 %v10422_v47, %v10417_v45 }
 0x384   :  { %13205 = vmatprep.subr.bf16.mxu1 %v13204_v11  ;;  %v10421_v11 = vld [vmem:[%s21451_s4 + $0x678] sm:$0xff] }
 0x385   :  { %10328 = vmatmul.mubr.msk.f32.gmra.mrb[38].mxu1 %vm1204_vm1, %v15939_v30  ;;  %10354 = vmatmul.mubr.msk.f32.gmra.mrb[56].mxu0 %vm1204_vm1, %v16113_v15 }
 0x386   :  { %1891 = vmatprep.mubr.f32.mxu1 %v21461_v32  ;;  %2112 = vmatprep.mubr.f32.mxu0 %v21461_v32 }
 0x387   :  { %13207 = vmatpush1.bf16.msra.mxu1 %v13206_v17  ;;  %v10431_v17 = vld [vmem:[%s21451_s4 + $0x6c8] sm:$0xff] }
 0x388   :  { %13209 = vmatprep.subr.bf16.mxu1 %v13208_v19  ;;  %v10437_v19 = vld [vmem:[%s21451_s4 + $0x6f8] sm:$0xff] }
 0x389   :  { %10329 = vmatmul.mubr.msk.f32.gmra.mrb[40].mxu1 %vm1204_vm1, %v15951_v31  ;;  %10355 = vmatmul.mubr.msk.f32.gmra.mrb[58].mxu0 %vm1204_vm1, %v16136_v13  ;;  %v13240_v25 = vpack.c.bf16 %v10442_v21, %v10437_v19 }
 0x38a   :  { %1897 = vmatprep.mubr.f32.mxu1 %v21461_v32  ;;  %2118 = vmatprep.mubr.f32.mxu0 %v21461_v32 }
 0x38b   :  { %13211 = vmatpush1.bf16.msra.mxu1 %v13210_v18  ;;  %v10447_v18 = vld [vmem:[%s21451_s4 + $0x748] sm:$0xff] }
 0x38c   :  { %13213 = vmatprep.subr.bf16.mxu1 %v13212_v24  ;;  %v10452_v24 = vld [vmem:[%s21451_s4 + $0x770] sm:$0xff] }
 0x38d   :  { %10330 = vmatmul.mubr.msk.f32.gmra.mrb[42].mxu1 %vm1204_vm1, %v15963_v33  ;;  %10356 = vmatmul.mubr.msk.f32.gmra.mrb[60].mxu0 %vm1204_vm1, %v16159_v46  ;;  %v13244_v37 = vpack.c.bf16 %v10452_v24, %v10447_v18 }
 0x38e   :  { %1903 = vmatprep.mubr.f32.mxu1 %v21461_v32  ;;  %12098 = vmatprep.mubr.msk.f32.mxu0 %vm14707_vm2, %v21461_v32 }
 0x38f   :  { %13215 = vmatpush1.bf16.msra.mxu1 %v13214_v51  ;;  %v10393_v51 = vld [vmem:[%s21451_s4 + $0x598] sm:$0xff] }
 0x390   :  { %13249 = vmatprep.subr.bf16.mxu1 %v16161_v52 }
 0x391   :  { %10331 = vmatmul.mubr.msk.f32.gmra.mrb[44].mxu1 %vm1204_vm1, %v15975_v34  ;;  %12099 = vmatmul.mubr.msk.f32.vlgmr.msra.gmra.mrb[62].mxu0 %vm1204_vm1, %v15866_v8  ;;  %v10396_v8 = vld [vmem:[%s21451_s4 + $0x5b0] sm:$0xff] }
 0x392   :  { %1909 = vmatprep.mubr.f32.mxu1 %v21461_v32  ;;  %12101 = vmatprep.mubr.msk.f32.mxu0 %vm14707_vm2, %v21461_v32  ;;  %v13226_v41 = vpack.c.bf16 %v10401_v6, %v10396_v8 }
 0x393   :  { %13219 = vmatpush1.bf16.msra.mxu0 %v13218_v60  ;;  %v10423_v60 = vld [vmem:[%s21451_s4 + $0x688] sm:$0xff] }
 0x394   :  { %13221 = vmatprep.subr.bf16.mxu0 %v13220_v61  ;;  %v10428_v61 = vld [vmem:[%s21451_s4 + $0x6b0] sm:$0xff] }
 0x395   :  { %10332 = vmatmul.mubr.msk.f32.gmra.mrb[46].mxu1 %vm1204_vm1, %v15998_v43  ;;  %12102 = vmatmul.mubr.msk.f32.gmra.mrb[64].mxu0 %vm1204_vm1, %v15886_v22  ;;  %v10406_v22 = vld [vmem:[%s21451_s4 + $0x600] sm:$0xff] }
 0x396   :  { %1915 = vmatprep.mubr.f32.mxu1 %v21461_v32  ;;  %12104 = vmatprep.mubr.msk.f32.mxu0 %vm14707_vm2, %v21461_v32  ;;  %v13230_v48 = vpack.c.bf16 %v10411_v44, %v10406_v22 }
 0x397   :  { %13223 = vmatpush1.bf16.msra.mxu0 %v13222_v4  ;;  %v10453_v4 = vld [vmem:[%s21451_s4 + $0x778] sm:$0xff] }
 0x398   :  { %13225 = vmatprep.subr.bf16.mxu0 %v13224_v5 }
 0x399   :  { %10333 = vmatmul.mubr.msk.f32.gmra.mrb[48].mxu1 %vm1204_vm1, %v16021_v58  ;;  %12105 = vmatmul.mubr.msk.f32.gmra.mrb[66].mxu0 %vm1204_vm1, %v15902_v26  ;;  %v10416_v26 = vld [vmem:[%s21451_s4 + $0x650] sm:$0xff] }
 0x39a   :  { %1921 = vmatprep.mubr.f32.mxu1 %v21461_v32  ;;  %12107 = vmatprep.mubr.msk.f32.mxu0 %vm14707_vm2, %v21461_v32  ;;  %v13234_v12 = vpack.c.bf16 %v10421_v11, %v10416_v26 }
 0x39b   :  { %13227 = vmatpush1.bf16.msra.mxu0 %v13226_v41 }
 0x39c   :  { %13229 = vmatprep.subr.bf16.mxu0 %v13228_v42 }
 0x39d   :  { %10334 = vmatmul.mubr.msk.f32.gmra.mrb[50].mxu1 %vm1204_vm1, %v16044_v1  ;;  %12108 = vmatmul.mubr.msk.f32.gmra.mrb[68].mxu0 %vm1204_vm1, %v15915_v28  ;;  %v10426_v28 = vld [vmem:[%s21451_s4 + $0x6a0] sm:$0xff] }
 0x39e   :  { %1927 = vmatprep.mubr.f32.mxu1 %v21461_v32  ;;  %12110 = vmatprep.mubr.msk.f32.mxu0 %vm14707_vm2, %v21461_v32  ;;  %v13238_v23 = vpack.c.bf16 %v10431_v17, %v10426_v28 }
 0x39f   :  { %13231 = vmatpush1.bf16.msra.mxu0 %v13230_v48 }
 0x3a0   :  { %13233 = vmatprep.subr.bf16.mxu0 %v13232_v50 }
 0x3a1   :  { %10335 = vmatmul.mubr.msk.f32.gmra.mrb[52].mxu1 %vm1204_vm1, %v16067_v38  ;;  %12111 = vmatmul.mubr.msk.f32.gmra.mrb[70].mxu0 %vm1204_vm1, %v15927_v29  ;;  %v10436_v29 = vld [vmem:[%s21451_s4 + $0x6f0] sm:$0xff] }
 0x3a2   :  { %1933 = vmatprep.mubr.f32.mxu1 %v21461_v32  ;;  %12113 = vmatprep.mubr.msk.f32.mxu0 %vm14707_vm2, %v21461_v32  ;;  %v13242_v35 = vpack.c.bf16 %v10441_v27, %v10436_v29 }
 0x3a3   :  { %13235 = vmatpush1.bf16.msra.mxu0 %v13234_v12 }
 0x3a4   :  { %13237 = vmatprep.subr.bf16.mxu0 %v13236_v14 }
 0x3a5   :  { %10336 = vmatmul.mubr.msk.f32.gmra.mrb[54].mxu1 %vm1204_vm1, %v16090_v49  ;;  %12114 = vmatmul.mubr.msk.f32.gmra.mrb[72].mxu0 %vm1204_vm1, %v15939_v30  ;;  %v10446_v30 = vld [vmem:[%s21451_s4 + $0x740] sm:$0xff] }
 0x3a6   :  { %1939 = vmatprep.mubr.f32.mxu1 %v21461_v32  ;;  %12116 = vmatprep.mubr.msk.f32.mxu0 %vm14707_vm2, %v21461_v32  ;;  %v13246_v40 = vpack.c.bf16 %v10451_v39, %v10446_v30 }
 0x3a7   :  { %13239 = vmatpush1.bf16.msra.mxu0 %v13238_v23 }
 0x3a8   :  { %13241 = vmatprep.subr.bf16.mxu0 %v13240_v25 }
 0x3a9   :  { %10337 = vmatmul.mubr.msk.f32.gmra.mrb[56].mxu1 %vm1204_vm1, %v16113_v15  ;;  %12117 = vmatmul.mubr.msk.f32.gmra.mrb[74].mxu0 %vm1204_vm1, %v15951_v31  ;;  %v10388_v31 = vld [vmem:[%s21451_s4 + $0x570] sm:$0xff] }
 0x3aa   :  { %1945 = vmatprep.mubr.f32.mxu1 %v21461_v32  ;;  %12119 = vmatprep.mubr.msk.f32.mxu0 %vm14707_vm2, %v21461_v32 }
 0x3ab   :  { %13243 = vmatpush1.bf16.msra.mxu0 %v13242_v35 }
 0x3ac   :  { %13245 = vmatprep.subr.bf16.mxu0 %v13244_v37 }
 0x3ad   :  { %10338 = vmatmul.mubr.msk.f32.gmra.mrb[58].mxu1 %vm1204_vm1, %v16136_v13  ;;  %12120 = vmatmul.mubr.msk.f32.gmra.mrb[76].mxu0 %vm1204_vm1, %v15963_v33  ;;  %v13252_v33 = vpack.c.bf16 %v10393_v51, %v10388_v31 }
 0x3ae   :  { %1951 = vmatprep.mubr.f32.mxu1 %v21461_v32  ;;  %12122 = vmatprep.mubr.msk.f32.mxu0 %vm14707_vm2, %v21461_v32 }
 0x3af   :  { %13247 = vmatpush1.bf16.msra.mxu0 %v13246_v40 }
 0x3b1   :  { %10339 = vmatmul.mubr.msk.f32.gmra.mrb[60].mxu1 %vm1204_vm1, %v16159_v46  ;;  %12123 = vmatmul.mubr.msk.f32.gmra.mrb[78].mxu0 %vm1204_vm1, %v15975_v34  ;;  %v13256_v34 = vpack.c.bf16 %v10403_v56, %v10398_v53 }
 0x3b2   :  { %12125 = vmatprep.mubr.msk.f32.mxu0 %vm14707_vm2, %v21461_v32  ;;  %2420 = vmatprep.mubr.f32.mxu1 %v21461_v32 }
 0x3b5   :  { %12126 = vmatmul.mubr.msk.f32.gmra.mrb[80].mxu0 %vm1204_vm1, %v15998_v43  ;;  %2421 = vmatmul.mubr.f32.vlgmr.msra.gmra.mrb[96].mxu1 %v15244_v54  ;;  %v13260_v43 = vpack.c.bf16 %v10413_v59, %v10408_v57 }
 0x3b6   :  { %13251 = vmatpush3.bf16.msra.mxu1 %v16161_v52  ;;  %12128 = vmatprep.mubr.msk.f32.mxu0 %vm14707_vm2, %v21461_v32  ;;  %v10418_v52 = vld [vmem:[%s21451_s4 + $0x660] sm:$0xff] }
 0x3b7   :  { %2426 = vmatprep.mubr.f32.mxu1 %v21461_v32  ;;  %13253 = vmatprep.subr.bf16.mxu1 %v13252_v33 }
 0x3b9   :  { %12129 = vmatmul.mubr.msk.f32.gmra.mrb[82].mxu0 %vm1204_vm1, %v16021_v58  ;;  %2427 = vmatmul.mubr.f32.gmra.mrb[98].mxu1 %v15266_v2  ;;  %v13264_v58 = vpack.c.bf16 %v10423_v60, %v10418_v52 }
 0x3ba   :  { %13255 = vmatpush3.bf16.msra.mxu1 %v13252_v33  ;;  %12131 = vmatprep.mubr.msk.f32.mxu0 %vm14707_vm2, %v21461_v32 }
 0x3bb   :  { %2432 = vmatprep.mubr.f32.mxu1 %v21461_v32  ;;  %13257 = vmatprep.subr.bf16.mxu1 %v13256_v34 }
 0x3bd   :  { %12132 = vmatmul.mubr.msk.f32.gmra.mrb[84].mxu0 %vm1204_vm1, %v16044_v1  ;;  %2433 = vmatmul.mubr.f32.gmra.mrb[100].mxu1 %v15282_v10  ;;  %v13268_v1 = vpack.c.bf16 %v10433_v62, %v10428_v61 }
 0x3be   :  { %13259 = vmatpush3.bf16.msra.mxu1 %v13256_v34  ;;  %12134 = vmatprep.mubr.msk.f32.mxu0 %vm14707_vm2, %v21461_v32 }
 0x3bf   :  { %2438 = vmatprep.mubr.f32.mxu1 %v21461_v32  ;;  %13261 = vmatprep.subr.bf16.mxu1 %v13260_v43 }
 0x3c1   :  { %12135 = vmatmul.mubr.msk.f32.gmra.mrb[86].mxu0 %vm1204_vm1, %v16067_v38  ;;  %2439 = vmatmul.mubr.f32.gmra.mrb[102].mxu1 %v15306_v20  ;;  %v13272_v38 = vpack.c.bf16 %v10443_v0, %v10438_v63 }
 0x3c2   :  { %13263 = vmatpush3.bf16.msra.mxu1 %v13260_v43  ;;  %12181 = vmatprep.mubr.f32.mxu1 %v15244_v54 }
 0x3c3   :  { %12137 = vmatprep.mubr.msk.f32.mxu0 %vm14707_vm2, %v21461_v32  ;;  %13265 = vmatprep.subr.bf16.mxu1 %v13264_v58 }
 0x3c5   :  { %12138 = vmatmul.mubr.msk.f32.gmra.mrb[88].mxu0 %vm1204_vm1, %v16090_v49  ;;  %v13276_v49 = vpack.c.bf16 %v10453_v4, %v10448_v3 }
 0x3c6   :  { %13267 = vmatpush3.bf16.msra.mxu1 %v13264_v58  ;;  %12140 = vmatprep.mubr.msk.f32.mxu0 %vm14707_vm2, %v21461_v32 }
 0x3c7   :  { %13269 = vmatprep.subr.bf16.mxu1 %v13268_v1 }
 0x3c9   :  { %12141 = vmatmul.mubr.msk.f32.gmra.mrb[90].mxu0 %vm1204_vm1, %v16113_v15 }
 0x3ca   :  { %13271 = vmatpush3.bf16.msra.mxu1 %v13268_v1  ;;  %12143 = vmatprep.mubr.msk.f32.mxu0 %vm14707_vm2, %v21461_v32 }
 0x3cb   :  { %13273 = vmatprep.subr.bf16.mxu1 %v13272_v38 }
 0x3cd   :  { %12144 = vmatmul.mubr.msk.f32.gmra.mrb[92].mxu0 %vm1204_vm1, %v16136_v13 }
 0x3ce   :  { %13275 = vmatpush3.bf16.msra.mxu1 %v13272_v38  ;;  %12146 = vmatprep.mubr.msk.f32.mxu0 %vm14707_vm2, %v21461_v32 }
 0x3cf   :  { %13277 = vmatprep.subr.bf16.mxu1 %v13276_v49 }
 0x3d1   :  { %12147 = vmatmul.mubr.msk.f32.gmra.mrb[94].mxu0 %vm1204_vm1, %v16159_v46 }
 0x3d2   :  { %13279 = vmatpush3.bf16.msra.mxu1 %v13276_v49  ;;  %2509 = vmatprep.mubr.f32.mxu0 %v21461_v32 }
 0x3d5   :  { %12182 = vmatmul.mubr.f32.vlgmr.msra.gmra.mrb[104].mxu1 %v15266_v2  ;;  %2510 = vmatmul.mubr.f32.vlgmr.msra.gmra.mrb[96].mxu0 %v15244_v54 }
 0x3d6   :  { %12184 = vmatprep.mubr.f32.mxu1 %v15282_v10  ;;  %2515 = vmatprep.mubr.f32.mxu0 %v21461_v32 }
 0x3d9   :  { %12185 = vmatmul.mubr.f32.gmra.mrb[106].mxu1 %v15306_v20  ;;  %2516 = vmatmul.mubr.f32.gmra.mrb[98].mxu0 %v15266_v2 }
 0x3da   :  { %2521 = vmatprep.mubr.f32.mxu0 %v21461_v32  ;;  %2752 = vmatprep.mubr.f32.mxu1 %v21461_v32 }
 0x3dd   :  { %2522 = vmatmul.mubr.f32.gmra.mrb[100].mxu0 %v15282_v10 }
 0x3de   :  { %2527 = vmatprep.mubr.f32.mxu0 %v21461_v32 }
 0x3e1   :  { %2528 = vmatmul.mubr.f32.gmra.mrb[102].mxu0 %v15306_v20 }
 0x3e2   :  { %2919 = vmatprep.mubr.f32.mxu0 %v21461_v32 }
 0x400   :  { %v1656_v15 = vpop.f32.mrb[62].mxu1 }
 0x401   :  { %v12041_v13 = vpop.f32.mrb[63].mxu1 }
 0x404   :  { %v1661_v46 = vpop.f32.mrb[64].mxu1 }
 0x405   :  { %v12044_v5 = vpop.f32.mrb[65].mxu1 }
 0x408   :  { %v1666_v8 = vpop.f32.mrb[66].mxu1 }
 0x409   :  { %v12047_v6 = vpop.f32.mrb[67].mxu1 }
 0x40c   :  { %v1671_v7 = vpop.f32.mrb[68].mxu1 }
 0x40d   :  { %v12050_v36 = vpop.f32.mrb[69].mxu1 }
 0x410   :  { %v1676_v41 = vpop.f32.mrb[70].mxu1 }
 0x411   :  { %v12053_v42 = vpop.f32.mrb[71].mxu1 }
 0x414   :  { %v1681_v22 = vpop.f32.mrb[72].mxu1 }
 0x415   :  { %v12056_v44 = vpop.f32.mrb[73].mxu1 }
 0x418   :  { %v1686_v45 = vpop.f32.mrb[74].mxu1 }
 0x419   :  { %v12059_v47 = vpop.f32.mrb[75].mxu1 }
 0x41c   :  { %v1691_v48 = vpop.f32.mrb[76].mxu1 }
 0x41d   :  { %v12062_v50 = vpop.f32.mrb[77].mxu1 }
 0x420   :  { %v1696_v26 = vpop.f32.mrb[78].mxu1 }
 0x421   :  { %v12065_v11 = vpop.f32.mrb[79].mxu1 }
 0x424   :  { %v1701_v16 = vpop.f32.mrb[80].mxu1 }
 0x425   :  { %v12068_v9 = vpop.f32.mrb[81].mxu1 }
 0x428   :  { %v1706_v12 = vpop.f32.mrb[82].mxu1 }
 0x429   :  { %v12071_v14 = vpop.f32.mrb[83].mxu1 }
 0x42c   :  { %v1711_v28 = vpop.f32.mrb[84].mxu1 }
 0x42d   :  { %v12074_v17 = vpop.f32.mrb[85].mxu1 }
 0x430   :  { %v1716_v19 = vpop.f32.mrb[86].mxu1 }
 0x431   :  { %v12077_v21 = vpop.f32.mrb[87].mxu1 }
 0x434   :  { %v16418_v23 = vpop.f32.mrb[88].mxu1 }
 0x435   :  { %v12080_v25 = vpop.f32.mrb[89].mxu1 }
 0x438   :  { %v16420_v29 = vpop.f32.mrb[90].mxu1 }
 0x439   :  { %v12083_v27 = vpop.f32.mrb[91].mxu1 }
 0x43c   :  { %v16422_v18 = vpop.f32.mrb[92].mxu1 }
 0x43d   :  { %v12086_v24 = vpop.f32.mrb[93].mxu1 }
 0x440   :  { %v16424_v35 = vpop.f32.mrb[94].mxu1 }
 0x441   :  { %v12089_v37 = vpop.f32.mrb[95].mxu1 }
 0x464   :  { %v2191_v30 = vpop.f32.mrb[62].mxu0 }
 0x465   :  { %v16426_v39 = vadd.f32 %v2191_v30, %v1656_v15  ;;  %v12100_v40 = vpop.f32.mrb[63].mxu0 }
 0x466   :  { %v10522_v40 = vld [vmem:[%s21451_s4 + $0x780] sm:$0xff] }
 0x468   :  { %v2196_v31 = vpop.f32.mrb[64].mxu0 }
 0x469   :  { %v16428_v51 = vadd.f32 %v2196_v31, %v1661_v46  ;;  %v12103_v33 = vpop.f32.mrb[65].mxu0  ;;  %v10527_v31 = vld [vmem:[%s21451_s4 + $0x7a8] sm:$0xff] }
 0x46a   :  { %v10533_v33 = vld [vmem:[%s21451_s4 + $0x7d8] sm:$0xff] }
 0x46c   :  { %v2201_v53 = vpop.f32.mrb[66].mxu0 }
 0x46d   :  { %v16430_v56 = vadd.f32 %v2201_v53, %v1666_v8  ;;  %v12106_v34 = vpop.f32.mrb[67].mxu0 }
 0x470   :  { %v2206_v57 = vpop.f32.mrb[68].mxu0 }
 0x471   :  { %v16432_v59 = vadd.f32 %v2206_v57, %v1671_v7  ;;  %v12109_v43 = vpop.f32.mrb[69].mxu0 }
 0x472   :  { %v16476_v43 = vld [vmem:[%s21452_s5 + $0x110] sm:$0xff] }
 0x474   :  { %v2211_v52 = vpop.f32.mrb[70].mxu0 }
 0x475   :  { %v16434_v60 = vadd.f32 %v2211_v52, %v1676_v41  ;;  %v12112_v58 = vpop.f32.mrb[71].mxu0  ;;  %v13304_v52 = vpack.c.bf16 %v10527_v31, %v10522_v40 }
 0x478   :  { %v2216_v61 = vpop.f32.mrb[72].mxu0 }
 0x479   :  { %v16436_v62 = vadd.f32 %v2216_v61, %v1681_v22  ;;  %v12115_v1 = vpop.f32.mrb[73].mxu0  ;;  %v10532_v61 = vld [vmem:[%s21451_s4 + $0x7d0] sm:$0xff] }
 0x47a   :  { %v10537_v1 = vld [vmem:[%s21451_s4 + $0x7f8] sm:$0xff] }
 0x47c   :  { %v2221_v63 = vpop.f32.mrb[74].mxu0 }
 0x47d   :  { %v16438_v0 = vadd.f32 %v2221_v63, %v1686_v45  ;;  %v12118_v38 = vpop.f32.mrb[75].mxu0  ;;  %v10548_v63 = vld [vmem:[%s21451_s4 + $0x850] sm:$0xff] }
 0x480   :  { %v2226_v3 = vpop.f32.mrb[76].mxu0 }
 0x481   :  { %v16440_v4 = vadd.f32 %v2226_v3, %v1691_v48  ;;  %v12121_v49 = vpop.f32.mrb[77].mxu0 }
 0x484   :  { %v2231_v15 = vpop.f32.mrb[78].mxu0 }
 0x485   :  { %v16442_v13 = vadd.f32 %v2231_v15, %v1696_v26  ;;  %v12124_v46 = vpop.f32.mrb[79].mxu0  ;;  %v16499_v15 = vld [vmem:[%s21452_s5 + $0x118] sm:$0xff] }
 0x486   :  { %v13308_v46 = vpack.c.bf16 %v10537_v1, %v10532_v61  ;;  %v10577_v61 = vld [vmem:[%s21451_s4 + $0x938] sm:$0xff] }
 0x488   :  { %v2236_v5 = vpop.f32.mrb[80].mxu0  ;;  %v2422_v8 = vpop.f32.mrb[96].mxu1 }
 0x489   :  { %v16444_v6 = vadd.f32 %v2236_v5, %v1701_v16  ;;  %v2424_v7 = vpop.f32.mrb[97].mxu1  ;;  %v12127_v36 = vpop.f32.mrb[81].mxu0  ;;  %v10523_v16 = vld [vmem:[%s21451_s4 + $0x788] sm:$0xff] }
 0x48a   :  { %v10558_v36 = vld [vmem:[%s21451_s4 + $0x8a0] sm:$0xff] }
 0x48c   :  { %v2241_v41 = vpop.f32.mrb[82].mxu0  ;;  %v2428_v42 = vpop.f32.mrb[98].mxu1 }
 0x48d   :  { %v16446_v22 = vadd.f32 %v2241_v41, %v1706_v12  ;;  %v13282_v44 = vpack.c.bf16 %v2428_v42, %v2422_v8  ;;  %v2430_v45 = vpop.f32.mrb[99].mxu1  ;;  %v12130_v47 = vpop.f32.mrb[83].mxu0  ;;  %v10528_v12 = vld [vmem:[%s21451_s4 + $0x7b0] sm:$0xff]  ;;  %v10542_v8 = vld [vmem:[%s21451_s4 + $0x820] sm:$0xff] }
 0x48e   :  { %v13280_v48 = vpack.c.bf16 %v2430_v45, %v2424_v7  ;;  %v13302_v30 = vpack.c.bf16 %v10528_v12, %v10523_v16  ;;  %v10553_v7 = vld [vmem:[%s21451_s4 + $0x878] sm:$0xff]  ;;  %v16522_v45 = vld [vmem:[%s21452_s5 + $0x120] sm:$0xff] }
 0x490   :  { %v2246_v50 = vpop.f32.mrb[84].mxu0  ;;  %v2434_v11 = vpop.f32.mrb[100].mxu1  ;;  %13281 = vmatprep.subr.bf16.mxu1 %v13280_v48  ;;  %v13314_v48 = vpack.c.bf16 %v10558_v36, %v10553_v7 }
 0x491   :  { %v16448_v26 = vadd.f32 %v2246_v50, %v1711_v28  ;;  %v2436_v9 = vpop.f32.mrb[101].mxu1  ;;  %13283 = vmatpush1.bf16.msra.mxu1 %v13282_v44  ;;  %v12133_v14 = vpop.f32.mrb[85].mxu0  ;;  %v10552_v50 = vld [vmem:[%s21451_s4 + $0x870] sm:$0xff] }
 0x494   :  { %v2251_v17 = vpop.f32.mrb[86].mxu0  ;;  %v2440_v21 = vpop.f32.mrb[102].mxu1 }
 0x495   :  { %v16456_v25 = vadd.f32 %v2251_v17, %v1716_v19  ;;  %v13286_v27 = vpack.c.bf16 %v2440_v21, %v2434_v11  ;;  %v2442_v24 = vpop.f32.mrb[103].mxu1  ;;  %v12136_v37 = vpop.f32.mrb[87].mxu0  ;;  %v10538_v19 = vld [vmem:[%s21451_s4 + $0x800] sm:$0xff]  ;;  %v10563_v11 = vld [vmem:[%s21451_s4 + $0x8c8] sm:$0xff] }
 0x496   :  { %v13284_v28 = vpack.c.bf16 %v2442_v24, %v2436_v9  ;;  %v13306_v58 = vpack.c.bf16 %v10538_v19, %v10533_v33  ;;  %v10568_v9 = vld [vmem:[%s21451_s4 + $0x8f0] sm:$0xff]  ;;  %v16545_v17 = vld [vmem:[%s21452_s5 + $0x128] sm:$0xff]  ;;  %v10562_v24 = vld [vmem:[%s21451_s4 + $0x8c0] sm:$0xff] }
 0x497   :  { %v10573_v37 = vld [vmem:[%s21451_s4 + $0x918] sm:$0xff]  ;;  %v16569_v19 = vld [vmem:[%s21452_s5 + $0x130] sm:$0xff] }
 0x498   :  { %v2256_v53 = vpop.f32.mrb[88].mxu0  ;;  %13285 = vmatprep.subr.bf16.mxu1 %v13284_v28  ;;  %v10578_v28 = vld [vmem:[%s21451_s4 + $0x940] sm:$0xff] }
 0x499   :  { %v16471_v34 = vadd.f32 %v2256_v53, %v16418_v23  ;;  %13287 = vmatpush1.bf16.msra.mxu1 %v13286_v27  ;;  %v12139_v57 = vpop.f32.mrb[89].mxu0  ;;  %v10543_v23 = vld [vmem:[%s21451_s4 + $0x828] sm:$0xff]  ;;  %v13318_v27 = vpack.c.bf16 %v10568_v9, %v10563_v11  ;;  %v16614_v9 = vld [vmem:[%s21452_s5 + $0x140] sm:$0xff] }
 0x49a   :  { %13303 = vmatprep.subr.bf16.mxu1 %v13302_v30  ;;  %v13310_v5 = vpack.c.bf16 %v10548_v63, %v10543_v23  ;;  %v10583_v63 = vld [vmem:[%s21451_s4 + $0x968] sm:$0xff] }
 0x49c   :  { %v2261_v38 = vpop.f32.mrb[90].mxu0  ;;  %10471 = vmatmul.mubr.msk.f32.vlgmr.msra.gmra.mrb[28].mxu1 %vm1204_vm1, %v16476_v43 }
 0x49d   :  { %v16493_v3 = vadd.f32 %v2261_v38, %v16420_v29  ;;  %v12142_v49 = vpop.f32.mrb[91].mxu0  ;;  %2758 = vmatprep.mubr.f32.mxu1 %v21461_v32  ;;  %13305 = vmatpush1.bf16.msra.mxu1 %v13304_v52  ;;  %v10547_v29 = vld [vmem:[%s21451_s4 + $0x848] sm:$0xff]  ;;  %v13322_v52 = vpack.c.bf16 %v10578_v28, %v10573_v37  ;;  %v10588_v38 = vld [vmem:[%s21451_s4 + $0x990] sm:$0xff]  ;;  %v10530_v37 = vld [vmem:[%s21451_s4 + $0x7c0] sm:$0xff] }
 0x49e   :  { %13307 = vmatprep.subr.bf16.mxu1 %v13306_v58  ;;  %v13312_v47 = vpack.c.bf16 %v10547_v29, %v10542_v8  ;;  %v10572_v58 = vld [vmem:[%s21451_s4 + $0x910] sm:$0xff]  ;;  %v16593_v8 = vld [vmem:[%s21452_s5 + $0x138] sm:$0xff] }
 0x49f   :  { %v13324_v36 = vpack.c.bf16 %v10577_v61, %v10572_v58  ;;  %v16642_v61 = vld [vmem:[%s21452_s5 + $0x150] sm:$0xff] }
 0x4a0   :  { %v2266_v41 = vpop.f32.mrb[92].mxu0  ;;  %10472 = vmatmul.mubr.msk.f32.gmra.mrb[30].mxu1 %vm1204_vm1, %v16499_v15 }
 0x4a1   :  { %v16516_v42 = vadd.f32 %v2266_v41, %v16422_v18  ;;  %v12145_v44 = vpop.f32.mrb[93].mxu0  ;;  %2764 = vmatprep.mubr.f32.mxu1 %v21461_v32  ;;  %13309 = vmatpush1.bf16.msra.mxu1 %v13308_v46  ;;  %v10557_v18 = vld [vmem:[%s21451_s4 + $0x898] sm:$0xff]  ;;  %v13326_v41 = vpack.c.bf16 %v10588_v38, %v10583_v63 }
 0x4a2   :  { %13311 = vmatprep.subr.bf16.mxu1 %v13310_v5  ;;  %v13316_v21 = vpack.c.bf16 %v10557_v18, %v10552_v50  ;;  %v10582_v44 = vld [vmem:[%s21451_s4 + $0x960] sm:$0xff]  ;;  %v10593_v50 = vld [vmem:[%s21451_s4 + $0x9b8] sm:$0xff] }
 0x4a3   :  { %v10598_v18 = vld [vmem:[%s21451_s4 + $0x9e0] sm:$0xff]  ;;  %v16662_v63 = vld [vmem:[%s21452_s5 + $0x158] sm:$0xff] }
 0x4a4   :  { %v2271_v14 = vpop.f32.mrb[94].mxu0  ;;  %10473 = vmatmul.mubr.msk.f32.gmra.mrb[32].mxu1 %vm1204_vm1, %v16522_v45 }
 0x4a5   :  { %v16539_v16 = vadd.f32 %v2271_v14, %v16424_v35  ;;  %v12148_v12 = vpop.f32.mrb[95].mxu0  ;;  %2770 = vmatprep.mubr.f32.mxu1 %v21461_v32  ;;  %13313 = vmatpush1.bf16.msra.mxu1 %v13312_v47  ;;  %v10567_v35 = vld [vmem:[%s21451_s4 + $0x8e8] sm:$0xff] }
 0x4a6   :  { %13315 = vmatprep.subr.bf16.mxu1 %v13314_v48  ;;  %v13320_v53 = vpack.c.bf16 %v10567_v35, %v10562_v24  ;;  %v10587_v47 = vld [vmem:[%s21451_s4 + $0x988] sm:$0xff]  ;;  %v13330_v12 = vpack.c.bf16 %v10598_v18, %v10593_v50  ;;  %v10525_v35 = vld [vmem:[%s21451_s4 + $0x798] sm:$0xff]  ;;  %v10534_v50 = vld [vmem:[%s21451_s4 + $0x7e0] sm:$0xff] }
 0x4a7   :  { %v13328_v14 = vpack.c.bf16 %v10587_v47, %v10582_v44  ;;  %v13334_v58 = vpack.c.bf16 %v10530_v37, %v10525_v35  ;;  %v10540_v44 = vld [vmem:[%s21451_s4 + $0x810] sm:$0xff]  ;;  %v10539_v18 = vld [vmem:[%s21451_s4 + $0x808] sm:$0xff] }
 0x4a8   :  { %v16559_v30 = vpop.f32.mrb[104].mxu1  ;;  %v2511_v40 = vpop.f32.mrb[96].mxu0  ;;  %10474 = vmatmul.mubr.msk.f32.gmra.mrb[34].mxu1 %vm1204_vm1, %v16545_v17  ;;  %v10555_v35 = vld [vmem:[%s21451_s4 + $0x888] sm:$0xff]  ;;  %v10560_v37 = vld [vmem:[%s21451_s4 + $0x8b0] sm:$0xff] }
 0x4a9   :  { %v16563_v31 = vpop.f32.mrb[105].mxu1  ;;  %v2513_v33 = vpop.f32.mrb[97].mxu0  ;;  %2776 = vmatprep.mubr.f32.mxu1 %v21461_v32  ;;  %13317 = vmatpush1.bf16.msra.mxu1 %v13316_v21  ;;  %v10592_v21 = vld [vmem:[%s21451_s4 + $0x9b0] sm:$0xff] }
 0x4aa   :  { %v13297_v57 = vpack.c.bf16 %v16559_v30, %v16563_v31  ;;  %13319 = vmatprep.subr.bf16.mxu1 %v13318_v27  ;;  %v10597_v27 = vld [vmem:[%s21451_s4 + $0x9d8] sm:$0xff]  ;;  %v16676_v30 = vld [vmem:[%s21452_s5 + $0x160] sm:$0xff]  ;;  %v16689_v31 = vld [vmem:[%s21452_s5 + $0x168] sm:$0xff] }
 0x4ac   :  { %v16579_v1 = vpop.f32.mrb[106].mxu1  ;;  %v2517_v23 = vpop.f32.mrb[98].mxu0  ;;  %10475 = vmatmul.mubr.msk.f32.gmra.mrb[36].mxu1 %vm1204_vm1, %v16569_v19 }
 0x4ad   :  { %v13290_v49 = vpack.c.bf16 %v2517_v23, %v2511_v40  ;;  %v2610_v46 = vpop.f32.mrb[107].mxu1  ;;  %v2519_v5 = vpop.f32.mrb[99].mxu0  ;;  %2782 = vmatprep.mubr.f32.mxu1 %v21461_v32  ;;  %13321 = vmatpush1.bf16.msra.mxu1 %v13320_v53  ;;  %v10531_v23 = vld [vmem:[%s21451_s4 + $0x7c8] sm:$0xff] }
 0x4ae   :  { %v13300_v29 = vpack.c.bf16 %v16579_v1, %v2610_v46  ;;  %v13288_v7 = vpack.c.bf16 %v2519_v5, %v2513_v33  ;;  %13323 = vmatprep.subr.bf16.mxu1 %v13322_v52  ;;  %v16634_v33 = vld [vmem:[%s21452_s5 + $0x148] sm:$0xff]  ;;  %v13332_v52 = vpack.c.bf16 %v10597_v27, %v10592_v21  ;;  %v10526_v1 = vld [vmem:[%s21451_s4 + $0x7a0] sm:$0xff]  ;;  %v10544_v27 = vld [vmem:[%s21451_s4 + $0x830] sm:$0xff] }
 0x4af   :  { %v16666_v38 = vpack.c.bf16 %v10531_v23, %v10526_v1  ;;  %v16722_v46 = vld [vmem:[%s21452_s5 + $0x180] sm:$0xff]  ;;  %v16733_v5 = vld [vmem:[%s21452_s5 + $0x188] sm:$0xff] }
 0x4b0   :  { %v2523_v48 = vpop.f32.mrb[100].mxu0  ;;  %10476 = vmatmul.mubr.msk.f32.gmra.mrb[38].mxu1 %vm1204_vm1, %v16593_v8  ;;  %13289 = vmatprep.subr.bf16.mxu0 %v13288_v7  ;;  %v10524_v7 = vld [vmem:[%s21451_s4 + $0x790] sm:$0xff]  ;;  %v10570_v1 = vld [vmem:[%s21451_s4 + $0x900] sm:$0xff] }
 0x4b1   :  { %v2525_v11 = vpop.f32.mrb[101].mxu0  ;;  %13291 = vmatpush1.bf16.msra.mxu0 %v13290_v49  ;;  %2788 = vmatprep.mubr.f32.mxu1 %v21461_v32  ;;  %v16711_v49 = vld [vmem:[%s21452_s5 + $0x178] sm:$0xff] }
 0x4b2   :  { %13325 = vmatpush1.bf16.msra.mxu1 %v13324_v36  ;;  %v10529_v36 = vld [vmem:[%s21451_s4 + $0x7b8] sm:$0xff] }
 0x4b3   :  { %13327 = vmatprep.subr.bf16.mxu1 %v13326_v41  ;;  %v10535_v41 = vld [vmem:[%s21451_s4 + $0x7e8] sm:$0xff]  ;;  %v13336_v47 = vpack.c.bf16 %v10529_v36, %v10524_v7  ;;  %v10564_v36 = vld [vmem:[%s21451_s4 + $0x8d0] sm:$0xff] }
 0x4b4   :  { %v2529_v24 = vpop.f32.mrb[102].mxu0  ;;  %10477 = vmatmul.mubr.msk.f32.gmra.mrb[40].mxu1 %vm1204_vm1, %v16614_v9 }
 0x4b5   :  { %v13294_v28 = vpack.c.bf16 %v2529_v24, %v2523_v48  ;;  %v2531_v40 = vpop.f32.mrb[103].mxu0  ;;  %2794 = vmatprep.mubr.f32.mxu1 %v21461_v32  ;;  %v13338_v48 = vpack.c.bf16 %v10540_v44, %v10535_v41  ;;  %v10549_v24 = vld [vmem:[%s21451_s4 + $0x858] sm:$0xff]  ;;  %v10575_v44 = vld [vmem:[%s21451_s4 + $0x928] sm:$0xff] }
 0x4b6   :  { %v13292_v53 = vpack.c.bf16 %v2531_v40, %v2525_v11  ;;  %13329 = vmatpush1.bf16.msra.mxu1 %v13328_v14  ;;  %v10545_v11 = vld [vmem:[%s21451_s4 + $0x838] sm:$0xff]  ;;  %v10550_v14 = vld [vmem:[%s21451_s4 + $0x860] sm:$0xff]  ;;  %v13346_v40 = vpack.c.bf16 %v10560_v37, %v10555_v35  ;;  %v10595_v37 = vld [vmem:[%s21451_s4 + $0x9c8] sm:$0xff] }
 0x4b7   :  { %13331 = vmatprep.subr.bf16.mxu1 %v13330_v12  ;;  %v13340_v12 = vpack.c.bf16 %v10539_v18, %v10534_v50  ;;  %v13342_v21 = vpack.c.bf16 %v10550_v14, %v10545_v11  ;;  %v10569_v41 = vld [vmem:[%s21451_s4 + $0x8f8] sm:$0xff]  ;;  %v10574_v18 = vld [vmem:[%s21451_s4 + $0x920] sm:$0xff]  ;;  %v10579_v11 = vld [vmem:[%s21451_s4 + $0x948] sm:$0xff] }
 0x4b8   :  { %10478 = vmatmul.mubr.msk.f32.gmra.mrb[42].mxu1 %vm1204_vm1, %v16634_v33  ;;  %13293 = vmatprep.subr.bf16.mxu0 %v13292_v53  ;;  %v10554_v53 = vld [vmem:[%s21451_s4 + $0x880] sm:$0xff]  ;;  %v10585_v14 = vld [vmem:[%s21451_s4 + $0x978] sm:$0xff] }
 0x4b9   :  { %13295 = vmatpush1.bf16.msra.mxu0 %v13294_v28  ;;  %2800 = vmatprep.mubr.f32.mxu1 %v21461_v32  ;;  %v13344_v28 = vpack.c.bf16 %v10549_v24, %v10544_v27  ;;  %v10584_v24 = vld [vmem:[%s21451_s4 + $0x970] sm:$0xff]  ;;  %v10589_v35 = vld [vmem:[%s21451_s4 + $0x998] sm:$0xff] }
 0x4ba   :  { %13296 = vmatprep.subr.bf16.mxu0 %v21463_v55  ;;  %13333 = vmatpush1.bf16.msra.mxu1 %v13332_v52  ;;  %v10559_v52 = vld [vmem:[%s21451_s4 + $0x8a8] sm:$0xff] }
 0x4bb   :  { %13335 = vmatprep.subr.bf16.mxu1 %v13334_v58  ;;  %v10565_v58 = vld [vmem:[%s21451_s4 + $0x8d8] sm:$0xff]  ;;  %v13348_v23 = vpack.c.bf16 %v10559_v52, %v10554_v53  ;;  %v10594_v52 = vld [vmem:[%s21451_s4 + $0x9c0] sm:$0xff] }
 0x4bc   :  { %10479 = vmatmul.mubr.msk.f32.gmra.mrb[44].mxu1 %vm1204_vm1, %v16642_v61  ;;  %10488 = vmatmul.mubr.msk.f32.vlgmr.msra.gmra.mrb[28].mxu0 %vm1204_vm1, %v16476_v43  ;;  %v13350_v7 = vpack.c.bf16 %v10570_v1, %v10565_v58  ;;  %v10599_v58 = vld [vmem:[%s21451_s4 + $0x9e8] sm:$0xff] }
 0x4bd   :  { %13298 = vmatpush3.bf16.msra.mxu0 %v13297_v57  ;;  %2806 = vmatprep.mubr.f32.mxu1 %v21461_v32  ;;  %v16700_v57 = vld [vmem:[%s21452_s5 + $0x170] sm:$0xff]  ;;  %v13364_v1 = vpack.c.bf16 %v10599_v58, %v10594_v52 }
 0x4be   :  { %2925 = vmatprep.mubr.f32.mxu0 %v21461_v32  ;;  %13299 = vmatprep.subr.bf16.mxu0 %v21463_v55 }
 0x4c0   :  { %10480 = vmatmul.mubr.msk.f32.gmra.mrb[46].mxu1 %vm1204_vm1, %v16662_v63  ;;  %10489 = vmatmul.mubr.msk.f32.gmra.mrb[30].mxu0 %vm1204_vm1, %v16499_v15 }
 0x4c1   :  { %13301 = vmatpush3.bf16.msra.mxu0 %v13300_v29  ;;  %2812 = vmatprep.mubr.f32.mxu1 %v21461_v32  ;;  %v16744_v29 = vld [vmem:[%s21452_s5 + $0x190] sm:$0xf] }
 0x4c2   :  { %2931 = vmatprep.mubr.f32.mxu0 %v21461_v32  ;;  %13367 = vmatprep.subr.bf16.mxu0 %v16666_v38 }
 0x4c4   :  { %10481 = vmatmul.mubr.msk.f32.gmra.mrb[48].mxu1 %vm1204_vm1, %v16676_v30  ;;  %10490 = vmatmul.mubr.msk.f32.gmra.mrb[32].mxu0 %vm1204_vm1, %v16522_v45 }
 0x4c5   :  { %2818 = vmatprep.mubr.f32.mxu1 %v21461_v32  ;;  %2937 = vmatprep.mubr.f32.mxu0 %v21461_v32 }
 0x4c8   :  { %10482 = vmatmul.mubr.msk.f32.gmra.mrb[50].mxu1 %vm1204_vm1, %v16689_v31  ;;  %10491 = vmatmul.mubr.msk.f32.gmra.mrb[34].mxu0 %vm1204_vm1, %v16545_v17 }
 0x4c9   :  { %2824 = vmatprep.mubr.f32.mxu1 %v21461_v32  ;;  %2943 = vmatprep.mubr.f32.mxu0 %v21461_v32 }
 0x4cc   :  { %10483 = vmatmul.mubr.msk.f32.gmra.mrb[52].mxu1 %vm1204_vm1, %v16700_v57  ;;  %10492 = vmatmul.mubr.msk.f32.gmra.mrb[36].mxu0 %vm1204_vm1, %v16569_v19 }
 0x4cd   :  { %2830 = vmatprep.mubr.f32.mxu1 %v21461_v32  ;;  %2949 = vmatprep.mubr.f32.mxu0 %v21461_v32 }
 0x4d0   :  { %10484 = vmatmul.mubr.msk.f32.gmra.mrb[54].mxu1 %vm1204_vm1, %v16711_v49  ;;  %10493 = vmatmul.mubr.msk.f32.gmra.mrb[38].mxu0 %vm1204_vm1, %v16593_v8 }
 0x4d1   :  { %2836 = vmatprep.mubr.f32.mxu1 %v21461_v32  ;;  %2955 = vmatprep.mubr.f32.mxu0 %v21461_v32 }
 0x4d4   :  { %10485 = vmatmul.mubr.msk.f32.gmra.mrb[56].mxu1 %vm1204_vm1, %v16722_v46  ;;  %10494 = vmatmul.mubr.msk.f32.gmra.mrb[40].mxu0 %vm1204_vm1, %v16614_v9 }
 0x4d5   :  { %2842 = vmatprep.mubr.f32.mxu1 %v21461_v32  ;;  %2961 = vmatprep.mubr.f32.mxu0 %v21461_v32 }
 0x4d8   :  { %10486 = vmatmul.mubr.msk.f32.gmra.mrb[58].mxu1 %vm1204_vm1, %v16733_v5  ;;  %10495 = vmatmul.mubr.msk.f32.gmra.mrb[42].mxu0 %vm1204_vm1, %v16634_v33 }
 0x4d9   :  { %2848 = vmatprep.mubr.f32.mxu1 %v21461_v32  ;;  %2967 = vmatprep.mubr.f32.mxu0 %v21461_v32 }
 0x4dc   :  { %10487 = vmatmul.mubr.msk.f32.gmra.mrb[60].mxu1 %vm1204_vm1, %v16744_v29  ;;  %10496 = vmatmul.mubr.msk.f32.gmra.mrb[44].mxu0 %vm1204_vm1, %v16642_v61 }
 0x4dd   :  { %2973 = vmatprep.mubr.f32.mxu0 %v21461_v32  ;;  %3402 = vmatprep.mubr.f32.mxu1 %v21461_v32 }
 0x4e0   :  { %10497 = vmatmul.mubr.msk.f32.gmra.mrb[46].mxu0 %vm1204_vm1, %v16662_v63  ;;  %3403 = vmatmul.mubr.f32.vlgmr.msra.gmra.mrb[108].mxu1 %v15244_v54 }
 0x4e1   :  { %13337 = vmatpush1.bf16.msra.mxu1 %v13336_v47  ;;  %2979 = vmatprep.mubr.f32.mxu0 %v21461_v32  ;;  %v10580_v47 = vld [vmem:[%s21451_s4 + $0x950] sm:$0xff] }
 0x4e2   :  { %3408 = vmatprep.mubr.f32.mxu1 %v21461_v32  ;;  %13339 = vmatprep.subr.bf16.mxu1 %v13338_v48  ;;  %v13352_v48 = vpack.c.bf16 %v10569_v41, %v10564_v36  ;;  %v13354_v50 = vpack.c.bf16 %v10580_v47, %v10575_v44  ;;  %v10546_v41 = vld [vmem:[%s21451_s4 + $0x840] sm:$0xff]  ;;  %v10551_v44 = vld [vmem:[%s21451_s4 + $0x868] sm:$0xff] }
 0x4e3   :  { %v13374_v47 = vpack.c.bf16 %v10551_v44, %v10546_v41 }
 0x4e4   :  { %10498 = vmatmul.mubr.msk.f32.gmra.mrb[48].mxu0 %vm1204_vm1, %v16676_v30  ;;  %3409 = vmatmul.mubr.f32.gmra.mrb[110].mxu1 %v15266_v2 }
 0x4e5   :  { %13341 = vmatpush1.bf16.msra.mxu1 %v13340_v12  ;;  %2985 = vmatprep.mubr.f32.mxu0 %v21461_v32  ;;  %v10590_v12 = vld [vmem:[%s21451_s4 + $0x9a0] sm:$0xff] }
 0x4e6   :  { %3414 = vmatprep.mubr.f32.mxu1 %v21461_v32  ;;  %13343 = vmatprep.subr.bf16.mxu1 %v13342_v21  ;;  %v13356_v21 = vpack.c.bf16 %v10579_v11, %v10574_v18  ;;  %v13358_v27 = vpack.c.bf16 %v10590_v12, %v10585_v14  ;;  %v10581_v11 = vld [vmem:[%s21451_s4 + $0x958] sm:$0xff]  ;;  %v10591_v12 = vld [vmem:[%s21451_s4 + $0x9a8] sm:$0xff] }
 0x4e8   :  { %10499 = vmatmul.mubr.msk.f32.gmra.mrb[50].mxu0 %vm1204_vm1, %v16689_v31  ;;  %3415 = vmatmul.mubr.f32.gmra.mrb[112].mxu1 %v15282_v10 }
 0x4e9   :  { %13345 = vmatpush1.bf16.msra.mxu1 %v13344_v28  ;;  %2991 = vmatprep.mubr.f32.mxu0 %v21461_v32  ;;  %v10600_v28 = vld [vmem:[%s21451_s4 + $0x9f0] sm:$0xff] }
 0x4ea   :  { %3420 = vmatprep.mubr.f32.mxu1 %v21461_v32  ;;  %13347 = vmatprep.subr.bf16.mxu1 %v13346_v40  ;;  %v13360_v40 = vpack.c.bf16 %v10589_v35, %v10584_v24  ;;  %v13362_v53 = vpack.c.bf16 %v10600_v28, %v10595_v37  ;;  %v17000_v35 = vld [vmem:[%s21452_s5 + $0x198] sm:$0xff]  ;;  %v17009_v37 = vld [vmem:[%s21452_s5 + $0x1a0] sm:$0xff]  ;;  %v17017_v28 = vld [vmem:[%s21452_s5 + $0x1a8] sm:$0xff] }
 0x4ec   :  { %10500 = vmatmul.mubr.msk.f32.gmra.mrb[52].mxu0 %vm1204_vm1, %v16700_v57  ;;  %3421 = vmatmul.mubr.f32.gmra.mrb[114].mxu1 %v15306_v20 }
 0x4ed   :  { %13349 = vmatpush1.bf16.msra.mxu1 %v13348_v23  ;;  %2997 = vmatprep.mubr.f32.mxu0 %v21461_v32  ;;  %v10536_v23 = vld [vmem:[%s21451_s4 + $0x7f0] sm:$0xff] }
 0x4ee   :  { %13351 = vmatprep.subr.bf16.mxu1 %v13350_v7  ;;  %3491 = vmatprep.mubr.f32.mxu1 %v21461_v32  ;;  %v10541_v7 = vld [vmem:[%s21451_s4 + $0x818] sm:$0xff] }
 0x4ef   :  { %v13370_v36 = vpack.c.bf16 %v10541_v7, %v10536_v23  ;;  %v17036_v7 = vld [vmem:[%s21452_s5 + $0x1b8] sm:$0xff] }
 0x4f0   :  { %10501 = vmatmul.mubr.msk.f32.gmra.mrb[54].mxu0 %vm1204_vm1, %v16711_v49 }
 0x4f1   :  { %13353 = vmatpush1.bf16.msra.mxu1 %v13352_v48  ;;  %3003 = vmatprep.mubr.f32.mxu0 %v21461_v32  ;;  %v10561_v48 = vld [vmem:[%s21451_s4 + $0x8b8] sm:$0xff] }
 0x4f2   :  { %13355 = vmatprep.subr.bf16.mxu1 %v13354_v50  ;;  %v10571_v50 = vld [vmem:[%s21451_s4 + $0x908] sm:$0xff] }
 0x4f4   :  { %10502 = vmatmul.mubr.msk.f32.gmra.mrb[56].mxu0 %vm1204_vm1, %v16722_v46 }
 0x4f5   :  { %13357 = vmatpush1.bf16.msra.mxu1 %v13356_v21  ;;  %3009 = vmatprep.mubr.f32.mxu0 %v21461_v32 }
 0x4f6   :  { %13359 = vmatprep.subr.bf16.mxu1 %v13358_v27  ;;  %v10601_v27 = vld [vmem:[%s21451_s4 + $0x9f8] sm:$0xff] }
 0x4f8   :  { %10503 = vmatmul.mubr.msk.f32.gmra.mrb[58].mxu0 %vm1204_vm1, %v16733_v5 }
 0x4f9   :  { %13361 = vmatpush1.bf16.msra.mxu1 %v13360_v40  ;;  %3015 = vmatprep.mubr.f32.mxu0 %v21461_v32  ;;  %v17025_v40 = vld [vmem:[%s21452_s5 + $0x1b0] sm:$0xff] }
 0x4fa   :  { %13363 = vmatprep.subr.bf16.mxu1 %v13362_v53 }
 0x4fc   :  { %10504 = vmatmul.mubr.msk.f32.gmra.mrb[60].mxu0 %vm1204_vm1, %v16744_v29 }
 0x4fd   :  { %13365 = vmatpush1.bf16.msra.mxu1 %v13364_v1  ;;  %12195 = vmatprep.mubr.msk.f32.mxu0 %vm14707_vm2, %v21461_v32 }
 0x500   :  { %3492 = vmatmul.mubr.f32.vlgmr.msra.gmra.mrb[116].mxu1 %v15244_v54  ;;  %12196 = vmatmul.mubr.msk.f32.vlgmr.msra.gmra.mrb[104].mxu0 %vm1204_vm1, %v16476_v43  ;;  %v10556_v43 = vld [vmem:[%s21451_s4 + $0x890] sm:$0xff] }
 0x501   :  { %3497 = vmatprep.mubr.f32.mxu1 %v21461_v32  ;;  %12198 = vmatprep.mubr.msk.f32.mxu0 %vm14707_vm2, %v21461_v32 }
 0x502   :  { %13369 = vmatpush3.bf16.msra.mxu0 %v16666_v38  ;;  %v13378_v38 = vpack.c.bf16 %v10561_v48, %v10556_v43  ;;  %v17047_v48 = vld [vmem:[%s21452_s5 + $0x1c0] sm:$0xff] }
 0x503   :  { %13371 = vmatprep.subr.bf16.mxu0 %v13370_v36 }
 0x504   :  { %3498 = vmatmul.mubr.f32.gmra.mrb[118].mxu1 %v15266_v2  ;;  %12199 = vmatmul.mubr.msk.f32.gmra.mrb[106].mxu0 %vm1204_vm1, %v16499_v15  ;;  %v10566_v15 = vld [vmem:[%s21451_s4 + $0x8e0] sm:$0xff] }
 0x505   :  { %3503 = vmatprep.mubr.f32.mxu1 %v21461_v32  ;;  %12201 = vmatprep.mubr.msk.f32.mxu0 %vm14707_vm2, %v21461_v32  ;;  %v13382_v18 = vpack.c.bf16 %v10571_v50, %v10566_v15 }
 0x506   :  { %13373 = vmatpush3.bf16.msra.mxu0 %v13370_v36 }
 0x507   :  { %13375 = vmatprep.subr.bf16.mxu0 %v13374_v47 }
 0x508   :  { %3504 = vmatmul.mubr.f32.gmra.mrb[120].mxu1 %v15282_v10  ;;  %12202 = vmatmul.mubr.msk.f32.gmra.mrb[108].mxu0 %vm1204_vm1, %v16522_v45  ;;  %v10576_v45 = vld [vmem:[%s21451_s4 + $0x930] sm:$0xff] }
 0x509   :  { %3509 = vmatprep.mubr.f32.mxu1 %v21461_v32  ;;  %12204 = vmatprep.mubr.msk.f32.mxu0 %vm14707_vm2, %v21461_v32  ;;  %v13386_v14 = vpack.c.bf16 %v10581_v11, %v10576_v45  ;;  %v17058_v11 = vld [vmem:[%s21452_s5 + $0x1c8] sm:$0xff] }
 0x50a   :  { %13377 = vmatpush3.bf16.msra.mxu0 %v13374_v47 }
 0x50b   :  { %13379 = vmatprep.subr.bf16.mxu0 %v13378_v38 }
 0x50c   :  { %3510 = vmatmul.mubr.f32.gmra.mrb[122].mxu1 %v15306_v20  ;;  %12205 = vmatmul.mubr.msk.f32.gmra.mrb[110].mxu0 %vm1204_vm1, %v16545_v17  ;;  %v10586_v17 = vld [vmem:[%s21451_s4 + $0x980] sm:$0xff] }
 0x50d   :  { %12207 = vmatprep.mubr.msk.f32.mxu0 %vm14707_vm2, %v21461_v32  ;;  %3734 = vmatprep.mubr.f32.mxu1 %v21461_v32  ;;  %v13390_v21 = vpack.c.bf16 %v10591_v12, %v10586_v17  ;;  %v10676_v17 = vld [vmem:[%s21451_s4 + $0xa30] sm:$0xff] }
 0x50e   :  { %13381 = vmatpush3.bf16.msra.mxu0 %v13378_v38 }
 0x50f   :  { %13383 = vmatprep.subr.bf16.mxu0 %v13382_v18 }
 0x510   :  { %12208 = vmatmul.mubr.msk.f32.gmra.mrb[112].mxu0 %vm1204_vm1, %v16569_v19  ;;  %v10596_v19 = vld [vmem:[%s21451_s4 + $0x9d0] sm:$0xff] }
 0x511   :  { %12210 = vmatprep.mubr.msk.f32.mxu0 %vm14707_vm2, %v21461_v32  ;;  %v13394_v24 = vpack.c.bf16 %v10601_v27, %v10596_v19 }
 0x512   :  { %13385 = vmatpush3.bf16.msra.mxu0 %v13382_v18 }
 0x513   :  { %13387 = vmatprep.subr.bf16.mxu0 %v13386_v14 }
 0x514   :  { %12211 = vmatmul.mubr.msk.f32.gmra.mrb[114].mxu0 %vm1204_vm1, %v16593_v8 }
 0x515   :  { %12213 = vmatprep.mubr.msk.f32.mxu0 %vm14707_vm2, %v21461_v32 }
 0x516   :  { %13389 = vmatpush3.bf16.msra.mxu0 %v13386_v14  ;;  %v10671_v14 = vld [vmem:[%s21451_s4 + $0xa08] sm:$0xff] }
 0x517   :  { %13391 = vmatprep.subr.bf16.mxu0 %v13390_v21 }
 0x518   :  { %12214 = vmatmul.mubr.msk.f32.gmra.mrb[116].mxu0 %vm1204_vm1, %v16614_v9 }
 0x519   :  { %12216 = vmatprep.mubr.msk.f32.mxu0 %vm14707_vm2, %v21461_v32 }
 0x51a   :  { %13393 = vmatpush3.bf16.msra.mxu0 %v13390_v21 }
 0x51b   :  { %13395 = vmatprep.subr.bf16.mxu0 %v13394_v24 }
 0x51c   :  { %12217 = vmatmul.mubr.msk.f32.gmra.mrb[118].mxu0 %vm1204_vm1, %v16634_v33 }
 0x51d   :  { %12219 = vmatprep.mubr.msk.f32.mxu0 %vm14707_vm2, %v21461_v32 }
 0x51e   :  { %13397 = vmatpush3.bf16.msra.mxu0 %v13394_v24 }
 0x520   :  { %12220 = vmatmul.mubr.msk.f32.gmra.mrb[120].mxu0 %vm1204_vm1, %v16642_v61 }
 0x521   :  { %12222 = vmatprep.mubr.msk.f32.mxu0 %vm14707_vm2, %v21461_v32 }
 0x524   :  { %12223 = vmatmul.mubr.msk.f32.gmra.mrb[122].mxu0 %vm1204_vm1, %v16662_v63 }
 0x525   :  { %12225 = vmatprep.mubr.msk.f32.mxu0 %vm14707_vm2, %v21461_v32 }
 0x528   :  { %12226 = vmatmul.mubr.msk.f32.gmra.mrb[124].mxu0 %vm1204_vm1, %v16676_v30 }
 0x529   :  { %12228 = vmatprep.mubr.msk.f32.mxu0 %vm14707_vm2, %v21461_v32 }
 0x52c   :  { %12229 = vmatmul.mubr.msk.f32.gmra.mrb[126].mxu0 %vm1204_vm1, %v16689_v31 }
 0x52d   :  { %12231 = vmatprep.mubr.msk.f32.mxu0 %vm14707_vm2, %v21461_v32 }
 0x530   :  { %12232 = vmatmul.mubr.msk.f32.gmra.mrb[128].mxu0 %vm1204_vm1, %v16700_v57 }
 0x531   :  { %12234 = vmatprep.mubr.msk.f32.mxu0 %vm14707_vm2, %v21461_v32 }
 0x534   :  { %12235 = vmatmul.mubr.msk.f32.gmra.mrb[130].mxu0 %vm1204_vm1, %v16711_v49 }
 0x535   :  { %12237 = vmatprep.mubr.msk.f32.mxu0 %vm14707_vm2, %v21461_v32 }
 0x538   :  { %12238 = vmatmul.mubr.msk.f32.gmra.mrb[132].mxu0 %vm1204_vm1, %v16722_v46 }
 0x539   :  { %12240 = vmatprep.mubr.msk.f32.mxu0 %vm14707_vm2, %v21461_v32 }
 0x53c   :  { %12241 = vmatmul.mubr.msk.f32.gmra.mrb[134].mxu0 %vm1204_vm1, %v16733_v5 }
 0x53d   :  { %12243 = vmatprep.mubr.msk.f32.mxu0 %vm14707_vm2, %v21461_v32 }
 0x540   :  { %12244 = vmatmul.mubr.msk.f32.gmra.mrb[136].mxu0 %vm1204_vm1, %v16744_v29 }
 0x541   :  { %12278 = vmatprep.mubr.f32.mxu0 %v15244_v54 }
 0x544   :  { %12279 = vmatmul.mubr.f32.vlgmr.msra.gmra.mrb[138].mxu0 %v15266_v2 }
 0x545   :  { %12281 = vmatprep.mubr.f32.mxu0 %v15282_v10 }
 0x548   :  { %12282 = vmatmul.mubr.f32.gmra.mrb[140].mxu0 %v15306_v20 }
 0x549   :  { %3901 = vmatprep.mubr.f32.mxu0 %v21461_v32 }
 0x5b3   :  { %v3404_v8 = vpop.f32.mrb[108].mxu1 }
 0x5b4   :  { %v3406_v9 = vpop.f32.mrb[109].mxu1 }
 0x5b7   :  { %v3410_v33 = vpop.f32.mrb[110].mxu1 }
 0x5b8   :  { %v13400_v61 = vpack.c.bf16 %v3410_v33, %v3404_v8  ;;  %v3412_v63 = vpop.f32.mrb[111].mxu1  ;;  %v17075_v8 = vld [vmem:[%s21452_s5 + $0x1d0] sm:$0xff]  ;;  %v13420_v33 = vpack.c.bf16 %v10676_v17, %v10671_v14  ;;  %v17150_v17 = vld [vmem:[%s21452_s5 + $0x1e8] sm:$0xff] }
 0x5b9   :  { %v13398_v30 = vpack.c.bf16 %v3412_v63, %v3406_v9 }
 0x5bb   :  { %v3416_v31 = vpop.f32.mrb[112].mxu1  ;;  %13399 = vmatprep.subr.bf16.mxu1 %v13398_v30  ;;  %v10681_v30 = vld [vmem:[%s21451_s4 + $0xa58] sm:$0xff] }
 0x5bc   :  { %v3418_v57 = vpop.f32.mrb[113].mxu1  ;;  %13401 = vmatpush1.bf16.msra.mxu1 %v13400_v61  ;;  %v10670_v61 = vld [vmem:[%s21451_s4 + $0xa00] sm:$0xff] }
 0x5bf   :  { %v3422_v49 = vpop.f32.mrb[114].mxu1 }
 0x5c0   :  { %v13404_v46 = vpack.c.bf16 %v3422_v49, %v3416_v31  ;;  %v3424_v5 = vpop.f32.mrb[115].mxu1  ;;  %v10686_v31 = vld [vmem:[%s21451_s4 + $0xa80] sm:$0xff] }
 0x5c1   :  { %v13402_v29 = vpack.c.bf16 %v3424_v5, %v3418_v57 }
 0x5c3   :  { %13403 = vmatprep.subr.bf16.mxu1 %v13402_v29  ;;  %v13424_v29 = vpack.c.bf16 %v10686_v31, %v10681_v30  ;;  %v10710_v31 = vld [vmem:[%s21451_s4 + $0xb40] sm:$0xff] }
 0x5c4   :  { %13405 = vmatpush1.bf16.msra.mxu1 %v13404_v46  ;;  %v17098_v46 = vld [vmem:[%s21452_s5 + $0x1d8] sm:$0xff] }
 0x5c5   :  { %13414 = vmatprep.subr.bf16.mxu1 %v21463_v55 }
 0x5c7   :  { %10619 = vmatmul.mubr.msk.f32.vlgmr.msra.gmra.mrb[28].mxu1 %vm1204_vm1, %v17000_v35 }
 0x5c8   :  { %3740 = vmatprep.mubr.f32.mxu1 %v21461_v32 }
 0x5cb   :  { %10620 = vmatmul.mubr.msk.f32.gmra.mrb[30].mxu1 %vm1204_vm1, %v17009_v37 }
 0x5cc   :  { %3746 = vmatprep.mubr.f32.mxu1 %v21461_v32 }
 0x5cf   :  { %10621 = vmatmul.mubr.msk.f32.gmra.mrb[32].mxu1 %vm1204_vm1, %v17017_v28 }
 0x5d0   :  { %3752 = vmatprep.mubr.f32.mxu1 %v21461_v32 }
 0x5d3   :  { %v3493_v53 = vpop.f32.mrb[116].mxu1  ;;  %v3088_v52 = vpop.f32.mrb[104].mxu0  ;;  %10622 = vmatmul.mubr.msk.f32.gmra.mrb[34].mxu1 %vm1204_vm1, %v17025_v40 }
 0x5d4   :  { %v17030_v58 = vadd.f32 %v3088_v52, %v16426_v39  ;;  %v3495_v1 = vpop.f32.mrb[117].mxu1  ;;  %v12197_v23 = vpop.f32.mrb[105].mxu0  ;;  %3758 = vmatprep.mubr.f32.mxu1 %v21461_v32 }
 0x5d5   :  { %v10696_v23 = vld [vmem:[%s21451_s4 + $0xad0] sm:$0xff] }
 0x5d7   :  { %v3499_v36 = vpop.f32.mrb[118].mxu1  ;;  %v3093_v41 = vpop.f32.mrb[106].mxu0  ;;  %10623 = vmatmul.mubr.msk.f32.gmra.mrb[36].mxu1 %vm1204_vm1, %v17036_v7 }
 0x5d8   :  { %v13408_v44 = vpack.c.bf16 %v3499_v36, %v3493_v53  ;;  %v17041_v47 = vadd.f32 %v3093_v41, %v16428_v51  ;;  %v3501_v39 = vpop.f32.mrb[119].mxu1  ;;  %v12200_v43 = vpop.f32.mrb[107].mxu0  ;;  %3764 = vmatprep.mubr.f32.mxu1 %v21461_v32  ;;  %v10680_v53 = vld [vmem:[%s21451_s4 + $0xa50] sm:$0xff] }
 0x5d9   :  { %v13406_v38 = vpack.c.bf16 %v3501_v39, %v3495_v1  ;;  %v10691_v1 = vld [vmem:[%s21451_s4 + $0xaa8] sm:$0xff] }
 0x5da   :  { %v13428_v43 = vpack.c.bf16 %v10696_v23, %v10691_v1 }
 0x5db   :  { %v3505_v15 = vpop.f32.mrb[120].mxu1  ;;  %13407 = vmatprep.subr.bf16.mxu0 %v13406_v38  ;;  %v3098_v50 = vpop.f32.mrb[108].mxu0  ;;  %10624 = vmatmul.mubr.msk.f32.gmra.mrb[38].mxu1 %vm1204_vm1, %v17047_v48  ;;  %v10690_v38 = vld [vmem:[%s21451_s4 + $0xaa0] sm:$0xff] }
 0x5dc   :  { %v17052_v18 = vadd.f32 %v3098_v50, %v16430_v56  ;;  %v3507_v51 = vpop.f32.mrb[121].mxu1  ;;  %13409 = vmatpush1.bf16.msra.mxu0 %v13408_v44  ;;  %v12203_v45 = vpop.f32.mrb[109].mxu0  ;;  %3770 = vmatprep.mubr.f32.mxu1 %v21461_v32  ;;  %v17124_v44 = vld [vmem:[%s21452_s5 + $0x1e0] sm:$0xff]  ;;  %v10701_v50 = vld [vmem:[%s21451_s4 + $0xaf8] sm:$0xff] }
 0x5df   :  { %v3511_v56 = vpop.f32.mrb[122].mxu1  ;;  %v3103_v12 = vpop.f32.mrb[110].mxu0  ;;  %10625 = vmatmul.mubr.msk.f32.gmra.mrb[40].mxu1 %vm1204_vm1, %v17058_v11 }
 0x5e0   :  { %v13412_v21 = vpack.c.bf16 %v3511_v56, %v3505_v15  ;;  %v17069_v19 = vadd.f32 %v3103_v12, %v16432_v59  ;;  %v3513_v27 = vpop.f32.mrb[123].mxu1  ;;  %v12206_v24 = vpop.f32.mrb[111].mxu0  ;;  %3776 = vmatprep.mubr.f32.mxu1 %v21461_v32  ;;  %v10675_v59 = vld [vmem:[%s21451_s4 + $0xa28] sm:$0xff] }
 0x5e1   :  { %v13410_v9 = vpack.c.bf16 %v3513_v27, %v3507_v51  ;;  %v13422_v5 = vpack.c.bf16 %v10675_v59, %v10670_v61  ;;  %v10706_v51 = vld [vmem:[%s21451_s4 + $0xb20] sm:$0xff]  ;;  %v10711_v24 = vld [vmem:[%s21451_s4 + $0xb48] sm:$0xff]  ;;  %v17176_v59 = vld [vmem:[%s21452_s5 + $0x1f0] sm:$0xff] }
 0x5e2   :  { %v13432_v12 = vpack.c.bf16 %v10706_v51, %v10701_v50  ;;  %v17228_v50 = vld [vmem:[%s21452_s5 + $0x200] sm:$0xff] }
 0x5e3   :  { %13411 = vmatprep.subr.bf16.mxu0 %v13410_v9  ;;  %v3108_v63 = vpop.f32.mrb[112].mxu0  ;;  %10626 = vmatmul.mubr.msk.f32.gmra.mrb[42].mxu1 %vm1204_vm1, %v17075_v8  ;;  %v10716_v9 = vld [vmem:[%s21451_s4 + $0xb70] sm:$0xff] }
 0x5e4   :  { %v17092_v57 = vadd.f32 %v3108_v63, %v16434_v60  ;;  %13413 = vmatpush1.bf16.msra.mxu0 %v13412_v21  ;;  %v12209_v49 = vpop.f32.mrb[113].mxu0  ;;  %3782 = vmatprep.mubr.f32.mxu1 %v21461_v32  ;;  %v10685_v60 = vld [vmem:[%s21451_s4 + $0xa78] sm:$0xff]  ;;  %v10700_v21 = vld [vmem:[%s21451_s4 + $0xaf0] sm:$0xff]  ;;  %v13436_v30 = vpack.c.bf16 %v10716_v9, %v10711_v24  ;;  %v17254_v9 = vld [vmem:[%s21452_s5 + $0x208] sm:$0xff] }
 0x5e5   :  { %13421 = vmatprep.subr.bf16.mxu0 %v13420_v33  ;;  %v13426_v39 = vpack.c.bf16 %v10685_v60, %v10680_v53 }
 0x5e7   :  { %10636 = vmatmul.mubr.msk.f32.vlgmr.msra.gmra.mrb[28].mxu0 %vm1204_vm1, %v17000_v35  ;;  %v3113_v52 = vpop.f32.mrb[114].mxu0  ;;  %10627 = vmatmul.mubr.msk.f32.gmra.mrb[44].mxu1 %vm1204_vm1, %v17098_v46 }
 0x5e8   :  { %v17117_v36 = vadd.f32 %v3113_v52, %v16436_v62  ;;  %3907 = vmatprep.mubr.f32.mxu0 %v21461_v32  ;;  %v12212_v41 = vpop.f32.mrb[115].mxu0  ;;  %3788 = vmatprep.mubr.f32.mxu1 %v21461_v32  ;;  %v10695_v62 = vld [vmem:[%s21451_s4 + $0xac8] sm:$0xff]  ;;  %v17202_v52 = vld [vmem:[%s21452_s5 + $0x1f8] sm:$0xff] }
 0x5e9   :  { %13423 = vmatpush1.bf16.msra.mxu0 %v13422_v5  ;;  %v13430_v56 = vpack.c.bf16 %v10695_v62, %v10690_v38  ;;  %v10721_v5 = vld [vmem:[%s21451_s4 + $0xb98] sm:$0xff]  ;;  %v10720_v41 = vld [vmem:[%s21451_s4 + $0xb90] sm:$0xff] }
 0x5ea   :  { %13425 = vmatprep.subr.bf16.mxu0 %v13424_v29  ;;  %v10726_v29 = vld [vmem:[%s21451_s4 + $0xbc0] sm:$0xff]  ;;  %v10736_v38 = vld [vmem:[%s21451_s4 + $0xc10] sm:$0xff] }
 0x5eb   :  { %10637 = vmatmul.mubr.msk.f32.gmra.mrb[30].mxu0 %vm1204_vm1, %v17009_v37  ;;  %v3118_v15 = vpop.f32.mrb[116].mxu0  ;;  %10628 = vmatmul.mubr.msk.f32.gmra.mrb[46].mxu1 %vm1204_vm1, %v17124_v44  ;;  %v13440_v23 = vpack.c.bf16 %v10726_v29, %v10721_v5 }
 0x5ec   :  { %v17143_v45 = vadd.f32 %v3118_v15, %v16438_v0  ;;  %3913 = vmatprep.mubr.f32.mxu0 %v21461_v32  ;;  %v12215_v14 = vpop.f32.mrb[117].mxu0  ;;  %3794 = vmatprep.mubr.f32.mxu1 %v21461_v32  ;;  %v10705_v0 = vld [vmem:[%s21451_s4 + $0xb18] sm:$0xff] }
 0x5ed   :  { %13427 = vmatpush1.bf16.msra.mxu0 %v13426_v39  ;;  %v13434_v63 = vpack.c.bf16 %v10705_v0, %v10700_v21  ;;  %v10741_v21 = vld [vmem:[%s21451_s4 + $0xc38] sm:$0xff]  ;;  %v10746_v0 = vld [vmem:[%s21451_s4 + $0xc60] sm:$0xff] }
 0x5ee   :  { %13429 = vmatprep.subr.bf16.mxu0 %v13428_v43  ;;  %v10731_v43 = vld [vmem:[%s21451_s4 + $0xbe8] sm:$0xff] }
 0x5ef   :  { %10638 = vmatmul.mubr.msk.f32.gmra.mrb[32].mxu0 %vm1204_vm1, %v17017_v28  ;;  %v3123_v27 = vpop.f32.mrb[118].mxu0  ;;  %10629 = vmatmul.mubr.msk.f32.gmra.mrb[48].mxu1 %vm1204_vm1, %v17150_v17  ;;  %v13444_v14 = vpack.c.bf16 %v10736_v38, %v10731_v43 }
 0x5f0   :  { %v17169_v33 = vadd.f32 %v3123_v27, %v16440_v4  ;;  %3919 = vmatprep.mubr.f32.mxu0 %v21461_v32  ;;  %v12218_v61 = vpop.f32.mrb[119].mxu0  ;;  %3800 = vmatprep.mubr.f32.mxu1 %v21461_v32  ;;  %v10715_v4 = vld [vmem:[%s21451_s4 + $0xb68] sm:$0xff] }
 0x5f1   :  { %13431 = vmatpush1.bf16.msra.mxu0 %v13430_v56  ;;  %v13438_v1 = vpack.c.bf16 %v10715_v4, %v10710_v31  ;;  %v10730_v56 = vld [vmem:[%s21451_s4 + $0xbe0] sm:$0xff]  ;;  %v10673_v4 = vld [vmem:[%s21451_s4 + $0xa18] sm:$0xff] }
 0x5f2   :  { %13433 = vmatprep.subr.bf16.mxu0 %v13432_v12 }
 0x5f3   :  { %10639 = vmatmul.mubr.msk.f32.gmra.mrb[34].mxu0 %vm1204_vm1, %v17025_v40  ;;  %v3128_v49 = vpop.f32.mrb[120].mxu0  ;;  %10630 = vmatmul.mubr.msk.f32.gmra.mrb[50].mxu1 %vm1204_vm1, %v17176_v59 }
 0x5f4   :  { %v17195_v53 = vadd.f32 %v3128_v49, %v16442_v13  ;;  %3925 = vmatprep.mubr.f32.mxu0 %v21461_v32  ;;  %v12221_v60 = vpop.f32.mrb[121].mxu0  ;;  %3806 = vmatprep.mubr.f32.mxu1 %v21461_v32  ;;  %v10725_v13 = vld [vmem:[%s21451_s4 + $0xbb8] sm:$0xff]  ;;  %v10678_v49 = vld [vmem:[%s21451_s4 + $0xa40] sm:$0xff] }
 0x5f5   :  { %13435 = vmatpush1.bf16.msra.mxu0 %v13434_v63  ;;  %v13442_v51 = vpack.c.bf16 %v10725_v13, %v10720_v41  ;;  %v13448_v63 = vpack.c.bf16 %v10746_v0, %v10741_v21  ;;  %v17280_v60 = vld [vmem:[%s21452_s5 + $0x210] sm:$0xff] }
 0x5f6   :  { %13437 = vmatprep.subr.bf16.mxu0 %v13436_v30  ;;  %v10740_v30 = vld [vmem:[%s21451_s4 + $0xc30] sm:$0xff] }
 0x5f7   :  { %10640 = vmatmul.mubr.msk.f32.gmra.mrb[36].mxu0 %vm1204_vm1, %v17036_v7  ;;  %v3133_v39 = vpop.f32.mrb[122].mxu0  ;;  %10631 = vmatmul.mubr.msk.f32.gmra.mrb[52].mxu1 %vm1204_vm1, %v17202_v52 }
 0x5f8   :  { %v17221_v62 = vadd.f32 %v3133_v39, %v16444_v6  ;;  %3931 = vmatprep.mubr.f32.mxu0 %v21461_v32  ;;  %v12224_v15 = vpop.f32.mrb[123].mxu0  ;;  %3812 = vmatprep.mubr.f32.mxu1 %v21461_v32  ;;  %v10735_v6 = vld [vmem:[%s21451_s4 + $0xc08] sm:$0xff]  ;;  %v17294_v39 = vld [vmem:[%s21452_s5 + $0x218] sm:$0xf] }
 0x5f9   :  { %13439 = vmatpush1.bf16.msra.mxu0 %v13438_v1  ;;  %v13446_v61 = vpack.c.bf16 %v10735_v6, %v10730_v56 }
 0x5fa   :  { %13441 = vmatprep.subr.bf16.mxu0 %v13440_v23  ;;  %v13452_v23 = vpack.c.bf16 %v10678_v49, %v10673_v4  ;;  %v10684_v4 = vld [vmem:[%s21451_s4 + $0xa70] sm:$0xff]  ;;  %v10689_v49 = vld [vmem:[%s21451_s4 + $0xa98] sm:$0xff] }
 0x5fb   :  { %10641 = vmatmul.mubr.msk.f32.gmra.mrb[38].mxu0 %vm1204_vm1, %v17047_v48  ;;  %v3138_v12 = vpop.f32.mrb[124].mxu0  ;;  %10632 = vmatmul.mubr.msk.f32.gmra.mrb[54].mxu1 %vm1204_vm1, %v17228_v50 }
 0x5fc   :  { %v17247_v27 = vadd.f32 %v3138_v12, %v16446_v22  ;;  %3937 = vmatprep.mubr.f32.mxu0 %v21461_v32  ;;  %v12227_v24 = vpop.f32.mrb[125].mxu0  ;;  %3818 = vmatprep.mubr.f32.mxu1 %v21461_v32  ;;  %v10745_v22 = vld [vmem:[%s21451_s4 + $0xc58] sm:$0xff] }
 0x5fd   :  { %13443 = vmatpush1.bf16.msra.mxu0 %v13442_v51  ;;  %v13450_v1 = vpack.c.bf16 %v10745_v22, %v10740_v30 }
 0x5fe   :  { %13445 = vmatprep.subr.bf16.mxu0 %v13444_v14 }
 0x5ff   :  { %10642 = vmatmul.mubr.msk.f32.gmra.mrb[40].mxu0 %vm1204_vm1, %v17058_v11  ;;  %v3143_v31 = vpop.f32.mrb[126].mxu0  ;;  %10633 = vmatmul.mubr.msk.f32.gmra.mrb[56].mxu1 %vm1204_vm1, %v17254_v9 }
 0x600   :  { %v17273_v5 = vadd.f32 %v3143_v31, %v16448_v26  ;;  %3943 = vmatprep.mubr.f32.mxu0 %v21461_v32  ;;  %v12230_v29 = vpop.f32.mrb[127].mxu0  ;;  %3824 = vmatprep.mubr.f32.mxu1 %v21461_v32 }
 0x601   :  { %13447 = vmatpush1.bf16.msra.mxu0 %v13446_v61  ;;  %v10674_v61 = vld [vmem:[%s21451_s4 + $0xa20] sm:$0xff]  ;;  %v13488_v29 = vpack.c.bf16 %v10689_v49, %v10684_v4  ;;  %v10724_v49 = vld [vmem:[%s21451_s4 + $0xbb0] sm:$0xff] }
 0x602   :  { %13449 = vmatprep.subr.bf16.mxu0 %v13448_v63 }
 0x603   :  { %10643 = vmatmul.mubr.msk.f32.gmra.mrb[42].mxu0 %vm1204_vm1, %v17075_v8  ;;  %v3148_v41 = vpop.f32.mrb[128].mxu0  ;;  %10634 = vmatmul.mubr.msk.f32.gmra.mrb[58].mxu1 %vm1204_vm1, %v17280_v60 }
 0x604   :  { %v17287_v26 = vadd.f32 %v3148_v41, %v16456_v25  ;;  %3949 = vmatprep.mubr.f32.mxu0 %v21461_v32  ;;  %v12233_v13 = vpop.f32.mrb[129].mxu0  ;;  %3830 = vmatprep.mubr.f32.mxu1 %v21461_v32  ;;  %v10677_v41 = vld [vmem:[%s21451_s4 + $0xa38] sm:$0xff] }
 0x605   :  { %13451 = vmatpush1.bf16.msra.mxu0 %v13450_v1  ;;  %v10694_v1 = vld [vmem:[%s21451_s4 + $0xac0] sm:$0xff] }
 0x606   :  { %13453 = vmatprep.subr.bf16.mxu0 %v13452_v23  ;;  %v10699_v23 = vld [vmem:[%s21451_s4 + $0xae8] sm:$0xff] }
 0x607   :  { %10644 = vmatmul.mubr.msk.f32.gmra.mrb[44].mxu0 %vm1204_vm1, %v17098_v46  ;;  %v3153_v43 = vpop.f32.mrb[130].mxu0  ;;  %10635 = vmatmul.mubr.msk.f32.gmra.mrb[60].mxu1 %vm1204_vm1, %v17294_v39  ;;  %v13492_v13 = vpack.c.bf16 %v10699_v23, %v10694_v1  ;;  %v10702_v23 = vld [vmem:[%s21451_s4 + $0xb00] sm:$0xff] }
 0x608   :  { %v17301_v25 = vadd.f32 %v3153_v43, %v16471_v34  ;;  %3955 = vmatprep.mubr.f32.mxu0 %v21461_v32  ;;  %v12236_v38 = vpop.f32.mrb[131].mxu0  ;;  %12292 = vmatprep.mubr.msk.f32.mxu1 %vm14707_vm2, %v21461_v32  ;;  %v10683_v43 = vld [vmem:[%s21451_s4 + $0xa68] sm:$0xff] }
 0x609   :  { %v10688_v38 = vld [vmem:[%s21451_s4 + $0xa90] sm:$0xff] }
 0x60b   :  { %10645 = vmatmul.mubr.msk.f32.gmra.mrb[46].mxu0 %vm1204_vm1, %v17124_v44  ;;  %v3158_v15 = vpop.f32.mrb[132].mxu0 }
 0x60c   :  { %v17309_v51 = vadd.f32 %v3158_v15, %v16493_v3  ;;  %3961 = vmatprep.mubr.f32.mxu0 %v21461_v32  ;;  %v12239_v14 = vpop.f32.mrb[133].mxu0  ;;  %v10704_v15 = vld [vmem:[%s21451_s4 + $0xb10] sm:$0xff] }
 0x60f   :  { %10646 = vmatmul.mubr.msk.f32.gmra.mrb[48].mxu0 %vm1204_vm1, %v17150_v17  ;;  %v3163_v34 = vpop.f32.mrb[134].mxu0 }
 0x610   :  { %v17315_v56 = vadd.f32 %v3163_v34, %v16516_v42  ;;  %3967 = vmatprep.mubr.f32.mxu0 %v21461_v32  ;;  %v12242_v6 = vpop.f32.mrb[135].mxu0  ;;  %v13456_v34 = vpack.c.bf16 %v10688_v38, %v10683_v43  ;;  %v10734_v38 = vld [vmem:[%s21451_s4 + $0xc00] sm:$0xff] }
 0x611   :  { %v10682_v6 = vld [vmem:[%s21451_s4 + $0xa60] sm:$0xff] }
 0x613   :  { %10647 = vmatmul.mubr.msk.f32.gmra.mrb[50].mxu0 %vm1204_vm1, %v17176_v59  ;;  %v3168_v12 = vpop.f32.mrb[136].mxu0 }
 0x614   :  { %v17321_v3 = vadd.f32 %v3168_v12, %v16539_v16  ;;  %3973 = vmatprep.mubr.f32.mxu0 %v21461_v32  ;;  %v12245_v21 = vpop.f32.mrb[137].mxu0  ;;  %v10679_v16 = vld [vmem:[%s21451_s4 + $0xa48] sm:$0xff] }
 0x615   :  { %v13484_v22 = vpack.c.bf16 %v10679_v16, %v10674_v61  ;;  %v10687_v12 = vld [vmem:[%s21451_s4 + $0xa88] sm:$0xff]  ;;  %v10693_v21 = vld [vmem:[%s21451_s4 + $0xab8] sm:$0xff] }
 0x616   :  { %v13458_v61 = vpack.c.bf16 %v10687_v12, %v10682_v6  ;;  %v10723_v6 = vld [vmem:[%s21451_s4 + $0xba8] sm:$0xff]  ;;  %v10728_v12 = vld [vmem:[%s21451_s4 + $0xbd0] sm:$0xff] }
 0x617   :  { %10648 = vmatmul.mubr.msk.f32.gmra.mrb[52].mxu0 %vm1204_vm1, %v17202_v52  ;;  %v12280_v0 = vpop.f32.mrb[138].mxu0 }
 0x618   :  { %v3582_v24 = vpop.f32.mrb[139].mxu0  ;;  %3979 = vmatprep.mubr.f32.mxu0 %v21461_v32 }
 0x619   :  { %v13415_v42 = vpack.c.bf16 %v12280_v0, %v3582_v24  ;;  %v10698_v0 = vld [vmem:[%s21451_s4 + $0xae0] sm:$0xff] }
 0x61a   :  { %v13460_v16 = vpack.c.bf16 %v10698_v0, %v10693_v21  ;;  %v10744_v0 = vld [vmem:[%s21451_s4 + $0xc50] sm:$0xff] }
 0x61b   :  { %10649 = vmatmul.mubr.msk.f32.gmra.mrb[54].mxu0 %vm1204_vm1, %v17228_v50  ;;  %v12283_v63 = vpop.f32.mrb[140].mxu0  ;;  %13416 = vmatpush3.bf16.msra.mxu1 %v13415_v42  ;;  %v10714_v42 = vld [vmem:[%s21451_s4 + $0xb60] sm:$0xff] }
 0x61c   :  { %v3592_v30 = vpop.f32.mrb[141].mxu0  ;;  %3985 = vmatprep.mubr.f32.mxu0 %v21461_v32  ;;  %13417 = vmatprep.subr.bf16.mxu1 %v21463_v55 }
 0x61d   :  { %v13418_v31 = vpack.c.bf16 %v12283_v63, %v3592_v30  ;;  %v10692_v63 = vld [vmem:[%s21451_s4 + $0xab0] sm:$0xff]  ;;  %v10697_v30 = vld [vmem:[%s21451_s4 + $0xad8] sm:$0xff] }
 0x61f   :  { %10650 = vmatmul.mubr.msk.f32.gmra.mrb[56].mxu0 %vm1204_vm1, %v17254_v9  ;;  %13419 = vmatpush3.bf16.msra.mxu1 %v13418_v31  ;;  %v10708_v31 = vld [vmem:[%s21451_s4 + $0xb30] sm:$0xff] }
 0x620   :  { %3991 = vmatprep.mubr.f32.mxu0 %v21461_v32  ;;  %13485 = vmatprep.subr.bf16.mxu1 %v13484_v22 }
 0x622   :  { %12293 = vmatmul.mubr.msk.f32.vlgmr.msra.gmra.mrb[124].mxu1 %vm1204_vm1, %v17000_v35  ;;  %v10672_v35 = vld [vmem:[%s21451_s4 + $0xa10] sm:$0xff] }
 0x623   :  { %10651 = vmatmul.mubr.msk.f32.gmra.mrb[58].mxu0 %vm1204_vm1, %v17280_v60  ;;  %12295 = vmatprep.mubr.msk.f32.mxu1 %vm14707_vm2, %v21461_v32  ;;  %v13454_v14 = vpack.c.bf16 %v10677_v41, %v10672_v35  ;;  %v10707_v35 = vld [vmem:[%s21451_s4 + $0xb28] sm:$0xff]  ;;  %v10713_v41 = vld [vmem:[%s21451_s4 + $0xb58] sm:$0xff] }
 0x624   :  { %3997 = vmatprep.mubr.f32.mxu0 %v21461_v32  ;;  %13487 = vmatpush3.bf16.msra.mxu1 %v13484_v22  ;;  %v10703_v22 = vld [vmem:[%s21451_s4 + $0xb08] sm:$0xff] }
 0x625   :  { %13489 = vmatprep.subr.bf16.mxu1 %v13488_v29  ;;  %v13464_v1 = vpack.c.bf16 %v10708_v31, %v10703_v22 }
 0x626   :  { %12296 = vmatmul.mubr.msk.f32.gmra.mrb[126].mxu1 %vm1204_vm1, %v17009_v37  ;;  %v10709_v37 = vld [vmem:[%s21451_s4 + $0xb38] sm:$0xff] }
 0x627   :  { %10652 = vmatmul.mubr.msk.f32.gmra.mrb[60].mxu0 %vm1204_vm1, %v17294_v39  ;;  %12298 = vmatprep.mubr.msk.f32.mxu1 %vm14707_vm2, %v21461_v32  ;;  %v13496_v24 = vpack.c.bf16 %v10709_v37, %v10704_v15  ;;  %v13466_v15 = vpack.c.bf16 %v10707_v35, %v10702_v23  ;;  %v10747_v23 = vld [vmem:[%s21451_s4 + $0xc68] sm:$0xff] }
 0x628   :  { %4384 = vmatprep.mubr.f32.mxu0 %v21461_v32  ;;  %13491 = vmatpush3.bf16.msra.mxu1 %v13488_v29  ;;  %v13462_v29 = vpack.c.bf16 %v10697_v30, %v10692_v63  ;;  %v10738_v63 = vld [vmem:[%s21451_s4 + $0xc20] sm:$0xff] }
 0x629   :  { %13493 = vmatprep.subr.bf16.mxu1 %v13492_v13 }
 0x62a   :  { %12299 = vmatmul.mubr.msk.f32.gmra.mrb[128].mxu1 %vm1204_vm1, %v17017_v28  ;;  %v10719_v28 = vld [vmem:[%s21451_s4 + $0xb88] sm:$0xff] }
 0x62b   :  { %4385 = vmatmul.mubr.f32.vlgmr.msra.gmra.mrb[142].mxu0 %v15244_v54  ;;  %12301 = vmatprep.mubr.msk.f32.mxu1 %vm14707_vm2, %v21461_v32  ;;  %v13500_v4 = vpack.c.bf16 %v10719_v28, %v10714_v42  ;;  %v13472_v42 = vpack.c.bf16 %v10728_v12, %v10723_v6  ;;  %v10722_v28 = vld [vmem:[%s21451_s4 + $0xba0] sm:$0xff] }
 0x62c   :  { %13455 = vmatpush1.bf16.msra.mxu0 %v13454_v14  ;;  %4390 = vmatprep.mubr.f32.mxu0 %v21461_v32  ;;  %v10712_v14 = vld [vmem:[%s21451_s4 + $0xb50] sm:$0xff] }
 0x62d   :  { %13457 = vmatprep.subr.bf16.mxu0 %v13456_v34  ;;  %13495 = vmatpush3.bf16.msra.mxu1 %v13492_v13  ;;  %v10718_v13 = vld [vmem:[%s21451_s4 + $0xb80] sm:$0xff]  ;;  %v10717_v34 = vld [vmem:[%s21451_s4 + $0xb78] sm:$0xff] }
 0x62e   :  { %12302 = vmatmul.mubr.msk.f32.gmra.mrb[130].mxu1 %vm1204_vm1, %v17025_v40  ;;  %13497 = vmatprep.subr.bf16.mxu1 %v13496_v24  ;;  %v10729_v40 = vld [vmem:[%s21451_s4 + $0xbd8] sm:$0xff]  ;;  %v13468_v37 = vpack.c.bf16 %v10718_v13, %v10713_v41 }
 0x62f   :  { %4391 = vmatmul.mubr.f32.gmra.mrb[144].mxu0 %v15266_v2  ;;  %12304 = vmatprep.mubr.msk.f32.mxu1 %vm14707_vm2, %v21461_v32  ;;  %v13504_v43 = vpack.c.bf16 %v10729_v40, %v10724_v49  ;;  %v10743_v49 = vld [vmem:[%s21451_s4 + $0xc48] sm:$0xff]  ;;  %v10748_v40 = vld [vmem:[%s21451_s4 + $0xc70] sm:$0xff] }
 0x630   :  { %13459 = vmatpush1.bf16.msra.mxu0 %v13458_v61  ;;  %4396 = vmatprep.mubr.f32.mxu0 %v21461_v32  ;;  %v10727_v61 = vld [vmem:[%s21451_s4 + $0xbc8] sm:$0xff] }
 0x631   :  { %13461 = vmatprep.subr.bf16.mxu0 %v13460_v16  ;;  %13499 = vmatpush3.bf16.msra.mxu1 %v13496_v24  ;;  %v13470_v24 = vpack.c.bf16 %v10717_v34, %v10712_v14  ;;  %v10733_v16 = vld [vmem:[%s21451_s4 + $0xbf8] sm:$0xff]  ;;  %v13474_v22 = vpack.c.bf16 %v10727_v61, %v10722_v28 }
 0x632   :  { %12305 = vmatmul.mubr.msk.f32.gmra.mrb[132].mxu1 %vm1204_vm1, %v17036_v7  ;;  %13501 = vmatprep.subr.bf16.mxu1 %v13500_v4  ;;  %v10739_v7 = vld [vmem:[%s21451_s4 + $0xc28] sm:$0xff]  ;;  %v13476_v31 = vpack.c.bf16 %v10738_v63, %v10733_v16 }
 0x633   :  { %4397 = vmatmul.mubr.f32.gmra.mrb[146].mxu0 %v15282_v10  ;;  %12307 = vmatprep.mubr.msk.f32.mxu1 %vm14707_vm2, %v21461_v32  ;;  %v13508_v21 = vpack.c.bf16 %v10739_v7, %v10734_v38 }
 0x634   :  { %13463 = vmatpush1.bf16.msra.mxu0 %v13462_v29  ;;  %4402 = vmatprep.mubr.f32.mxu0 %v21461_v32 }
 0x635   :  { %13465 = vmatprep.subr.bf16.mxu0 %v13464_v1  ;;  %13503 = vmatpush3.bf16.msra.mxu1 %v13500_v4  ;;  %v10737_v4 = vld [vmem:[%s21451_s4 + $0xc18] sm:$0xff]  ;;  %v13480_v1 = vpack.c.bf16 %v10748_v40, %v10743_v49 }
 0x636   :  { %12308 = vmatmul.mubr.msk.f32.gmra.mrb[134].mxu1 %vm1204_vm1, %v17047_v48  ;;  %13505 = vmatprep.subr.bf16.mxu1 %v13504_v43  ;;  %v10749_v48 = vld [vmem:[%s21451_s4 + $0xc78] sm:$0xff] }
 0x637   :  { %4403 = vmatmul.mubr.f32.gmra.mrb[148].mxu0 %v15306_v20  ;;  %12310 = vmatprep.mubr.msk.f32.mxu1 %vm14707_vm2, %v21461_v32  ;;  %v13512_v30 = vpack.c.bf16 %v10749_v48, %v10744_v0 }
 0x638   :  { %13467 = vmatpush1.bf16.msra.mxu0 %v13466_v15  ;;  %4473 = vmatprep.mubr.f32.mxu0 %v21461_v32 }
 0x639   :  { %13469 = vmatprep.subr.bf16.mxu0 %v13468_v37  ;;  %13507 = vmatpush3.bf16.msra.mxu1 %v13504_v43 }
 0x63a   :  { %12311 = vmatmul.mubr.msk.f32.gmra.mrb[136].mxu1 %vm1204_vm1, %v17058_v11  ;;  %13509 = vmatprep.subr.bf16.mxu1 %v13508_v21  ;;  %v10732_v11 = vld [vmem:[%s21451_s4 + $0xbf0] sm:$0xff] }
 0x63b   :  { %12313 = vmatprep.mubr.msk.f32.mxu1 %vm14707_vm2, %v21461_v32  ;;  %v13478_v29 = vpack.c.bf16 %v10737_v4, %v10732_v11 }
 0x63c   :  { %13471 = vmatpush1.bf16.msra.mxu0 %v13470_v24 }
 0x63d   :  { %13473 = vmatprep.subr.bf16.mxu0 %v13472_v42  ;;  %13511 = vmatpush3.bf16.msra.mxu1 %v13508_v21 }
 0x63e   :  { %12314 = vmatmul.mubr.msk.f32.gmra.mrb[138].mxu1 %vm1204_vm1, %v17075_v8  ;;  %13513 = vmatprep.subr.bf16.mxu1 %v13512_v30  ;;  %v10742_v8 = vld [vmem:[%s21451_s4 + $0xc40] sm:$0xff] }
 0x63f   :  { %12316 = vmatprep.mubr.msk.f32.mxu1 %vm14707_vm2, %v21461_v32  ;;  %v13482_v35 = vpack.c.bf16 %v10747_v23, %v10742_v8 }
 0x640   :  { %13475 = vmatpush1.bf16.msra.mxu0 %v13474_v22 }
 0x641   :  { %13477 = vmatprep.subr.bf16.mxu0 %v13476_v31  ;;  %13515 = vmatpush3.bf16.msra.mxu1 %v13512_v30 }
 0x642   :  { %12317 = vmatmul.mubr.msk.f32.gmra.mrb[140].mxu1 %vm1204_vm1, %v17098_v46 }
 0x643   :  { %12319 = vmatprep.mubr.msk.f32.mxu1 %vm14707_vm2, %v21461_v32 }
 0x644   :  { %13479 = vmatpush1.bf16.msra.mxu0 %v13478_v29 }
 0x645   :  { %13481 = vmatprep.subr.bf16.mxu0 %v13480_v1 }
 0x646   :  { %12320 = vmatmul.mubr.msk.f32.gmra.mrb[142].mxu1 %vm1204_vm1, %v17124_v44 }
 0x647   :  { %12322 = vmatprep.mubr.msk.f32.mxu1 %vm14707_vm2, %v21461_v32 }
 0x648   :  { %13483 = vmatpush1.bf16.msra.mxu0 %v13482_v35 }
 0x64a   :  { %12323 = vmatmul.mubr.msk.f32.gmra.mrb[144].mxu1 %vm1204_vm1, %v17150_v17 }
 0x64b   :  { %4474 = vmatmul.mubr.f32.vlgmr.msra.gmra.mrb[150].mxu0 %v15244_v54  ;;  %12325 = vmatprep.mubr.msk.f32.mxu1 %vm14707_vm2, %v21461_v32 }
 0x64c   :  { %4479 = vmatprep.mubr.f32.mxu0 %v21461_v32 }
 0x64e   :  { %12326 = vmatmul.mubr.msk.f32.gmra.mrb[146].mxu1 %vm1204_vm1, %v17176_v59 }
 0x64f   :  { %4480 = vmatmul.mubr.f32.gmra.mrb[152].mxu0 %v15266_v2  ;;  %12328 = vmatprep.mubr.msk.f32.mxu1 %vm14707_vm2, %v21461_v32 }
 0x650   :  { %4485 = vmatprep.mubr.f32.mxu0 %v21461_v32 }
 0x652   :  { %12329 = vmatmul.mubr.msk.f32.gmra.mrb[148].mxu1 %vm1204_vm1, %v17202_v52 }
 0x653   :  { %4486 = vmatmul.mubr.f32.gmra.mrb[154].mxu0 %v15282_v10  ;;  %12331 = vmatprep.mubr.msk.f32.mxu1 %vm14707_vm2, %v21461_v32 }
 0x654   :  { %4491 = vmatprep.mubr.f32.mxu0 %v21461_v32 }
 0x656   :  { %12332 = vmatmul.mubr.msk.f32.gmra.mrb[150].mxu1 %vm1204_vm1, %v17228_v50 }
 0x657   :  { %4492 = vmatmul.mubr.f32.gmra.mrb[156].mxu0 %v15306_v20  ;;  %12334 = vmatprep.mubr.msk.f32.mxu1 %vm14707_vm2, %v21461_v32 }
 0x658   :  { %4883 = vmatprep.mubr.f32.mxu0 %v21461_v32 }
 0x65a   :  { %12335 = vmatmul.mubr.msk.f32.gmra.mrb[152].mxu1 %vm1204_vm1, %v17254_v9 }
 0x65b   :  { %12337 = vmatprep.mubr.msk.f32.mxu1 %vm14707_vm2, %v21461_v32 }
 0x65e   :  { %12338 = vmatmul.mubr.msk.f32.gmra.mrb[154].mxu1 %vm1204_vm1, %v17280_v60 }
 0x65f   :  { %12340 = vmatprep.mubr.msk.f32.mxu1 %vm14707_vm2, %v21461_v32 }
 0x662   :  { %12341 = vmatmul.mubr.msk.f32.gmra.mrb[156].mxu1 %vm1204_vm1, %v17294_v39 }
 0x663   :  { %12375 = vmatprep.mubr.f32.mxu1 %v15244_v54 }
 0x666   :  { %12376 = vmatmul.mubr.f32.vlgmr.msra.gmra.mrb[158].mxu1 %v15266_v2 }
 0x667   :  { %12378 = vmatprep.mubr.f32.mxu1 %v15282_v10 }
 0x66a   :  { %12379 = vmatmul.mubr.f32.gmra.mrb[160].mxu1 %v15306_v20 }
 0x66b   :  { %4716 = vmatprep.mubr.f32.mxu1 %v21461_v32 }
 0x6f5   :  { %v4070_v46 = vpop.f32.mrb[124].mxu1 }
 0x6f6   :  { %v12294_v44 = vpop.f32.mrb[125].mxu1  ;;  %v17566_v17 = vadd.f32 %v4070_v46, %v17030_v58 }
 0x6f9   :  { %v4075_v59 = vpop.f32.mrb[126].mxu1 }
 0x6fa   :  { %v12297_v52 = vpop.f32.mrb[127].mxu1  ;;  %v17569_v50 = vadd.f32 %v4075_v59, %v17041_v47 }
 0x6fd   :  { %v4080_v9 = vpop.f32.mrb[128].mxu1 }
 0x6fe   :  { %v4386_v54 = vpop.f32.mrb[142].mxu0  ;;  %v12300_v60 = vpop.f32.mrb[129].mxu1  ;;  %v17572_v2 = vadd.f32 %v4080_v9, %v17052_v18 }
 0x6ff   :  { %v4388_v10 = vpop.f32.mrb[143].mxu0 }
 0x701   :  { %v4085_v20 = vpop.f32.mrb[130].mxu1 }
 0x702   :  { %v4392_v39 = vpop.f32.mrb[144].mxu0  ;;  %v12303_v41 = vpop.f32.mrb[131].mxu1  ;;  %v17575_v13 = vadd.f32 %v4085_v20, %v17069_v19  ;;  %v17656_v20 = vld [vmem:[%s21452_s5 + $0x250] sm:$0xff] }
 0x703   :  { %v4394_v58 = vpop.f32.mrb[145].mxu0  ;;  %v13518_v43 = vpack.c.bf16 %v4392_v39, %v4386_v54 }
 0x704   :  { %v13516_v38 = vpack.c.bf16 %v4394_v58, %v4388_v10 }
 0x705   :  { %v4090_v7 = vpop.f32.mrb[132].mxu1 }
 0x706   :  { %v4398_v15 = vpop.f32.mrb[146].mxu0  ;;  %13517 = vmatprep.subr.bf16.mxu1 %v13516_v38  ;;  %v12306_v47 = vpop.f32.mrb[133].mxu1  ;;  %v17578_v37 = vadd.f32 %v4090_v7, %v17092_v57  ;;  %v17589_v57 = vld [vmem:[%s21452_s5 + $0x220] sm:$0xff]  ;;  %v17667_v38 = vld [vmem:[%s21452_s5 + $0x258] sm:$0xff] }
 0x707   :  { %v4400_v14 = vpop.f32.mrb[147].mxu0  ;;  %13519 = vmatpush1.bf16.msra.mxu1 %v13518_v43  ;;  %v5419_v47 = vld [vmem:[%s21454_s7 + $0x8] sm:$0xff] }
 0x709   :  { %v4095_v18 = vpop.f32.mrb[134].mxu1 }
 0x70a   :  { %v4404_v34 = vpop.f32.mrb[148].mxu0  ;;  %v12309_v6 = vpop.f32.mrb[135].mxu1  ;;  %v17581_v12 = vadd.f32 %v4095_v18, %v17117_v36 }
 0x70b   :  { %v4406_v19 = vpop.f32.mrb[149].mxu0  ;;  %v13522_v21 = vpack.c.bf16 %v4404_v34, %v4398_v15  ;;  %v5418_v15 = vld [vmem:[%s21454_s7] sm:$0xff] }
 0x70c   :  { %v13520_v0 = vpack.c.bf16 %v4406_v19, %v4400_v14  ;;  %v17684_v19 = vld [vmem:[%s21452_s5 + $0x260] sm:$0xff] }
 0x70d   :  { %v4100_v48 = vpop.f32.mrb[136].mxu1 }
 0x70e   :  { %13521 = vmatprep.subr.bf16.mxu1 %v13520_v0  ;;  %v12312_v24 = vpop.f32.mrb[137].mxu1  ;;  %v17584_v42 = vadd.f32 %v4100_v48, %v17143_v45  ;;  %v17601_v45 = vld [vmem:[%s21452_s5 + $0x228] sm:$0xff]  ;;  %v5421_v0 = vld [vmem:[%s21454_s7 + $0x18] sm:$0xff] }
 0x70f   :  { %13523 = vmatpush1.bf16.msra.mxu1 %v13522_v21  ;;  %v5420_v21 = vld [vmem:[%s21454_s7 + $0x10] sm:$0xff] }
 0x710   :  { %13538 = vmatprep.subr.bf16.mxu1 %v21463_v55 }
 0x711   :  { %v4105_v28 = vpop.f32.mrb[138].mxu1 }
 0x712   :  { %10767 = vmatmul.mubr.msk.f32.vlgmr.msra.gmra.mrb[28].mxu1 %vm1204_vm1, %v17589_v57  ;;  %v12315_v36 = vpop.f32.mrb[139].mxu1  ;;  %v17595_v61 = vadd.f32 %v4105_v28, %v17169_v33  ;;  %v17612_v33 = vld [vmem:[%s21452_s5 + $0x230] sm:$0xff] }
 0x713   :  { %4722 = vmatprep.mubr.f32.mxu1 %v21461_v32  ;;  %v17706_v36 = vld [vmem:[%s21452_s5 + $0x268] sm:$0xff] }
 0x715   :  { %v4110_v16 = vpop.f32.mrb[140].mxu1 }
 0x716   :  { %10768 = vmatmul.mubr.msk.f32.gmra.mrb[30].mxu1 %vm1204_vm1, %v17601_v45  ;;  %v12318_v63 = vpop.f32.mrb[141].mxu1  ;;  %v17606_v30 = vadd.f32 %v4110_v16, %v17195_v53  ;;  %v17623_v53 = vld [vmem:[%s21452_s5 + $0x238] sm:$0xff]  ;;  %v5422_v16 = vld [vmem:[%s21454_s7 + $0x20] sm:$0xff] }
 0x717   :  { %4728 = vmatprep.mubr.f32.mxu1 %v21461_v32  ;;  %v5423_v63 = vld [vmem:[%s21454_s7 + $0x28] sm:$0xff] }
 0x719   :  { %v4115_v22 = vpop.f32.mrb[142].mxu1 }
 0x71a   :  { %10769 = vmatmul.mubr.msk.f32.gmra.mrb[32].mxu1 %vm1204_vm1, %v17612_v33  ;;  %v12321_v31 = vpop.f32.mrb[143].mxu1  ;;  %v17617_v11 = vadd.f32 %v4115_v22, %v17221_v62  ;;  %v17634_v62 = vld [vmem:[%s21452_s5 + $0x240] sm:$0xff] }
 0x71b   :  { %4734 = vmatprep.mubr.f32.mxu1 %v21461_v32 }
 0x71d   :  { %v4120_v4 = vpop.f32.mrb[144].mxu1 }
 0x71e   :  { %v4475_v49 = vpop.f32.mrb[150].mxu0  ;;  %10770 = vmatmul.mubr.msk.f32.gmra.mrb[34].mxu1 %vm1204_vm1, %v17623_v53  ;;  %v12324_v40 = vpop.f32.mrb[145].mxu1  ;;  %v17628_v29 = vadd.f32 %v4120_v4, %v17247_v27  ;;  %v17645_v27 = vld [vmem:[%s21452_s5 + $0x248] sm:$0xff]  ;;  %v5424_v4 = vld [vmem:[%s21454_s7 + $0x30] sm:$0xff] }
 0x71f   :  { %v4477_v1 = vpop.f32.mrb[151].mxu0  ;;  %4740 = vmatprep.mubr.f32.mxu1 %v21461_v32 }
 0x721   :  { %v4125_v8 = vpop.f32.mrb[146].mxu1 }
 0x722   :  { %v4481_v23 = vpop.f32.mrb[152].mxu0  ;;  %10771 = vmatmul.mubr.msk.f32.gmra.mrb[36].mxu1 %vm1204_vm1, %v17634_v62  ;;  %v12327_v35 = vpop.f32.mrb[147].mxu1  ;;  %v17639_v46 = vadd.f32 %v4125_v8, %v17273_v5 }
 0x723   :  { %v4483_v44 = vpop.f32.mrb[153].mxu0  ;;  %4746 = vmatprep.mubr.f32.mxu1 %v21461_v32  ;;  %v13526_v59 = vpack.c.bf16 %v4481_v23, %v4475_v49  ;;  %v5425_v49 = vld [vmem:[%s21454_s7 + $0x38] sm:$0xff]  ;;  %v5426_v35 = vld [vmem:[%s21454_s7 + $0x40] sm:$0xff] }
 0x724   :  { %v13524_v52 = vpack.c.bf16 %v4483_v44, %v4477_v1  ;;  %v17733_v1 = vld [vmem:[%s21452_s5 + $0x270] sm:$0xff]  ;;  %v13548_v8 = vpack.c.bf16 %v5425_v49, %v5424_v4  ;;  %v5439_v4 = vld [vmem:[%s21454_s7 + $0xa8] sm:$0xff] }
 0x725   :  { %v4130_v9 = vpop.f32.mrb[148].mxu1 }
 0x726   :  { %v4487_v54 = vpop.f32.mrb[154].mxu0  ;;  %13525 = vmatprep.subr.bf16.mxu0 %v13524_v52  ;;  %10772 = vmatmul.mubr.msk.f32.gmra.mrb[38].mxu1 %vm1204_vm1, %v17645_v27  ;;  %v12330_v60 = vpop.f32.mrb[149].mxu1  ;;  %v17650_v5 = vadd.f32 %v4130_v9, %v17287_v26  ;;  %v17751_v52 = vld [vmem:[%s21452_s5 + $0x278] sm:$0xff] }
 0x727   :  { %v4489_v10 = vpop.f32.mrb[155].mxu0  ;;  %13527 = vmatpush1.bf16.msra.mxu0 %v13526_v59  ;;  %4752 = vmatprep.mubr.f32.mxu1 %v21461_v32  ;;  %v5428_v60 = vld [vmem:[%s21454_s7 + $0x50] sm:$0xff] }
 0x729   :  { %v4135_v39 = vpop.f32.mrb[150].mxu1 }
 0x72a   :  { %v4493_v41 = vpop.f32.mrb[156].mxu0  ;;  %10773 = vmatmul.mubr.msk.f32.gmra.mrb[40].mxu1 %vm1204_vm1, %v17656_v20  ;;  %v12333_v58 = vpop.f32.mrb[151].mxu1  ;;  %v17661_v43 = vadd.f32 %v4135_v39, %v17301_v25  ;;  %v13539_v25 = vpack.c.bf16 %v5419_v47, %v5418_v15  ;;  %v5431_v15 = vld [vmem:[%s21454_s7 + $0x68] sm:$0xff] }
 0x72b   :  { %v4495_v26 = vpop.f32.mrb[157].mxu0  ;;  %4758 = vmatprep.mubr.f32.mxu1 %v21461_v32  ;;  %v13530_v7 = vpack.c.bf16 %v4493_v41, %v4487_v54  ;;  %v17769_v58 = vld [vmem:[%s21452_s5 + $0x280] sm:$0xff]  ;;  %v17788_v47 = vld [vmem:[%s21452_s5 + $0x288] sm:$0xff] }
 0x72c   :  { %v13528_v14 = vpack.c.bf16 %v4495_v26, %v4489_v10  ;;  %13540 = vmatpush1.bf16.msra.mxu1 %v13539_v25  ;;  %v5429_v10 = vld [vmem:[%s21454_s7 + $0x58] sm:$0xff]  ;;  %v5432_v25 = vld [vmem:[%s21454_s7 + $0x70] sm:$0xff] }
 0x72d   :  { %v4140_v18 = vpop.f32.mrb[152].mxu1  ;;  %13541 = vmatprep.subr.bf16.mxu1 %v21463_v55  ;;  %v13554_v26 = vpack.c.bf16 %v5429_v10, %v5428_v60  ;;  %v5446_v10 = vld [vmem:[%s21454_s7 + $0xe0] sm:$0xff] }
 0x72e   :  { %13529 = vmatprep.subr.bf16.mxu0 %v13528_v14  ;;  %10774 = vmatmul.mubr.msk.f32.gmra.mrb[42].mxu1 %vm1204_vm1, %v17667_v38  ;;  %v12336_v34 = vpop.f32.mrb[153].mxu1  ;;  %v17678_v6 = vadd.f32 %v4140_v18, %v17309_v51  ;;  %v13542_v51 = vpack.c.bf16 %v5421_v0, %v5420_v21  ;;  %v5433_v18 = vld [vmem:[%s21454_s7 + $0x78] sm:$0xff]  ;;  %v5434_v0 = vld [vmem:[%s21454_s7 + $0x80] sm:$0xff] }
 0x72f   :  { %13531 = vmatpush1.bf16.msra.mxu0 %v13530_v7  ;;  %4764 = vmatprep.mubr.f32.mxu1 %v21461_v32  ;;  %v5430_v7 = vld [vmem:[%s21454_s7 + $0x60] sm:$0xff]  ;;  %v17807_v34 = vld [vmem:[%s21452_s5 + $0x290] sm:$0xff]  ;;  %v13560_v21 = vpack.c.bf16 %v5433_v18, %v5432_v25  ;;  %v10836_v25 = vld [vmem:[%s21454_s7 + $0x218] sm:$0xff] }
 0x730   :  { %13532 = vmatprep.subr.bf16.mxu0 %v21463_v55  ;;  %13543 = vmatpush1.bf16.msra.mxu1 %v13542_v51  ;;  %v13557_v14 = vpack.c.bf16 %v5431_v15, %v5430_v7  ;;  %v5435_v51 = vld [vmem:[%s21454_s7 + $0x88] sm:$0xff]  ;;  %v5449_v7 = vld [vmem:[%s21454_s7 + $0xf8] sm:$0xff] }
 0x731   :  { %v4145_v48 = vpop.f32.mrb[154].mxu1  ;;  %13544 = vmatprep.subr.bf16.mxu1 %v21463_v55 }
 0x732   :  { %10784 = vmatmul.mubr.msk.f32.vlgmr.msra.gmra.mrb[28].mxu0 %vm1204_vm1, %v17589_v57  ;;  %10775 = vmatmul.mubr.msk.f32.gmra.mrb[44].mxu1 %vm1204_vm1, %v17684_v19  ;;  %v12339_v24 = vpop.f32.mrb[155].mxu1  ;;  %v17699_v28 = vadd.f32 %v4145_v48, %v17315_v56  ;;  %v13545_v56 = vpack.c.bf16 %v5423_v63, %v5422_v16  ;;  %v17825_v48 = vld [vmem:[%s21452_s5 + $0x298] sm:$0xff]  ;;  %v5436_v16 = vld [vmem:[%s21454_s7 + $0x90] sm:$0xff] }
 0x733   :  { %4889 = vmatprep.mubr.f32.mxu0 %v21461_v32  ;;  %4770 = vmatprep.mubr.f32.mxu1 %v21461_v32  ;;  %v13563_v24 = vpack.c.bf16 %v5435_v51, %v5434_v0  ;;  %v5437_v63 = vld [vmem:[%s21454_s7 + $0x98] sm:$0xff]  ;;  %v10838_v0 = vld [vmem:[%s21454_s7 + $0x228] sm:$0xff] }
 0x734   :  { %13546 = vmatpush1.bf16.msra.mxu1 %v13545_v56  ;;  %v17843_v56 = vld [vmem:[%s21452_s5 + $0x2a0] sm:$0xf] }
 0x735   :  { %v4150_v22 = vpop.f32.mrb[156].mxu1  ;;  %13547 = vmatprep.subr.bf16.mxu1 %v21463_v55 }
 0x736   :  { %10785 = vmatmul.mubr.msk.f32.gmra.mrb[30].mxu0 %vm1204_vm1, %v17601_v45  ;;  %10776 = vmatmul.mubr.msk.f32.gmra.mrb[46].mxu1 %vm1204_vm1, %v17706_v36  ;;  %v12342_v31 = vpop.f32.mrb[157].mxu1  ;;  %v17726_v40 = vadd.f32 %v4150_v22, %v17321_v3  ;;  %v5427_v3 = vld [vmem:[%s21454_s7 + $0x48] sm:$0xff]  ;;  %v13566_v22 = vpack.c.bf16 %v5437_v63, %v5436_v16  ;;  %v10840_v16 = vld [vmem:[%s21454_s7 + $0x238] sm:$0xff]  ;;  %v10841_v63 = vld [vmem:[%s21454_s7 + $0x240] sm:$0xff] }
 0x737   :  { %4895 = vmatprep.mubr.f32.mxu0 %v21461_v32  ;;  %4776 = vmatprep.mubr.f32.mxu1 %v21461_v32  ;;  %v13551_v9 = vpack.c.bf16 %v5427_v3, %v5426_v35  ;;  %v5438_v31 = vld [vmem:[%s21454_s7 + $0xa0] sm:$0xff] }
 0x738   :  { %13549 = vmatpush1.bf16.msra.mxu1 %v13548_v8  ;;  %v13569_v49 = vpack.c.bf16 %v5439_v4, %v5438_v31  ;;  %v5440_v8 = vld [vmem:[%s21454_s7 + $0xb0] sm:$0xff]  ;;  %v5442_v3 = vld [vmem:[%s21454_s7 + $0xc0] sm:$0xff]  ;;  %v10844_v4 = vld [vmem:[%s21454_s7 + $0x258] sm:$0xff] }
 0x739   :  { %v12377_v23 = vpop.f32.mrb[158].mxu1  ;;  %13550 = vmatprep.subr.bf16.mxu1 %v21463_v55  ;;  %v10843_v31 = vld [vmem:[%s21454_s7 + $0x250] sm:$0xff] }
 0x73a   :  { %10786 = vmatmul.mubr.msk.f32.gmra.mrb[32].mxu0 %vm1204_vm1, %v17612_v33  ;;  %10777 = vmatmul.mubr.msk.f32.gmra.mrb[48].mxu1 %vm1204_vm1, %v17733_v1  ;;  %v4564_v44 = vpop.f32.mrb[159].mxu1 }
 0x73b   :  { %v13533_v59 = vpack.c.bf16 %v12377_v23, %v4564_v44  ;;  %4901 = vmatprep.mubr.f32.mxu0 %v21461_v32  ;;  %4782 = vmatprep.mubr.f32.mxu1 %v21461_v32  ;;  %v5441_v23 = vld [vmem:[%s21454_s7 + $0xb8] sm:$0xff]  ;;  %v5443_v44 = vld [vmem:[%s21454_s7 + $0xc8] sm:$0xff] }
 0x73c   :  { %13552 = vmatpush1.bf16.msra.mxu1 %v13551_v9  ;;  %v13572_v35 = vpack.c.bf16 %v5441_v23, %v5440_v8  ;;  %v5444_v9 = vld [vmem:[%s21454_s7 + $0xd0] sm:$0xff]  ;;  %v10846_v8 = vld [vmem:[%s21454_s7 + $0x268] sm:$0xff] }
 0x73d   :  { %v12380_v54 = vpop.f32.mrb[160].mxu1  ;;  %13534 = vmatpush3.bf16.msra.mxu0 %v13533_v59  ;;  %13553 = vmatprep.subr.bf16.mxu1 %v21463_v55  ;;  %v13575_v59 = vpack.c.bf16 %v5443_v44, %v5442_v3  ;;  %v10847_v23 = vld [vmem:[%s21454_s7 + $0x270] sm:$0xff]  ;;  %v10849_v3 = vld [vmem:[%s21454_s7 + $0x280] sm:$0xff]  ;;  %v10850_v44 = vld [vmem:[%s21454_s7 + $0x288] sm:$0xff] }
 0x73e   :  { %10787 = vmatmul.mubr.msk.f32.gmra.mrb[34].mxu0 %vm1204_vm1, %v17623_v53  ;;  %10778 = vmatmul.mubr.msk.f32.gmra.mrb[50].mxu1 %vm1204_vm1, %v17751_v52  ;;  %v4574_v39 = vpop.f32.mrb[161].mxu1 }
 0x73f   :  { %v13536_v41 = vpack.c.bf16 %v12380_v54, %v4574_v39  ;;  %4907 = vmatprep.mubr.f32.mxu0 %v21461_v32  ;;  %4788 = vmatprep.mubr.f32.mxu1 %v21461_v32  ;;  %v5445_v54 = vld [vmem:[%s21454_s7 + $0xd8] sm:$0xff]  ;;  %v5447_v39 = vld [vmem:[%s21454_s7 + $0xe8] sm:$0xff] }
 0x740   :  { %13535 = vmatprep.subr.bf16.mxu0 %v21463_v55  ;;  %13555 = vmatpush1.bf16.msra.mxu1 %v13554_v26  ;;  %v13578_v60 = vpack.c.bf16 %v5445_v54, %v5444_v9  ;;  %v5448_v26 = vld [vmem:[%s21454_s7 + $0xf0] sm:$0xff]  ;;  %v10852_v9 = vld [vmem:[%s21454_s7 + $0x298] sm:$0xff]  ;;  %v10853_v54 = vld [vmem:[%s21454_s7 + $0x2a0] sm:$0xff] }
 0x741   :  { %13537 = vmatpush3.bf16.msra.mxu0 %v13536_v41  ;;  %13556 = vmatprep.subr.bf16.mxu1 %v21463_v55  ;;  %v13581_v41 = vpack.c.bf16 %v5447_v39, %v5446_v10  ;;  %v13584_v15 = vpack.c.bf16 %v5449_v7, %v5448_v26  ;;  %v10855_v10 = vld [vmem:[%s21454_s7 + $0x2b0] sm:$0xff]  ;;  %v10856_v39 = vld [vmem:[%s21454_s7 + $0x2b8] sm:$0xff]  ;;  %v10858_v26 = vld [vmem:[%s21454_s7 + $0x2c8] sm:$0xff] }
 0x742   :  { %10788 = vmatmul.mubr.msk.f32.gmra.mrb[36].mxu0 %vm1204_vm1, %v17634_v62  ;;  %10779 = vmatmul.mubr.msk.f32.gmra.mrb[52].mxu1 %vm1204_vm1, %v17769_v58  ;;  %v10859_v7 = vld [vmem:[%s21454_s7 + $0x2d0] sm:$0xff] }
 0x743   :  { %4913 = vmatprep.mubr.f32.mxu0 %v21461_v32  ;;  %4794 = vmatprep.mubr.f32.mxu1 %v21461_v32 }
 0x744   :  { %13637 = vmatprep.subr.bf16.mxu0 %v21463_v55  ;;  %13558 = vmatpush1.bf16.msra.mxu1 %v13557_v14  ;;  %v10835_v14 = vld [vmem:[%s21454_s7 + $0x210] sm:$0xff] }
 0x745   :  { %13559 = vmatprep.subr.bf16.mxu1 %v21463_v55  ;;  %v13638_v18 = vpack.c.bf16 %v10836_v25, %v10835_v14  ;;  %v10861_v14 = vld [vmem:[%s21454_s7 + $0x2e0] sm:$0xff]  ;;  %v10862_v25 = vld [vmem:[%s21454_s7 + $0x2e8] sm:$0xff] }
 0x746   :  { %10789 = vmatmul.mubr.msk.f32.gmra.mrb[38].mxu0 %vm1204_vm1, %v17645_v27  ;;  %10780 = vmatmul.mubr.msk.f32.gmra.mrb[54].mxu1 %vm1204_vm1, %v17788_v47 }
 0x747   :  { %4919 = vmatprep.mubr.f32.mxu0 %v21461_v32  ;;  %4800 = vmatprep.mubr.f32.mxu1 %v21461_v32 }
 0x748   :  { %13561 = vmatpush1.bf16.msra.mxu1 %v13560_v21  ;;  %v10837_v21 = vld [vmem:[%s21454_s7 + $0x220] sm:$0xff] }
 0x749   :  { %13562 = vmatprep.subr.bf16.mxu1 %v21463_v55  ;;  %v13641_v51 = vpack.c.bf16 %v10838_v0, %v10837_v21  ;;  %v10864_v21 = vld [vmem:[%s21454_s7 + $0x2f8] sm:$0xff]  ;;  %v10865_v0 = vld [vmem:[%s21454_s7 + $0x300] sm:$0xff] }
 0x74a   :  { %10790 = vmatmul.mubr.msk.f32.gmra.mrb[40].mxu0 %vm1204_vm1, %v17656_v20  ;;  %10781 = vmatmul.mubr.msk.f32.gmra.mrb[56].mxu1 %vm1204_vm1, %v17807_v34 }
 0x74b   :  { %4925 = vmatprep.mubr.f32.mxu0 %v21461_v32  ;;  %4806 = vmatprep.mubr.f32.mxu1 %v21461_v32 }
 0x74c   :  { %13564 = vmatpush1.bf16.msra.mxu1 %v13563_v24  ;;  %v10839_v24 = vld [vmem:[%s21454_s7 + $0x230] sm:$0xff] }
 0x74d   :  { %13565 = vmatprep.subr.bf16.mxu1 %v21463_v55 }
 0x74e   :  { %10791 = vmatmul.mubr.msk.f32.gmra.mrb[42].mxu0 %vm1204_vm1, %v17667_v38  ;;  %10782 = vmatmul.mubr.msk.f32.gmra.mrb[58].mxu1 %vm1204_vm1, %v17825_v48 }
 0x74f   :  { %4931 = vmatprep.mubr.f32.mxu0 %v21461_v32  ;;  %4812 = vmatprep.mubr.f32.mxu1 %v21461_v32 }
 0x750   :  { %13567 = vmatpush1.bf16.msra.mxu1 %v13566_v22  ;;  %v10842_v22 = vld [vmem:[%s21454_s7 + $0x248] sm:$0xff] }
 0x751   :  { %13568 = vmatprep.subr.bf16.mxu1 %v21463_v55 }
 0x752   :  { %10792 = vmatmul.mubr.msk.f32.gmra.mrb[44].mxu0 %vm1204_vm1, %v17684_v19  ;;  %10783 = vmatmul.mubr.msk.f32.gmra.mrb[60].mxu1 %vm1204_vm1, %v17843_v56 }
 0x753   :  { %4937 = vmatprep.mubr.f32.mxu0 %v21461_v32 }
 0x754   :  { %13570 = vmatpush1.bf16.msra.mxu1 %v13569_v49  ;;  %v10845_v49 = vld [vmem:[%s21454_s7 + $0x260] sm:$0xff] }
 0x755   :  { %13571 = vmatprep.subr.bf16.mxu1 %v21463_v55 }
 0x756   :  { %10793 = vmatmul.mubr.msk.f32.gmra.mrb[46].mxu0 %vm1204_vm1, %v17706_v36 }
 0x757   :  { %4943 = vmatprep.mubr.f32.mxu0 %v21461_v32 }
 0x758   :  { %13573 = vmatpush1.bf16.msra.mxu1 %v13572_v35  ;;  %v10848_v35 = vld [vmem:[%s21454_s7 + $0x278] sm:$0xff] }
 0x759   :  { %13574 = vmatprep.subr.bf16.mxu1 %v21463_v55 }
 0x75a   :  { %10794 = vmatmul.mubr.msk.f32.gmra.mrb[48].mxu0 %vm1204_vm1, %v17733_v1 }
 0x75b   :  { %4949 = vmatprep.mubr.f32.mxu0 %v21461_v32 }
 0x75c   :  { %13576 = vmatpush1.bf16.msra.mxu1 %v13575_v59  ;;  %v10851_v59 = vld [vmem:[%s21454_s7 + $0x290] sm:$0xff] }
 0x75d   :  { %13577 = vmatprep.subr.bf16.mxu1 %v21463_v55 }
 0x75e   :  { %10795 = vmatmul.mubr.msk.f32.gmra.mrb[50].mxu0 %vm1204_vm1, %v17751_v52 }
 0x75f   :  { %4955 = vmatprep.mubr.f32.mxu0 %v21461_v32 }
 0x760   :  { %13579 = vmatpush1.bf16.msra.mxu1 %v13578_v60  ;;  %v10854_v60 = vld [vmem:[%s21454_s7 + $0x2a8] sm:$0xff] }
 0x761   :  { %13580 = vmatprep.subr.bf16.mxu1 %v21463_v55 }
 0x762   :  { %10796 = vmatmul.mubr.msk.f32.gmra.mrb[52].mxu0 %vm1204_vm1, %v17769_v58 }
 0x763   :  { %4961 = vmatprep.mubr.f32.mxu0 %v21461_v32 }
 0x764   :  { %13582 = vmatpush1.bf16.msra.mxu1 %v13581_v41  ;;  %v10857_v41 = vld [vmem:[%s21454_s7 + $0x2c0] sm:$0xff] }
 0x765   :  { %13583 = vmatprep.subr.bf16.mxu1 %v21463_v55 }
 0x766   :  { %10797 = vmatmul.mubr.msk.f32.gmra.mrb[54].mxu0 %vm1204_vm1, %v17788_v47 }
 0x767   :  { %4967 = vmatprep.mubr.f32.mxu0 %v21461_v32 }
 0x768   :  { %13585 = vmatpush1.bf16.msra.mxu1 %v13584_v15  ;;  %v10860_v15 = vld [vmem:[%s21454_s7 + $0x2d8] sm:$0xff] }
 0x769   :  { %13586 = vmatprep.subr.bf16.mxu1 %v21463_v55 }
 0x76a   :  { %10798 = vmatmul.mubr.msk.f32.gmra.mrb[56].mxu0 %vm1204_vm1, %v17807_v34 }
 0x76b   :  { %4973 = vmatprep.mubr.f32.mxu0 %v21461_v32 }
 0x76e   :  { %10799 = vmatmul.mubr.msk.f32.gmra.mrb[58].mxu0 %vm1204_vm1, %v17825_v48 }
 0x76f   :  { %4979 = vmatprep.mubr.f32.mxu0 %v21461_v32 }
 0x772   :  { %10800 = vmatmul.mubr.msk.f32.gmra.mrb[60].mxu0 %vm1204_vm1, %v17843_v56 }
 0x773   :  { %12389 = vmatprep.mubr.msk.f32.mxu0 %vm14707_vm2, %v21461_v32 }
 0x776   :  { %12390 = vmatmul.mubr.msk.f32.vlgmr.msra.gmra.mrb[158].mxu0 %vm1204_vm1, %v17589_v57  ;;  %v13644_v57 = vpack.c.bf16 %v10840_v16, %v10839_v24 }
 0x777   :  { %12392 = vmatprep.mubr.msk.f32.mxu0 %vm14707_vm2, %v21461_v32  ;;  %13639 = vmatpush1.bf16.msra.mxu0 %v13638_v18  ;;  %v10863_v18 = vld [vmem:[%s21454_s7 + $0x2f0] sm:$0xff] }
 0x778   :  { %13640 = vmatprep.subr.bf16.mxu0 %v21463_v55 }
 0x77a   :  { %12393 = vmatmul.mubr.msk.f32.gmra.mrb[160].mxu0 %vm1204_vm1, %v17601_v45  ;;  %v13647_v45 = vpack.c.bf16 %v10842_v22, %v10841_v63 }
 0x77b   :  { %12395 = vmatprep.mubr.msk.f32.mxu0 %vm14707_vm2, %v21461_v32  ;;  %13642 = vmatpush1.bf16.msra.mxu0 %v13641_v51  ;;  %v10866_v51 = vld [vmem:[%s21454_s7 + $0x308] sm:$0xff] }
 0x77c   :  { %13643 = vmatprep.subr.bf16.mxu0 %v21463_v55 }
 0x77e   :  { %12396 = vmatmul.mubr.msk.f32.gmra.mrb[162].mxu0 %vm1204_vm1, %v17612_v33  ;;  %v13650_v33 = vpack.c.bf16 %v10844_v4, %v10843_v31 }
 0x77f   :  { %12398 = vmatprep.mubr.msk.f32.mxu0 %vm14707_vm2, %v21461_v32  ;;  %13645 = vmatpush1.bf16.msra.mxu0 %v13644_v57  ;;  %v18103_v57 = vld [vmem:[%s21453_s6] sm:$0x1f] }
 0x780   :  { %13646 = vmatprep.subr.bf16.mxu0 %v21463_v55 }
 0x782   :  { %12399 = vmatmul.mubr.msk.f32.gmra.mrb[164].mxu0 %vm1204_vm1, %v17623_v53  ;;  %v13653_v53 = vpack.c.bf16 %v10846_v8, %v10845_v49  ;;  %v10867_v49 = vld [vmem:[%s21454_s7 + $0x310] sm:$0xff]  ;;  %v10868_v8 = vld [vmem:[%s21454_s7 + $0x318] sm:$0xff] }
 0x783   :  { %12401 = vmatprep.mubr.msk.f32.mxu0 %vm14707_vm2, %v21461_v32  ;;  %13648 = vmatpush1.bf16.msra.mxu0 %v13647_v45 }
 0x784   :  { %13649 = vmatprep.subr.bf16.mxu0 %v21463_v55 }
 0x786   :  { %12402 = vmatmul.mubr.msk.f32.gmra.mrb[166].mxu0 %vm1204_vm1, %v17634_v62  ;;  %v13656_v62 = vpack.c.bf16 %v10848_v35, %v10847_v23 }
 0x787   :  { %12404 = vmatprep.mubr.msk.f32.mxu0 %vm14707_vm2, %v21461_v32  ;;  %13651 = vmatpush1.bf16.msra.mxu0 %v13650_v33  ;;  %v5451_v33 = vld [vmem:[%s21454_s7 + $0x108] sm:$0xff] }
 0x788   :  { %13652 = vmatprep.subr.bf16.mxu0 %v21463_v55 }
 0x78a   :  { %12405 = vmatmul.mubr.msk.f32.gmra.mrb[168].mxu0 %vm1204_vm1, %v17645_v27  ;;  %v13659_v27 = vpack.c.bf16 %v10850_v44, %v10849_v3  ;;  %v13686_v3 = vpack.c.bf16 %v10868_v8, %v10867_v49  ;;  %v5452_v44 = vld [vmem:[%s21454_s7 + $0x110] sm:$0xff] }
 0x78b   :  { %12407 = vmatprep.mubr.msk.f32.mxu0 %vm14707_vm2, %v21461_v32  ;;  %13654 = vmatpush1.bf16.msra.mxu0 %v13653_v53 }
 0x78c   :  { %13655 = vmatprep.subr.bf16.mxu0 %v21463_v55 }
 0x78e   :  { %12408 = vmatmul.mubr.msk.f32.gmra.mrb[170].mxu0 %vm1204_vm1, %v17656_v20  ;;  %v13662_v20 = vpack.c.bf16 %v10852_v9, %v10851_v59 }
 0x78f   :  { %12410 = vmatprep.mubr.msk.f32.mxu0 %vm14707_vm2, %v21461_v32  ;;  %13657 = vmatpush1.bf16.msra.mxu0 %v13656_v62 }
 0x790   :  { %13658 = vmatprep.subr.bf16.mxu0 %v21463_v55 }
 0x792   :  { %12411 = vmatmul.mubr.msk.f32.gmra.mrb[172].mxu0 %vm1204_vm1, %v17667_v38  ;;  %v13665_v38 = vpack.c.bf16 %v10854_v60, %v10853_v54  ;;  %v10869_v54 = vld [vmem:[%s21454_s7 + $0x320] sm:$0xff]  ;;  %v10870_v60 = vld [vmem:[%s21454_s7 + $0x328] sm:$0xff] }
 0x793   :  { %12413 = vmatprep.mubr.msk.f32.mxu0 %vm14707_vm2, %v21461_v32  ;;  %13660 = vmatpush1.bf16.msra.mxu0 %v13659_v27 }
 0x794   :  { %13661 = vmatprep.subr.bf16.mxu0 %v21463_v55 }
 0x796   :  { %12414 = vmatmul.mubr.msk.f32.gmra.mrb[174].mxu0 %vm1204_vm1, %v17684_v19  ;;  %v13668_v19 = vpack.c.bf16 %v10856_v39, %v10855_v10 }
 0x797   :  { %12416 = vmatprep.mubr.msk.f32.mxu0 %vm14707_vm2, %v21461_v32  ;;  %13663 = vmatpush1.bf16.msra.mxu0 %v13662_v20  ;;  %v5453_v20 = vld [vmem:[%s21454_s7 + $0x118] sm:$0xff] }
 0x798   :  { %13664 = vmatprep.subr.bf16.mxu0 %v21463_v55 }
 0x79a   :  { %12417 = vmatmul.mubr.msk.f32.gmra.mrb[176].mxu0 %vm1204_vm1, %v17706_v36  ;;  %v13671_v36 = vpack.c.bf16 %v10858_v26, %v10857_v41  ;;  %v13689_v41 = vpack.c.bf16 %v10870_v60, %v10869_v54  ;;  %v5454_v26 = vld [vmem:[%s21454_s7 + $0x120] sm:$0xff] }
 0x79b   :  { %12419 = vmatprep.mubr.msk.f32.mxu0 %vm14707_vm2, %v21461_v32  ;;  %13666 = vmatpush1.bf16.msra.mxu0 %v13665_v38 }
 0x79c   :  { %13667 = vmatprep.subr.bf16.mxu0 %v21463_v55 }
 0x79e   :  { %12420 = vmatmul.mubr.msk.f32.gmra.mrb[178].mxu0 %vm1204_vm1, %v17733_v1  ;;  %v13674_v1 = vpack.c.bf16 %v10860_v15, %v10859_v7 }
 0x79f   :  { %12422 = vmatprep.mubr.msk.f32.mxu0 %vm14707_vm2, %v21461_v32  ;;  %13669 = vmatpush1.bf16.msra.mxu0 %v13668_v19  ;;  %v13590_v19 = vpack.c.bf16 %v5453_v20, %v5452_v44  ;;  %v5459_v44 = vld [vmem:[%s21454_s7 + $0x148] sm:$0xff] }
 0x7a0   :  { %13670 = vmatprep.subr.bf16.mxu0 %v21463_v55 }
 0x7a2   :  { %12423 = vmatmul.mubr.msk.f32.gmra.mrb[180].mxu0 %vm1204_vm1, %v17751_v52  ;;  %v13677_v52 = vpack.c.bf16 %v10862_v25, %v10861_v14  ;;  %v10871_v14 = vld [vmem:[%s21454_s7 + $0x330] sm:$0xff]  ;;  %v10872_v25 = vld [vmem:[%s21454_s7 + $0x338] sm:$0xff] }
 0x7a3   :  { %12425 = vmatprep.mubr.msk.f32.mxu0 %vm14707_vm2, %v21461_v32  ;;  %13672 = vmatpush1.bf16.msra.mxu0 %v13671_v36 }
 0x7a4   :  { %13673 = vmatprep.subr.bf16.mxu0 %v21463_v55 }
 0x7a6   :  { %12426 = vmatmul.mubr.msk.f32.gmra.mrb[182].mxu0 %vm1204_vm1, %v17769_v58  ;;  %v13680_v58 = vpack.c.bf16 %v10864_v21, %v10863_v18 }
 0x7a7   :  { %12428 = vmatprep.mubr.msk.f32.mxu0 %vm14707_vm2, %v21461_v32  ;;  %13675 = vmatpush1.bf16.msra.mxu0 %v13674_v1  ;;  %v5455_v1 = vld [vmem:[%s21454_s7 + $0x128] sm:$0xff] }
 0x7a8   :  { %13676 = vmatprep.subr.bf16.mxu0 %v21463_v55 }
 0x7aa   :  { %12429 = vmatmul.mubr.msk.f32.gmra.mrb[184].mxu0 %vm1204_vm1, %v17788_v47  ;;  %v13683_v47 = vpack.c.bf16 %v10866_v51, %v10865_v0  ;;  %v13692_v0 = vpack.c.bf16 %v10872_v25, %v10871_v14  ;;  %v5456_v51 = vld [vmem:[%s21454_s7 + $0x130] sm:$0xff]  ;;  %v10878_v14 = vld [vmem:[%s21454_s7 + $0x368] sm:$0xff] }
 0x7ab   :  { %12431 = vmatprep.mubr.msk.f32.mxu0 %vm14707_vm2, %v21461_v32  ;;  %13678 = vmatpush1.bf16.msra.mxu0 %v13677_v52 }
 0x7ac   :  { %13679 = vmatprep.subr.bf16.mxu0 %v21463_v55 }
 0x7ae   :  { %12432 = vmatmul.mubr.msk.f32.gmra.mrb[186].mxu0 %vm1204_vm1, %v17807_v34  ;;  %v5223_v34 = vlaneseq }
 0x7af   :  { %12434 = vmatprep.mubr.msk.f32.mxu0 %vm14707_vm2, %v21461_v32  ;;  %13681 = vmatpush1.bf16.msra.mxu0 %v13680_v58  ;;  %v13593_v58 = vpack.c.bf16 %v5455_v1, %v5454_v26  ;;  %v10877_v1 = vld [vmem:[%s21454_s7 + $0x360] sm:$0xff] }
 0x7b0   :  { %13682 = vmatprep.subr.bf16.mxu0 %v21463_v55  ;;  %v18097_v24 = vshrl.u32 %v5223_v34, 7 }
 0x7b2   :  { %12435 = vmatmul.mubr.msk.f32.gmra.mrb[188].mxu0 %vm1204_vm1, %v17825_v48  ;;  %v5225_v16 = vsub.s32 0, %v18097_v24  ;;  %v5229_v48 = vsub.s32 1, %v18097_v24 }
 0x7b3   :  { %12437 = vmatprep.mubr.msk.f32.mxu0 %vm14707_vm2, %v21461_v32  ;;  %13684 = vmatpush1.bf16.msra.mxu0 %v13683_v47 }
 0x7b4   :  { %13685 = vmatprep.subr.bf16.mxu0 %v21463_v55  ;;  %v18107_v63 = vrot.slane %v18103_v57, %v5225_v16  ;;  %v18110_v22 = vrot.slane %v18103_v57, %v5229_v48  ;;  %v5457_v48 = vld [vmem:[%s21454_s7 + $0x138] sm:$0xff] }
 0x7b5   :  { %v13596_v49 = vpack.c.bf16 %v5457_v48, %v5456_v51  ;;  %v5462_v51 = vld [vmem:[%s21454_s7 + $0x160] sm:$0xff] }
 0x7b6   :  { %12438 = vmatmul.mubr.msk.f32.gmra.mrb[190].mxu0 %vm1204_vm1, %v17843_v56  ;;  %v5450_v56 = vld [vmem:[%s21454_s7 + $0x100] sm:$0xff] }
 0x7b7   :  { %v13587_v62 = vpack.c.bf16 %v5451_v33, %v5450_v56  ;;  %v10874_v56 = vld [vmem:[%s21454_s7 + $0x348] sm:$0xff] }
 0x7e5   :  { %v4718_v45 = vpop.f32.mrb[28].mxu1 }
 0x7e6   :  { %v5248_v31 = vadd.f32 %v18107_v63, %v4718_v45  ;;  %v4720_v4 = vpop.f32.mrb[29].mxu1  ;;  %v10873_v45 = vld [vmem:[%s21454_s7 + $0x340] sm:$0xff] }
 0x7e7   :  { %v5249_v53 = vadd.f32 %v18110_v22, %v4720_v4  ;;  %v13695_v8 = vpack.c.bf16 %v10874_v56, %v10873_v45  ;;  %v5463_v45 = vld [vmem:[%s21454_s7 + $0x168] sm:$0xff]  ;;  %v10879_v56 = vld [vmem:[%s21454_s7 + $0x370] sm:$0xff] }
 0x7e8   :  { %v18131_v27 = vmax.f32 %v5248_v31, 0.0 }
 0x7e9   :  { %v18126_v23 = vmax.f32 %v5249_v53, 0.0  ;;  %v4724_v35 = vpop.f32.mrb[30].mxu1  ;;  %v5458_v53 = vld [vmem:[%s21454_s7 + $0x140] sm:$0xff] }
 0x7ea   :  { %v5253_v59 = vadd.f32 %v18107_v63, %v4724_v35  ;;  %v4726_v9 = vpop.f32.mrb[31].mxu1 }
 0x7eb   :  { %v5254_v38 = vadd.f32 %v18110_v22, %v4726_v9  ;;  %5599 = vmatprep.mubr.f32.mxu1 %v18126_v23  ;;  %6184 = vmatprep.mubr.f32.mxu0 %v18126_v23  ;;  %v10876_v9 = vld [vmem:[%s21454_s7 + $0x358] sm:$0xff] }
 0x7ec   :  { %5600 = vmatmul.mubr.f32.vlgmr.msra.gmra.mrb[162].mxu1 %v18131_v27  ;;  %6185 = vmatmul.mubr.f32.vlgmr.msra.gmra.mrb[192].mxu0 %v18131_v27  ;;  %v18153_v36 = vmax.f32 %v5253_v59, 0.0  ;;  %v10875_v59 = vld [vmem:[%s21454_s7 + $0x350] sm:$0xff] }
 0x7ed   :  { %v18148_v10 = vmax.f32 %v5254_v38, 0.0  ;;  %v4730_v39 = vpop.f32.mrb[32].mxu1  ;;  %13588 = vmatpush1.bf16.msra.mxu1 %v13587_v62  ;;  %13687 = vmatpush1.bf16.msra.mxu0 %v13686_v3  ;;  %v13599_v38 = vpack.c.bf16 %v5459_v44, %v5458_v53  ;;  %v13605_v53 = vpack.c.bf16 %v5463_v45, %v5462_v51  ;;  %v5467_v51 = vld [vmem:[%s21454_s7 + $0x188] sm:$0xff] }
 0x7ee   :  { %v5258_v7 = vadd.f32 %v18107_v63, %v4730_v39  ;;  %v4732_v15 = vpop.f32.mrb[33].mxu1  ;;  %13589 = vmatprep.subr.bf16.mxu1 %v21463_v55  ;;  %13688 = vmatprep.subr.bf16.mxu0 %v21463_v55  ;;  %v13698_v39 = vpack.c.bf16 %v10876_v9, %v10875_v59 }
 0x7ef   :  { %v5259_v52 = vadd.f32 %v18110_v22, %v4732_v15  ;;  %5604 = vmatprep.mubr.f32.mxu1 %v18148_v10  ;;  %6189 = vmatprep.mubr.f32.mxu0 %v18148_v10  ;;  %v5461_v15 = vld [vmem:[%s21454_s7 + $0x158] sm:$0xff] }
 0x7f0   :  { %5605 = vmatmul.mubr.f32.gmra.mrb[164].mxu1 %v18153_v36  ;;  %6190 = vmatmul.mubr.f32.gmra.mrb[194].mxu0 %v18153_v36  ;;  %v18177_v47 = vmax.f32 %v5258_v7, 0.0 }
 0x7f1   :  { %v18172_v18 = vmax.f32 %v5259_v52, 0.0  ;;  %v4736_v21 = vpop.f32.mrb[34].mxu1  ;;  %13591 = vmatpush1.bf16.msra.mxu1 %v13590_v19  ;;  %13690 = vmatpush1.bf16.msra.mxu0 %v13689_v41  ;;  %v5460_v19 = vld [vmem:[%s21454_s7 + $0x150] sm:$0xff] }
 0x7f2   :  { %21574 = vst [vmem:[#allocation5_spill] sm:$0xff] %v18177_v47  ;;  %v5263_v34 = vadd.f32 %v18107_v63, %v4736_v21  ;;  %v4738_v16 = vpop.f32.mrb[35].mxu1  ;;  %13592 = vmatprep.subr.bf16.mxu1 %v21463_v55  ;;  %13691 = vmatprep.subr.bf16.mxu0 %v21463_v55 }
 0x7f3   :  { %v5264_v31 = vadd.f32 %v18110_v22, %v4738_v16  ;;  %5609 = vmatprep.mubr.f32.mxu1 %v18172_v18  ;;  %6194 = vmatprep.mubr.f32.mxu0 %v18172_v18 }
 0x7f4   :  { %5610 = vmatmul.mubr.f32.gmra.mrb[166].mxu1 %v18177_v47  ;;  %6195 = vmatmul.mubr.f32.gmra.mrb[196].mxu0 %v18177_v47  ;;  %v18201_v35 = vmax.f32 %v5263_v34, 0.0 }
 0x7f5   :  { %v18196_v4 = vmax.f32 %v5264_v31, 0.0  ;;  %v4742_v33 = vpop.f32.mrb[36].mxu1  ;;  %13594 = vmatpush1.bf16.msra.mxu1 %v13593_v58  ;;  %13693 = vmatpush1.bf16.msra.mxu0 %v13692_v0  ;;  %v13602_v58 = vpack.c.bf16 %v5461_v15, %v5460_v19  ;;  %v13701_v0 = vpack.c.bf16 %v10878_v14, %v10877_v1  ;;  %v10880_v31 = vld [vmem:[%s21454_s7 + $0x378] sm:$0xff]  ;;  %v5466_v14 = vld [vmem:[%s21454_s7 + $0x180] sm:$0xff] }
 0x7f6   :  { %21576 = vst [vmem:[#allocation7_spill] sm:$0xff] %v18201_v35  ;;  %v5268_v62 = vadd.f32 %v18107_v63, %v4742_v33  ;;  %v4744_v3 = vpop.f32.mrb[37].mxu1  ;;  %13595 = vmatprep.subr.bf16.mxu1 %v21463_v55  ;;  %13694 = vmatprep.subr.bf16.mxu0 %v21463_v55 }
 0x7f7   :  { %21575 = vst [vmem:[#allocation6_spill] sm:$0xff] %v18196_v4  ;;  %v5269_v20 = vadd.f32 %v18110_v22, %v4744_v3  ;;  %5614 = vmatprep.mubr.f32.mxu1 %v18196_v4  ;;  %6199 = vmatprep.mubr.f32.mxu0 %v18196_v4  ;;  %v5464_v3 = vld [vmem:[%s21454_s7 + $0x170] sm:$0xff] }
 0x7f8   :  { %5615 = vmatmul.mubr.f32.gmra.mrb[168].mxu1 %v18201_v35  ;;  %6200 = vmatmul.mubr.f32.gmra.mrb[198].mxu0 %v18201_v35  ;;  %v18225_v41 = vmax.f32 %v5268_v62, 0.0  ;;  %v13704_v62 = vpack.c.bf16 %v10880_v31, %v10879_v56 }
 0x7f9   :  { %v18220_v54 = vmax.f32 %v5269_v20, 0.0  ;;  %v4748_v60 = vpop.f32.mrb[38].mxu1  ;;  %13597 = vmatpush1.bf16.msra.mxu1 %v13596_v49  ;;  %13696 = vmatpush1.bf16.msra.mxu0 %v13695_v8  ;;  %v5465_v20 = vld [vmem:[%s21454_s7 + $0x178] sm:$0xff] }
 0x7fa   :  { %21578 = vst [vmem:[#allocation9_spill] sm:$0xff] %v18225_v41  ;;  %v5273_v26 = vadd.f32 %v18107_v63, %v4748_v60  ;;  %v4750_v7 = vpop.f32.mrb[39].mxu1  ;;  %13598 = vmatprep.subr.bf16.mxu1 %v21463_v55  ;;  %13697 = vmatprep.subr.bf16.mxu0 %v21463_v55  ;;  %v10881_v60 = vld [vmem:[%s21454_s7 + $0x380] sm:$0xff]  ;;  %v13608_v15 = vpack.c.bf16 %v5465_v20, %v5464_v3 }
 0x7fb   :  { %21577 = vst [vmem:[#allocation8_spill] sm:$0xff] %v18220_v54  ;;  %v5274_v25 = vadd.f32 %v18110_v22, %v4750_v7  ;;  %5619 = vmatprep.mubr.f32.mxu1 %v18220_v54  ;;  %6204 = vmatprep.mubr.f32.mxu0 %v18220_v54 }
 0x7fc   :  { %5620 = vmatmul.mubr.f32.gmra.mrb[170].mxu1 %v18225_v41  ;;  %6205 = vmatmul.mubr.f32.gmra.mrb[200].mxu0 %v18225_v41  ;;  %v18249_v34 = vmax.f32 %v5273_v26, 0.0 }
 0x7fd   :  { %v18244_v52 = vmax.f32 %v5274_v25, 0.0  ;;  %v4754_v21 = vpop.f32.mrb[40].mxu1  ;;  %13600 = vmatpush1.bf16.msra.mxu1 %v13599_v38  ;;  %13699 = vmatpush1.bf16.msra.mxu0 %v13698_v39  ;;  %v10882_v38 = vld [vmem:[%s21454_s7 + $0x388] sm:$0xff] }
 0x7fe   :  { %21580 = vst [vmem:[#allocation11_spill] sm:$0xff] %v18249_v34  ;;  %v5278_v16 = vadd.f32 %v18107_v63, %v4754_v21  ;;  %v4756_v48 = vpop.f32.mrb[41].mxu1  ;;  %13601 = vmatprep.subr.bf16.mxu1 %v21463_v55  ;;  %13700 = vmatprep.subr.bf16.mxu0 %v21463_v55  ;;  %v13707_v1 = vpack.c.bf16 %v10882_v38, %v10881_v60  ;;  %v5469_v60 = vld [vmem:[%s21454_s7 + $0x198] sm:$0xff]  ;;  %v10885_v38 = vld [vmem:[%s21454_s7 + $0x3a0] sm:$0xff] }
 0x7ff   :  { %21579 = vst [vmem:[#allocation10_spill] sm:$0xff] %v18244_v52  ;;  %v5279_v33 = vadd.f32 %v18110_v22, %v4756_v48  ;;  %5624 = vmatprep.mubr.f32.mxu1 %v18244_v52  ;;  %6209 = vmatprep.mubr.f32.mxu0 %v18244_v52  ;;  %v10884_v48 = vld [vmem:[%s21454_s7 + $0x398] sm:$0xff] }
 0x800   :  { %5625 = vmatmul.mubr.f32.gmra.mrb[172].mxu1 %v18249_v34  ;;  %6210 = vmatmul.mubr.f32.gmra.mrb[202].mxu0 %v18249_v34  ;;  %v18273_v44 = vmax.f32 %v5278_v16, 0.0  ;;  %v10883_v16 = vld [vmem:[%s21454_s7 + $0x390] sm:$0xff] }
 0x801   :  { %v18268_v49 = vmax.f32 %v5279_v33, 0.0  ;;  %v4760_v8 = vpop.f32.mrb[42].mxu1  ;;  %13603 = vmatpush1.bf16.msra.mxu1 %v13602_v58  ;;  %13702 = vmatpush1.bf16.msra.mxu0 %v13701_v0 }
 0x802   :  { %21582 = vst [vmem:[#allocation13_spill] sm:$0xff] %v18273_v44  ;;  %v5283_v59 = vadd.f32 %v18107_v63, %v4760_v8  ;;  %v4762_v9 = vpop.f32.mrb[43].mxu1  ;;  %13604 = vmatprep.subr.bf16.mxu1 %v21463_v55  ;;  %13703 = vmatprep.subr.bf16.mxu0 %v21463_v55  ;;  %v13611_v8 = vpack.c.bf16 %v5467_v51, %v5466_v14  ;;  %v5470_v51 = vld [vmem:[%s21454_s7 + $0x1a0] sm:$0xff] }
 0x803   :  { %21581 = vst [vmem:[#allocation12_spill] sm:$0xff] %v18268_v49  ;;  %v5284_v39 = vadd.f32 %v18110_v22, %v4762_v9  ;;  %5629 = vmatprep.mubr.f32.mxu1 %v18268_v49  ;;  %6214 = vmatprep.mubr.f32.mxu0 %v18268_v49 }
 0x804   :  { %5630 = vmatmul.mubr.f32.gmra.mrb[174].mxu1 %v18273_v44  ;;  %6215 = vmatmul.mubr.f32.gmra.mrb[204].mxu0 %v18273_v44  ;;  %v18299_v25 = vmax.f32 %v5283_v59, 0.0 }
 0x805   :  { %v18292_v19 = vmax.f32 %v5284_v39, 0.0  ;;  %v18294_v26 = vpop.f32.mrb[28].mxu0  ;;  %v4766_v7 = vpop.f32.mrb[44].mxu1  ;;  %13606 = vmatpush1.bf16.msra.mxu1 %v13605_v53  ;;  %13705 = vmatpush1.bf16.msra.mxu0 %v13704_v62  ;;  %v13710_v53 = vpack.c.bf16 %v10884_v48, %v10883_v16  ;;  %v5468_v62 = vld [vmem:[%s21454_s7 + $0x190] sm:$0xff]  ;;  %v10886_v39 = vld [vmem:[%s21454_s7 + $0x3a8] sm:$0xff] }
 0x806   :  { %21584 = vst [vmem:[#allocation15_spill] sm:$0xff] %v18299_v25  ;;  %v5288_v21 = vadd.f32 %v18107_v63, %v4766_v7  ;;  %v18302_v58 = vpop.f32.mrb[29].mxu0  ;;  %v4768_v0 = vpop.f32.mrb[45].mxu1  ;;  %13607 = vmatprep.subr.bf16.mxu1 %v21463_v55  ;;  %13706 = vmatprep.subr.bf16.mxu0 %v21463_v55 }
 0x807   :  { %21583 = vst [vmem:[#allocation14_spill] sm:$0xff] %v18292_v19  ;;  %v5289_v45 = vadd.f32 %v18110_v22, %v4768_v0  ;;  %5634 = vmatprep.mubr.f32.mxu1 %v18292_v19  ;;  %6219 = vmatprep.mubr.f32.mxu0 %v18292_v19  ;;  %v13713_v0 = vpack.c.bf16 %v10886_v39, %v10885_v38 }
 0x808   :  { %5635 = vmatmul.mubr.f32.gmra.mrb[176].mxu1 %v18299_v25  ;;  %6220 = vmatmul.mubr.f32.gmra.mrb[206].mxu0 %v18299_v25  ;;  %v18327_v3 = vmax.f32 %v5288_v21, 0.0  ;;  %v13614_v21 = vpack.c.bf16 %v5469_v60, %v5468_v62  ;;  %v10888_v62 = vld [vmem:[%s21454_s7 + $0x3b8] sm:$0xff] }
 0x809   :  { %v18320_v56 = vmax.f32 %v5289_v45, 0.0  ;;  %v18322_v31 = vpop.f32.mrb[30].mxu0  ;;  %v4772_v33 = vpop.f32.mrb[46].mxu1  ;;  %13609 = vmatpush1.bf16.msra.mxu1 %v13608_v15  ;;  %13708 = vmatpush1.bf16.msra.mxu0 %v13707_v1 }
 0x80a   :  { %21586 = vst [vmem:[#allocation17_spill] sm:$0xff] %v18327_v3  ;;  %v5293_v59 = vadd.f32 %v18107_v63, %v4772_v33  ;;  %v18330_v9 = vpop.f32.mrb[31].mxu0  ;;  %v4774_v20 = vpop.f32.mrb[47].mxu1  ;;  %13610 = vmatprep.subr.bf16.mxu1 %v21463_v55  ;;  %13709 = vmatprep.subr.bf16.mxu0 %v21463_v55 }
 0x80b   :  { %21585 = vst [vmem:[#allocation16_spill] sm:$0xff] %v18320_v56  ;;  %v5294_v7 = vadd.f32 %v18110_v22, %v4774_v20  ;;  %5639 = vmatprep.mubr.f32.mxu1 %v18320_v56  ;;  %6224 = vmatprep.mubr.f32.mxu0 %v18320_v56 }
 0x80c   :  { %5640 = vmatmul.mubr.f32.gmra.mrb[178].mxu1 %v18327_v3  ;;  %6225 = vmatmul.mubr.f32.gmra.mrb[208].mxu0 %v18327_v3  ;;  %v18355_v16 = vmax.f32 %v5293_v59, 0.0 }
 0x80d   :  { %v18348_v15 = vmax.f32 %v5294_v7, 0.0  ;;  %v18350_v1 = vpop.f32.mrb[32].mxu0  ;;  %v4778_v14 = vpop.f32.mrb[48].mxu1  ;;  %13612 = vmatpush1.bf16.msra.mxu1 %v13611_v8  ;;  %13711 = vmatpush1.bf16.msra.mxu0 %v13710_v53  ;;  %v5471_v8 = vld [vmem:[%s21454_s7 + $0x1a8] sm:$0xff]  ;;  %v10887_v53 = vld [vmem:[%s21454_s7 + $0x3b0] sm:$0xff] }
 0x80e   :  { %21588 = vst [vmem:[#allocation19_spill] sm:$0xff] %v18355_v16  ;;  %v5298_v48 = vadd.f32 %v18107_v63, %v4778_v14  ;;  %v18358_v45 = vpop.f32.mrb[33].mxu0  ;;  %v4780_v33 = vpop.f32.mrb[49].mxu1  ;;  %13613 = vmatprep.subr.bf16.mxu1 %v21463_v55  ;;  %13712 = vmatprep.subr.bf16.mxu0 %v21463_v55  ;;  %v13617_v39 = vpack.c.bf16 %v5471_v8, %v5470_v51  ;;  %v5472_v14 = vld [vmem:[%s21454_s7 + $0x1b0] sm:$0xff]  ;;  %v10890_v51 = vld [vmem:[%s21454_s7 + $0x3c8] sm:$0xff] }
 0x80f   :  { %21587 = vst [vmem:[#allocation18_spill] sm:$0xff] %v18348_v15  ;;  %v5299_v59 = vadd.f32 %v18110_v22, %v4780_v33  ;;  %5644 = vmatprep.mubr.f32.mxu1 %v18348_v15  ;;  %6229 = vmatprep.mubr.f32.mxu0 %v18348_v15  ;;  %v13716_v7 = vpack.c.bf16 %v10888_v62, %v10887_v53 }
 0x810   :  { %5645 = vmatmul.mubr.f32.gmra.mrb[180].mxu1 %v18355_v16  ;;  %6230 = vmatmul.mubr.f32.gmra.mrb[210].mxu0 %v18355_v16  ;;  %v18383_v33 = vmax.f32 %v5298_v48, 0.0 }
 0x811   :  { %v18376_v20 = vmax.f32 %v5299_v59, 0.0  ;;  %v18378_v60 = vpop.f32.mrb[34].mxu0  ;;  %v4784_v38 = vpop.f32.mrb[50].mxu1  ;;  %13615 = vmatpush1.bf16.msra.mxu1 %v13614_v21  ;;  %13714 = vmatpush1.bf16.msra.mxu0 %v13713_v0  ;;  %v21591_v59 = vmov 0.0|0.0   ;;  %v5473_v21 = vld [vmem:[%s21454_s7 + $0x1b8] sm:$0xff]  ;;  %v10889_v0 = vld [vmem:[%s21454_s7 + $0x3c0] sm:$0xff] }
 0x812   :  { %21590 = vst [vmem:[#allocation21_spill] sm:$0xff] %v18383_v33  ;;  %v5303_v32 = vadd.f32 %v18107_v63, %v4784_v38  ;;  %v18386_v55 = vpop.f32.mrb[35].mxu0  ;;  %v4786_v16 = vpop.f32.mrb[51].mxu1  ;;  %13616 = vmatprep.subr.bf16.mxu1 %v21591_v59  ;;  %13715 = vmatprep.subr.bf16.mxu0 %v21591_v59  ;;  %v13620_v38 = vpack.c.bf16 %v5473_v21, %v5472_v14 }
 0x813   :  { %21589 = vst [vmem:[#allocation20_spill] sm:$0xff] %v18376_v20  ;;  %v5304_v48 = vadd.f32 %v18110_v22, %v4786_v16  ;;  %5649 = vmatprep.mubr.f32.mxu1 %v18376_v20  ;;  %6234 = vmatprep.mubr.f32.mxu0 %v18376_v20  ;;  %v13719_v15 = vpack.c.bf16 %v10890_v51, %v10889_v0  ;;  %v5474_v16 = vld [vmem:[%s21454_s7 + $0x1c0] sm:$0xff] }
 0x814   :  { %5650 = vmatmul.mubr.f32.gmra.mrb[182].mxu1 %v18383_v33  ;;  %6235 = vmatmul.mubr.f32.gmra.mrb[212].mxu0 %v18383_v33  ;;  %v18411_v3 = vmax.f32 %v5303_v32, 0.0  ;;  %v10892_v32 = vld [vmem:[%s21454_s7 + $0x3d8] sm:$0xff] }
 0x815   :  { %v18404_v8 = vmax.f32 %v5304_v48, 0.0  ;;  %v18406_v53 = vpop.f32.mrb[36].mxu0  ;;  %v4790_v62 = vpop.f32.mrb[52].mxu1  ;;  %13618 = vmatpush1.bf16.msra.mxu1 %v13617_v39  ;;  %13717 = vmatpush1.bf16.msra.mxu0 %v13716_v7  ;;  %v5475_v39 = vld [vmem:[%s21454_s7 + $0x1c8] sm:$0xff]  ;;  %v10891_v7 = vld [vmem:[%s21454_s7 + $0x3d0] sm:$0xff] }
 0x816   :  { %21593 = vst [vmem:[#allocation23_spill] sm:$0xff] %v18411_v3  ;;  %v5308_v20 = vadd.f32 %v18107_v63, %v4790_v62  ;;  %v18414_v56 = vpop.f32.mrb[37].mxu0  ;;  %v4792_v33 = vpop.f32.mrb[53].mxu1  ;;  %13619 = vmatprep.subr.bf16.mxu1 %v21591_v59  ;;  %13718 = vmatprep.subr.bf16.mxu0 %v21591_v59  ;;  %v13623_v48 = vpack.c.bf16 %v5475_v39, %v5474_v16 }
 0x817   :  { %21592 = vst [vmem:[#allocation22_spill] sm:$0xff] %v18404_v8  ;;  %v5309_v14 = vadd.f32 %v18110_v22, %v4792_v33  ;;  %5654 = vmatprep.mubr.f32.mxu1 %v18404_v8  ;;  %6239 = vmatprep.mubr.f32.mxu0 %v18404_v8  ;;  %v13722_v62 = vpack.c.bf16 %v10892_v32, %v10891_v7  ;;  %v5476_v33 = vld [vmem:[%s21454_s7 + $0x1d0] sm:$0xff] }
 0x818   :  { %5655 = vmatmul.mubr.f32.gmra.mrb[184].mxu1 %v18411_v3  ;;  %6240 = vmatmul.mubr.f32.gmra.mrb[214].mxu0 %v18411_v3  ;;  %v18439_v25 = vmax.f32 %v5308_v20, 0.0  ;;  %v10894_v20 = vld [vmem:[%s21454_s7 + $0x3e8] sm:$0xff] }
 0x819   :  { %v18432_v21 = vmax.f32 %v5309_v14, 0.0  ;;  %v18434_v0 = vpop.f32.mrb[38].mxu0  ;;  %v4796_v51 = vpop.f32.mrb[54].mxu1  ;;  %13621 = vmatpush1.bf16.msra.mxu1 %v13620_v38  ;;  %13720 = vmatpush1.bf16.msra.mxu0 %v13719_v15  ;;  %v5477_v15 = vld [vmem:[%s21454_s7 + $0x1d8] sm:$0xff]  ;;  %v10893_v38 = vld [vmem:[%s21454_s7 + $0x3e0] sm:$0xff] }
 0x81a   :  { %21595 = vst [vmem:[#allocation25_spill] sm:$0xff] %v18439_v25  ;;  %v5313_v8 = vadd.f32 %v18107_v63, %v4796_v51  ;;  %v18442_v19 = vpop.f32.mrb[39].mxu0  ;;  %v4798_v3 = vpop.f32.mrb[55].mxu1  ;;  %13622 = vmatprep.subr.bf16.mxu1 %v21591_v59  ;;  %13721 = vmatprep.subr.bf16.mxu0 %v21591_v59  ;;  %v13626_v14 = vpack.c.bf16 %v5477_v15, %v5476_v33  ;;  %v5237_v15 = vsub.s32 3, %v18097_v24 }
 0x81b   :  { %21594 = vst [vmem:[#allocation24_spill] sm:$0xff] %v18432_v21  ;;  %v5314_v16 = vadd.f32 %v18110_v22, %v4798_v3  ;;  %5659 = vmatprep.mubr.f32.mxu1 %v18432_v21  ;;  %6244 = vmatprep.mubr.f32.mxu0 %v18432_v21  ;;  %v13725_v51 = vpack.c.bf16 %v10894_v20, %v10893_v38  ;;  %v5478_v3 = vld [vmem:[%s21454_s7 + $0x1e0] sm:$0xff]  ;;  %v5233_v38 = vsub.s32 2, %v18097_v24 }
 0x81c   :  { %5660 = vmatmul.mubr.f32.gmra.mrb[186].mxu1 %v18439_v25  ;;  %6245 = vmatmul.mubr.f32.gmra.mrb[216].mxu0 %v18439_v25  ;;  %v18467_v44 = vmax.f32 %v5313_v8, 0.0  ;;  %v10896_v8 = vld [vmem:[%s21454_s7 + $0x3f8] sm:$0xff] }
 0x81d   :  { %v18460_v39 = vmax.f32 %v5314_v16, 0.0  ;;  %v18462_v7 = vpop.f32.mrb[40].mxu0  ;;  %v4802_v32 = vpop.f32.mrb[56].mxu1  ;;  %13624 = vmatpush1.bf16.msra.mxu1 %v13623_v48  ;;  %13723 = vmatpush1.bf16.msra.mxu0 %v13722_v62  ;;  %v5479_v48 = vld [vmem:[%s21454_s7 + $0x1e8] sm:$0xff]  ;;  %v10895_v62 = vld [vmem:[%s21454_s7 + $0x3f0] sm:$0xff]  ;;  %v18526_v35 = vrot.slane %v18103_v57, %v5233_v38 }
 0x81e   :  { %21597 = vst [vmem:[#allocation27_spill] sm:$0xff] %v18467_v44  ;;  %v5318_v21 = vadd.f32 %v18107_v63, %v4802_v32  ;;  %v18470_v49 = vpop.f32.mrb[41].mxu0  ;;  %v4804_v25 = vpop.f32.mrb[57].mxu1  ;;  %13625 = vmatprep.subr.bf16.mxu1 %v21591_v59  ;;  %13724 = vmatprep.subr.bf16.mxu0 %v21591_v59  ;;  %v13728_v34 = vpack.c.bf16 %v10896_v8, %v10895_v62  ;;  %v5483_v38 = vld [vmem:[%s21454_s7 + $0x208] sm:$0xff] }
 0x81f   :  { %21596 = vst [vmem:[#allocation26_spill] sm:$0xff] %v18460_v39  ;;  %v5319_v33 = vadd.f32 %v18110_v22, %v4804_v25  ;;  %5664 = vmatprep.mubr.f32.mxu1 %v18460_v39  ;;  %6249 = vmatprep.mubr.f32.mxu0 %v18460_v39  ;;  %v13629_v25 = vpack.c.bf16 %v5479_v48, %v5478_v3  ;;  %v5480_v39 = vld [vmem:[%s21454_s7 + $0x1f0] sm:$0xff] }
 0x820   :  { %5665 = vmatmul.mubr.f32.gmra.mrb[188].mxu1 %v18467_v44  ;;  %6250 = vmatmul.mubr.f32.gmra.mrb[218].mxu0 %v18467_v44  ;;  %v18497_v52 = vmax.f32 %v5318_v21, 0.0  ;;  %v10898_v21 = vld [vmem:[%s21454_s7 + $0x408] sm:$0xff]  ;;  %v18517_v48 = vrot.slane %v18103_v57, %v5237_v15 }
 0x821   :  { %v18490_v20 = vmax.f32 %v5319_v33, 0.0  ;;  %v18492_v16 = vpop.f32.mrb[42].mxu0  ;;  %v4808_v32 = vpop.f32.mrb[58].mxu1  ;;  %13627 = vmatpush1.bf16.msra.mxu1 %v13626_v14  ;;  %13726 = vmatpush1.bf16.msra.mxu0 %v13725_v51  ;;  %v5481_v14 = vld [vmem:[%s21454_s7 + $0x1f8] sm:$0xff]  ;;  %v10897_v51 = vld [vmem:[%s21454_s7 + $0x400] sm:$0xff] }
 0x822   :  { %v5323_v41 = vadd.f32 %v18107_v63, %v4808_v32  ;;  %v18500_v44 = vpop.f32.mrb[43].mxu0  ;;  %v4810_v54 = vpop.f32.mrb[59].mxu1  ;;  %13628 = vmatprep.subr.bf16.mxu1 %v21591_v59  ;;  %13727 = vmatprep.subr.bf16.mxu0 %v21591_v59  ;;  %v13632_v32 = vpack.c.bf16 %v5481_v14, %v5480_v39  ;;  %v5251_v57 = vadd.f32 %v18517_v48, %v18302_v58  ;;  %v5482_v58 = vld [vmem:[%s21454_s7 + $0x200] sm:$0xff]  ;;  %v10900_v14 = vld [vmem:[%s21454_s7 + $0x418] sm:$0xff] }
 0x823   :  { %21598 = vst [vmem:[#allocation28_spill] sm:$0xff] %v18490_v20  ;;  %v5324_v3 = vadd.f32 %v18110_v22, %v4810_v54  ;;  %5669 = vmatprep.mubr.f32.mxu1 %v18490_v20  ;;  %6254 = vmatprep.mubr.f32.mxu0 %v18490_v20  ;;  %v13731_v54 = vpack.c.bf16 %v10898_v21, %v10897_v51 }
 0x824   :  { %5670 = vmatmul.mubr.f32.gmra.mrb[190].mxu1 %v18497_v52  ;;  %6255 = vmatmul.mubr.f32.gmra.mrb[220].mxu0 %v18497_v52  ;;  %v18528_v20 = vmax.f32 %v5323_v41, 0.0  ;;  %v18559_v39 = vmax.f32 %v5251_v57, 0.0 }
 0x825   :  { %v18521_v62 = vmax.f32 %v5324_v3, 0.0  ;;  %v18523_v8 = vpop.f32.mrb[44].mxu0  ;;  %v4814_v33 = vpop.f32.mrb[60].mxu1  ;;  %13630 = vmatpush1.bf16.msra.mxu1 %v13629_v25  ;;  %13729 = vmatpush1.bf16.msra.mxu0 %v13728_v34  ;;  %v10899_v25 = vld [vmem:[%s21454_s7 + $0x410] sm:$0xff] }
 0x826   :  { %21600 = vst [vmem:[#allocation30_spill] sm:$0xff] %v18528_v20  ;;  %v5328_v15 = vadd.f32 %v18107_v63, %v4814_v33  ;;  %v18531_v4 = vpop.f32.mrb[45].mxu0  ;;  %v4816_v47 = vpop.f32.mrb[61].mxu1  ;;  %13631 = vmatprep.subr.bf16.mxu1 %v21591_v59  ;;  %13730 = vmatprep.subr.bf16.mxu0 %v21591_v59  ;;  %21603 = vst [vmem:[#allocation33_spill] sm:$0xff] %v18559_v39  ;;  %v5255_v33 = vadd.f32 %v18526_v35, %v18322_v31 }
 0x827   :  { %21599 = vst [vmem:[#allocation29_spill] sm:$0xff] %v18521_v62  ;;  %v5329_v3 = vadd.f32 %v18110_v22, %v4816_v47  ;;  %5674 = vmatprep.mubr.f32.mxu1 %v18521_v62  ;;  %6259 = vmatprep.mubr.f32.mxu0 %v18521_v62  ;;  %v5250_v22 = vadd.f32 %v18526_v35, %v18294_v26 }
 0x828   :  { %5675 = vmatmul.mubr.f32.gmra.mrb[192].mxu1 %v18528_v20  ;;  %6260 = vmatmul.mubr.f32.gmra.mrb[222].mxu0 %v18528_v20  ;;  %v18548_v47 = vmax.f32 %v5328_v15, 0.0  ;;  %v5256_v26 = vadd.f32 %v18517_v48, %v18330_v9  ;;  %v18596_v31 = vmax.f32 %v5255_v33, 0.0  ;;  %v5271_v33 = vadd.f32 %v18517_v48, %v18414_v56 }
 0x829   :  { %v18542_v63 = vmax.f32 %v5329_v3, 0.0  ;;  %v18544_v41 = vpop.f32.mrb[46].mxu0  ;;  %13633 = vmatpush1.bf16.msra.mxu1 %v13632_v32  ;;  %13732 = vmatpush1.bf16.msra.mxu0 %v13731_v54  ;;  %v18578_v9 = vmax.f32 %v5250_v22, 0.0  ;;  %v13635_v32 = vpack.c.bf16 %v5483_v38, %v5482_v58  ;;  %v13734_v54 = vpack.c.bf16 %v10900_v14, %v10899_v25 }
 0x82a   :  { %21602 = vst [vmem:[#allocation32_spill] sm:$0xff] %v18548_v47  ;;  %v18550_v34 = vpop.f32.mrb[47].mxu0  ;;  %13634 = vmatprep.subr.bf16.mxu1 %v21591_v59  ;;  %13733 = vmatprep.subr.bf16.mxu0 %v21591_v59  ;;  %v18584_v15 = vmax.f32 %v5256_v26, 0.0  ;;  %v5261_v3 = vadd.f32 %v18517_v48, %v18358_v45  ;;  %21606 = vst [vmem:[#allocation36_spill] sm:$0xff] %v18596_v31  ;;  %v5260_v58 = vadd.f32 %v18526_v35, %v18350_v1 }
 0x82b   :  { %21601 = vst [vmem:[#allocation31_spill] sm:$0xff] %v18542_v63  ;;  %5679 = vmatprep.mubr.f32.mxu1 %v18542_v63  ;;  %6264 = vmatprep.mubr.f32.mxu0 %v18542_v63  ;;  %21604 = vst [vmem:[#allocation34_spill] sm:$0xff] %v18578_v9  ;;  %v5266_v26 = vadd.f32 %v18517_v48, %v18386_v55  ;;  %v5265_v55 = vadd.f32 %v18526_v35, %v18378_v60 }
 0x82c   :  { %5680 = vmatmul.mubr.f32.gmra.mrb[194].mxu1 %v18548_v47  ;;  %6265 = vmatmul.mubr.f32.gmra.mrb[224].mxu0 %v18548_v47  ;;  %21605 = vst [vmem:[#allocation35_spill] sm:$0xff] %v18584_v15  ;;  %v18600_v45 = vmax.f32 %v5261_v3, 0.0  ;;  %v18614_v25 = vmax.f32 %v5260_v58, 0.0  ;;  %v5270_v60 = vadd.f32 %v18526_v35, %v18406_v53  ;;  %v18634_v58 = vmax.f32 %v5271_v33, 0.0 }
 0x82d   :  { %v18574_v51 = vpop.f32.mrb[48].mxu0  ;;  %5749 = vmatprep.mubr.f32.mxu1 %v18559_v39  ;;  %6334 = vmatprep.mubr.f32.mxu0 %v18559_v39  ;;  %v18618_v14 = vmax.f32 %v5266_v26, 0.0  ;;  %v18630_v3 = vmax.f32 %v5265_v55, 0.0  ;;  %v5276_v56 = vadd.f32 %v18517_v48, %v18442_v19  ;;  %v5275_v53 = vadd.f32 %v18526_v35, %v18434_v0 }
 0x82e   :  { %v18580_v21 = vpop.f32.mrb[49].mxu0  ;;  %21607 = vst [vmem:[#allocation37_spill] sm:$0xff] %v18600_v45  ;;  %21608 = vst [vmem:[#allocation38_spill] sm:$0xff] %v18614_v25  ;;  %v5281_v19 = vadd.f32 %v18517_v48, %v18470_v49  ;;  %v5280_v0 = vadd.f32 %v18526_v35, %v18462_v7  ;;  %v5286_v49 = vadd.f32 %v18517_v48, %v18500_v44 }
 0x82f   :  { %21609 = vst [vmem:[#allocation39_spill] sm:$0xff] %v18618_v14  ;;  %21610 = vst [vmem:[#allocation40_spill] sm:$0xff] %v18630_v3  ;;  %v18650_v33 = vmax.f32 %v5276_v56, 0.0  ;;  %v5285_v7 = vadd.f32 %v18526_v35, %v18492_v16  ;;  %v5291_v44 = vadd.f32 %v18517_v48, %v18531_v4  ;;  %v5290_v16 = vadd.f32 %v18526_v35, %v18523_v8 }
 0x830   :  { %5750 = vmatmul.mubr.f32.vlgmr.msra.gmra.mrb[162].mxu1 %v18578_v9  ;;  %6335 = vmatmul.mubr.f32.vlgmr.msra.gmra.mrb[192].mxu0 %v18578_v9  ;;  %21611 = vst [vmem:[#allocation41_spill] sm:$0xff] %v18634_v58  ;;  %v18666_v56 = vmax.f32 %v5281_v19, 0.0 }
 0x831   :  { %v18590_v57 = vpop.f32.mrb[50].mxu0  ;;  %5754 = vmatprep.mubr.f32.mxu1 %v18584_v15  ;;  %6339 = vmatprep.mubr.f32.mxu0 %v18584_v15  ;;  %21613 = vst [vmem:[#allocation43_spill] sm:$0xff] %v18650_v33  ;;  %v18707_v8 = vmax.f32 %v5290_v16, 0.0 }
 0x832   :  { %v18594_v22 = vpop.f32.mrb[51].mxu0  ;;  %13636 = vmatpush3.bf16.msra.mxu1 %v13635_v32  ;;  %13735 = vmatpush3.bf16.msra.mxu0 %v13734_v54  ;;  %21615 = vst [vmem:[#allocation45_spill] sm:$0xff] %v18666_v56 }
 0x833   :  { %13736 = vmatprep.subr.bf16.mxu1 %v21591_v59  ;;  %13760 = vmatprep.subr.bf16.mxu0 %v21591_v59 }
 0x834   :  { %5755 = vmatmul.mubr.f32.gmra.mrb[164].mxu1 %v18596_v31  ;;  %6340 = vmatmul.mubr.f32.gmra.mrb[194].mxu0 %v18596_v31 }
 0x835   :  { %v18608_v38 = vpop.f32.mrb[52].mxu0  ;;  %5759 = vmatprep.mubr.f32.mxu1 %v18600_v45  ;;  %6344 = vmatprep.mubr.f32.mxu0 %v18600_v45 }
 0x836   :  { %v18612_v1 = vpop.f32.mrb[53].mxu0 }
 0x838   :  { %5760 = vmatmul.mubr.f32.gmra.mrb[166].mxu1 %v18614_v25  ;;  %6345 = vmatmul.mubr.f32.gmra.mrb[196].mxu0 %v18614_v25  ;;  %v18677_v25 = vmax.f32 %v5280_v0, 0.0 }
 0x839   :  { %v18624_v32 = vpop.f32.mrb[54].mxu0  ;;  %5764 = vmatprep.mubr.f32.mxu1 %v18618_v14  ;;  %6349 = vmatprep.mubr.f32.mxu0 %v18618_v14  ;;  %v18646_v14 = vmax.f32 %v5270_v60, 0.0 }
 0x83a   :  { %v18628_v54 = vpop.f32.mrb[55].mxu0  ;;  %21616 = vst [vmem:[#allocation46_spill] sm:$0xff] %v18677_v25 }
 0x83b   :  { %21612 = vst [vmem:[#allocation42_spill] sm:$0xff] %v18646_v14 }
 0x83c   :  { %5765 = vmatmul.mubr.f32.gmra.mrb[168].mxu1 %v18630_v3  ;;  %6350 = vmatmul.mubr.f32.gmra.mrb[198].mxu0 %v18630_v3 }
 0x83d   :  { %v18640_v26 = vpop.f32.mrb[56].mxu0  ;;  %5769 = vmatprep.mubr.f32.mxu1 %v18634_v58  ;;  %6354 = vmatprep.mubr.f32.mxu0 %v18634_v58  ;;  %v18662_v58 = vmax.f32 %v5275_v53, 0.0 }
 0x83e   :  { %v18644_v55 = vpop.f32.mrb[57].mxu0 }
 0x83f   :  { %21614 = vst [vmem:[#allocation44_spill] sm:$0xff] %v18662_v58 }
 0x840   :  { %5770 = vmatmul.mubr.f32.gmra.mrb[170].mxu1 %v18646_v14  ;;  %6355 = vmatmul.mubr.f32.gmra.mrb[200].mxu0 %v18646_v14 }
 0x841   :  { %v18656_v3 = vpop.f32.mrb[58].mxu0  ;;  %5774 = vmatprep.mubr.f32.mxu1 %v18650_v33  ;;  %6359 = vmatprep.mubr.f32.mxu0 %v18650_v33 }
 0x842   :  { %v18660_v60 = vpop.f32.mrb[59].mxu0 }
 0x844   :  { %5775 = vmatmul.mubr.f32.gmra.mrb[172].mxu1 %v18662_v58  ;;  %6360 = vmatmul.mubr.f32.gmra.mrb[202].mxu0 %v18662_v58  ;;  %v18686_v58 = vmax.f32 %v5286_v49, 0.0  ;;  %v18699_v49 = vmax.f32 %v5291_v44, 0.0 }
 0x845   :  { %v4981_v14 = vpop.f32.mrb[60].mxu0  ;;  %5779 = vmatprep.mubr.f32.mxu1 %v18666_v56  ;;  %6364 = vmatprep.mubr.f32.mxu0 %v18666_v56  ;;  %v5296_v56 = vadd.f32 %v18517_v48, %v18550_v34  ;;  %v5301_v34 = vadd.f32 %v18517_v48, %v18580_v21  ;;  %v5306_v21 = vadd.f32 %v18517_v48, %v18594_v22 }
 0x846   :  { %v18675_v53 = vadd.f32 %v18526_v35, %v4981_v14  ;;  %v4983_v33 = vpop.f32.mrb[61].mxu0  ;;  %21617 = vst [vmem:[#allocation47_spill] sm:$0xff] %v18686_v58  ;;  %21618 = vst [vmem:[#allocation48_spill] sm:$0xff] %v18699_v49  ;;  %v5311_v22 = vadd.f32 %v18517_v48, %v18612_v1  ;;  %v5316_v1 = vadd.f32 %v18517_v48, %v18628_v54 }
 0x847   :  { %v18684_v19 = vadd.f32 %v18517_v48, %v4983_v33  ;;  %v18697_v33 = vmax.f32 %v5285_v7, 0.0  ;;  %v5321_v54 = vadd.f32 %v18517_v48, %v18644_v55  ;;  %v5326_v55 = vadd.f32 %v18517_v48, %v18660_v60 }
 0x848   :  { %5780 = vmatmul.mubr.f32.gmra.mrb[174].mxu1 %v18677_v25  ;;  %6365 = vmatmul.mubr.f32.gmra.mrb[204].mxu0 %v18677_v25 }
 0x849   :  { %v5052_v14 = vpop.f32.mrb[158].mxu0  ;;  %5784 = vmatprep.mubr.f32.mxu1 %v18686_v58  ;;  %6369 = vmatprep.mubr.f32.mxu0 %v18686_v58  ;;  %v18805_v60 = vmax.f32 %v5326_v55, 0.0 }
 0x84a   :  { %v18695_v0 = vadd.f32 %v5052_v14, %v17566_v17  ;;  %v12391_v4 = vpop.f32.mrb[159].mxu0  ;;  %v5295_v17 = vadd.f32 %v18526_v35, %v18544_v41  ;;  %v18714_v14 = vmax.f32 %v5296_v56, 0.0  ;;  %v18729_v56 = vmax.f32 %v5301_v34, 0.0 }
 0x84c   :  { %5785 = vmatmul.mubr.f32.gmra.mrb[176].mxu1 %v18697_v33  ;;  %6370 = vmatmul.mubr.f32.gmra.mrb[206].mxu0 %v18697_v33  ;;  %21619 = vst [vmem:[#allocation49_spill] sm:$0xff] %v18714_v14  ;;  %v18722_v16 = vmax.f32 %v5295_v17, 0.0  ;;  %21620 = vst [vmem:[#allocation50_spill] sm:$0xff] %v18729_v56 }
 0x84d   :  { %v5057_v25 = vpop.f32.mrb[160].mxu0  ;;  %5789 = vmatprep.mubr.f32.mxu1 %v18699_v49  ;;  %6374 = vmatprep.mubr.f32.mxu0 %v18699_v49 }
 0x84e   :  { %v18712_v7 = vadd.f32 %v5057_v25, %v17569_v50  ;;  %v12394_v44 = vpop.f32.mrb[161].mxu0  ;;  %v5300_v50 = vadd.f32 %v18526_v35, %v18574_v51 }
 0x850   :  { %5790 = vmatmul.mubr.f32.gmra.mrb[178].mxu1 %v18707_v8  ;;  %6375 = vmatmul.mubr.f32.gmra.mrb[208].mxu0 %v18707_v8  ;;  %v18737_v17 = vmax.f32 %v5300_v50, 0.0 }
 0x851   :  { %v5062_v4 = vpop.f32.mrb[162].mxu0  ;;  %5794 = vmatprep.mubr.f32.mxu1 %v18714_v14  ;;  %6379 = vmatprep.mubr.f32.mxu0 %v18714_v14 }
 0x852   :  { %v18727_v41 = vadd.f32 %v5062_v4, %v17572_v2  ;;  %v12397_v25 = vpop.f32.mrb[163].mxu0  ;;  %v5305_v2 = vadd.f32 %v18526_v35, %v18590_v57  ;;  %v18744_v4 = vmax.f32 %v5306_v21, 0.0 }
 0x854   :  { %5795 = vmatmul.mubr.f32.gmra.mrb[180].mxu1 %v18722_v16  ;;  %6380 = vmatmul.mubr.f32.gmra.mrb[210].mxu0 %v18722_v16  ;;  %21621 = vst [vmem:[#allocation51_spill] sm:$0xff] %v18744_v4  ;;  %v18752_v50 = vmax.f32 %v5305_v2, 0.0 }
 0x855   :  { %v5067_v44 = vpop.f32.mrb[164].mxu0  ;;  %5799 = vmatprep.mubr.f32.mxu1 %v18729_v56  ;;  %6384 = vmatprep.mubr.f32.mxu0 %v18729_v56 }
 0x856   :  { %v18742_v51 = vadd.f32 %v5067_v44, %v17575_v13  ;;  %v12400_v34 = vpop.f32.mrb[165].mxu0  ;;  %v5310_v13 = vadd.f32 %v18526_v35, %v18608_v38  ;;  %v18759_v44 = vmax.f32 %v5311_v22, 0.0 }
 0x858   :  { %5800 = vmatmul.mubr.f32.gmra.mrb[182].mxu1 %v18737_v17  ;;  %6385 = vmatmul.mubr.f32.gmra.mrb[212].mxu0 %v18737_v17  ;;  %21622 = vst [vmem:[#allocation52_spill] sm:$0xff] %v18759_v44  ;;  %v18767_v2 = vmax.f32 %v5310_v13, 0.0 }
 0x859   :  { %v5072_v25 = vpop.f32.mrb[166].mxu0  ;;  %5804 = vmatprep.mubr.f32.mxu1 %v18744_v4  ;;  %6389 = vmatprep.mubr.f32.mxu0 %v18744_v4 }
 0x85a   :  { %v18757_v57 = vadd.f32 %v5072_v25, %v17578_v37  ;;  %v12403_v21 = vpop.f32.mrb[167].mxu0  ;;  %v5315_v37 = vadd.f32 %v18526_v35, %v18624_v32  ;;  %v18774_v25 = vmax.f32 %v5316_v1, 0.0 }
 0x85c   :  { %5805 = vmatmul.mubr.f32.gmra.mrb[184].mxu1 %v18752_v50  ;;  %6390 = vmatmul.mubr.f32.gmra.mrb[214].mxu0 %v18752_v50  ;;  %21623 = vst [vmem:[#allocation53_spill] sm:$0xff] %v18774_v25  ;;  %v18782_v13 = vmax.f32 %v5315_v37, 0.0 }
 0x85d   :  { %v5077_v34 = vpop.f32.mrb[168].mxu0  ;;  %5809 = vmatprep.mubr.f32.mxu1 %v18759_v44  ;;  %6394 = vmatprep.mubr.f32.mxu0 %v18759_v44 }
 0x85e   :  { %v18772_v38 = vadd.f32 %v5077_v34, %v17581_v12  ;;  %v12406_v22 = vpop.f32.mrb[169].mxu0  ;;  %v5320_v12 = vadd.f32 %v18526_v35, %v18640_v26  ;;  %v18789_v34 = vmax.f32 %v5321_v54, 0.0  ;;  %v5241_v26 = vsub.s32 4, %v18097_v24  ;;  %v14680_v24 = vld [vmem:[%s21453_s6] sm:$0x1f] }
 0x860   :  { %5810 = vmatmul.mubr.f32.gmra.mrb[186].mxu1 %v18767_v2  ;;  %6395 = vmatmul.mubr.f32.gmra.mrb[216].mxu0 %v18767_v2  ;;  %21624 = vst [vmem:[#allocation54_spill] sm:$0xff] %v18789_v34  ;;  %v18797_v37 = vmax.f32 %v5320_v12, 0.0 }
 0x861   :  { %v5082_v21 = vpop.f32.mrb[170].mxu0  ;;  %5814 = vmatprep.mubr.f32.mxu1 %v18774_v25  ;;  %6399 = vmatprep.mubr.f32.mxu0 %v18774_v25 }
 0x862   :  { %v18787_v32 = vadd.f32 %v5082_v21, %v17584_v42  ;;  %v12409_v1 = vpop.f32.mrb[171].mxu0  ;;  %v5325_v42 = vadd.f32 %v18526_v35, %v18656_v3 }
 0x863   :  { %v18822_v1 = vmax.f32 %v18684_v19, 0.0 }
 0x864   :  { %5815 = vmatmul.mubr.f32.gmra.mrb[188].mxu1 %v18782_v13  ;;  %6400 = vmatmul.mubr.f32.gmra.mrb[218].mxu0 %v18782_v13  ;;  %v18811_v12 = vmax.f32 %v5325_v42, 0.0 }
 0x865   :  { %v5087_v22 = vpop.f32.mrb[172].mxu0  ;;  %5819 = vmatprep.mubr.f32.mxu1 %v18789_v34  ;;  %6404 = vmatprep.mubr.f32.mxu0 %v18789_v34 }
 0x866   :  { %v18803_v54 = vadd.f32 %v5087_v22, %v17595_v61  ;;  %v12412_v48 = vpop.f32.mrb[173].mxu0  ;;  %v18816_v61 = vrot.slane %v14680_v24, %v5241_v26  ;;  %v18829_v22 = vmax.f32 %v18675_v53, 0.0 }
 0x867   :  { %v21626_v48 = vmov 0.0  }
 0x868   :  { %5820 = vmatmul.mubr.f32.gmra.mrb[190].mxu1 %v18797_v37  ;;  %6405 = vmatmul.mubr.f32.gmra.mrb[220].mxu0 %v18797_v37  ;;  %21625 = vst [vmem:[#allocation55_spill] sm:$0xff] %v18829_v22 }
 0x869   :  { %v5092_v21 = vpop.f32.mrb[174].mxu0  ;;  %5824 = vmatprep.mubr.f32.mxu1 %v18805_v60  ;;  %6409 = vmatprep.mubr.f32.mxu0 %v18805_v60 }
 0x86a   :  { %v18819_v35 = vadd.f32 %v5092_v21, %v17606_v30  ;;  %v12415_v3 = vpop.f32.mrb[175].mxu0  ;;  %v5252_v30 = vadd.f32 %v18816_v61, %v18695_v0  ;;  %v5257_v0 = vadd.f32 %v18816_v61, %v18712_v7 }
 0x86c   :  { %5825 = vmatmul.mubr.f32.gmra.mrb[192].mxu1 %v18811_v12  ;;  %6410 = vmatmul.mubr.f32.gmra.mrb[222].mxu0 %v18811_v12  ;;  %v18842_v53 = vmax.f32 %v5252_v30, 0.0  ;;  %v18857_v3 = vmax.f32 %v5257_v0, 0.0 }
 0x86d   :  { %v5097_v55 = vpop.f32.mrb[176].mxu0  ;;  %5829 = vmatprep.mubr.f32.mxu1 %v18822_v1  ;;  %6414 = vmatprep.mubr.f32.mxu0 %v18822_v1 }
 0x86e   :  { %v18834_v42 = vadd.f32 %v5097_v55, %v17617_v11  ;;  %v12418_v19 = vpop.f32.mrb[177].mxu0  ;;  %21627 = vst [vmem:[#allocation56_spill] sm:$0xff] %v18842_v53  ;;  %21628 = vst [vmem:[#allocation57_spill] sm:$0xff] %v18857_v3 }
 0x870   :  { %5830 = vmatmul.mubr.f32.gmra.mrb[194].mxu1 %v18829_v22  ;;  %6415 = vmatmul.mubr.f32.gmra.mrb[224].mxu0 %v18829_v22 }
 0x871   :  { %v5102_v26 = vpop.f32.mrb[178].mxu0  ;;  %12444 = vmatprep.mubr.msk.f32.mxu1 %vm14707_vm2, %v21626_v48  ;;  %12499 = vmatprep.mubr.msk.f32.mxu0 %vm14707_vm2, %v21626_v48 }
 0x872   :  { %v18847_v11 = vadd.f32 %v5102_v26, %v17628_v29  ;;  %v12421_v21 = vpop.f32.mrb[179].mxu0  ;;  %v5262_v29 = vadd.f32 %v18816_v61, %v18727_v41 }
 0x874   :  { %12445 = vmatmul.mubr.msk.f32.vlgmr.msra.gmra.mrb[162].mxu1 %vm272_vm0, %v18842_v53  ;;  %12500 = vmatmul.mubr.msk.f32.vlgmr.msra.gmra.mrb[192].mxu0 %vm272_vm0, %v18842_v53  ;;  %v18872_v19 = vmax.f32 %v5262_v29, 0.0 }
 0x875   :  { %v5107_v24 = vpop.f32.mrb[180].mxu0  ;;  %12447 = vmatprep.mubr.msk.f32.mxu1 %vm14707_vm2, %v21626_v48  ;;  %12502 = vmatprep.mubr.msk.f32.mxu0 %vm14707_vm2, %v21626_v48 }
 0x876   :  { %v18862_v7 = vadd.f32 %v5107_v24, %v17639_v46  ;;  %v12424_v55 = vpop.f32.mrb[181].mxu0  ;;  %21629 = vst [vmem:[#allocation58_spill] sm:$0xff] %v18872_v19  ;;  %v5267_v46 = vadd.f32 %v18816_v61, %v18742_v51 }
 0x878   :  { %12448 = vmatmul.mubr.msk.f32.gmra.mrb[164].mxu1 %vm272_vm0, %v18857_v3  ;;  %12503 = vmatmul.mubr.msk.f32.gmra.mrb[194].mxu0 %vm272_vm0, %v18857_v3  ;;  %v18887_v21 = vmax.f32 %v5267_v46, 0.0 }
 0x879   :  { %v5112_v30 = vpop.f32.mrb[182].mxu0  ;;  %12450 = vmatprep.mubr.msk.f32.mxu1 %vm14707_vm2, %v21626_v48  ;;  %12505 = vmatprep.mubr.msk.f32.mxu0 %vm14707_vm2, %v21626_v48 }
 0x87a   :  { %v18877_v41 = vadd.f32 %v5112_v30, %v17650_v5  ;;  %v12427_v26 = vpop.f32.mrb[183].mxu0  ;;  %21630 = vst [vmem:[#allocation59_spill] sm:$0xff] %v18887_v21  ;;  %v5272_v5 = vadd.f32 %v18816_v61, %v18757_v57 }
 0x87c   :  { %12451 = vmatmul.mubr.msk.f32.gmra.mrb[166].mxu1 %vm272_vm0, %v18872_v19  ;;  %12506 = vmatmul.mubr.msk.f32.gmra.mrb[196].mxu0 %vm272_vm0, %v18872_v19  ;;  %v18902_v55 = vmax.f32 %v5272_v5, 0.0 }
 0x87d   :  { %v5117_v0 = vpop.f32.mrb[184].mxu0  ;;  %12453 = vmatprep.mubr.msk.f32.mxu1 %vm14707_vm2, %v21626_v48  ;;  %12508 = vmatprep.mubr.msk.f32.mxu0 %vm14707_vm2, %v21626_v48 }
 0x87e   :  { %v18892_v51 = vadd.f32 %v5117_v0, %v17661_v43  ;;  %v12430_v24 = vpop.f32.mrb[185].mxu0  ;;  %21631 = vst [vmem:[#allocation60_spill] sm:$0xff] %v18902_v55  ;;  %v5277_v43 = vadd.f32 %v18816_v61, %v18772_v38  ;;  %v5282_v38 = vadd.f32 %v18816_v61, %v18787_v32  ;;  %v5287_v32 = vadd.f32 %v18816_v61, %v18803_v54 }
 0x880   :  { %12454 = vmatmul.mubr.msk.f32.gmra.mrb[168].mxu1 %vm272_vm0, %v18887_v21  ;;  %12509 = vmatmul.mubr.msk.f32.gmra.mrb[198].mxu0 %vm272_vm0, %v18887_v21  ;;  %v18915_v26 = vmax.f32 %v5277_v43, 0.0  ;;  %v18928_v24 = vmax.f32 %v5282_v38, 0.0  ;;  %v5302_v38 = vadd.f32 %v18816_v61, %v18847_v11 }
 0x881   :  { %v5122_v29 = vpop.f32.mrb[186].mxu0  ;;  %12456 = vmatprep.mubr.msk.f32.mxu1 %vm14707_vm2, %v21626_v48  ;;  %12511 = vmatprep.mubr.msk.f32.mxu0 %vm14707_vm2, %v21626_v48 }
 0x882   :  { %v5210_v57 = vadd.f32 %v5122_v29, %v17678_v6  ;;  %v12433_v30 = vpop.f32.mrb[187].mxu0  ;;  %21632 = vst [vmem:[#allocation61_spill] sm:$0xff] %v18915_v26  ;;  %21633 = vst [vmem:[#allocation62_spill] sm:$0xff] %v18928_v24 }
 0x883   :  { %v18942_v30 = vmax.f32 %v5287_v32, 0.0  ;;  %v5317_v32 = vadd.f32 %v18816_v61, %v18892_v51 }
 0x884   :  { %12457 = vmatmul.mubr.msk.f32.gmra.mrb[170].mxu1 %vm272_vm0, %v18902_v55  ;;  %12512 = vmatmul.mubr.msk.f32.gmra.mrb[200].mxu0 %vm272_vm0, %v18902_v55 }
 0x885   :  { %v5127_v46 = vpop.f32.mrb[188].mxu0  ;;  %12459 = vmatprep.mubr.msk.f32.mxu1 %vm14707_vm2, %v21626_v48  ;;  %12514 = vmatprep.mubr.msk.f32.mxu0 %vm14707_vm2, %v21626_v48  ;;  %21634 = vst [vmem:[#allocation63_spill] sm:$0xff] %v18942_v30 }
 0x886   :  { %v5215_v6 = vadd.f32 %v5127_v46, %v17699_v28  ;;  %v12436_v0 = vpop.f32.mrb[189].mxu0  ;;  %v5297_v46 = vadd.f32 %v18816_v61, %v18834_v42  ;;  %v18978_v42 = vmax.f32 %v5302_v38, 0.0 }
 0x887   :  { %v5307_v0 = vadd.f32 %v18816_v61, %v18862_v7 }
 0x888   :  { %12460 = vmatmul.mubr.msk.f32.gmra.mrb[172].mxu1 %vm272_vm0, %v18915_v26  ;;  %12515 = vmatmul.mubr.msk.f32.gmra.mrb[202].mxu0 %vm272_vm0, %v18915_v26  ;;  %21637 = vst [vmem:[#allocation66_spill] sm:$0xff] %v18978_v42 }
 0x889   :  { %v5132_v5 = vpop.f32.mrb[190].mxu0  ;;  %12462 = vmatprep.mubr.msk.f32.mxu1 %vm14707_vm2, %v21626_v48  ;;  %12517 = vmatprep.mubr.msk.f32.mxu0 %vm14707_vm2, %v21626_v48  ;;  %v18990_v11 = vmax.f32 %v5307_v0, 0.0 }
 0x88a   :  { %v5220_v28 = vadd.f32 %v5132_v5, %v17726_v40  ;;  %v12439_v29 = vpop.f32.mrb[191].mxu0  ;;  %v5292_v40 = vadd.f32 %v18816_v61, %v18819_v35  ;;  %v18966_v35 = vmax.f32 %v5297_v46, 0.0  ;;  %v5312_v5 = vadd.f32 %v18816_v61, %v18877_v41 }
 0x88b   :  { %21638 = vst [vmem:[#allocation67_spill] sm:$0xff] %v18990_v11  ;;  %v19014_v41 = vmax.f32 %v5317_v32, 0.0  ;;  %v5327_v29 = vadd.f32 %v18816_v61, %v5215_v6  ;;  %v10919_v6 = vld [vmem:[%s21455_s8 + $0x228] sm:$0xff] }
 0x88c   :  { %v5332_v43 = vadd.f32 %v18816_v61, %v5220_v28  ;;  %12463 = vmatmul.mubr.msk.f32.gmra.mrb[174].mxu1 %vm272_vm0, %v18928_v24  ;;  %12518 = vmatmul.mubr.msk.f32.gmra.mrb[204].mxu0 %vm272_vm0, %v18928_v24  ;;  %v18954_v54 = vmax.f32 %v5292_v40, 0.0  ;;  %21636 = vst [vmem:[#allocation65_spill] sm:$0xff] %v18966_v35  ;;  %v19002_v7 = vmax.f32 %v5312_v5, 0.0  ;;  %v5322_v28 = vadd.f32 %v18816_v61, %v5210_v57  ;;  %v5986_v40 = vld [vmem:[%s21455_s8 + $0x8] sm:$0xff] }
 0x88d   :  { %12465 = vmatprep.mubr.msk.f32.mxu1 %vm14707_vm2, %v21626_v48  ;;  %12520 = vmatprep.mubr.msk.f32.mxu0 %vm14707_vm2, %v21626_v48  ;;  %21640 = vst [vmem:[#allocation69_spill] sm:$0xff] %v19014_v41  ;;  %v19036_v57 = vmax.f32 %v5327_v29, 0.0 }
 0x88e   :  { %21635 = vst [vmem:[#allocation64_spill] sm:$0xff] %v18954_v54  ;;  %21639 = vst [vmem:[#allocation68_spill] sm:$0xff] %v19002_v7  ;;  %v19025_v51 = vmax.f32 %v5322_v28, 0.0  ;;  %v19046_v61 = vmax.f32 %v5332_v43, 0.0 }
 0x88f   :  { %21642 = vst [vmem:[#allocation71_spill] sm:$0xff] %v19036_v57 }
 0x890   :  { %12466 = vmatmul.mubr.msk.f32.gmra.mrb[176].mxu1 %vm272_vm0, %v18942_v30  ;;  %12521 = vmatmul.mubr.msk.f32.gmra.mrb[206].mxu0 %vm272_vm0, %v18942_v30  ;;  %21641 = vst [vmem:[#allocation70_spill] sm:$0xff] %v19025_v51  ;;  %21643 = vst [vmem:[#allocation72_spill] sm:$0xff] %v19046_v61 }
 0x891   :  { %12468 = vmatprep.mubr.msk.f32.mxu1 %vm14707_vm2, %v21626_v48  ;;  %12523 = vmatprep.mubr.msk.f32.mxu0 %vm14707_vm2, %v21626_v48 }
 0x894   :  { %12469 = vmatmul.mubr.msk.f32.gmra.mrb[178].mxu1 %vm272_vm0, %v18954_v54  ;;  %12524 = vmatmul.mubr.msk.f32.gmra.mrb[208].mxu0 %vm272_vm0, %v18954_v54 }
 0x895   :  { %12471 = vmatprep.mubr.msk.f32.mxu1 %vm14707_vm2, %v21626_v48  ;;  %12526 = vmatprep.mubr.msk.f32.mxu0 %vm14707_vm2, %v21626_v48 }
 0x898   :  { %12472 = vmatmul.mubr.msk.f32.gmra.mrb[180].mxu1 %vm272_vm0, %v18966_v35  ;;  %12527 = vmatmul.mubr.msk.f32.gmra.mrb[210].mxu0 %vm272_vm0, %v18966_v35 }
 0x899   :  { %12474 = vmatprep.mubr.msk.f32.mxu1 %vm14707_vm2, %v21626_v48  ;;  %12529 = vmatprep.mubr.msk.f32.mxu0 %vm14707_vm2, %v21626_v48 }
 0x89c   :  { %12475 = vmatmul.mubr.msk.f32.gmra.mrb[182].mxu1 %vm272_vm0, %v18978_v42  ;;  %12530 = vmatmul.mubr.msk.f32.gmra.mrb[212].mxu0 %vm272_vm0, %v18978_v42 }
 0x89d   :  { %12477 = vmatprep.mubr.msk.f32.mxu1 %vm14707_vm2, %v21626_v48  ;;  %12532 = vmatprep.mubr.msk.f32.mxu0 %vm14707_vm2, %v21626_v48 }
 0x8a0   :  { %12478 = vmatmul.mubr.msk.f32.gmra.mrb[184].mxu1 %vm272_vm0, %v18990_v11  ;;  %12533 = vmatmul.mubr.msk.f32.gmra.mrb[214].mxu0 %vm272_vm0, %v18990_v11 }
 0x8a1   :  { %12480 = vmatprep.mubr.msk.f32.mxu1 %vm14707_vm2, %v21626_v48  ;;  %12535 = vmatprep.mubr.msk.f32.mxu0 %vm14707_vm2, %v21626_v48 }
 0x8a4   :  { %12481 = vmatmul.mubr.msk.f32.gmra.mrb[186].mxu1 %vm272_vm0, %v19002_v7  ;;  %12536 = vmatmul.mubr.msk.f32.gmra.mrb[216].mxu0 %vm272_vm0, %v19002_v7 }
 0x8a5   :  { %12483 = vmatprep.mubr.msk.f32.mxu1 %vm14707_vm2, %v21626_v48  ;;  %12538 = vmatprep.mubr.msk.f32.mxu0 %vm14707_vm2, %v21626_v48 }
 0x8a8   :  { %12484 = vmatmul.mubr.msk.f32.gmra.mrb[188].mxu1 %vm272_vm0, %v19014_v41  ;;  %12539 = vmatmul.mubr.msk.f32.gmra.mrb[218].mxu0 %vm272_vm0, %v19014_v41 }
 0x8a9   :  { %12486 = vmatprep.mubr.msk.f32.mxu1 %vm14707_vm2, %v21626_v48  ;;  %12541 = vmatprep.mubr.msk.f32.mxu0 %vm14707_vm2, %v21626_v48 }
 0x8ac   :  { %12487 = vmatmul.mubr.msk.f32.gmra.mrb[190].mxu1 %vm272_vm0, %v19025_v51  ;;  %12542 = vmatmul.mubr.msk.f32.gmra.mrb[220].mxu0 %vm272_vm0, %v19025_v51 }
 0x8ad   :  { %12489 = vmatprep.mubr.msk.f32.mxu1 %vm14707_vm2, %v21626_v48  ;;  %12544 = vmatprep.mubr.msk.f32.mxu0 %vm14707_vm2, %v21626_v48 }
 0x8b0   :  { %12490 = vmatmul.mubr.msk.f32.gmra.mrb[192].mxu1 %vm272_vm0, %v19036_v57  ;;  %12545 = vmatmul.mubr.msk.f32.gmra.mrb[222].mxu0 %vm272_vm0, %v19036_v57 }
 0x8b1   :  { %12492 = vmatprep.mubr.msk.f32.mxu1 %vm14707_vm2, %v21626_v48  ;;  %12547 = vmatprep.mubr.msk.f32.mxu0 %vm14707_vm2, %v21626_v48 }
 0x8b4   :  { %12493 = vmatmul.mubr.msk.f32.gmra.mrb[194].mxu1 %vm272_vm0, %v19046_v61  ;;  %12548 = vmatmul.mubr.msk.f32.gmra.mrb[224].mxu0 %vm272_vm0, %v19046_v61 }
 0x8b5   :  { %10987 = vmatprep.mubr.msk.f32.mxu1 %vm6639_vm3, %v10919_v6  ;;  %11022 = vmatprep.mubr.msk.f32.mxu0 %vm6639_vm3, %v5986_v40 }
 0x947   :  { %v5901_v43 = vpop.f32.mrb[162].mxu1  ;;  %v6486_v46 = vpop.f32.mrb[192].mxu0 }
 0x948   :  { %v12446_v38 = vpop.f32.mrb[163].mxu1  ;;  %v12501_v0 = vpop.f32.mrb[193].mxu0 }
 0x94b   :  { %v5906_v5 = vpop.f32.mrb[164].mxu1  ;;  %v6491_v32 = vpop.f32.mrb[194].mxu0 }
 0x94c   :  { %v13761_v28 = vpack.c.bf16 %v5906_v5, %v5901_v43  ;;  %v13737_v29 = vpack.c.bf16 %v6491_v32, %v6486_v46  ;;  %v12449_v61 = vpop.f32.mrb[165].mxu1  ;;  %v12504_v57 = vpop.f32.mrb[195].mxu0 }
 0x94e   :  { %13738 = vmatpush1.bf16.msra.mxu1 %v13737_v29  ;;  %13762 = vmatpush1.bf16.msra.mxu0 %v13761_v28 }
 0x94f   :  { %v5911_v51 = vpop.f32.mrb[166].mxu1  ;;  %v6496_v41 = vpop.f32.mrb[196].mxu0  ;;  %13739 = vmatprep.subr.bf16.mxu1 %v21591_v59  ;;  %13763 = vmatprep.subr.bf16.mxu0 %v21591_v59 }
 0x950   :  { %v12452_v6 = vpop.f32.mrb[167].mxu1  ;;  %v12507_v40 = vpop.f32.mrb[197].mxu0 }
 0x953   :  { %v5916_v7 = vpop.f32.mrb[168].mxu1  ;;  %v6501_v11 = vpop.f32.mrb[198].mxu0 }
 0x954   :  { %v13764_v38 = vpack.c.bf16 %v5916_v7, %v5911_v51  ;;  %v13740_v0 = vpack.c.bf16 %v6501_v11, %v6496_v41  ;;  %v12455_v42 = vpop.f32.mrb[169].mxu1  ;;  %v12510_v35 = vpop.f32.mrb[199].mxu0 }
 0x956   :  { %13741 = vmatpush1.bf16.msra.mxu1 %v13740_v0  ;;  %13765 = vmatpush1.bf16.msra.mxu0 %v13764_v38 }
 0x957   :  { %v5921_v61 = vpop.f32.mrb[170].mxu1  ;;  %v6506_v57 = vpop.f32.mrb[200].mxu0  ;;  %13742 = vmatprep.subr.bf16.mxu1 %v21591_v59  ;;  %13766 = vmatprep.subr.bf16.mxu0 %v21591_v59 }
 0x958   :  { %v12458_v43 = vpop.f32.mrb[171].mxu1  ;;  %v12513_v46 = vpop.f32.mrb[201].mxu0 }
 0x95b   :  { %v5926_v5 = vpop.f32.mrb[172].mxu1  ;;  %v6511_v32 = vpop.f32.mrb[202].mxu0 }
 0x95c   :  { %v13767_v28 = vpack.c.bf16 %v5926_v5, %v5921_v61  ;;  %v13743_v29 = vpack.c.bf16 %v6511_v32, %v6506_v57  ;;  %v12461_v6 = vpop.f32.mrb[173].mxu1  ;;  %v12516_v40 = vpop.f32.mrb[203].mxu0 }
 0x95e   :  { %13744 = vmatpush1.bf16.msra.mxu1 %v13743_v29  ;;  %13768 = vmatpush1.bf16.msra.mxu0 %v13767_v28 }
 0x95f   :  { %v5931_v42 = vpop.f32.mrb[174].mxu1  ;;  %v6516_v35 = vpop.f32.mrb[204].mxu0  ;;  %13745 = vmatprep.subr.bf16.mxu1 %v21591_v59  ;;  %13769 = vmatprep.subr.bf16.mxu0 %v21591_v59 }
 0x960   :  { %v12464_v11 = vpop.f32.mrb[175].mxu1  ;;  %v12519_v7 = vpop.f32.mrb[205].mxu0 }
 0x963   :  { %v5936_v41 = vpop.f32.mrb[176].mxu1  ;;  %v6521_v51 = vpop.f32.mrb[206].mxu0 }
 0x964   :  { %v13770_v38 = vpack.c.bf16 %v5936_v41, %v5931_v42  ;;  %v13746_v0 = vpack.c.bf16 %v6521_v51, %v6516_v35  ;;  %v12467_v43 = vpop.f32.mrb[177].mxu1  ;;  %v12522_v46 = vpop.f32.mrb[207].mxu0 }
 0x966   :  { %13747 = vmatpush1.bf16.msra.mxu1 %v13746_v0  ;;  %13771 = vmatpush1.bf16.msra.mxu0 %v13770_v38 }
 0x967   :  { %v5941_v61 = vpop.f32.mrb[178].mxu1  ;;  %v6526_v57 = vpop.f32.mrb[208].mxu0  ;;  %13748 = vmatprep.subr.bf16.mxu1 %v21591_v59  ;;  %13772 = vmatprep.subr.bf16.mxu0 %v21591_v59 }
 0x968   :  { %v12470_v5 = vpop.f32.mrb[179].mxu1  ;;  %v12525_v32 = vpop.f32.mrb[209].mxu0 }
 0x96b   :  { %v5946_v28 = vpop.f32.mrb[180].mxu1  ;;  %v6531_v29 = vpop.f32.mrb[210].mxu0 }
 0x96c   :  { %v13773_v6 = vpack.c.bf16 %v5946_v28, %v5941_v61  ;;  %v13749_v40 = vpack.c.bf16 %v6531_v29, %v6526_v57  ;;  %v12473_v11 = vpop.f32.mrb[181].mxu1  ;;  %v12528_v7 = vpop.f32.mrb[211].mxu0 }
 0x96e   :  { %13750 = vmatpush1.bf16.msra.mxu1 %v13749_v40  ;;  %13774 = vmatpush1.bf16.msra.mxu0 %v13773_v6 }
 0x96f   :  { %v5951_v42 = vpop.f32.mrb[182].mxu1  ;;  %v6536_v35 = vpop.f32.mrb[212].mxu0  ;;  %13751 = vmatprep.subr.bf16.mxu1 %v21591_v59  ;;  %13775 = vmatprep.subr.bf16.mxu0 %v21591_v59 }
 0x970   :  { %v12476_v41 = vpop.f32.mrb[183].mxu1  ;;  %v12531_v51 = vpop.f32.mrb[213].mxu0 }
 0x973   :  { %v5956_v38 = vpop.f32.mrb[184].mxu1  ;;  %v6541_v0 = vpop.f32.mrb[214].mxu0 }
 0x974   :  { %v13776_v43 = vpack.c.bf16 %v5956_v38, %v5951_v42  ;;  %v13752_v46 = vpack.c.bf16 %v6541_v0, %v6536_v35  ;;  %v12479_v5 = vpop.f32.mrb[185].mxu1  ;;  %v12534_v32 = vpop.f32.mrb[215].mxu0 }
 0x976   :  { %13753 = vmatpush1.bf16.msra.mxu1 %v13752_v46  ;;  %13777 = vmatpush1.bf16.msra.mxu0 %v13776_v43 }
 0x977   :  { %v5961_v61 = vpop.f32.mrb[186].mxu1  ;;  %v6546_v57 = vpop.f32.mrb[216].mxu0  ;;  %13754 = vmatprep.subr.bf16.mxu1 %v21591_v59  ;;  %13778 = vmatprep.subr.bf16.mxu0 %v21591_v59 }
 0x978   :  { %v12482_v28 = vpop.f32.mrb[187].mxu1  ;;  %v12537_v29 = vpop.f32.mrb[217].mxu0 }
 0x97b   :  { %v5966_v6 = vpop.f32.mrb[188].mxu1  ;;  %v6551_v40 = vpop.f32.mrb[218].mxu0 }
 0x97c   :  { %v13779_v11 = vpack.c.bf16 %v5966_v6, %v5961_v61  ;;  %v13755_v7 = vpack.c.bf16 %v6551_v40, %v6546_v57  ;;  %v12485_v41 = vpop.f32.mrb[189].mxu1  ;;  %v12540_v51 = vpop.f32.mrb[219].mxu0  ;;  %v11056_v6 = vld [vmem:[%s21454_s7 + $0x420] sm:$0xff]  ;;  %v11057_v40 = vld [vmem:[%s21454_s7 + $0x428] sm:$0xff] }
 0x97d   :  { %v10918_v41 = vld [vmem:[%s21455_s8 + $0x220] sm:$0xff] }
 0x97e   :  { %13756 = vmatpush1.bf16.msra.mxu1 %v13755_v7  ;;  %13780 = vmatpush1.bf16.msra.mxu0 %v13779_v11  ;;  %v5985_v51 = vld [vmem:[%s21455_s8] sm:$0xff] }
 0x97f   :  { %v5971_v42 = vpop.f32.mrb[190].mxu1  ;;  %v6556_v35 = vpop.f32.mrb[220].mxu0  ;;  %13757 = vmatprep.subr.bf16.mxu1 %v21591_v59  ;;  %13781 = vmatprep.subr.bf16.mxu0 %v21591_v59 }
 0x980   :  { %v12488_v38 = vpop.f32.mrb[191].mxu1  ;;  %v12543_v0 = vpop.f32.mrb[221].mxu0 }
 0x981   :  { %v13785_v38 = vpack.c.bf16 %v11057_v40, %v11056_v6  ;;  %v11058_v0 = vld [vmem:[%s21454_s7 + $0x430] sm:$0xff]  ;;  %v10922_v6 = vld [vmem:[%s21455_s8 + $0x240] sm:$0xff] }
 0x982   :  { %v5989_v40 = vld [vmem:[%s21455_s8 + $0x20] sm:$0xff] }
 0x983   :  { %v5976_v43 = vpop.f32.mrb[192].mxu1  ;;  %v6561_v46 = vpop.f32.mrb[222].mxu0 }
 0x984   :  { %v13782_v5 = vpack.c.bf16 %v5976_v43, %v5971_v42  ;;  %v13758_v32 = vpack.c.bf16 %v6561_v46, %v6556_v35  ;;  %v12491_v28 = vpop.f32.mrb[193].mxu1  ;;  %v12546_v29 = vpop.f32.mrb[223].mxu0  ;;  %v10921_v42 = vld [vmem:[%s21455_s8 + $0x238] sm:$0xff]  ;;  %v10920_v46 = vld [vmem:[%s21455_s8 + $0x230] sm:$0xff] }
 0x985   :  { %v5988_v35 = vld [vmem:[%s21455_s8 + $0x18] sm:$0xff]  ;;  %v5990_v28 = vld [vmem:[%s21455_s8 + $0x28] sm:$0xff] }
 0x986   :  { %13759 = vmatpush1.bf16.msra.mxu1 %v13758_v32  ;;  %13783 = vmatpush1.bf16.msra.mxu0 %v13782_v5  ;;  %v11059_v43 = vld [vmem:[%s21454_s7 + $0x438] sm:$0xff]  ;;  %v5987_v5 = vld [vmem:[%s21455_s8 + $0x10] sm:$0xff]  ;;  %v10923_v32 = vld [vmem:[%s21455_s8 + $0x248] sm:$0xff] }
 0x987   :  { %v5981_v61 = vpop.f32.mrb[194].mxu1  ;;  %v6566_v57 = vpop.f32.mrb[224].mxu0  ;;  %6778 = vmatprep.subr.mxu1 %v21626_v48  ;;  %7118 = vmatprep.subr.mxu0 %v21626_v48  ;;  %v13788_v29 = vpack.c.bf16 %v11059_v43, %v11058_v0  ;;  %v10927_v0 = vld [vmem:[%s21455_s8 + $0x268] sm:$0xff] }
 0x988   :  { %v12494_v11 = vpop.f32.mrb[195].mxu1  ;;  %v12549_v7 = vpop.f32.mrb[225].mxu0  ;;  %v5994_v43 = vld [vmem:[%s21455_s8 + $0x48] sm:$0xff] }
 0x989   :  { %v10925_v11 = vld [vmem:[%s21455_s8 + $0x258] sm:$0xff] }
 0x98a   :  { %10986 = vmatpush1.msk.msra.mxu1 %vm6742_vm4, %v6566_v57  ;;  %11021 = vmatpush1.msk.msra.mxu0 %vm6742_vm4, %v5981_v61  ;;  %v11060_v61 = vld [vmem:[%s21454_s7 + $0x440] sm:$0xff]  ;;  %v11061_v57 = vld [vmem:[%s21454_s7 + $0x448] sm:$0xff]  ;;  %v5992_v7 = vld [vmem:[%s21455_s8 + $0x38] sm:$0xff] }
 0x98b   :  { %6811 = vmatmul.mubr.f32.vlgmr.msra.gmra.mrb[196].mxu1 %v10918_v41  ;;  %7151 = vmatmul.mubr.f32.vlgmr.msra.gmra.mrb[226].mxu0 %v5985_v51  ;;  %v13791_v41 = vpack.c.bf16 %v11061_v57, %v11060_v61  ;;  %v11062_v51 = vld [vmem:[%s21454_s7 + $0x450] sm:$0xff]  ;;  %v10929_v61 = vld [vmem:[%s21455_s8 + $0x278] sm:$0xff] }
 0x98c   :  { %10988 = vmatprep.mubr.msk.f32.mxu1 %vm6639_vm3, %v10921_v42  ;;  %11023 = vmatprep.mubr.msk.f32.mxu0 %vm6639_vm3, %v5988_v35  ;;  %v11063_v42 = vld [vmem:[%s21454_s7 + $0x458] sm:$0xff]  ;;  %v10924_v35 = vld [vmem:[%s21455_s8 + $0x250] sm:$0xff] }
 0x98d   :  { %13784 = vmatprep.subr.bf16.mxu1 %v21591_v59  ;;  %13883 = vmatprep.subr.bf16.mxu0 %v21591_v59  ;;  %v5996_v57 = vld [vmem:[%s21455_s8 + $0x58] sm:$0xff] }
 0x98e   :  { %13786 = vmatpush1.bf16.msra.mxu1 %v13785_v38  ;;  %v5991_v38 = vld [vmem:[%s21455_s8 + $0x30] sm:$0xff] }
 0x98f   :  { %6816 = vmatmul.mubr.f32.gmra.mrb[198].mxu1 %v10920_v46  ;;  %7156 = vmatmul.mubr.f32.gmra.mrb[228].mxu0 %v5987_v5  ;;  %v13794_v46 = vpack.c.bf16 %v11063_v42, %v11062_v51  ;;  %v11064_v5 = vld [vmem:[%s21454_s7 + $0x460] sm:$0xff]  ;;  %v10931_v51 = vld [vmem:[%s21455_s8 + $0x288] sm:$0xff] }
 0x990   :  { %10989 = vmatprep.mubr.msk.f32.mxu1 %vm6639_vm3, %v10923_v32  ;;  %11024 = vmatprep.mubr.msk.f32.mxu0 %vm6639_vm3, %v5990_v28  ;;  %v11065_v32 = vld [vmem:[%s21454_s7 + $0x468] sm:$0xff]  ;;  %v10926_v28 = vld [vmem:[%s21455_s8 + $0x260] sm:$0xff] }
 0x991   :  { %13787 = vmatprep.subr.bf16.mxu1 %v21591_v59  ;;  %v5998_v42 = vld [vmem:[%s21455_s8 + $0x68] sm:$0xff] }
 0x992   :  { %13789 = vmatpush1.bf16.msra.mxu1 %v13788_v29  ;;  %v5993_v29 = vld [vmem:[%s21455_s8 + $0x40] sm:$0xff] }
 0x993   :  { %6821 = vmatmul.mubr.f32.gmra.mrb[200].mxu1 %v10922_v6  ;;  %7161 = vmatmul.mubr.f32.gmra.mrb[230].mxu0 %v5989_v40  ;;  %v13797_v6 = vpack.c.bf16 %v11065_v32, %v11064_v5  ;;  %v11066_v40 = vld [vmem:[%s21454_s7 + $0x470] sm:$0xff]  ;;  %v10933_v5 = vld [vmem:[%s21455_s8 + $0x298] sm:$0xff] }
 0x994   :  { %10990 = vmatprep.mubr.msk.f32.mxu1 %vm6639_vm3, %v10925_v11  ;;  %11025 = vmatprep.mubr.msk.f32.mxu0 %vm6639_vm3, %v5992_v7  ;;  %v11067_v11 = vld [vmem:[%s21454_s7 + $0x478] sm:$0xff]  ;;  %v10928_v7 = vld [vmem:[%s21455_s8 + $0x270] sm:$0xff] }
 0x995   :  { %13790 = vmatprep.subr.bf16.mxu1 %v21591_v59  ;;  %v6000_v32 = vld [vmem:[%s21455_s8 + $0x78] sm:$0xff] }
 0x996   :  { %13792 = vmatpush1.bf16.msra.mxu1 %v13791_v41  ;;  %v5995_v41 = vld [vmem:[%s21455_s8 + $0x50] sm:$0xff] }
 0x997   :  { %6826 = vmatmul.mubr.f32.gmra.mrb[202].mxu1 %v10924_v35  ;;  %7166 = vmatmul.mubr.f32.gmra.mrb[232].mxu0 %v5991_v38  ;;  %v13800_v35 = vpack.c.bf16 %v11067_v11, %v11066_v40  ;;  %v11068_v38 = vld [vmem:[%s21454_s7 + $0x480] sm:$0xff]  ;;  %v10935_v40 = vld [vmem:[%s21455_s8 + $0x2a8] sm:$0xff] }
 0x998   :  { %10991 = vmatprep.mubr.msk.f32.mxu1 %vm6639_vm3, %v10927_v0  ;;  %11026 = vmatprep.mubr.msk.f32.mxu0 %vm6639_vm3, %v5994_v43  ;;  %v11069_v0 = vld [vmem:[%s21454_s7 + $0x488] sm:$0xff]  ;;  %v10930_v43 = vld [vmem:[%s21455_s8 + $0x280] sm:$0xff] }
 0x999   :  { %13793 = vmatprep.subr.bf16.mxu1 %v21591_v59  ;;  %v6002_v11 = vld [vmem:[%s21455_s8 + $0x88] sm:$0xff] }
 0x99a   :  { %13795 = vmatpush1.bf16.msra.mxu1 %v13794_v46  ;;  %v5997_v46 = vld [vmem:[%s21455_s8 + $0x60] sm:$0xff] }
 0x99b   :  { %6831 = vmatmul.mubr.f32.gmra.mrb[204].mxu1 %v10926_v28  ;;  %7171 = vmatmul.mubr.f32.gmra.mrb[234].mxu0 %v5993_v29  ;;  %v13803_v28 = vpack.c.bf16 %v11069_v0, %v11068_v38  ;;  %v11070_v29 = vld [vmem:[%s21454_s7 + $0x490] sm:$0xff]  ;;  %v10937_v38 = vld [vmem:[%s21455_s8 + $0x2b8] sm:$0xff] }
 0x99c   :  { %10992 = vmatprep.mubr.msk.f32.mxu1 %vm6639_vm3, %v10929_v61  ;;  %11027 = vmatprep.mubr.msk.f32.mxu0 %vm6639_vm3, %v5996_v57  ;;  %v11071_v61 = vld [vmem:[%s21454_s7 + $0x498] sm:$0xff]  ;;  %v10932_v57 = vld [vmem:[%s21455_s8 + $0x290] sm:$0xff] }
 0x99d   :  { %13796 = vmatprep.subr.bf16.mxu1 %v21591_v59  ;;  %v6004_v0 = vld [vmem:[%s21455_s8 + $0x98] sm:$0xff] }
 0x99e   :  { %13798 = vmatpush1.bf16.msra.mxu1 %v13797_v6  ;;  %v5999_v6 = vld [vmem:[%s21455_s8 + $0x70] sm:$0xff] }
 0x99f   :  { %6836 = vmatmul.mubr.f32.gmra.mrb[206].mxu1 %v10928_v7  ;;  %7176 = vmatmul.mubr.f32.gmra.mrb[236].mxu0 %v5995_v41  ;;  %v13806_v7 = vpack.c.bf16 %v11071_v61, %v11070_v29  ;;  %v11072_v41 = vld [vmem:[%s21454_s7 + $0x4a0] sm:$0xff]  ;;  %v10939_v29 = vld [vmem:[%s21455_s8 + $0x2c8] sm:$0xff] }
 0x9a0   :  { %10993 = vmatprep.mubr.msk.f32.mxu1 %vm6639_vm3, %v10931_v51  ;;  %11028 = vmatprep.mubr.msk.f32.mxu0 %vm6639_vm3, %v5998_v42  ;;  %v11073_v51 = vld [vmem:[%s21454_s7 + $0x4a8] sm:$0xff]  ;;  %v10934_v42 = vld [vmem:[%s21455_s8 + $0x2a0] sm:$0xff] }
 0x9a1   :  { %13799 = vmatprep.subr.bf16.mxu1 %v21591_v59  ;;  %v6006_v61 = vld [vmem:[%s21455_s8 + $0xa8] sm:$0xff] }
 0x9a2   :  { %13801 = vmatpush1.bf16.msra.mxu1 %v13800_v35  ;;  %v6001_v35 = vld [vmem:[%s21455_s8 + $0x80] sm:$0xff] }
 0x9a3   :  { %6841 = vmatmul.mubr.f32.gmra.mrb[208].mxu1 %v10930_v43  ;;  %7181 = vmatmul.mubr.f32.gmra.mrb[238].mxu0 %v5997_v46  ;;  %v13809_v43 = vpack.c.bf16 %v11073_v51, %v11072_v41  ;;  %v11074_v46 = vld [vmem:[%s21454_s7 + $0x4b0] sm:$0xff]  ;;  %v10941_v41 = vld [vmem:[%s21455_s8 + $0x2d8] sm:$0xff] }
 0x9a4   :  { %10994 = vmatprep.mubr.msk.f32.mxu1 %vm6639_vm3, %v10933_v5  ;;  %11029 = vmatprep.mubr.msk.f32.mxu0 %vm6639_vm3, %v6000_v32  ;;  %v11075_v5 = vld [vmem:[%s21454_s7 + $0x4b8] sm:$0xff]  ;;  %v10936_v32 = vld [vmem:[%s21455_s8 + $0x2b0] sm:$0xff] }
 0x9a5   :  { %13802 = vmatprep.subr.bf16.mxu1 %v21591_v59  ;;  %v6008_v51 = vld [vmem:[%s21455_s8 + $0xb8] sm:$0xff] }
 0x9a6   :  { %13804 = vmatpush1.bf16.msra.mxu1 %v13803_v28  ;;  %v6003_v28 = vld [vmem:[%s21455_s8 + $0x90] sm:$0xff] }
 0x9a7   :  { %6846 = vmatmul.mubr.f32.gmra.mrb[210].mxu1 %v10932_v57  ;;  %7186 = vmatmul.mubr.f32.gmra.mrb[240].mxu0 %v5999_v6  ;;  %v13812_v57 = vpack.c.bf16 %v11075_v5, %v11074_v46  ;;  %v11076_v6 = vld [vmem:[%s21454_s7 + $0x4c0] sm:$0xff]  ;;  %v10943_v46 = vld [vmem:[%s21455_s8 + $0x2e8] sm:$0xff] }
 0x9a8   :  { %10995 = vmatprep.mubr.msk.f32.mxu1 %vm6639_vm3, %v10935_v40  ;;  %11030 = vmatprep.mubr.msk.f32.mxu0 %vm6639_vm3, %v6002_v11  ;;  %v11077_v40 = vld [vmem:[%s21454_s7 + $0x4c8] sm:$0xff]  ;;  %v10938_v11 = vld [vmem:[%s21455_s8 + $0x2c0] sm:$0xff] }
 0x9a9   :  { %13805 = vmatprep.subr.bf16.mxu1 %v21591_v59  ;;  %v6010_v5 = vld [vmem:[%s21455_s8 + $0xc8] sm:$0xff] }
 0x9aa   :  { %13807 = vmatpush1.bf16.msra.mxu1 %v13806_v7  ;;  %v6005_v7 = vld [vmem:[%s21455_s8 + $0xa0] sm:$0xff] }
 0x9ab   :  { %6851 = vmatmul.mubr.f32.gmra.mrb[212].mxu1 %v10934_v42  ;;  %7191 = vmatmul.mubr.f32.gmra.mrb[242].mxu0 %v6001_v35  ;;  %v13815_v42 = vpack.c.bf16 %v11077_v40, %v11076_v6  ;;  %v11078_v35 = vld [vmem:[%s21454_s7 + $0x4d0] sm:$0xff]  ;;  %v10945_v6 = vld [vmem:[%s21455_s8 + $0x2f8] sm:$0xff] }
 0x9ac   :  { %10996 = vmatprep.mubr.msk.f32.mxu1 %vm6639_vm3, %v10937_v38  ;;  %11031 = vmatprep.mubr.msk.f32.mxu0 %vm6639_vm3, %v6004_v0  ;;  %v11079_v38 = vld [vmem:[%s21454_s7 + $0x4d8] sm:$0xff]  ;;  %v10940_v0 = vld [vmem:[%s21455_s8 + $0x2d0] sm:$0xff] }
 0x9ad   :  { %13808 = vmatprep.subr.bf16.mxu1 %v21591_v59  ;;  %v6012_v40 = vld [vmem:[%s21455_s8 + $0xd8] sm:$0xff] }
 0x9ae   :  { %13810 = vmatpush1.bf16.msra.mxu1 %v13809_v43  ;;  %v6007_v43 = vld [vmem:[%s21455_s8 + $0xb0] sm:$0xff] }
 0x9af   :  { %6856 = vmatmul.mubr.f32.gmra.mrb[214].mxu1 %v10936_v32  ;;  %7196 = vmatmul.mubr.f32.gmra.mrb[244].mxu0 %v6003_v28  ;;  %v13818_v32 = vpack.c.bf16 %v11079_v38, %v11078_v35  ;;  %v11080_v28 = vld [vmem:[%s21454_s7 + $0x4e0] sm:$0xff]  ;;  %v10947_v35 = vld [vmem:[%s21455_s8 + $0x308] sm:$0xff] }
 0x9b0   :  { %10997 = vmatprep.mubr.msk.f32.mxu1 %vm6639_vm3, %v10939_v29  ;;  %11032 = vmatprep.mubr.msk.f32.mxu0 %vm6639_vm3, %v6006_v61  ;;  %v11081_v29 = vld [vmem:[%s21454_s7 + $0x4e8] sm:$0xff]  ;;  %v10942_v61 = vld [vmem:[%s21455_s8 + $0x2e0] sm:$0xff] }
 0x9b1   :  { %13811 = vmatprep.subr.bf16.mxu1 %v21591_v59  ;;  %v6014_v38 = vld [vmem:[%s21455_s8 + $0xe8] sm:$0xff] }
 0x9b2   :  { %13813 = vmatpush1.bf16.msra.mxu1 %v13812_v57  ;;  %v6009_v57 = vld [vmem:[%s21455_s8 + $0xc0] sm:$0xff] }
 0x9b3   :  { %6861 = vmatmul.mubr.f32.gmra.mrb[216].mxu1 %v10938_v11  ;;  %7201 = vmatmul.mubr.f32.gmra.mrb[246].mxu0 %v6005_v7  ;;  %v13821_v11 = vpack.c.bf16 %v11081_v29, %v11080_v28  ;;  %v11082_v7 = vld [vmem:[%s21454_s7 + $0x4f0] sm:$0xff]  ;;  %v10949_v28 = vld [vmem:[%s21455_s8 + $0x318] sm:$0xff] }
 0x9b4   :  { %10998 = vmatprep.mubr.msk.f32.mxu1 %vm6639_vm3, %v10941_v41  ;;  %11033 = vmatprep.mubr.msk.f32.mxu0 %vm6639_vm3, %v6008_v51  ;;  %v11083_v41 = vld [vmem:[%s21454_s7 + $0x4f8] sm:$0xff]  ;;  %v10944_v51 = vld [vmem:[%s21455_s8 + $0x2f0] sm:$0xff] }
 0x9b5   :  { %13814 = vmatprep.subr.bf16.mxu1 %v21591_v59  ;;  %v6016_v29 = vld [vmem:[%s21455_s8 + $0xf8] sm:$0xff] }
 0x9b6   :  { %13816 = vmatpush1.bf16.msra.mxu1 %v13815_v42  ;;  %v6011_v42 = vld [vmem:[%s21455_s8 + $0xd0] sm:$0xff] }
 0x9b7   :  { %6866 = vmatmul.mubr.f32.gmra.mrb[218].mxu1 %v10940_v0  ;;  %7206 = vmatmul.mubr.f32.gmra.mrb[248].mxu0 %v6007_v43  ;;  %v13824_v0 = vpack.c.bf16 %v11083_v41, %v11082_v7  ;;  %v11084_v43 = vld [vmem:[%s21454_s7 + $0x500] sm:$0xff]  ;;  %v10951_v7 = vld [vmem:[%s21455_s8 + $0x328] sm:$0xff] }
 0x9b8   :  { %10999 = vmatprep.mubr.msk.f32.mxu1 %vm6639_vm3, %v10943_v46  ;;  %11034 = vmatprep.mubr.msk.f32.mxu0 %vm6639_vm3, %v6010_v5  ;;  %v11085_v46 = vld [vmem:[%s21454_s7 + $0x508] sm:$0xff]  ;;  %v10946_v5 = vld [vmem:[%s21455_s8 + $0x300] sm:$0xff] }
 0x9b9   :  { %13817 = vmatprep.subr.bf16.mxu1 %v21591_v59  ;;  %v6018_v41 = vld [vmem:[%s21455_s8 + $0x108] sm:$0xff] }
 0x9ba   :  { %13819 = vmatpush1.bf16.msra.mxu1 %v13818_v32  ;;  %v6013_v32 = vld [vmem:[%s21455_s8 + $0xe0] sm:$0xff] }
 0x9bb   :  { %6871 = vmatmul.mubr.f32.gmra.mrb[220].mxu1 %v10942_v61  ;;  %7211 = vmatmul.mubr.f32.gmra.mrb[250].mxu0 %v6009_v57  ;;  %v13827_v61 = vpack.c.bf16 %v11085_v46, %v11084_v43  ;;  %v11086_v57 = vld [vmem:[%s21454_s7 + $0x510] sm:$0xff] }
 0x9bc   :  { %11000 = vmatprep.mubr.msk.f32.mxu1 %vm6639_vm3, %v10945_v6  ;;  %11035 = vmatprep.mubr.msk.f32.mxu0 %vm6639_vm3, %v6012_v40  ;;  %v11087_v6 = vld [vmem:[%s21454_s7 + $0x518] sm:$0xff]  ;;  %v10948_v40 = vld [vmem:[%s21455_s8 + $0x310] sm:$0xff] }
 0x9bd   :  { %13820 = vmatprep.subr.bf16.mxu1 %v21591_v59  ;;  %v10952_v43 = vld [vmem:[%s21455_s8 + $0x330] sm:$0xff] }
 0x9be   :  { %13822 = vmatpush1.bf16.msra.mxu1 %v13821_v11  ;;  %v6015_v11 = vld [vmem:[%s21455_s8 + $0xf0] sm:$0xff] }
 0x9bf   :  { %6876 = vmatmul.mubr.f32.gmra.mrb[222].mxu1 %v10944_v51  ;;  %7216 = vmatmul.mubr.f32.gmra.mrb[252].mxu0 %v6011_v42  ;;  %v13830_v51 = vpack.c.bf16 %v11087_v6, %v11086_v57  ;;  %v10950_v42 = vld [vmem:[%s21455_s8 + $0x320] sm:$0xff]  ;;  %v6019_v46 = vld [vmem:[%s21455_s8 + $0x110] sm:$0xff]  ;;  %v6024_v57 = vld [vmem:[%s21455_s8 + $0x138] sm:$0xff] }
 0x9c0   :  { %11001 = vmatprep.mubr.msk.f32.mxu1 %vm6639_vm3, %v10947_v35  ;;  %11036 = vmatprep.mubr.msk.f32.mxu0 %vm6639_vm3, %v6014_v38  ;;  %v6017_v35 = vld [vmem:[%s21455_s8 + $0x100] sm:$0xff]  ;;  %v10953_v38 = vld [vmem:[%s21455_s8 + $0x338] sm:$0xff]  ;;  %v10956_v6 = vld [vmem:[%s21455_s8 + $0x350] sm:$0xff] }
 0x9c1   :  { %13823 = vmatprep.subr.bf16.mxu1 %v21591_v59 }
 0x9c2   :  { %13825 = vmatpush1.bf16.msra.mxu1 %v13824_v0  ;;  %v6020_v0 = vld [vmem:[%s21455_s8 + $0x118] sm:$0xff] }
 0x9c3   :  { %6881 = vmatmul.mubr.f32.gmra.mrb[224].mxu1 %v10946_v5  ;;  %7221 = vmatmul.mubr.f32.gmra.mrb[254].mxu0 %v6013_v32  ;;  %v10955_v5 = vld [vmem:[%s21455_s8 + $0x348] sm:$0xff] }
 0x9c4   :  { %11002 = vmatprep.mubr.msk.f32.mxu1 %vm6639_vm3, %v10949_v28  ;;  %11037 = vmatprep.mubr.msk.f32.mxu0 %vm6639_vm3, %v6016_v29  ;;  %v6022_v32 = vld [vmem:[%s21455_s8 + $0x128] sm:$0xff]  ;;  %v10954_v28 = vld [vmem:[%s21455_s8 + $0x340] sm:$0xff] }
 0x9c5   :  { %13826 = vmatprep.subr.bf16.mxu1 %v21591_v59  ;;  %v6021_v29 = vld [vmem:[%s21455_s8 + $0x120] sm:$0xff] }
 0x9c6   :  { %13828 = vmatpush1.bf16.msra.mxu1 %v13827_v61  ;;  %v10957_v61 = vld [vmem:[%s21455_s8 + $0x358] sm:$0xff] }
 0x9c7   :  { %6886 = vmatmul.mubr.f32.gmra.mrb[226].mxu1 %v10948_v40  ;;  %7226 = vmatmul.mubr.f32.gmra.mrb[0].mxu0 %v6015_v11  ;;  %v6023_v40 = vld [vmem:[%s21455_s8 + $0x130] sm:$0xff]  ;;  %v10959_v11 = vld [vmem:[%s21455_s8 + $0x368] sm:$0xff] }
 0x9c8   :  { %11003 = vmatprep.mubr.msk.f32.mxu1 %vm6639_vm3, %v10951_v7  ;;  %11038 = vmatprep.mubr.msk.f32.mxu0 %vm6639_vm3, %v6018_v41  ;;  %v6026_v7 = vld [vmem:[%s21455_s8 + $0x148] sm:$0xff]  ;;  %v10958_v41 = vld [vmem:[%s21455_s8 + $0x360] sm:$0xff] }
 0x9c9   :  { %13829 = vmatprep.subr.bf16.mxu1 %v21591_v59 }
 0x9ca   :  { %13831 = vmatpush1.bf16.msra.mxu1 %v13830_v51  ;;  %v6025_v51 = vld [vmem:[%s21455_s8 + $0x140] sm:$0xff] }
 0x9cb   :  { %6891 = vmatmul.mubr.f32.gmra.mrb[228].mxu1 %v10950_v42  ;;  %7231 = vmatmul.mubr.f32.gmra.mrb[2].mxu0 %v6017_v35  ;;  %v10961_v42 = vld [vmem:[%s21455_s8 + $0x378] sm:$0xff] }
 0x9cc   :  { %11004 = vmatprep.mubr.msk.f32.mxu1 %vm6639_vm3, %v10953_v38  ;;  %11039 = vmatprep.mubr.msk.f32.mxu0 %vm6639_vm3, %v6020_v0  ;;  %v6028_v35 = vld [vmem:[%s21455_s8 + $0x158] sm:$0xff]  ;;  %v10960_v38 = vld [vmem:[%s21455_s8 + $0x370] sm:$0xff] }
 0x9cd   :  { %13832 = vmatprep.subr.bf16.mxu1 %v21591_v59  ;;  %v6027_v0 = vld [vmem:[%s21455_s8 + $0x150] sm:$0xff] }
 0x9cf   :  { %6896 = vmatmul.mubr.f32.gmra.mrb[230].mxu1 %v10952_v43  ;;  %7236 = vmatmul.mubr.f32.gmra.mrb[4].mxu0 %v6019_v46  ;;  %v10963_v43 = vld [vmem:[%s21455_s8 + $0x388] sm:$0xff] }
 0x9d0   :  { %11005 = vmatprep.mubr.msk.f32.mxu1 %vm6639_vm3, %v10955_v5  ;;  %11040 = vmatprep.mubr.msk.f32.mxu0 %vm6639_vm3, %v6022_v32  ;;  %v6030_v46 = vld [vmem:[%s21455_s8 + $0x168] sm:$0xff]  ;;  %v10962_v5 = vld [vmem:[%s21455_s8 + $0x380] sm:$0xff] }
 0x9d1   :  { %v6029_v32 = vld [vmem:[%s21455_s8 + $0x160] sm:$0xff] }
 0x9d3   :  { %6901 = vmatmul.mubr.f32.gmra.mrb[232].mxu1 %v10954_v28  ;;  %7241 = vmatmul.mubr.f32.gmra.mrb[6].mxu0 %v6021_v29  ;;  %v10965_v28 = vld [vmem:[%s21455_s8 + $0x398] sm:$0xff] }
 0x9d4   :  { %11006 = vmatprep.mubr.msk.f32.mxu1 %vm6639_vm3, %v10957_v61  ;;  %11041 = vmatprep.mubr.msk.f32.mxu0 %vm6639_vm3, %v6024_v57  ;;  %v6032_v29 = vld [vmem:[%s21455_s8 + $0x178] sm:$0xff]  ;;  %v10964_v61 = vld [vmem:[%s21455_s8 + $0x390] sm:$0xff] }
 0x9d5   :  { %v6031_v57 = vld [vmem:[%s21455_s8 + $0x170] sm:$0xff] }
 0x9d7   :  { %6906 = vmatmul.mubr.f32.gmra.mrb[234].mxu1 %v10956_v6  ;;  %7246 = vmatmul.mubr.f32.gmra.mrb[8].mxu0 %v6023_v40  ;;  %v10967_v6 = vld [vmem:[%s21455_s8 + $0x3a8] sm:$0xff] }
 0x9d8   :  { %11007 = vmatprep.mubr.msk.f32.mxu1 %vm6639_vm3, %v10959_v11  ;;  %11042 = vmatprep.mubr.msk.f32.mxu0 %vm6639_vm3, %v6026_v7  ;;  %v6034_v40 = vld [vmem:[%s21455_s8 + $0x188] sm:$0xff]  ;;  %v10966_v11 = vld [vmem:[%s21455_s8 + $0x3a0] sm:$0xff] }
 0x9d9   :  { %v6033_v7 = vld [vmem:[%s21455_s8 + $0x180] sm:$0xff] }
 0x9db   :  { %6911 = vmatmul.mubr.f32.gmra.mrb[236].mxu1 %v10958_v41  ;;  %7251 = vmatmul.mubr.f32.gmra.mrb[10].mxu0 %v6025_v51  ;;  %v10969_v41 = vld [vmem:[%s21455_s8 + $0x3b8] sm:$0xff] }
 0x9dc   :  { %11008 = vmatprep.mubr.msk.f32.mxu1 %vm6639_vm3, %v10961_v42  ;;  %11043 = vmatprep.mubr.msk.f32.mxu0 %vm6639_vm3, %v6028_v35  ;;  %v6036_v51 = vld [vmem:[%s21455_s8 + $0x198] sm:$0xff]  ;;  %v10968_v42 = vld [vmem:[%s21455_s8 + $0x3b0] sm:$0xff] }
 0x9dd   :  { %v6035_v35 = vld [vmem:[%s21455_s8 + $0x190] sm:$0xff] }
 0x9df   :  { %6916 = vmatmul.mubr.f32.gmra.mrb[238].mxu1 %v10960_v38  ;;  %7256 = vmatmul.mubr.f32.gmra.mrb[12].mxu0 %v6027_v0  ;;  %v10971_v38 = vld [vmem:[%s21455_s8 + $0x3c8] sm:$0xff] }
 0x9e0   :  { %11009 = vmatprep.mubr.msk.f32.mxu1 %vm6639_vm3, %v10963_v43  ;;  %11044 = vmatprep.mubr.msk.f32.mxu0 %vm6639_vm3, %v6030_v46  ;;  %v6038_v0 = vld [vmem:[%s21455_s8 + $0x1a8] sm:$0xff]  ;;  %v10970_v43 = vld [vmem:[%s21455_s8 + $0x3c0] sm:$0xff] }
 0x9e1   :  { %v6037_v46 = vld [vmem:[%s21455_s8 + $0x1a0] sm:$0xff] }
 0x9e3   :  { %6921 = vmatmul.mubr.f32.gmra.mrb[240].mxu1 %v10962_v5  ;;  %7261 = vmatmul.mubr.f32.gmra.mrb[14].mxu0 %v6029_v32  ;;  %v10973_v5 = vld [vmem:[%s21455_s8 + $0x3d8] sm:$0xff] }
 0x9e4   :  { %11010 = vmatprep.mubr.msk.f32.mxu1 %vm6639_vm3, %v10965_v28  ;;  %11045 = vmatprep.mubr.msk.f32.mxu0 %vm6639_vm3, %v6032_v29  ;;  %v6040_v32 = vld [vmem:[%s21455_s8 + $0x1b8] sm:$0xff]  ;;  %v10972_v28 = vld [vmem:[%s21455_s8 + $0x3d0] sm:$0xff] }
 0x9e5   :  { %v6039_v29 = vld [vmem:[%s21455_s8 + $0x1b0] sm:$0xff] }
 0x9e7   :  { %6926 = vmatmul.mubr.f32.gmra.mrb[242].mxu1 %v10964_v61  ;;  %7266 = vmatmul.mubr.f32.gmra.mrb[16].mxu0 %v6031_v57  ;;  %v10975_v61 = vld [vmem:[%s21455_s8 + $0x3e8] sm:$0xff] }
 0x9e8   :  { %11011 = vmatprep.mubr.msk.f32.mxu1 %vm6639_vm3, %v10967_v6  ;;  %11046 = vmatprep.mubr.msk.f32.mxu0 %vm6639_vm3, %v6034_v40  ;;  %v6042_v57 = vld [vmem:[%s21455_s8 + $0x1c8] sm:$0xff]  ;;  %v10974_v6 = vld [vmem:[%s21455_s8 + $0x3e0] sm:$0xff] }
 0x9e9   :  { %v6041_v40 = vld [vmem:[%s21455_s8 + $0x1c0] sm:$0xff] }
 0x9eb   :  { %6931 = vmatmul.mubr.f32.gmra.mrb[244].mxu1 %v10966_v11  ;;  %7271 = vmatmul.mubr.f32.gmra.mrb[18].mxu0 %v6033_v7  ;;  %v10977_v11 = vld [vmem:[%s21455_s8 + $0x3f8] sm:$0xff] }
 0x9ec   :  { %11012 = vmatprep.mubr.msk.f32.mxu1 %vm6639_vm3, %v10969_v41  ;;  %11047 = vmatprep.mubr.msk.f32.mxu0 %vm6639_vm3, %v6036_v51  ;;  %v6044_v7 = vld [vmem:[%s21455_s8 + $0x1d8] sm:$0xff]  ;;  %v10976_v41 = vld [vmem:[%s21455_s8 + $0x3f0] sm:$0xff] }
 0x9ed   :  { %v6043_v51 = vld [vmem:[%s21455_s8 + $0x1d0] sm:$0xff] }
 0x9ef   :  { %6936 = vmatmul.mubr.f32.gmra.mrb[246].mxu1 %v10968_v42  ;;  %7276 = vmatmul.mubr.f32.gmra.mrb[20].mxu0 %v6035_v35  ;;  %v10979_v42 = vld [vmem:[%s21455_s8 + $0x408] sm:$0xff] }
 0x9f0   :  { %11013 = vmatprep.mubr.msk.f32.mxu1 %vm6639_vm3, %v10971_v38  ;;  %11048 = vmatprep.mubr.msk.f32.mxu0 %vm6639_vm3, %v6038_v0  ;;  %v6046_v35 = vld [vmem:[%s21455_s8 + $0x1e8] sm:$0xff]  ;;  %v10978_v38 = vld [vmem:[%s21455_s8 + $0x400] sm:$0xff] }
 0x9f1   :  { %v6045_v0 = vld [vmem:[%s21455_s8 + $0x1e0] sm:$0xff] }
 0x9f3   :  { %6941 = vmatmul.mubr.f32.gmra.mrb[248].mxu1 %v10970_v43  ;;  %7281 = vmatmul.mubr.f32.gmra.mrb[22].mxu0 %v6037_v46  ;;  %v10981_v43 = vld [vmem:[%s21455_s8 + $0x418] sm:$0xff] }
 0x9f4   :  { %11014 = vmatprep.mubr.msk.f32.mxu1 %vm6639_vm3, %v10973_v5  ;;  %11049 = vmatprep.mubr.msk.f32.mxu0 %vm6639_vm3, %v6040_v32  ;;  %v6048_v46 = vld [vmem:[%s21455_s8 + $0x1f8] sm:$0xff]  ;;  %v10980_v5 = vld [vmem:[%s21455_s8 + $0x410] sm:$0xff] }
 0x9f5   :  { %v6047_v32 = vld [vmem:[%s21455_s8 + $0x1f0] sm:$0xff] }
 0x9f7   :  { %6946 = vmatmul.mubr.f32.gmra.mrb[250].mxu1 %v10972_v28  ;;  %7286 = vmatmul.mubr.f32.gmra.mrb[24].mxu0 %v6039_v29  ;;  %v10983_v28 = vld [vmem:[%s21455_s8 + $0x428] sm:$0xff] }
 0x9f8   :  { %11015 = vmatprep.mubr.msk.f32.mxu1 %vm6639_vm3, %v10975_v61  ;;  %11050 = vmatprep.mubr.msk.f32.mxu0 %vm6639_vm3, %v6042_v57  ;;  %v6050_v29 = vld [vmem:[%s21455_s8 + $0x208] sm:$0xff]  ;;  %v10982_v61 = vld [vmem:[%s21455_s8 + $0x420] sm:$0xff] }
 0x9f9   :  { %v6049_v57 = vld [vmem:[%s21455_s8 + $0x200] sm:$0xff] }
 0x9fb   :  { %6951 = vmatmul.mubr.f32.gmra.mrb[252].mxu1 %v10974_v6  ;;  %7291 = vmatmul.mubr.f32.gmra.mrb[26].mxu0 %v6041_v40  ;;  %v10985_v6 = vld [vmem:[%s21455_s8 + $0x438] sm:$0xff] }
 0x9fc   :  { %11016 = vmatprep.mubr.msk.f32.mxu1 %vm6639_vm3, %v10977_v11  ;;  %11051 = vmatprep.mubr.msk.f32.mxu0 %vm6639_vm3, %v6044_v7  ;;  %v6052_v40 = vld [vmem:[%s21455_s8 + $0x218] sm:$0xff]  ;;  %v10984_v11 = vld [vmem:[%s21455_s8 + $0x430] sm:$0xff] }
 0x9fd   :  { %v6051_v7 = vld [vmem:[%s21455_s8 + $0x210] sm:$0xff] }
 0x9ff   :  { %6956 = vmatmul.mubr.f32.gmra.mrb[254].mxu1 %v10976_v41  ;;  %7296 = vmatmul.mubr.f32.gmra.mrb[62].mxu0 %v6043_v51  ;;  %v11088_v41 = vld [vmem:[%s21454_s7 + $0x520] sm:$0xff]  ;;  %v11089_v51 = vld [vmem:[%s21454_s7 + $0x528] sm:$0xff] }
 0xa00   :  { %11017 = vmatprep.mubr.msk.f32.mxu1 %vm6639_vm3, %v10979_v42  ;;  %11052 = vmatprep.mubr.msk.f32.mxu0 %vm6639_vm3, %v6046_v35  ;;  %v13833_v42 = vpack.c.bf16 %v11089_v51, %v11088_v41  ;;  %v11090_v35 = vld [vmem:[%s21454_s7 + $0x530] sm:$0xff] }
 0xa01   :  { %v11098_v51 = vld [vmem:[%s21454_s7 + $0x570] sm:$0xff] }
 0xa03   :  { %6961 = vmatmul.mubr.f32.gmra.mrb[0].mxu1 %v10978_v38  ;;  %7301 = vmatmul.mubr.f32.gmra.mrb[64].mxu0 %v6045_v0  ;;  %v11091_v38 = vld [vmem:[%s21454_s7 + $0x538] sm:$0xff] }
 0xa04   :  { %11018 = vmatprep.mubr.msk.f32.mxu1 %vm6639_vm3, %v10981_v43  ;;  %11053 = vmatprep.mubr.msk.f32.mxu0 %vm6639_vm3, %v6048_v46  ;;  %v13836_v0 = vpack.c.bf16 %v11091_v38, %v11090_v35  ;;  %v11092_v43 = vld [vmem:[%s21454_s7 + $0x540] sm:$0xff]  ;;  %v11093_v46 = vld [vmem:[%s21454_s7 + $0x548] sm:$0xff]  ;;  %v21648_v35 = vld [vmem:[#allocation9_spill] sm:$0xff] }
 0xa05   :  { %v21649_v38 = vld [vmem:[#allocation10_spill] sm:$0xff] }
 0xa07   :  { %6966 = vmatmul.mubr.f32.gmra.mrb[2].mxu1 %v10980_v5  ;;  %7306 = vmatmul.mubr.f32.gmra.mrb[66].mxu0 %v6047_v32  ;;  %v13839_v5 = vpack.c.bf16 %v11093_v46, %v11092_v43  ;;  %v11094_v32 = vld [vmem:[%s21454_s7 + $0x550] sm:$0xff]  ;;  %v11100_v43 = vld [vmem:[%s21454_s7 + $0x580] sm:$0xff]  ;;  %v11101_v46 = vld [vmem:[%s21454_s7 + $0x588] sm:$0xff] }
 0xa08   :  { %11019 = vmatprep.mubr.msk.f32.mxu1 %vm6639_vm3, %v10983_v28  ;;  %11054 = vmatprep.mubr.msk.f32.mxu0 %vm6639_vm3, %v6050_v29  ;;  %v11095_v28 = vld [vmem:[%s21454_s7 + $0x558] sm:$0xff]  ;;  %v21644_v29 = vld [vmem:[#allocation5_spill] sm:$0xff] }
 0xa0b   :  { %6971 = vmatmul.mubr.f32.gmra.mrb[4].mxu1 %v10982_v61  ;;  %7311 = vmatmul.mubr.f32.gmra.mrb[68].mxu0 %v6049_v57  ;;  %v21645_v61 = vld [vmem:[#allocation6_spill] sm:$0xff]  ;;  %v13842_v57 = vpack.c.bf16 %v11095_v28, %v11094_v32  ;;  %v21651_v32 = vld [vmem:[#allocation12_spill] sm:$0xff]  ;;  %v13851_v28 = vpack.c.bf16 %v11101_v46, %v11100_v43  ;;  %v21654_v43 = vld [vmem:[#allocation15_spill] sm:$0xff] }
 0xa0c   :  { %11020 = vmatprep.mubr.msk.f32.mxu1 %vm6639_vm3, %v10985_v6  ;;  %11055 = vmatprep.mubr.msk.f32.mxu0 %vm6639_vm3, %v6052_v40  ;;  %v11096_v6 = vld [vmem:[%s21454_s7 + $0x560] sm:$0xff]  ;;  %v11097_v40 = vld [vmem:[%s21454_s7 + $0x568] sm:$0xff] }
 0xa0d   :  { %v13845_v41 = vpack.c.bf16 %v11097_v40, %v11096_v6  ;;  %v11103_v6 = vld [vmem:[%s21454_s7 + $0x598] sm:$0xff]  ;;  %v21652_v40 = vld [vmem:[#allocation13_spill] sm:$0xff]  ;;  %v21655_v46 = vld [vmem:[#allocation16_spill] sm:$0xff] }
 0xa0f   :  { %6976 = vmatmul.mubr.f32.gmra.mrb[6].mxu1 %v10984_v11  ;;  %7316 = vmatmul.mubr.f32.gmra.mrb[70].mxu0 %v6051_v7  ;;  %v21646_v11 = vld [vmem:[#allocation7_spill] sm:$0xff]  ;;  %v21647_v7 = vld [vmem:[#allocation8_spill] sm:$0xff] }
 0xa10   :  { %7452 = vmatprep.mubr.f32.mxu1 %v18126_v23 }
 0xa13   :  { %7453 = vmatmul.mubr.f32.vlgmr.msra.gmra.mrb[8].mxu1 %v18131_v27 }
 0xa14   :  { %7457 = vmatprep.mubr.f32.mxu1 %v18148_v10  ;;  %13834 = vmatpush1.bf16.msra.mxu1 %v13833_v42  ;;  %v11099_v42 = vld [vmem:[%s21454_s7 + $0x578] sm:$0xff] }
 0xa15   :  { %13835 = vmatprep.subr.bf16.mxu1 %v21591_v59 }
 0xa17   :  { %7458 = vmatmul.mubr.f32.gmra.mrb[10].mxu1 %v18153_v36 }
 0xa18   :  { %7462 = vmatprep.mubr.f32.mxu1 %v18172_v18  ;;  %13837 = vmatpush1.bf16.msra.mxu1 %v13836_v0  ;;  %v13848_v0 = vpack.c.bf16 %v11099_v42, %v11098_v51  ;;  %v11104_v42 = vld [vmem:[%s21454_s7 + $0x5a0] sm:$0xff] }
 0xa19   :  { %13838 = vmatprep.subr.bf16.mxu1 %v21591_v59 }
 0xa1b   :  { %7463 = vmatmul.mubr.f32.gmra.mrb[12].mxu1 %v21644_v29 }
 0xa1c   :  { %7467 = vmatprep.mubr.f32.mxu1 %v21645_v61  ;;  %13840 = vmatpush1.bf16.msra.mxu1 %v13839_v5  ;;  %v21650_v5 = vld [vmem:[#allocation11_spill] sm:$0xff] }
 0xa1d   :  { %13841 = vmatprep.subr.bf16.mxu1 %v21591_v59 }
 0xa1f   :  { %7468 = vmatmul.mubr.f32.gmra.mrb[14].mxu1 %v21646_v11 }
 0xa20   :  { %7472 = vmatprep.mubr.f32.mxu1 %v21647_v7  ;;  %13843 = vmatpush1.bf16.msra.mxu1 %v13842_v57  ;;  %v11102_v57 = vld [vmem:[%s21454_s7 + $0x590] sm:$0xff] }
 0xa21   :  { %13844 = vmatprep.subr.bf16.mxu1 %v21591_v59  ;;  %v13854_v51 = vpack.c.bf16 %v11103_v6, %v11102_v57  ;;  %v11107_v57 = vld [vmem:[%s21454_s7 + $0x5b8] sm:$0xff]  ;;  %v21656_v6 = vld [vmem:[#allocation17_spill] sm:$0xff] }
 0xa23   :  { %7473 = vmatmul.mubr.f32.gmra.mrb[16].mxu1 %v21648_v35 }
 0xa24   :  { %7477 = vmatprep.mubr.f32.mxu1 %v21649_v38  ;;  %13846 = vmatpush1.bf16.msra.mxu1 %v13845_v41  ;;  %v21653_v41 = vld [vmem:[#allocation14_spill] sm:$0xff] }
 0xa25   :  { %13847 = vmatprep.subr.bf16.mxu1 %v21591_v59 }
 0xa27   :  { %7478 = vmatmul.mubr.f32.gmra.mrb[18].mxu1 %v21650_v5 }
 0xa28   :  { %7482 = vmatprep.mubr.f32.mxu1 %v21651_v32  ;;  %13849 = vmatpush1.bf16.msra.mxu1 %v13848_v0  ;;  %v11105_v0 = vld [vmem:[%s21454_s7 + $0x5a8] sm:$0xff] }
 0xa29   :  { %13850 = vmatprep.subr.bf16.mxu1 %v21591_v59 }
 0xa2b   :  { %7483 = vmatmul.mubr.f32.gmra.mrb[20].mxu1 %v21652_v40  ;;  %v13857_v40 = vpack.c.bf16 %v11105_v0, %v11104_v42  ;;  %v11109_v42 = vld [vmem:[%s21454_s7 + $0x5c8] sm:$0xff]  ;;  %v21658_v0 = vld [vmem:[#allocation19_spill] sm:$0xff] }
 0xa2c   :  { %7487 = vmatprep.mubr.f32.mxu1 %v21653_v41  ;;  %13852 = vmatpush1.bf16.msra.mxu1 %v13851_v28  ;;  %v11106_v28 = vld [vmem:[%s21454_s7 + $0x5b0] sm:$0xff]  ;;  %v21657_v41 = vld [vmem:[#allocation18_spill] sm:$0xff] }
 0xa2d   :  { %13853 = vmatprep.subr.bf16.mxu1 %v21591_v59 }
 0xa2f   :  { %7488 = vmatmul.mubr.f32.gmra.mrb[22].mxu1 %v21654_v43  ;;  %v13860_v43 = vpack.c.bf16 %v11107_v57, %v11106_v28  ;;  %v11111_v28 = vld [vmem:[%s21454_s7 + $0x5d8] sm:$0xff]  ;;  %v21660_v57 = vld [vmem:[#allocation21_spill] sm:$0xff] }
 0xa30   :  { %7492 = vmatprep.mubr.f32.mxu1 %v21655_v46  ;;  %13855 = vmatpush1.bf16.msra.mxu1 %v13854_v51  ;;  %v11108_v51 = vld [vmem:[%s21454_s7 + $0x5c0] sm:$0xff]  ;;  %v21659_v46 = vld [vmem:[#allocation20_spill] sm:$0xff] }
 0xa31   :  { %13856 = vmatprep.subr.bf16.mxu1 %v21591_v59 }
 0xa33   :  { %7493 = vmatmul.mubr.f32.gmra.mrb[24].mxu1 %v21656_v6  ;;  %v13863_v6 = vpack.c.bf16 %v11109_v42, %v11108_v51  ;;  %v11113_v51 = vld [vmem:[%s21454_s7 + $0x5e8] sm:$0xff]  ;;  %v21662_v42 = vld [vmem:[#allocation23_spill] sm:$0xff] }
 0xa34   :  { %7497 = vmatprep.mubr.f32.mxu1 %v21657_v41  ;;  %13858 = vmatpush1.bf16.msra.mxu1 %v13857_v40  ;;  %v11110_v40 = vld [vmem:[%s21454_s7 + $0x5d0] sm:$0xff]  ;;  %v21661_v41 = vld [vmem:[#allocation22_spill] sm:$0xff] }
 0xa35   :  { %13859 = vmatprep.subr.bf16.mxu1 %v21591_v59 }
 0xa37   :  { %7498 = vmatmul.mubr.f32.gmra.mrb[26].mxu1 %v21658_v0  ;;  %v13866_v0 = vpack.c.bf16 %v11111_v28, %v11110_v40  ;;  %v11115_v40 = vld [vmem:[%s21454_s7 + $0x5f8] sm:$0xff]  ;;  %v21664_v28 = vld [vmem:[#allocation25_spill] sm:$0xff] }
 0xa38   :  { %7502 = vmatprep.mubr.f32.mxu1 %v21659_v46  ;;  %13861 = vmatpush1.bf16.msra.mxu1 %v13860_v43  ;;  %v11112_v43 = vld [vmem:[%s21454_s7 + $0x5e0] sm:$0xff]  ;;  %v21663_v46 = vld [vmem:[#allocation24_spill] sm:$0xff] }
 0xa39   :  { %13862 = vmatprep.subr.bf16.mxu1 %v21591_v59 }
 0xa3b   :  { %7503 = vmatmul.mubr.f32.gmra.mrb[62].mxu1 %v21660_v57  ;;  %v13869_v57 = vpack.c.bf16 %v11113_v51, %v11112_v43  ;;  %v11117_v43 = vld [vmem:[%s21454_s7 + $0x608] sm:$0xff]  ;;  %v21666_v51 = vld [vmem:[#allocation27_spill] sm:$0xff] }
 0xa3c   :  { %7507 = vmatprep.mubr.f32.mxu1 %v21661_v41  ;;  %13864 = vmatpush1.bf16.msra.mxu1 %v13863_v6  ;;  %v11114_v6 = vld [vmem:[%s21454_s7 + $0x5f0] sm:$0xff]  ;;  %v21665_v41 = vld [vmem:[#allocation26_spill] sm:$0xff] }
 0xa3d   :  { %13865 = vmatprep.subr.bf16.mxu1 %v21591_v59 }
 0xa3f   :  { %7508 = vmatmul.mubr.f32.gmra.mrb[64].mxu1 %v21662_v42  ;;  %v13872_v42 = vpack.c.bf16 %v11115_v40, %v11114_v6  ;;  %v11119_v6 = vld [vmem:[%s21454_s7 + $0x618] sm:$0xff] }
 0xa40   :  { %7512 = vmatprep.mubr.f32.mxu1 %v21663_v46  ;;  %13867 = vmatpush1.bf16.msra.mxu1 %v13866_v0  ;;  %v11116_v0 = vld [vmem:[%s21454_s7 + $0x600] sm:$0xff]  ;;  %v21667_v46 = vld [vmem:[#allocation28_spill] sm:$0xff] }
 0xa41   :  { %13868 = vmatprep.subr.bf16.mxu1 %v21591_v59 }
 0xa43   :  { %7513 = vmatmul.mubr.f32.gmra.mrb[66].mxu1 %v21664_v28  ;;  %v13875_v28 = vpack.c.bf16 %v11117_v43, %v11116_v0  ;;  %v11121_v0 = vld [vmem:[%s21454_s7 + $0x628] sm:$0xff] }
 0xa44   :  { %7517 = vmatprep.mubr.f32.mxu1 %v21665_v41  ;;  %13870 = vmatpush1.bf16.msra.mxu1 %v13869_v57  ;;  %v11118_v57 = vld [vmem:[%s21454_s7 + $0x610] sm:$0xff] }
 0xa45   :  { %13871 = vmatprep.subr.bf16.mxu1 %v21591_v59  ;;  %v13878_v40 = vpack.c.bf16 %v11119_v6, %v11118_v57 }
 0xa47   :  { %7518 = vmatmul.mubr.f32.gmra.mrb[68].mxu1 %v21666_v51 }
 0xa48   :  { %7522 = vmatprep.mubr.f32.mxu1 %v21667_v46  ;;  %13873 = vmatpush1.bf16.msra.mxu1 %v13872_v42  ;;  %v11120_v42 = vld [vmem:[%s21454_s7 + $0x620] sm:$0xff] }
 0xa49   :  { %13874 = vmatprep.subr.bf16.mxu1 %v21591_v59 }
 0xa4b   :  { %7523 = vmatmul.mubr.f32.gmra.mrb[70].mxu1 %v18497_v52 }
 0xa4c   :  { %7527 = vmatprep.mubr.f32.mxu1 %v18521_v62  ;;  %13876 = vmatpush1.bf16.msra.mxu1 %v13875_v28  ;;  %v13881_v28 = vpack.c.bf16 %v11121_v0, %v11120_v42  ;;  %v21670_v42 = vld [vmem:[#allocation39_spill] sm:$0xff] }
 0xa4d   :  { %13877 = vmatprep.subr.bf16.mxu1 %v21591_v59 }
 0xa4f   :  { %7528 = vmatmul.mubr.f32.gmra.mrb[72].mxu1 %v18528_v20  ;;  %v21673_v20 = vld [vmem:[#allocation41_spill] sm:$0xff] }
 0xa50   :  { %7532 = vmatprep.mubr.f32.mxu1 %v18542_v63  ;;  %13879 = vmatpush1.bf16.msra.mxu1 %v13878_v40  ;;  %v21672_v63 = vld [vmem:[#allocation40_spill] sm:$0xff] }
 0xa51   :  { %13880 = vmatprep.subr.bf16.mxu1 %v21591_v59 }
 0xa53   :  { %7533 = vmatmul.mubr.f32.gmra.mrb[74].mxu1 %v18548_v47  ;;  %v21669_v47 = vld [vmem:[#allocation38_spill] sm:$0xff] }
 0xa54   :  { %7602 = vmatprep.mubr.f32.mxu1 %v18559_v39 }
 0xa57   :  { %7603 = vmatmul.mubr.f32.vlgmr.msra.gmra.mrb[8].mxu1 %v18578_v9 }
 0xa58   :  { %7607 = vmatprep.mubr.f32.mxu1 %v18584_v15  ;;  %13882 = vmatpush3.bf16.msra.mxu1 %v13881_v28 }
 0xa59   :  { %14006 = vmatprep.subr.bf16.mxu1 %v21591_v59 }
 0xa5b   :  { %7608 = vmatmul.mubr.f32.gmra.mrb[10].mxu1 %v18596_v31 }
 0xa5c   :  { %7612 = vmatprep.mubr.f32.mxu1 %v18600_v45 }
 0xa5e   :  { %v6812_v43 = vpop.f32.mrb[196].mxu1  ;;  %v7152_v57 = vpop.f32.mrb[226].mxu0 }
 0xa5f   :  { %v19818_v6 = vadd.f32 %v7152_v57, %v6812_v43  ;;  %v6814_v40 = vpop.f32.mrb[197].mxu1  ;;  %7613 = vmatmul.mubr.f32.gmra.mrb[12].mxu1 %v21669_v47  ;;  %v7154_v39 = vpop.f32.mrb[227].mxu0  ;;  %v21675_v47 = vld [vmem:[#allocation43_spill] sm:$0xff] }
 0xa60   :  { %7617 = vmatprep.mubr.f32.mxu1 %v21670_v42  ;;  %v21674_v40 = vld [vmem:[#allocation42_spill] sm:$0xff] }
 0xa61   :  { %21668 = vst [vmem:[#allocation5_spill] sm:$0xff] %v19818_v6 }
 0xa62   :  { %v6817_v0 = vpop.f32.mrb[198].mxu1  ;;  %v7157_v9 = vpop.f32.mrb[228].mxu0 }
 0xa63   :  { %v19822_v15 = vadd.f32 %v7157_v9, %v6817_v0  ;;  %v6819_v28 = vpop.f32.mrb[199].mxu1  ;;  %7618 = vmatmul.mubr.f32.gmra.mrb[14].mxu1 %v21672_v63  ;;  %v7159_v31 = vpop.f32.mrb[229].mxu0  ;;  %v21677_v63 = vld [vmem:[#allocation45_spill] sm:$0xff] }
 0xa64   :  { %7622 = vmatprep.mubr.f32.mxu1 %v21673_v20  ;;  %v21676_v28 = vld [vmem:[#allocation44_spill] sm:$0xff] }
 0xa65   :  { %21671 = vst [vmem:[#allocation6_spill] sm:$0xff] %v19822_v15 }
 0xa66   :  { %v6822_v45 = vpop.f32.mrb[200].mxu1  ;;  %v7162_v62 = vpop.f32.mrb[230].mxu0 }
 0xa67   :  { %v19826_v43 = vadd.f32 %v7162_v62, %v6822_v45  ;;  %v6824_v57 = vpop.f32.mrb[201].mxu1  ;;  %7623 = vmatmul.mubr.f32.gmra.mrb[16].mxu1 %v21674_v40  ;;  %v7164_v39 = vpop.f32.mrb[231].mxu0 }
 0xa68   :  { %7627 = vmatprep.mubr.f32.mxu1 %v21675_v47  ;;  %v21678_v57 = vld [vmem:[#allocation46_spill] sm:$0xff] }
 0xa6a   :  { %v6827_v42 = vpop.f32.mrb[202].mxu1  ;;  %v7167_v6 = vpop.f32.mrb[232].mxu0 }
 0xa6b   :  { %v19830_v9 = vadd.f32 %v7167_v6, %v6827_v42  ;;  %v6829_v0 = vpop.f32.mrb[203].mxu1  ;;  %7628 = vmatmul.mubr.f32.gmra.mrb[18].mxu1 %v21676_v28  ;;  %v7169_v31 = vpop.f32.mrb[233].mxu0 }
 0xa6c   :  { %7632 = vmatprep.mubr.f32.mxu1 %v21677_v63 }
 0xa6e   :  { %v6832_v20 = vpop.f32.mrb[204].mxu1  ;;  %v7172_v15 = vpop.f32.mrb[234].mxu0 }
 0xa6f   :  { %v19834_v62 = vadd.f32 %v7172_v15, %v6832_v20  ;;  %v6834_v45 = vpop.f32.mrb[205].mxu1  ;;  %7633 = vmatmul.mubr.f32.gmra.mrb[20].mxu1 %v21678_v57  ;;  %v7174_v39 = vpop.f32.mrb[235].mxu0 }
 0xa70   :  { %7637 = vmatprep.mubr.f32.mxu1 %v18686_v58 }
 0xa72   :  { %v6837_v47 = vpop.f32.mrb[206].mxu1  ;;  %v7177_v40 = vpop.f32.mrb[236].mxu0 }
 0xa73   :  { %v19838_v6 = vadd.f32 %v7177_v40, %v6837_v47  ;;  %v6839_v42 = vpop.f32.mrb[207].mxu1  ;;  %7638 = vmatmul.mubr.f32.gmra.mrb[22].mxu1 %v18697_v33  ;;  %v7179_v0 = vpop.f32.mrb[237].mxu0 }
 0xa74   :  { %7642 = vmatprep.mubr.f32.mxu1 %v18699_v49 }
 0xa76   :  { %v6842_v31 = vpop.f32.mrb[208].mxu1  ;;  %v7182_v63 = vpop.f32.mrb[238].mxu0 }
 0xa77   :  { %v19842_v20 = vadd.f32 %v7182_v63, %v6842_v31  ;;  %v6844_v15 = vpop.f32.mrb[209].mxu1  ;;  %7643 = vmatmul.mubr.f32.gmra.mrb[24].mxu1 %v18707_v8  ;;  %v7184_v45 = vpop.f32.mrb[239].mxu0 }
 0xa78   :  { %7647 = vmatprep.mubr.f32.mxu1 %v18714_v14 }
 0xa7a   :  { %v6847_v39 = vpop.f32.mrb[210].mxu1  ;;  %v7187_v58 = vpop.f32.mrb[240].mxu0 }
 0xa7b   :  { %v19846_v47 = vadd.f32 %v7187_v58, %v6847_v39  ;;  %v6849_v40 = vpop.f32.mrb[211].mxu1  ;;  %7648 = vmatmul.mubr.f32.gmra.mrb[26].mxu1 %v18722_v16  ;;  %v7189_v42 = vpop.f32.mrb[241].mxu0 }
 0xa7c   :  { %7652 = vmatprep.mubr.f32.mxu1 %v18729_v56 }
 0xa7e   :  { %v6852_v0 = vpop.f32.mrb[212].mxu1  ;;  %v7192_v49 = vpop.f32.mrb[242].mxu0 }
 0xa7f   :  { %v19850_v63 = vadd.f32 %v7192_v49, %v6852_v0  ;;  %v6854_v31 = vpop.f32.mrb[213].mxu1  ;;  %7653 = vmatmul.mubr.f32.gmra.mrb[62].mxu1 %v18737_v17  ;;  %v7194_v15 = vpop.f32.mrb[243].mxu0 }
 0xa80   :  { %7657 = vmatprep.mubr.f32.mxu1 %v18744_v4 }
 0xa82   :  { %v6857_v45 = vpop.f32.mrb[214].mxu1  ;;  %v7197_v14 = vpop.f32.mrb[244].mxu0 }
 0xa83   :  { %v19854_v58 = vadd.f32 %v7197_v14, %v6857_v45  ;;  %v6859_v39 = vpop.f32.mrb[215].mxu1  ;;  %7658 = vmatmul.mubr.f32.gmra.mrb[64].mxu1 %v18752_v50  ;;  %v7199_v40 = vpop.f32.mrb[245].mxu0 }
 0xa84   :  { %7662 = vmatprep.mubr.f32.mxu1 %v18759_v44 }
 0xa86   :  { %v6862_v42 = vpop.f32.mrb[216].mxu1  ;;  %v7202_v56 = vpop.f32.mrb[246].mxu0 }
 0xa87   :  { %v19858_v49 = vadd.f32 %v7202_v56, %v6862_v42  ;;  %v6864_v0 = vpop.f32.mrb[217].mxu1  ;;  %7663 = vmatmul.mubr.f32.gmra.mrb[66].mxu1 %v18767_v2  ;;  %v7204_v31 = vpop.f32.mrb[247].mxu0 }
 0xa88   :  { %7667 = vmatprep.mubr.f32.mxu1 %v18774_v25 }
 0xa8a   :  { %v6867_v15 = vpop.f32.mrb[218].mxu1  ;;  %v7207_v4 = vpop.f32.mrb[248].mxu0 }
 0xa8b   :  { %v19862_v14 = vadd.f32 %v7207_v4, %v6867_v15  ;;  %v6869_v45 = vpop.f32.mrb[219].mxu1  ;;  %7668 = vmatmul.mubr.f32.gmra.mrb[68].mxu1 %v18782_v13  ;;  %v7209_v39 = vpop.f32.mrb[249].mxu0 }
 0xa8c   :  { %7672 = vmatprep.mubr.f32.mxu1 %v18789_v34 }
 0xa8e   :  { %v6872_v40 = vpop.f32.mrb[220].mxu1  ;;  %v7212_v44 = vpop.f32.mrb[250].mxu0 }
 0xa8f   :  { %v19866_v56 = vadd.f32 %v7212_v44, %v6872_v40  ;;  %v6874_v42 = vpop.f32.mrb[221].mxu1  ;;  %7673 = vmatmul.mubr.f32.gmra.mrb[70].mxu1 %v18797_v37  ;;  %v7214_v0 = vpop.f32.mrb[251].mxu0 }
 0xa90   :  { %7677 = vmatprep.mubr.f32.mxu1 %v18805_v60 }
 0xa92   :  { %v6877_v31 = vpop.f32.mrb[222].mxu1  ;;  %v7217_v25 = vpop.f32.mrb[252].mxu0 }
 0xa93   :  { %v19870_v4 = vadd.f32 %v7217_v25, %v6877_v31  ;;  %v6879_v15 = vpop.f32.mrb[223].mxu1  ;;  %7678 = vmatmul.mubr.f32.gmra.mrb[72].mxu1 %v18811_v12  ;;  %v7219_v45 = vpop.f32.mrb[253].mxu0 }
 0xa94   :  { %7682 = vmatprep.mubr.f32.mxu1 %v18822_v1 }
 0xa96   :  { %v6882_v39 = vpop.f32.mrb[224].mxu1  ;;  %v7222_v34 = vpop.f32.mrb[254].mxu0 }
 0xa97   :  { %v19874_v44 = vadd.f32 %v7222_v34, %v6882_v39  ;;  %v6884_v40 = vpop.f32.mrb[225].mxu1  ;;  %7683 = vmatmul.mubr.f32.gmra.mrb[74].mxu1 %v18829_v22  ;;  %v7224_v42 = vpop.f32.mrb[255].mxu0 }
 0xa98   :  { %12554 = vmatprep.mubr.msk.f32.mxu1 %vm14707_vm2, %v21626_v48 }
 0xa9a   :  { %v6887_v0 = vpop.f32.mrb[226].mxu1  ;;  %v7227_v25 = vpop.f32.mrb[0].mxu0 }
 0xa9b   :  { %v19879_v31 = vadd.f32 %v7227_v25, %v6887_v0  ;;  %v6889_v15 = vpop.f32.mrb[227].mxu1  ;;  %12555 = vmatmul.mubr.msk.f32.vlgmr.msra.gmra.mrb[8].mxu1 %vm272_vm0, %v18842_v53  ;;  %v7229_v45 = vpop.f32.mrb[1].mxu0 }
 0xa9c   :  { %12557 = vmatprep.mubr.msk.f32.mxu1 %vm14707_vm2, %v21626_v48 }
 0xa9e   :  { %v6892_v34 = vpop.f32.mrb[228].mxu1  ;;  %v7232_v39 = vpop.f32.mrb[2].mxu0 }
 0xa9f   :  { %v19885_v40 = vadd.f32 %v7232_v39, %v6892_v34  ;;  %v6894_v42 = vpop.f32.mrb[229].mxu1  ;;  %12558 = vmatmul.mubr.msk.f32.gmra.mrb[10].mxu1 %vm272_vm0, %v18857_v3  ;;  %v7234_v22 = vpop.f32.mrb[3].mxu0 }
 0xaa0   :  { %12560 = vmatprep.mubr.msk.f32.mxu1 %vm14707_vm2, %v21626_v48 }
 0xaa2   :  { %v6897_v0 = vpop.f32.mrb[230].mxu1  ;;  %v7237_v25 = vpop.f32.mrb[4].mxu0 }
 0xaa3   :  { %v19891_v15 = vadd.f32 %v7237_v25, %v6897_v0  ;;  %v6899_v45 = vpop.f32.mrb[231].mxu1  ;;  %12561 = vmatmul.mubr.msk.f32.gmra.mrb[12].mxu1 %vm272_vm0, %v18872_v19  ;;  %v7239_v53 = vpop.f32.mrb[5].mxu0 }
 0xaa4   :  { %12563 = vmatprep.mubr.msk.f32.mxu1 %vm14707_vm2, %v21626_v48 }
 0xaa6   :  { %v6902_v34 = vpop.f32.mrb[232].mxu1  ;;  %v7242_v39 = vpop.f32.mrb[6].mxu0 }
 0xaa7   :  { %v19897_v42 = vadd.f32 %v7242_v39, %v6902_v34  ;;  %v6904_v22 = vpop.f32.mrb[233].mxu1  ;;  %12564 = vmatmul.mubr.msk.f32.gmra.mrb[14].mxu1 %vm272_vm0, %v18887_v21  ;;  %v7244_v3 = vpop.f32.mrb[7].mxu0 }
 0xaa8   :  { %12566 = vmatprep.mubr.msk.f32.mxu1 %vm14707_vm2, %v21626_v48 }
 0xaa9   :  { %21679 = vst [vmem:[#allocation7_spill] sm:$0xff] %v19897_v42 }
 0xaaa   :  { %v6907_v0 = vpop.f32.mrb[234].mxu1  ;;  %v7247_v25 = vpop.f32.mrb[8].mxu0 }
 0xaab   :  { %v19903_v45 = vadd.f32 %v7247_v25, %v6907_v0  ;;  %v6909_v53 = vpop.f32.mrb[235].mxu1  ;;  %12567 = vmatmul.mubr.msk.f32.gmra.mrb[16].mxu1 %vm272_vm0, %v18902_v55  ;;  %v7249_v19 = vpop.f32.mrb[9].mxu0 }
 0xaac   :  { %12569 = vmatprep.mubr.msk.f32.mxu1 %vm14707_vm2, %v21626_v48 }
 0xaad   :  { %21680 = vst [vmem:[#allocation8_spill] sm:$0xff] %v19903_v45 }
 0xaae   :  { %v6912_v34 = vpop.f32.mrb[236].mxu1  ;;  %v7252_v39 = vpop.f32.mrb[10].mxu0 }
 0xaaf   :  { %v19909_v22 = vadd.f32 %v7252_v39, %v6912_v34  ;;  %v6914_v3 = vpop.f32.mrb[237].mxu1  ;;  %12570 = vmatmul.mubr.msk.f32.gmra.mrb[18].mxu1 %vm272_vm0, %v18915_v26  ;;  %v7254_v21 = vpop.f32.mrb[11].mxu0 }
 0xab0   :  { %12572 = vmatprep.mubr.msk.f32.mxu1 %vm14707_vm2, %v21626_v48 }
 0xab1   :  { %21681 = vst [vmem:[#allocation9_spill] sm:$0xff] %v19909_v22 }
 0xab2   :  { %v6917_v0 = vpop.f32.mrb[238].mxu1  ;;  %v7257_v25 = vpop.f32.mrb[12].mxu0 }
 0xab3   :  { %v19915_v53 = vadd.f32 %v7257_v25, %v6917_v0  ;;  %v6919_v19 = vpop.f32.mrb[239].mxu1  ;;  %12573 = vmatmul.mubr.msk.f32.gmra.mrb[20].mxu1 %vm272_vm0, %v18928_v24  ;;  %v7259_v55 = vpop.f32.mrb[13].mxu0 }
 0xab4   :  { %12575 = vmatprep.mubr.msk.f32.mxu1 %vm14707_vm2, %v21626_v48 }
 0xab5   :  { %21682 = vst [vmem:[#allocation10_spill] sm:$0xff] %v19915_v53 }
 0xab6   :  { %v6922_v34 = vpop.f32.mrb[240].mxu1  ;;  %v7262_v39 = vpop.f32.mrb[14].mxu0 }
 0xab7   :  { %v19921_v3 = vadd.f32 %v7262_v39, %v6922_v34  ;;  %v6924_v21 = vpop.f32.mrb[241].mxu1  ;;  %12576 = vmatmul.mubr.msk.f32.gmra.mrb[22].mxu1 %vm272_vm0, %v18942_v30  ;;  %v7264_v26 = vpop.f32.mrb[15].mxu0  ;;  %v21686_v30 = vld [vmem:[#allocation65_spill] sm:$0xff] }
 0xab8   :  { %12578 = vmatprep.mubr.msk.f32.mxu1 %vm14707_vm2, %v21626_v48 }
 0xab9   :  { %21683 = vst [vmem:[#allocation11_spill] sm:$0xff] %v19921_v3 }
 0xaba   :  { %v6927_v0 = vpop.f32.mrb[242].mxu1  ;;  %v7267_v25 = vpop.f32.mrb[16].mxu0 }
 0xabb   :  { %v19927_v19 = vadd.f32 %v7267_v25, %v6927_v0  ;;  %v6929_v55 = vpop.f32.mrb[243].mxu1  ;;  %12579 = vmatmul.mubr.msk.f32.gmra.mrb[24].mxu1 %vm272_vm0, %v18954_v54  ;;  %v7269_v24 = vpop.f32.mrb[17].mxu0  ;;  %v21688_v54 = vld [vmem:[#allocation66_spill] sm:$0xff] }
 0xabc   :  { %12581 = vmatprep.mubr.msk.f32.mxu1 %vm14707_vm2, %v21626_v48 }
 0xabd   :  { %21684 = vst [vmem:[#allocation12_spill] sm:$0xff] %v19927_v19 }
 0xabe   :  { %v6932_v34 = vpop.f32.mrb[244].mxu1  ;;  %v7272_v39 = vpop.f32.mrb[18].mxu0 }
 0xabf   :  { %v19933_v21 = vadd.f32 %v7272_v39, %v6932_v34  ;;  %v6934_v26 = vpop.f32.mrb[245].mxu1  ;;  %12582 = vmatmul.mubr.msk.f32.gmra.mrb[26].mxu1 %vm272_vm0, %v21686_v30  ;;  %v7274_v3 = vpop.f32.mrb[19].mxu0  ;;  %v21690_v30 = vld [vmem:[#allocation67_spill] sm:$0xff] }
 0xac0   :  { %12584 = vmatprep.mubr.msk.f32.mxu1 %vm14707_vm2, %v21626_v48 }
 0xac1   :  { %21685 = vst [vmem:[#allocation26_spill] sm:$0xff] %v19933_v21 }
 0xac2   :  { %v6937_v0 = vpop.f32.mrb[246].mxu1  ;;  %v7277_v25 = vpop.f32.mrb[20].mxu0 }
 0xac3   :  { %v19939_v55 = vadd.f32 %v7277_v25, %v6937_v0  ;;  %v6939_v24 = vpop.f32.mrb[247].mxu1  ;;  %12585 = vmatmul.mubr.msk.f32.gmra.mrb[62].mxu1 %vm272_vm0, %v21688_v54  ;;  %v7279_v19 = vpop.f32.mrb[21].mxu0  ;;  %v21692_v54 = vld [vmem:[#allocation68_spill] sm:$0xff] }
 0xac4   :  { %12587 = vmatprep.mubr.msk.f32.mxu1 %vm14707_vm2, %v21626_v48 }
 0xac5   :  { %21687 = vst [vmem:[#allocation27_spill] sm:$0xff] %v19939_v55 }
 0xac6   :  { %v6942_v34 = vpop.f32.mrb[248].mxu1  ;;  %v7282_v39 = vpop.f32.mrb[22].mxu0 }
 0xac7   :  { %v19945_v26 = vadd.f32 %v7282_v39, %v6942_v34  ;;  %v6944_v3 = vpop.f32.mrb[249].mxu1  ;;  %12588 = vmatmul.mubr.msk.f32.gmra.mrb[64].mxu1 %vm272_vm0, %v21690_v30  ;;  %v7284_v21 = vpop.f32.mrb[23].mxu0  ;;  %v21694_v30 = vld [vmem:[#allocation69_spill] sm:$0xff] }
 0xac8   :  { %12590 = vmatprep.mubr.msk.f32.mxu1 %vm14707_vm2, %v21626_v48 }
 0xac9   :  { %21689 = vst [vmem:[#allocation28_spill] sm:$0xff] %v19945_v26 }
 0xaca   :  { %v6947_v0 = vpop.f32.mrb[250].mxu1  ;;  %v7287_v25 = vpop.f32.mrb[24].mxu0 }
 0xacb   :  { %v19951_v24 = vadd.f32 %v7287_v25, %v6947_v0  ;;  %v6949_v19 = vpop.f32.mrb[251].mxu1  ;;  %12591 = vmatmul.mubr.msk.f32.gmra.mrb[66].mxu1 %vm272_vm0, %v21692_v54  ;;  %v7289_v55 = vpop.f32.mrb[25].mxu0  ;;  %v21696_v54 = vld [vmem:[#allocation70_spill] sm:$0xff] }
 0xacc   :  { %12593 = vmatprep.mubr.msk.f32.mxu1 %vm14707_vm2, %v21626_v48 }
 0xacd   :  { %21691 = vst [vmem:[#allocation44_spill] sm:$0xff] %v19951_v24 }
 0xace   :  { %v6952_v34 = vpop.f32.mrb[252].mxu1  ;;  %v7292_v39 = vpop.f32.mrb[26].mxu0 }
 0xacf   :  { %v19957_v3 = vadd.f32 %v7292_v39, %v6952_v34  ;;  %v6954_v21 = vpop.f32.mrb[253].mxu1  ;;  %12594 = vmatmul.mubr.msk.f32.gmra.mrb[68].mxu1 %vm272_vm0, %v21694_v30  ;;  %v7294_v26 = vpop.f32.mrb[27].mxu0  ;;  %v21698_v30 = vld [vmem:[#allocation71_spill] sm:$0xff] }
 0xad0   :  { %12596 = vmatprep.mubr.msk.f32.mxu1 %vm14707_vm2, %v21626_v48 }
 0xad1   :  { %21693 = vst [vmem:[#allocation46_spill] sm:$0xff] %v19957_v3 }
 0xad2   :  { %v6957_v0 = vpop.f32.mrb[254].mxu1  ;;  %v7297_v25 = vpop.f32.mrb[62].mxu0 }
 0xad3   :  { %v19963_v19 = vadd.f32 %v7297_v25, %v6957_v0  ;;  %v6959_v55 = vpop.f32.mrb[255].mxu1  ;;  %12597 = vmatmul.mubr.msk.f32.gmra.mrb[70].mxu1 %vm272_vm0, %v21696_v54  ;;  %v7299_v24 = vpop.f32.mrb[63].mxu0  ;;  %v21699_v54 = vld [vmem:[#allocation72_spill] sm:$0xff] }
 0xad4   :  { %12599 = vmatprep.mubr.msk.f32.mxu1 %vm14707_vm2, %v21626_v48 }
 0xad5   :  { %21695 = vst [vmem:[#allocation73_spill] sm:$0xff] %v19963_v19 }
 0xad6   :  { %v6962_v34 = vpop.f32.mrb[0].mxu1  ;;  %v7302_v39 = vpop.f32.mrb[64].mxu0 }
 0xad7   :  { %v19969_v21 = vadd.f32 %v7302_v39, %v6962_v34  ;;  %v6964_v26 = vpop.f32.mrb[1].mxu1  ;;  %12600 = vmatmul.mubr.msk.f32.gmra.mrb[72].mxu1 %vm272_vm0, %v21698_v30  ;;  %v7304_v3 = vpop.f32.mrb[65].mxu0 }
 0xad8   :  { %12602 = vmatprep.mubr.msk.f32.mxu1 %vm14707_vm2, %v21626_v48 }
 0xad9   :  { %21697 = vst [vmem:[#allocation74_spill] sm:$0xff] %v19969_v21 }
 0xada   :  { %v6967_v0 = vpop.f32.mrb[2].mxu1  ;;  %v7307_v25 = vpop.f32.mrb[66].mxu0 }
 0xadb   :  { %v19975_v55 = vadd.f32 %v7307_v25, %v6967_v0  ;;  %v6969_v24 = vpop.f32.mrb[3].mxu1  ;;  %12603 = vmatmul.mubr.msk.f32.gmra.mrb[74].mxu1 %vm272_vm0, %v21699_v54  ;;  %v7309_v19 = vpop.f32.mrb[67].mxu0  ;;  %v11140_v0 = vld [vmem:[%s21455_s8 + $0x448] sm:$0xff] }
 0xadc   :  { %11208 = vmatprep.mubr.msk.f32.mxu0 %vm6639_vm3, %v11140_v0 }
 0xade   :  { %v6972_v53 = vpop.f32.mrb[4].mxu1  ;;  %v7312_v34 = vpop.f32.mrb[68].mxu0 }
 0xadf   :  { %v19979_v39 = vadd.f32 %v7312_v34, %v6972_v53  ;;  %v6974_v26 = vpop.f32.mrb[5].mxu1  ;;  %v7314_v21 = vpop.f32.mrb[69].mxu0 }
 0xae1   :  { %21700 = vst [vmem:[#allocation75_spill] sm:$0xff] %v19979_v39 }
 0xae2   :  { %v6977_v30 = vpop.f32.mrb[6].mxu1  ;;  %v7317_v3 = vpop.f32.mrb[70].mxu0 }
 0xae3   :  { %v19981_v22 = vadd.f32 %v7317_v3, %v6977_v30  ;;  %v6979_v45 = vpop.f32.mrb[7].mxu1  ;;  %v7319_v42 = vpop.f32.mrb[71].mxu0 }
 0xae5   :  { %21701 = vst [vmem:[#allocation76_spill] sm:$0xff] %v19981_v22 }
 0xb6e   :  { %v7754_v25 = vpop.f32.mrb[8].mxu1 }
 0xb6f   :  { %v12556_v19 = vpop.f32.mrb[9].mxu1 }
 0xb72   :  { %v7759_v24 = vpop.f32.mrb[10].mxu1 }
 0xb73   :  { %v13884_v54 = vpack.c.bf16 %v7759_v24, %v7754_v25  ;;  %v12559_v53 = vpop.f32.mrb[11].mxu1 }
 0xb75   :  { %13885 = vmatpush1.bf16.msra.mxu0 %v13884_v54 }
 0xb76   :  { %v7764_v34 = vpop.f32.mrb[12].mxu1  ;;  %13886 = vmatprep.subr.bf16.mxu0 %v21591_v59 }
 0xb77   :  { %v12562_v21 = vpop.f32.mrb[13].mxu1 }
 0xb7a   :  { %v7769_v30 = vpop.f32.mrb[14].mxu1 }
 0xb7b   :  { %v13887_v26 = vpack.c.bf16 %v7769_v30, %v7764_v34  ;;  %v12565_v45 = vpop.f32.mrb[15].mxu1 }
 0xb7d   :  { %13888 = vmatpush1.bf16.msra.mxu0 %v13887_v26 }
 0xb7e   :  { %v7774_v42 = vpop.f32.mrb[16].mxu1  ;;  %13889 = vmatprep.subr.bf16.mxu0 %v21591_v59 }
 0xb7f   :  { %v12568_v3 = vpop.f32.mrb[17].mxu1 }
 0xb82   :  { %v7779_v22 = vpop.f32.mrb[18].mxu1 }
 0xb83   :  { %v13890_v0 = vpack.c.bf16 %v7779_v22, %v7774_v42  ;;  %v12571_v39 = vpop.f32.mrb[19].mxu1 }
 0xb85   :  { %13891 = vmatpush1.bf16.msra.mxu0 %v13890_v0 }
 0xb86   :  { %v7784_v19 = vpop.f32.mrb[20].mxu1  ;;  %13892 = vmatprep.subr.bf16.mxu0 %v21591_v59 }
 0xb87   :  { %v12574_v54 = vpop.f32.mrb[21].mxu1 }
 0xb8a   :  { %v7789_v25 = vpop.f32.mrb[22].mxu1 }
 0xb8b   :  { %v13893_v24 = vpack.c.bf16 %v7789_v25, %v7784_v19  ;;  %v12577_v53 = vpop.f32.mrb[23].mxu1 }
 0xb8d   :  { %13894 = vmatpush1.bf16.msra.mxu0 %v13893_v24 }
 0xb8e   :  { %v7794_v21 = vpop.f32.mrb[24].mxu1  ;;  %13895 = vmatprep.subr.bf16.mxu0 %v21591_v59 }
 0xb8f   :  { %v12580_v34 = vpop.f32.mrb[25].mxu1 }
 0xb92   :  { %v7799_v30 = vpop.f32.mrb[26].mxu1 }
 0xb93   :  { %v13896_v26 = vpack.c.bf16 %v7799_v30, %v7794_v21  ;;  %v12583_v45 = vpop.f32.mrb[27].mxu1 }
 0xb95   :  { %13897 = vmatpush1.bf16.msra.mxu0 %v13896_v26 }
 0xb96   :  { %v7804_v3 = vpop.f32.mrb[62].mxu1  ;;  %13898 = vmatprep.subr.bf16.mxu0 %v21591_v59 }
 0xb97   :  { %v12586_v22 = vpop.f32.mrb[63].mxu1 }
 0xb98   :  { %v11243_v22 = vld [vmem:[%s21454_s7 + $0x638] sm:$0xff] }
 0xb9a   :  { %v7809_v39 = vpop.f32.mrb[64].mxu1 }
 0xb9b   :  { %v13899_v42 = vpack.c.bf16 %v7809_v39, %v7804_v3  ;;  %v12589_v0 = vpop.f32.mrb[65].mxu1  ;;  %v11242_v3 = vld [vmem:[%s21454_s7 + $0x630] sm:$0xff] }
 0xb9c   :  { %v11139_v0 = vld [vmem:[%s21455_s8 + $0x440] sm:$0xff] }
 0xb9d   :  { %13900 = vmatpush1.bf16.msra.mxu0 %v13899_v42 }
 0xb9e   :  { %v7814_v54 = vpop.f32.mrb[66].mxu1  ;;  %13901 = vmatprep.subr.bf16.mxu0 %v21591_v59 }
 0xb9f   :  { %v12592_v19 = vpop.f32.mrb[67].mxu1 }
 0xba0   :  { %v11142_v19 = vld [vmem:[%s21455_s8 + $0x458] sm:$0xff] }
 0xba2   :  { %v7819_v25 = vpop.f32.mrb[68].mxu1 }
 0xba3   :  { %v13902_v24 = vpack.c.bf16 %v7819_v25, %v7814_v54  ;;  %v12595_v53 = vpop.f32.mrb[69].mxu1  ;;  %v13908_v54 = vpack.c.bf16 %v11243_v22, %v11242_v3  ;;  %v11244_v25 = vld [vmem:[%s21454_s7 + $0x640] sm:$0xff]  ;;  %v11146_v22 = vld [vmem:[%s21455_s8 + $0x478] sm:$0xff] }
 0xba4   :  { %v11141_v53 = vld [vmem:[%s21455_s8 + $0x450] sm:$0xff] }
 0xba5   :  { %13903 = vmatpush1.bf16.msra.mxu0 %v13902_v24  ;;  %v11245_v24 = vld [vmem:[%s21454_s7 + $0x648] sm:$0xff] }
 0xba6   :  { %v7824_v34 = vpop.f32.mrb[70].mxu1  ;;  %13904 = vmatprep.subr.bf16.mxu0 %v21591_v59 }
 0xba7   :  { %v12598_v21 = vpop.f32.mrb[71].mxu1 }
 0xba8   :  { %v11144_v21 = vld [vmem:[%s21455_s8 + $0x468] sm:$0xff] }
 0xbaa   :  { %v7829_v30 = vpop.f32.mrb[72].mxu1 }
 0xbab   :  { %v13905_v26 = vpack.c.bf16 %v7829_v30, %v7824_v34  ;;  %v12601_v45 = vpop.f32.mrb[73].mxu1  ;;  %v13911_v34 = vpack.c.bf16 %v11245_v24, %v11244_v25  ;;  %v11246_v30 = vld [vmem:[%s21454_s7 + $0x650] sm:$0xff]  ;;  %v11251_v24 = vld [vmem:[%s21454_s7 + $0x678] sm:$0xff] }
 0xbac   :  { %v11143_v45 = vld [vmem:[%s21455_s8 + $0x460] sm:$0xff]  ;;  %v11250_v25 = vld [vmem:[%s21454_s7 + $0x670] sm:$0xff] }
 0xbad   :  { %13906 = vmatpush1.bf16.msra.mxu0 %v13905_v26  ;;  %v11247_v26 = vld [vmem:[%s21454_s7 + $0x658] sm:$0xff] }
 0xbae   :  { %v7834_v39 = vpop.f32.mrb[74].mxu1  ;;  %8044 = vmatprep.subr.mxu0 %v21626_v48  ;;  %v13914_v3 = vpack.c.bf16 %v11247_v26, %v11246_v30  ;;  %v11252_v30 = vld [vmem:[%s21454_s7 + $0x680] sm:$0xff]  ;;  %v11253_v26 = vld [vmem:[%s21454_s7 + $0x688] sm:$0xff] }
 0xbaf   :  { %v12604_v42 = vpop.f32.mrb[75].mxu1 }
 0xbb0   :  { %v11249_v42 = vld [vmem:[%s21454_s7 + $0x668] sm:$0xff] }
 0xbb1   :  { %11207 = vmatpush1.msk.msra.mxu0 %vm6742_vm4, %v7834_v39  ;;  %v11248_v39 = vld [vmem:[%s21454_s7 + $0x660] sm:$0xff] }
 0xbb2   :  { %8077 = vmatmul.mubr.f32.vlgmr.msra.gmra.mrb[72].mxu0 %v11139_v0  ;;  %13907 = vmatprep.subr.bf16.mxu0 %v21591_v59  ;;  %v11145_v0 = vld [vmem:[%s21455_s8 + $0x470] sm:$0xff] }
 0xbb3   :  { %11209 = vmatprep.mubr.msk.f32.mxu0 %vm6639_vm3, %v11142_v19  ;;  %13909 = vmatpush1.bf16.msra.mxu0 %v13908_v54  ;;  %v13917_v54 = vpack.c.bf16 %v11249_v42, %v11248_v39  ;;  %v11148_v19 = vld [vmem:[%s21455_s8 + $0x488] sm:$0xff]  ;;  %v11254_v39 = vld [vmem:[%s21454_s7 + $0x690] sm:$0xff]  ;;  %v11255_v42 = vld [vmem:[%s21454_s7 + $0x698] sm:$0xff] }
 0xbb4   :  { %13910 = vmatprep.subr.bf16.mxu0 %v21591_v59 }
 0xbb6   :  { %8082 = vmatmul.mubr.f32.gmra.mrb[74].mxu0 %v11141_v53  ;;  %v11147_v53 = vld [vmem:[%s21455_s8 + $0x480] sm:$0xff] }
 0xbb7   :  { %11210 = vmatprep.mubr.msk.f32.mxu0 %vm6639_vm3, %v11144_v21  ;;  %13912 = vmatpush1.bf16.msra.mxu0 %v13911_v34  ;;  %v13920_v34 = vpack.c.bf16 %v11251_v24, %v11250_v25  ;;  %v11150_v21 = vld [vmem:[%s21455_s8 + $0x498] sm:$0xff]  ;;  %v11256_v25 = vld [vmem:[%s21454_s7 + $0x6a0] sm:$0xff]  ;;  %v11257_v24 = vld [vmem:[%s21454_s7 + $0x6a8] sm:$0xff] }
 0xbb8   :  { %13913 = vmatprep.subr.bf16.mxu0 %v21591_v59 }
 0xbba   :  { %8087 = vmatmul.mubr.f32.gmra.mrb[76].mxu0 %v11143_v45  ;;  %v11149_v45 = vld [vmem:[%s21455_s8 + $0x490] sm:$0xff] }
 0xbbb   :  { %11211 = vmatprep.mubr.msk.f32.mxu0 %vm6639_vm3, %v11146_v22  ;;  %13915 = vmatpush1.bf16.msra.mxu0 %v13914_v3  ;;  %v13923_v3 = vpack.c.bf16 %v11253_v26, %v11252_v30  ;;  %v11152_v22 = vld [vmem:[%s21455_s8 + $0x4a8] sm:$0xff]  ;;  %v11258_v30 = vld [vmem:[%s21454_s7 + $0x6b0] sm:$0xff]  ;;  %v11259_v26 = vld [vmem:[%s21454_s7 + $0x6b8] sm:$0xff] }
 0xbbc   :  { %13916 = vmatprep.subr.bf16.mxu0 %v21591_v59 }
 0xbbe   :  { %8092 = vmatmul.mubr.f32.gmra.mrb[78].mxu0 %v11145_v0  ;;  %v11151_v0 = vld [vmem:[%s21455_s8 + $0x4a0] sm:$0xff] }
 0xbbf   :  { %11212 = vmatprep.mubr.msk.f32.mxu0 %vm6639_vm3, %v11148_v19  ;;  %13918 = vmatpush1.bf16.msra.mxu0 %v13917_v54  ;;  %v13926_v54 = vpack.c.bf16 %v11255_v42, %v11254_v39  ;;  %v11154_v19 = vld [vmem:[%s21455_s8 + $0x4b8] sm:$0xff]  ;;  %v11260_v39 = vld [vmem:[%s21454_s7 + $0x6c0] sm:$0xff]  ;;  %v11261_v42 = vld [vmem:[%s21454_s7 + $0x6c8] sm:$0xff] }
 0xbc0   :  { %13919 = vmatprep.subr.bf16.mxu0 %v21591_v59 }
 0xbc2   :  { %8097 = vmatmul.mubr.f32.gmra.mrb[80].mxu0 %v11147_v53  ;;  %v11153_v53 = vld [vmem:[%s21455_s8 + $0x4b0] sm:$0xff] }
 0xbc3   :  { %11213 = vmatprep.mubr.msk.f32.mxu0 %vm6639_vm3, %v11150_v21  ;;  %13921 = vmatpush1.bf16.msra.mxu0 %v13920_v34  ;;  %v13929_v34 = vpack.c.bf16 %v11257_v24, %v11256_v25  ;;  %v11156_v21 = vld [vmem:[%s21455_s8 + $0x4c8] sm:$0xff]  ;;  %v11262_v25 = vld [vmem:[%s21454_s7 + $0x6d0] sm:$0xff]  ;;  %v11263_v24 = vld [vmem:[%s21454_s7 + $0x6d8] sm:$0xff] }
 0xbc4   :  { %13922 = vmatprep.subr.bf16.mxu0 %v21591_v59 }
 0xbc6   :  { %8102 = vmatmul.mubr.f32.gmra.mrb[82].mxu0 %v11149_v45  ;;  %v11155_v45 = vld [vmem:[%s21455_s8 + $0x4c0] sm:$0xff] }
 0xbc7   :  { %11214 = vmatprep.mubr.msk.f32.mxu0 %vm6639_vm3, %v11152_v22  ;;  %13924 = vmatpush1.bf16.msra.mxu0 %v13923_v3  ;;  %v13932_v3 = vpack.c.bf16 %v11259_v26, %v11258_v30  ;;  %v11158_v22 = vld [vmem:[%s21455_s8 + $0x4d8] sm:$0xff]  ;;  %v11264_v30 = vld [vmem:[%s21454_s7 + $0x6e0] sm:$0xff]  ;;  %v11265_v26 = vld [vmem:[%s21454_s7 + $0x6e8] sm:$0xff] }
 0xbc8   :  { %13925 = vmatprep.subr.bf16.mxu0 %v21591_v59 }
 0xbca   :  { %8107 = vmatmul.mubr.f32.gmra.mrb[84].mxu0 %v11151_v0  ;;  %v11157_v0 = vld [vmem:[%s21455_s8 + $0x4d0] sm:$0xff] }
 0xbcb   :  { %11215 = vmatprep.mubr.msk.f32.mxu0 %vm6639_vm3, %v11154_v19  ;;  %13927 = vmatpush1.bf16.msra.mxu0 %v13926_v54  ;;  %v13935_v54 = vpack.c.bf16 %v11261_v42, %v11260_v39  ;;  %v11160_v19 = vld [vmem:[%s21455_s8 + $0x4e8] sm:$0xff]  ;;  %v11266_v39 = vld [vmem:[%s21454_s7 + $0x6f0] sm:$0xff]  ;;  %v11267_v42 = vld [vmem:[%s21454_s7 + $0x6f8] sm:$0xff] }
 0xbcc   :  { %13928 = vmatprep.subr.bf16.mxu0 %v21591_v59 }
 0xbce   :  { %8112 = vmatmul.mubr.f32.gmra.mrb[86].mxu0 %v11153_v53  ;;  %v11159_v53 = vld [vmem:[%s21455_s8 + $0x4e0] sm:$0xff] }
 0xbcf   :  { %11216 = vmatprep.mubr.msk.f32.mxu0 %vm6639_vm3, %v11156_v21  ;;  %13930 = vmatpush1.bf16.msra.mxu0 %v13929_v34  ;;  %v13938_v34 = vpack.c.bf16 %v11263_v24, %v11262_v25  ;;  %v11162_v21 = vld [vmem:[%s21455_s8 + $0x4f8] sm:$0xff]  ;;  %v11268_v25 = vld [vmem:[%s21454_s7 + $0x700] sm:$0xff]  ;;  %v11269_v24 = vld [vmem:[%s21454_s7 + $0x708] sm:$0xff] }
 0xbd0   :  { %13931 = vmatprep.subr.bf16.mxu0 %v21591_v59 }
 0xbd2   :  { %8117 = vmatmul.mubr.f32.gmra.mrb[88].mxu0 %v11155_v45  ;;  %v11161_v45 = vld [vmem:[%s21455_s8 + $0x4f0] sm:$0xff] }
 0xbd3   :  { %11217 = vmatprep.mubr.msk.f32.mxu0 %vm6639_vm3, %v11158_v22  ;;  %13933 = vmatpush1.bf16.msra.mxu0 %v13932_v3  ;;  %v13941_v3 = vpack.c.bf16 %v11265_v26, %v11264_v30  ;;  %v11164_v22 = vld [vmem:[%s21455_s8 + $0x508] sm:$0xff]  ;;  %v11270_v30 = vld [vmem:[%s21454_s7 + $0x710] sm:$0xff]  ;;  %v11271_v26 = vld [vmem:[%s21454_s7 + $0x718] sm:$0xff] }
 0xbd4   :  { %13934 = vmatprep.subr.bf16.mxu0 %v21591_v59 }
 0xbd6   :  { %8122 = vmatmul.mubr.f32.gmra.mrb[90].mxu0 %v11157_v0  ;;  %v11163_v0 = vld [vmem:[%s21455_s8 + $0x500] sm:$0xff] }
 0xbd7   :  { %11218 = vmatprep.mubr.msk.f32.mxu0 %vm6639_vm3, %v11160_v19  ;;  %13936 = vmatpush1.bf16.msra.mxu0 %v13935_v54  ;;  %v13944_v54 = vpack.c.bf16 %v11267_v42, %v11266_v39  ;;  %v11166_v19 = vld [vmem:[%s21455_s8 + $0x518] sm:$0xff]  ;;  %v11272_v39 = vld [vmem:[%s21454_s7 + $0x720] sm:$0xff]  ;;  %v11273_v42 = vld [vmem:[%s21454_s7 + $0x728] sm:$0xff] }
 0xbd8   :  { %13937 = vmatprep.subr.bf16.mxu0 %v21591_v59 }
 0xbda   :  { %8127 = vmatmul.mubr.f32.gmra.mrb[92].mxu0 %v11159_v53  ;;  %v11165_v53 = vld [vmem:[%s21455_s8 + $0x510] sm:$0xff] }
 0xbdb   :  { %11219 = vmatprep.mubr.msk.f32.mxu0 %vm6639_vm3, %v11162_v21  ;;  %13939 = vmatpush1.bf16.msra.mxu0 %v13938_v34  ;;  %v13947_v34 = vpack.c.bf16 %v11269_v24, %v11268_v25  ;;  %v11168_v21 = vld [vmem:[%s21455_s8 + $0x528] sm:$0xff]  ;;  %v11171_v25 = vld [vmem:[%s21455_s8 + $0x540] sm:$0xff]  ;;  %v11174_v24 = vld [vmem:[%s21455_s8 + $0x558] sm:$0xff] }
 0xbdc   :  { %13940 = vmatprep.subr.bf16.mxu0 %v21591_v59 }
 0xbde   :  { %8132 = vmatmul.mubr.f32.gmra.mrb[94].mxu0 %v11161_v45  ;;  %v11167_v45 = vld [vmem:[%s21455_s8 + $0x520] sm:$0xff] }
 0xbdf   :  { %11220 = vmatprep.mubr.msk.f32.mxu0 %vm6639_vm3, %v11164_v22  ;;  %13942 = vmatpush1.bf16.msra.mxu0 %v13941_v3  ;;  %v13950_v3 = vpack.c.bf16 %v11271_v26, %v11270_v30  ;;  %v11170_v22 = vld [vmem:[%s21455_s8 + $0x538] sm:$0xff]  ;;  %v11177_v26 = vld [vmem:[%s21455_s8 + $0x570] sm:$0xff] }
 0xbe0   :  { %13943 = vmatprep.subr.bf16.mxu0 %v21591_v59  ;;  %v11178_v30 = vld [vmem:[%s21455_s8 + $0x578] sm:$0xff] }
 0xbe2   :  { %8137 = vmatmul.mubr.f32.gmra.mrb[96].mxu0 %v11163_v0  ;;  %v11169_v0 = vld [vmem:[%s21455_s8 + $0x530] sm:$0xff] }
 0xbe3   :  { %11221 = vmatprep.mubr.msk.f32.mxu0 %vm6639_vm3, %v11166_v19  ;;  %13945 = vmatpush1.bf16.msra.mxu0 %v13944_v54  ;;  %v13953_v54 = vpack.c.bf16 %v11273_v42, %v11272_v39  ;;  %v11172_v19 = vld [vmem:[%s21455_s8 + $0x548] sm:$0xff]  ;;  %v11181_v39 = vld [vmem:[%s21455_s8 + $0x590] sm:$0xff] }
 0xbe4   :  { %13946 = vmatprep.subr.bf16.mxu0 %v21591_v59  ;;  %v11184_v42 = vld [vmem:[%s21455_s8 + $0x5a8] sm:$0xff] }
 0xbe6   :  { %8142 = vmatmul.mubr.f32.gmra.mrb[98].mxu0 %v11165_v53  ;;  %v11173_v53 = vld [vmem:[%s21455_s8 + $0x550] sm:$0xff] }
 0xbe7   :  { %11222 = vmatprep.mubr.msk.f32.mxu0 %vm6639_vm3, %v11168_v21  ;;  %13948 = vmatpush1.bf16.msra.mxu0 %v13947_v34  ;;  %v11176_v34 = vld [vmem:[%s21455_s8 + $0x568] sm:$0xff]  ;;  %v11175_v21 = vld [vmem:[%s21455_s8 + $0x560] sm:$0xff] }
 0xbe8   :  { %13949 = vmatprep.subr.bf16.mxu0 %v21591_v59 }
 0xbea   :  { %8147 = vmatmul.mubr.f32.gmra.mrb[100].mxu0 %v11167_v45  ;;  %v11180_v45 = vld [vmem:[%s21455_s8 + $0x588] sm:$0xff] }
 0xbeb   :  { %11223 = vmatprep.mubr.msk.f32.mxu0 %vm6639_vm3, %v11170_v22  ;;  %13951 = vmatpush1.bf16.msra.mxu0 %v13950_v3  ;;  %v11179_v3 = vld [vmem:[%s21455_s8 + $0x580] sm:$0xff]  ;;  %v11182_v22 = vld [vmem:[%s21455_s8 + $0x598] sm:$0xff] }
 0xbec   :  { %13952 = vmatprep.subr.bf16.mxu0 %v21591_v59 }
 0xbee   :  { %8152 = vmatmul.mubr.f32.gmra.mrb[102].mxu0 %v11169_v0  ;;  %v11183_v0 = vld [vmem:[%s21455_s8 + $0x5a0] sm:$0xff] }
 0xbef   :  { %11224 = vmatprep.mubr.msk.f32.mxu0 %vm6639_vm3, %v11172_v19  ;;  %13954 = vmatpush1.bf16.msra.mxu0 %v13953_v54  ;;  %v11186_v54 = vld [vmem:[%s21455_s8 + $0x5b8] sm:$0xff]  ;;  %v11185_v19 = vld [vmem:[%s21455_s8 + $0x5b0] sm:$0xff] }
 0xbf0   :  { %13955 = vmatprep.subr.bf16.mxu0 %v21591_v59 }
 0xbf2   :  { %8157 = vmatmul.mubr.f32.gmra.mrb[104].mxu0 %v11171_v25  ;;  %v11188_v25 = vld [vmem:[%s21455_s8 + $0x5c8] sm:$0xff] }
 0xbf3   :  { %11225 = vmatprep.mubr.msk.f32.mxu0 %vm6639_vm3, %v11174_v24  ;;  %v11187_v24 = vld [vmem:[%s21455_s8 + $0x5c0] sm:$0xff] }
 0xbf6   :  { %8162 = vmatmul.mubr.f32.gmra.mrb[106].mxu0 %v11173_v53  ;;  %v11190_v53 = vld [vmem:[%s21455_s8 + $0x5d8] sm:$0xff] }
 0xbf7   :  { %11226 = vmatprep.mubr.msk.f32.mxu0 %vm6639_vm3, %v11176_v34  ;;  %v11189_v34 = vld [vmem:[%s21455_s8 + $0x5d0] sm:$0xff] }
 0xbfa   :  { %8167 = vmatmul.mubr.f32.gmra.mrb[108].mxu0 %v11175_v21  ;;  %v11192_v21 = vld [vmem:[%s21455_s8 + $0x5e8] sm:$0xff] }
 0xbfb   :  { %11227 = vmatprep.mubr.msk.f32.mxu0 %vm6639_vm3, %v11178_v30  ;;  %v11191_v30 = vld [vmem:[%s21455_s8 + $0x5e0] sm:$0xff] }
 0xbfe   :  { %8172 = vmatmul.mubr.f32.gmra.mrb[110].mxu0 %v11177_v26  ;;  %v11194_v26 = vld [vmem:[%s21455_s8 + $0x5f8] sm:$0xff] }
 0xbff   :  { %11228 = vmatprep.mubr.msk.f32.mxu0 %vm6639_vm3, %v11180_v45  ;;  %v11193_v45 = vld [vmem:[%s21455_s8 + $0x5f0] sm:$0xff] }
 0xc02   :  { %8177 = vmatmul.mubr.f32.gmra.mrb[112].mxu0 %v11179_v3  ;;  %v11196_v3 = vld [vmem:[%s21455_s8 + $0x608] sm:$0xff] }
 0xc03   :  { %11229 = vmatprep.mubr.msk.f32.mxu0 %vm6639_vm3, %v11182_v22  ;;  %v11195_v22 = vld [vmem:[%s21455_s8 + $0x600] sm:$0xff] }
 0xc06   :  { %8182 = vmatmul.mubr.f32.gmra.mrb[114].mxu0 %v11181_v39  ;;  %v11198_v39 = vld [vmem:[%s21455_s8 + $0x618] sm:$0xff] }
 0xc07   :  { %11230 = vmatprep.mubr.msk.f32.mxu0 %vm6639_vm3, %v11184_v42  ;;  %v11197_v42 = vld [vmem:[%s21455_s8 + $0x610] sm:$0xff] }
 0xc0a   :  { %8187 = vmatmul.mubr.f32.gmra.mrb[116].mxu0 %v11183_v0  ;;  %v11200_v0 = vld [vmem:[%s21455_s8 + $0x628] sm:$0xff] }
 0xc0b   :  { %11231 = vmatprep.mubr.msk.f32.mxu0 %vm6639_vm3, %v11186_v54  ;;  %v11199_v54 = vld [vmem:[%s21455_s8 + $0x620] sm:$0xff] }
 0xc0e   :  { %8192 = vmatmul.mubr.f32.gmra.mrb[118].mxu0 %v11185_v19  ;;  %v11202_v19 = vld [vmem:[%s21455_s8 + $0x638] sm:$0xff] }
 0xc0f   :  { %11232 = vmatprep.mubr.msk.f32.mxu0 %vm6639_vm3, %v11188_v25  ;;  %v11201_v25 = vld [vmem:[%s21455_s8 + $0x630] sm:$0xff] }
 0xc12   :  { %8197 = vmatmul.mubr.f32.gmra.mrb[120].mxu0 %v11187_v24  ;;  %v11204_v24 = vld [vmem:[%s21455_s8 + $0x648] sm:$0xff] }
 0xc13   :  { %11233 = vmatprep.mubr.msk.f32.mxu0 %vm6639_vm3, %v11190_v53  ;;  %v11203_v53 = vld [vmem:[%s21455_s8 + $0x640] sm:$0xff] }
 0xc16   :  { %8202 = vmatmul.mubr.f32.gmra.mrb[122].mxu0 %v11189_v34  ;;  %v11206_v34 = vld [vmem:[%s21455_s8 + $0x658] sm:$0xff] }
 0xc17   :  { %11234 = vmatprep.mubr.msk.f32.mxu0 %vm6639_vm3, %v11192_v21  ;;  %v11205_v21 = vld [vmem:[%s21455_s8 + $0x650] sm:$0xff] }
 0xc1a   :  { %8207 = vmatmul.mubr.f32.gmra.mrb[124].mxu0 %v11191_v30  ;;  %v11274_v30 = vld [vmem:[%s21454_s7 + $0x730] sm:$0xff] }
 0xc1b   :  { %11235 = vmatprep.mubr.msk.f32.mxu0 %vm6639_vm3, %v11194_v26  ;;  %v11275_v26 = vld [vmem:[%s21454_s7 + $0x738] sm:$0xff] }
 0xc1e   :  { %8212 = vmatmul.mubr.f32.gmra.mrb[126].mxu0 %v11193_v45  ;;  %v13956_v45 = vpack.c.bf16 %v11275_v26, %v11274_v30  ;;  %v21704_v30 = vld [vmem:[#allocation15_spill] sm:$0xff]  ;;  %v21705_v26 = vld [vmem:[#allocation16_spill] sm:$0xff] }
 0xc1f   :  { %11236 = vmatprep.mubr.msk.f32.mxu0 %vm6639_vm3, %v11196_v3  ;;  %v11276_v3 = vld [vmem:[%s21454_s7 + $0x740] sm:$0xff] }
 0xc22   :  { %8217 = vmatmul.mubr.f32.gmra.mrb[128].mxu0 %v11195_v22  ;;  %v11277_v22 = vld [vmem:[%s21454_s7 + $0x748] sm:$0xff] }
 0xc23   :  { %11237 = vmatprep.mubr.msk.f32.mxu0 %vm6639_vm3, %v11198_v39  ;;  %v13959_v39 = vpack.c.bf16 %v11277_v22, %v11276_v3  ;;  %v11292_v3 = vld [vmem:[%s21454_s7 + $0x7c0] sm:$0xff]  ;;  %v11293_v22 = vld [vmem:[%s21454_s7 + $0x7c8] sm:$0xff] }
 0xc26   :  { %8222 = vmatmul.mubr.f32.gmra.mrb[130].mxu0 %v11197_v42  ;;  %v11279_v42 = vld [vmem:[%s21454_s7 + $0x758] sm:$0xff] }
 0xc27   :  { %11238 = vmatprep.mubr.msk.f32.mxu0 %vm6639_vm3, %v11200_v0  ;;  %v11281_v0 = vld [vmem:[%s21454_s7 + $0x768] sm:$0xff] }
 0xc2a   :  { %8227 = vmatmul.mubr.f32.gmra.mrb[132].mxu0 %v11199_v54  ;;  %v11283_v54 = vld [vmem:[%s21454_s7 + $0x778] sm:$0xff] }
 0xc2b   :  { %11239 = vmatprep.mubr.msk.f32.mxu0 %vm6639_vm3, %v11202_v19  ;;  %v11285_v19 = vld [vmem:[%s21454_s7 + $0x788] sm:$0xff] }
 0xc2e   :  { %8232 = vmatmul.mubr.f32.gmra.mrb[134].mxu0 %v11201_v25  ;;  %v11287_v25 = vld [vmem:[%s21454_s7 + $0x798] sm:$0xff] }
 0xc2f   :  { %11240 = vmatprep.mubr.msk.f32.mxu0 %vm6639_vm3, %v11204_v24  ;;  %v11289_v24 = vld [vmem:[%s21454_s7 + $0x7a8] sm:$0xff] }
 0xc32   :  { %8237 = vmatmul.mubr.f32.gmra.mrb[136].mxu0 %v11203_v53  ;;  %v21702_v53 = vld [vmem:[#allocation13_spill] sm:$0xff] }
 0xc33   :  { %11241 = vmatprep.mubr.msk.f32.mxu0 %vm6639_vm3, %v11206_v34  ;;  %v21703_v34 = vld [vmem:[#allocation14_spill] sm:$0xff] }
 0xc36   :  { %8242 = vmatmul.mubr.f32.gmra.mrb[138].mxu0 %v11205_v21  ;;  %v11291_v21 = vld [vmem:[%s21454_s7 + $0x7b8] sm:$0xff] }
 0xc37   :  { %8412 = vmatprep.mubr.f32.mxu0 %v18126_v23  ;;  %v11278_v23 = vld [vmem:[%s21454_s7 + $0x750] sm:$0xff] }
 0xc3a   :  { %8413 = vmatmul.mubr.f32.vlgmr.msra.gmra.mrb[140].mxu0 %v18131_v27  ;;  %v13962_v27 = vpack.c.bf16 %v11279_v42, %v11278_v23  ;;  %v21707_v23 = vld [vmem:[#allocation18_spill] sm:$0xff]  ;;  %v13983_v42 = vpack.c.bf16 %v11293_v22, %v11292_v3  ;;  %v21715_v3 = vld [vmem:[#allocation29_spill] sm:$0xff]  ;;  %v21717_v22 = vld [vmem:[#allocation31_spill] sm:$0xff] }
 0xc3b   :  { %8417 = vmatprep.mubr.f32.mxu0 %v18148_v10  ;;  %13957 = vmatpush1.bf16.msra.mxu0 %v13956_v45  ;;  %v11280_v10 = vld [vmem:[%s21454_s7 + $0x760] sm:$0xff] }
 0xc3c   :  { %13958 = vmatprep.subr.bf16.mxu0 %v21591_v59 }
 0xc3e   :  { %8418 = vmatmul.mubr.f32.gmra.mrb[142].mxu0 %v18153_v36  ;;  %v13965_v36 = vpack.c.bf16 %v11281_v0, %v11280_v10  ;;  %v11295_v10 = vld [vmem:[%s21454_s7 + $0x7d8] sm:$0xff]  ;;  %v21708_v0 = vld [vmem:[#allocation19_spill] sm:$0xff] }
 0xc3f   :  { %8422 = vmatprep.mubr.f32.mxu0 %v18172_v18  ;;  %13960 = vmatpush1.bf16.msra.mxu0 %v13959_v39  ;;  %v11282_v18 = vld [vmem:[%s21454_s7 + $0x770] sm:$0xff] }
 0xc40   :  { %13961 = vmatprep.subr.bf16.mxu0 %v21591_v59  ;;  %v21706_v39 = vld [vmem:[#allocation17_spill] sm:$0xff] }
 0xc42   :  { %8423 = vmatmul.mubr.f32.gmra.mrb[144].mxu0 %v21644_v29  ;;  %v13968_v29 = vpack.c.bf16 %v11283_v54, %v11282_v18  ;;  %v11296_v54 = vld [vmem:[%s21454_s7 + $0x7e0] sm:$0xff] }
 0xc43   :  { %8427 = vmatprep.mubr.f32.mxu0 %v21645_v61  ;;  %13963 = vmatpush1.bf16.msra.mxu0 %v13962_v27  ;;  %v11284_v61 = vld [vmem:[%s21454_s7 + $0x780] sm:$0xff]  ;;  %v11294_v27 = vld [vmem:[%s21454_s7 + $0x7d0] sm:$0xff] }
 0xc44   :  { %13964 = vmatprep.subr.bf16.mxu0 %v21591_v59  ;;  %v13986_v18 = vpack.c.bf16 %v11295_v10, %v11294_v27  ;;  %v21720_v10 = vld [vmem:[#allocation34_spill] sm:$0xff] }
 0xc46   :  { %8428 = vmatmul.mubr.f32.gmra.mrb[146].mxu0 %v21646_v11  ;;  %v13971_v11 = vpack.c.bf16 %v11285_v19, %v11284_v61  ;;  %v21710_v61 = vld [vmem:[#allocation21_spill] sm:$0xff]  ;;  %v21711_v19 = vld [vmem:[#allocation22_spill] sm:$0xff] }
 0xc47   :  { %8432 = vmatprep.mubr.f32.mxu0 %v21647_v7  ;;  %13966 = vmatpush1.bf16.msra.mxu0 %v13965_v36  ;;  %v11286_v7 = vld [vmem:[%s21454_s7 + $0x790] sm:$0xff]  ;;  %v21709_v36 = vld [vmem:[#allocation20_spill] sm:$0xff] }
 0xc48   :  { %13967 = vmatprep.subr.bf16.mxu0 %v21591_v59 }
 0xc4a   :  { %8433 = vmatmul.mubr.f32.gmra.mrb[148].mxu0 %v21648_v35  ;;  %v13974_v35 = vpack.c.bf16 %v11287_v25, %v11286_v7  ;;  %v11298_v7 = vld [vmem:[%s21454_s7 + $0x7f0] sm:$0xff]  ;;  %v11299_v25 = vld [vmem:[%s21454_s7 + $0x7f8] sm:$0xff] }
 0xc4b   :  { %8437 = vmatprep.mubr.f32.mxu0 %v21649_v38  ;;  %13969 = vmatpush1.bf16.msra.mxu0 %v13968_v29  ;;  %v11288_v38 = vld [vmem:[%s21454_s7 + $0x7a0] sm:$0xff]  ;;  %v11297_v29 = vld [vmem:[%s21454_s7 + $0x7e8] sm:$0xff] }
 0xc4c   :  { %13970 = vmatprep.subr.bf16.mxu0 %v21591_v59 }
 0xc4e   :  { %8438 = vmatmul.mubr.f32.gmra.mrb[150].mxu0 %v21650_v5  ;;  %v13977_v5 = vpack.c.bf16 %v11289_v24, %v11288_v38  ;;  %v21713_v38 = vld [vmem:[#allocation24_spill] sm:$0xff]  ;;  %v13992_v24 = vpack.c.bf16 %v11299_v25, %v11298_v7  ;;  %v21726_v7 = vld [vmem:[#allocation39_spill] sm:$0xff] }
 0xc4f   :  { %8442 = vmatprep.mubr.f32.mxu0 %v21651_v32  ;;  %13972 = vmatpush1.bf16.msra.mxu0 %v13971_v11  ;;  %v11290_v32 = vld [vmem:[%s21454_s7 + $0x7b0] sm:$0xff]  ;;  %v13989_v11 = vpack.c.bf16 %v11297_v29, %v11296_v54 }
 0xc50   :  { %13973 = vmatprep.subr.bf16.mxu0 %v21591_v59  ;;  %v13980_v45 = vpack.c.bf16 %v11291_v21, %v11290_v32  ;;  %v11302_v21 = vld [vmem:[%s21454_s7 + $0x810] sm:$0xff] }
 0xc51   :  { %v21724_v29 = vld [vmem:[#allocation5_spill] sm:$0xff] }
 0xc52   :  { %8443 = vmatmul.mubr.f32.gmra.mrb[152].mxu0 %v21702_v53  ;;  %v11300_v53 = vld [vmem:[%s21454_s7 + $0x800] sm:$0xff] }
 0xc53   :  { %8447 = vmatprep.mubr.f32.mxu0 %v21703_v34  ;;  %13975 = vmatpush1.bf16.msra.mxu0 %v13974_v35  ;;  %v21712_v35 = vld [vmem:[#allocation23_spill] sm:$0xff]  ;;  %v11301_v34 = vld [vmem:[%s21454_s7 + $0x808] sm:$0xff] }
 0xc54   :  { %13976 = vmatprep.subr.bf16.mxu0 %v21591_v59  ;;  %v13995_v32 = vpack.c.bf16 %v11301_v34, %v11300_v53  ;;  %v21728_v53 = vld [vmem:[#allocation40_spill] sm:$0xff]  ;;  %v21729_v34 = vld [vmem:[#allocation41_spill] sm:$0xff] }
 0xc56   :  { %8448 = vmatmul.mubr.f32.gmra.mrb[154].mxu0 %v21704_v30  ;;  %v11303_v30 = vld [vmem:[%s21454_s7 + $0x818] sm:$0xff] }
 0xc57   :  { %8452 = vmatprep.mubr.f32.mxu0 %v21705_v26  ;;  %13978 = vmatpush1.bf16.msra.mxu0 %v13977_v5  ;;  %v21714_v5 = vld [vmem:[#allocation25_spill] sm:$0xff]  ;;  %v13998_v26 = vpack.c.bf16 %v11303_v30, %v11302_v21  ;;  %v21730_v30 = vld [vmem:[#allocation42_spill] sm:$0xff] }
 0xc58   :  { %13979 = vmatprep.subr.bf16.mxu0 %v21591_v59 }
 0xc5a   :  { %8453 = vmatmul.mubr.f32.gmra.mrb[156].mxu0 %v21706_v39  ;;  %v11306_v39 = vld [vmem:[%s21454_s7 + $0x830] sm:$0xff] }
 0xc5b   :  { %8457 = vmatprep.mubr.f32.mxu0 %v21707_v23  ;;  %13981 = vmatpush1.bf16.msra.mxu0 %v13980_v45  ;;  %v11305_v45 = vld [vmem:[%s21454_s7 + $0x828] sm:$0xff] }
 0xc5c   :  { %13982 = vmatprep.subr.bf16.mxu0 %v21591_v59  ;;  %v21718_v23 = vld [vmem:[#allocation32_spill] sm:$0xff] }
 0xc5e   :  { %8458 = vmatmul.mubr.f32.gmra.mrb[28].mxu0 %v21708_v0  ;;  %v21721_v0 = vld [vmem:[#allocation35_spill] sm:$0xff] }
 0xc5f   :  { %8462 = vmatprep.mubr.f32.mxu0 %v21709_v36  ;;  %13984 = vmatpush1.bf16.msra.mxu0 %v13983_v42  ;;  %v21719_v42 = vld [vmem:[#allocation33_spill] sm:$0xff]  ;;  %v21722_v36 = vld [vmem:[#allocation36_spill] sm:$0xff] }
 0xc60   :  { %13985 = vmatprep.subr.bf16.mxu0 %v21591_v59 }
 0xc62   :  { %8463 = vmatmul.mubr.f32.gmra.mrb[30].mxu0 %v21710_v61 }
 0xc63   :  { %8467 = vmatprep.mubr.f32.mxu0 %v21711_v19  ;;  %13987 = vmatpush1.bf16.msra.mxu0 %v13986_v18  ;;  %v21723_v18 = vld [vmem:[#allocation37_spill] sm:$0xff] }
 0xc64   :  { %13988 = vmatprep.subr.bf16.mxu0 %v21591_v59 }
 0xc66   :  { %8468 = vmatmul.mubr.f32.gmra.mrb[32].mxu0 %v21712_v35  ;;  %v21727_v35 = vld [vmem:[#allocation6_spill] sm:$0xff] }
 0xc67   :  { %8472 = vmatprep.mubr.f32.mxu0 %v21713_v38  ;;  %13990 = vmatpush1.bf16.msra.mxu0 %v13989_v11  ;;  %v21725_v11 = vld [vmem:[#allocation38_spill] sm:$0xff] }
 0xc68   :  { %13991 = vmatprep.subr.bf16.mxu0 %v21591_v59 }
 0xc6a   :  { %8473 = vmatmul.mubr.f32.gmra.mrb[34].mxu0 %v21714_v5 }
 0xc6b   :  { %8477 = vmatprep.mubr.f32.mxu0 %v21665_v41  ;;  %13993 = vmatpush1.bf16.msra.mxu0 %v13992_v24  ;;  %v11304_v41 = vld [vmem:[%s21454_s7 + $0x820] sm:$0xff] }
 0xc6c   :  { %13994 = vmatprep.subr.bf16.mxu0 %v21591_v59 }
 0xc6e   :  { %8478 = vmatmul.mubr.f32.gmra.mrb[36].mxu0 %v21666_v51  ;;  %v14001_v51 = vpack.c.bf16 %v11305_v45, %v11304_v41 }
 0xc6f   :  { %8482 = vmatprep.mubr.f32.mxu0 %v21667_v46  ;;  %13996 = vmatpush1.bf16.msra.mxu0 %v13995_v32  ;;  %v21716_v46 = vld [vmem:[#allocation30_spill] sm:$0xff] }
 0xc70   :  { %13997 = vmatprep.subr.bf16.mxu0 %v21591_v59 }
 0xc72   :  { %8483 = vmatmul.mubr.f32.gmra.mrb[38].mxu0 %v18497_v52  ;;  %v11307_v52 = vld [vmem:[%s21454_s7 + $0x838] sm:$0xff] }
 0xc73   :  { %8487 = vmatprep.mubr.f32.mxu0 %v21715_v3  ;;  %13999 = vmatpush1.bf16.msra.mxu0 %v13998_v26  ;;  %v14004_v27 = vpack.c.bf16 %v11307_v52, %v11306_v39  ;;  %v21731_v26 = vld [vmem:[#allocation43_spill] sm:$0xff] }
 0xc74   :  { %14000 = vmatprep.subr.bf16.mxu0 %v21591_v59  ;;  %v21733_v39 = vld [vmem:[#allocation47_spill] sm:$0xff] }
 0xc76   :  { %8488 = vmatmul.mubr.f32.gmra.mrb[40].mxu0 %v21716_v46 }
 0xc77   :  { %8492 = vmatprep.mubr.f32.mxu0 %v21717_v22  ;;  %14002 = vmatpush1.bf16.msra.mxu0 %v14001_v51  ;;  %v21732_v51 = vld [vmem:[#allocation45_spill] sm:$0xff] }
 0xc78   :  { %14003 = vmatprep.subr.bf16.mxu0 %v21591_v59 }
 0xc7a   :  { %8493 = vmatmul.mubr.f32.gmra.mrb[42].mxu0 %v21718_v23 }
 0xc7b   :  { %8562 = vmatprep.mubr.f32.mxu0 %v21719_v42  ;;  %v21734_v42 = vld [vmem:[#allocation48_spill] sm:$0xff] }
 0xc7e   :  { %8563 = vmatmul.mubr.f32.vlgmr.msra.gmra.mrb[140].mxu0 %v21720_v10  ;;  %v21735_v10 = vld [vmem:[#allocation49_spill] sm:$0xff] }
 0xc7f   :  { %8567 = vmatprep.mubr.f32.mxu0 %v21721_v0  ;;  %14005 = vmatpush3.bf16.msra.mxu0 %v14004_v27 }
 0xc80   :  { %14066 = vmatprep.subr.bf16.mxu0 %v21591_v59 }
 0xc82   :  { %8568 = vmatmul.mubr.f32.gmra.mrb[142].mxu0 %v21722_v36  ;;  %v21736_v36 = vld [vmem:[#allocation50_spill] sm:$0xff] }
 0xc83   :  { %8572 = vmatprep.mubr.f32.mxu0 %v21723_v18 }
 0xc85   :  { %v8078_v54 = vpop.f32.mrb[72].mxu0 }
 0xc86   :  { %v20502_v61 = vadd.f32 %v8078_v54, %v21724_v29  ;;  %v8080_v19 = vpop.f32.mrb[73].mxu0  ;;  %8573 = vmatmul.mubr.f32.gmra.mrb[144].mxu0 %v21725_v11  ;;  %v21737_v54 = vld [vmem:[#allocation51_spill] sm:$0xff] }
 0xc87   :  { %8577 = vmatprep.mubr.f32.mxu0 %v21726_v7  ;;  %v21738_v19 = vld [vmem:[#allocation52_spill] sm:$0xff]  ;;  %v21739_v7 = vld [vmem:[#allocation53_spill] sm:$0xff] }
 0xc89   :  { %v8083_v25 = vpop.f32.mrb[74].mxu0 }
 0xc8a   :  { %v20507_v38 = vadd.f32 %v8083_v25, %v21727_v35  ;;  %v8085_v24 = vpop.f32.mrb[75].mxu0  ;;  %8578 = vmatmul.mubr.f32.gmra.mrb[146].mxu0 %v21728_v53  ;;  %v21740_v35 = vld [vmem:[#allocation54_spill] sm:$0xff] }
 0xc8b   :  { %8582 = vmatprep.mubr.f32.mxu0 %v21729_v34 }
 0xc8d   :  { %v8088_v5 = vpop.f32.mrb[76].mxu0 }
 0xc8e   :  { %v20512_v32 = vadd.f32 %v8088_v5, %v19826_v43  ;;  %v8090_v21 = vpop.f32.mrb[77].mxu0  ;;  %8583 = vmatmul.mubr.f32.gmra.mrb[148].mxu0 %v21730_v30  ;;  %v21741_v5 = vld [vmem:[#allocation55_spill] sm:$0xff]  ;;  %v21743_v30 = vld [vmem:[#allocation57_spill] sm:$0xff] }
 0xc8f   :  { %8587 = vmatprep.mubr.f32.mxu0 %v21731_v26  ;;  %v21742_v21 = vld [vmem:[#allocation56_spill] sm:$0xff] }
 0xc91   :  { %v8093_v41 = vpop.f32.mrb[78].mxu0 }
 0xc92   :  { %v20517_v45 = vadd.f32 %v8093_v41, %v19830_v9  ;;  %v8095_v3 = vpop.f32.mrb[79].mxu0  ;;  %8588 = vmatmul.mubr.f32.gmra.mrb[150].mxu0 %v21676_v28 }
 0xc93   :  { %8592 = vmatprep.mubr.f32.mxu0 %v21732_v51  ;;  %v21744_v3 = vld [vmem:[#allocation58_spill] sm:$0xff]  ;;  %v21745_v51 = vld [vmem:[#allocation7_spill] sm:$0xff] }
 0xc95   :  { %v8098_v46 = vpop.f32.mrb[80].mxu0 }
 0xc96   :  { %v20522_v22 = vadd.f32 %v8098_v46, %v19834_v62  ;;  %v8100_v43 = vpop.f32.mrb[81].mxu0  ;;  %8593 = vmatmul.mubr.f32.gmra.mrb[152].mxu0 %v21678_v57 }
 0xc97   :  { %8597 = vmatprep.mubr.f32.mxu0 %v21733_v39  ;;  %v21746_v39 = vld [vmem:[#allocation59_spill] sm:$0xff] }
 0xc99   :  { %v8103_v52 = vpop.f32.mrb[82].mxu0 }
 0xc9a   :  { %v20527_v23 = vadd.f32 %v8103_v52, %v19838_v6  ;;  %v8105_v9 = vpop.f32.mrb[83].mxu0  ;;  %8598 = vmatmul.mubr.f32.gmra.mrb[154].mxu0 %v18697_v33  ;;  %v21747_v52 = vld [vmem:[#allocation8_spill] sm:$0xff] }
 0xc9b   :  { %8602 = vmatprep.mubr.f32.mxu0 %v21734_v42 }
 0xc9d   :  { %v8108_v28 = vpop.f32.mrb[84].mxu0 }
 0xc9e   :  { %v20532_v27 = vadd.f32 %v8108_v28, %v19842_v20  ;;  %v8110_v62 = vpop.f32.mrb[85].mxu0  ;;  %8603 = vmatmul.mubr.f32.gmra.mrb[156].mxu0 %v18707_v8  ;;  %v21748_v28 = vld [vmem:[#allocation60_spill] sm:$0xff] }
 0xc9f   :  { %8607 = vmatprep.mubr.f32.mxu0 %v21735_v10  ;;  %v21749_v10 = vld [vmem:[#allocation9_spill] sm:$0xff] }
 0xca1   :  { %v8113_v57 = vpop.f32.mrb[86].mxu0 }
 0xca2   :  { %v20537_v0 = vadd.f32 %v8113_v57, %v19846_v47  ;;  %v8115_v6 = vpop.f32.mrb[87].mxu0  ;;  %8608 = vmatmul.mubr.f32.gmra.mrb[28].mxu0 %v18722_v16 }
 0xca3   :  { %8612 = vmatprep.mubr.f32.mxu0 %v21736_v36  ;;  %v21750_v36 = vld [vmem:[#allocation61_spill] sm:$0xff] }
 0xca5   :  { %v8118_v33 = vpop.f32.mrb[88].mxu0 }
 0xca6   :  { %v20542_v18 = vadd.f32 %v8118_v33, %v19850_v63  ;;  %v8120_v20 = vpop.f32.mrb[89].mxu0  ;;  %8613 = vmatmul.mubr.f32.gmra.mrb[30].mxu0 %v18737_v17 }
 0xca7   :  { %8617 = vmatprep.mubr.f32.mxu0 %v21737_v54  ;;  %v21751_v20 = vld [vmem:[#allocation10_spill] sm:$0xff] }
 0xca9   :  { %v8123_v8 = vpop.f32.mrb[90].mxu0 }
 0xcaa   :  { %v20547_v29 = vadd.f32 %v8123_v8, %v19854_v58  ;;  %v8125_v47 = vpop.f32.mrb[91].mxu0  ;;  %8618 = vmatmul.mubr.f32.gmra.mrb[32].mxu0 %v18752_v50 }
 0xcab   :  { %8622 = vmatprep.mubr.f32.mxu0 %v21738_v19  ;;  %v21752_v47 = vld [vmem:[#allocation62_spill] sm:$0xff] }
 0xcad   :  { %v8128_v16 = vpop.f32.mrb[92].mxu0 }
 0xcae   :  { %v20552_v11 = vadd.f32 %v8128_v16, %v19858_v49  ;;  %v8130_v63 = vpop.f32.mrb[93].mxu0  ;;  %8623 = vmatmul.mubr.f32.gmra.mrb[34].mxu0 %v18767_v2  ;;  %v21753_v16 = vld [vmem:[#allocation11_spill] sm:$0xff] }
 0xcaf   :  { %8627 = vmatprep.mubr.f32.mxu0 %v21739_v7 }
 0xcb1   :  { %v8133_v17 = vpop.f32.mrb[94].mxu0 }
 0xcb2   :  { %v20557_v25 = vadd.f32 %v8133_v17, %v19862_v14  ;;  %v8135_v58 = vpop.f32.mrb[95].mxu0  ;;  %8628 = vmatmul.mubr.f32.gmra.mrb[36].mxu0 %v18782_v13  ;;  %v21754_v17 = vld [vmem:[#allocation63_spill] sm:$0xff] }
 0xcb3   :  { %8632 = vmatprep.mubr.f32.mxu0 %v21740_v35  ;;  %v21755_v35 = vld [vmem:[#allocation12_spill] sm:$0xff] }
 0xcb5   :  { %v8138_v50 = vpop.f32.mrb[96].mxu0 }
 0xcb6   :  { %v20562_v24 = vadd.f32 %v8138_v50, %v19866_v56  ;;  %v8140_v49 = vpop.f32.mrb[97].mxu0  ;;  %8633 = vmatmul.mubr.f32.gmra.mrb[38].mxu0 %v18797_v37 }
 0xcb7   :  { %8637 = vmatprep.mubr.f32.mxu0 %v18805_v60 }
 0xcb9   :  { %v8143_v2 = vpop.f32.mrb[98].mxu0 }
 0xcba   :  { %v20567_v53 = vadd.f32 %v8143_v2, %v19870_v4  ;;  %v8145_v14 = vpop.f32.mrb[99].mxu0  ;;  %8638 = vmatmul.mubr.f32.gmra.mrb[40].mxu0 %v18811_v12  ;;  %v21756_v2 = vld [vmem:[#allocation64_spill] sm:$0xff] }
 0xcbb   :  { %8642 = vmatprep.mubr.f32.mxu0 %v18822_v1 }
 0xcbd   :  { %v8148_v13 = vpop.f32.mrb[100].mxu0 }
 0xcbe   :  { %v20572_v34 = vadd.f32 %v8148_v13, %v19874_v44  ;;  %v8150_v56 = vpop.f32.mrb[101].mxu0  ;;  %8643 = vmatmul.mubr.f32.gmra.mrb[42].mxu0 %v21741_v5  ;;  %v21757_v13 = vld [vmem:[#allocation26_spill] sm:$0xff] }
 0xcbf   :  { %12609 = vmatprep.mubr.msk.f32.mxu0 %vm14707_vm2, %v21626_v48 }
 0xcc1   :  { %v8153_v37 = vpop.f32.mrb[102].mxu0 }
 0xcc2   :  { %v20578_v60 = vadd.f32 %v8153_v37, %v19879_v31  ;;  %v8155_v4 = vpop.f32.mrb[103].mxu0  ;;  %12610 = vmatmul.mubr.msk.f32.vlgmr.msra.gmra.mrb[140].mxu0 %vm272_vm0, %v21742_v21  ;;  %v21758_v37 = vld [vmem:[#allocation65_spill] sm:$0xff]  ;;  %v21759_v21 = vld [vmem:[#allocation27_spill] sm:$0xff] }
 0xcc3   :  { %12612 = vmatprep.mubr.msk.f32.mxu0 %vm14707_vm2, %v21626_v48 }
 0xcc5   :  { %v8158_v12 = vpop.f32.mrb[104].mxu0 }
 0xcc6   :  { %v20585_v1 = vadd.f32 %v8158_v12, %v19885_v40  ;;  %v8160_v44 = vpop.f32.mrb[105].mxu0  ;;  %12613 = vmatmul.mubr.msk.f32.gmra.mrb[142].mxu0 %vm272_vm0, %v21743_v30  ;;  %v21760_v30 = vld [vmem:[#allocation66_spill] sm:$0xff] }
 0xcc7   :  { %12615 = vmatprep.mubr.msk.f32.mxu0 %vm14707_vm2, %v21626_v48 }
 0xcc9   :  { %v8163_v31 = vpop.f32.mrb[106].mxu0 }
 0xcca   :  { %v20592_v26 = vadd.f32 %v8163_v31, %v19891_v15  ;;  %v8165_v41 = vpop.f32.mrb[107].mxu0  ;;  %12616 = vmatmul.mubr.msk.f32.gmra.mrb[144].mxu0 %vm272_vm0, %v21744_v3 }
 0xccb   :  { %12618 = vmatprep.mubr.msk.f32.mxu0 %vm14707_vm2, %v21626_v48  ;;  %v21761_v41 = vld [vmem:[#allocation28_spill] sm:$0xff] }
 0xccd   :  { %v8168_v40 = vpop.f32.mrb[108].mxu0 }
 0xcce   :  { %v20599_v46 = vadd.f32 %v8168_v40, %v21745_v51  ;;  %v8170_v43 = vpop.f32.mrb[109].mxu0  ;;  %12619 = vmatmul.mubr.msk.f32.gmra.mrb[146].mxu0 %vm272_vm0, %v21746_v39  ;;  %v21762_v51 = vld [vmem:[#allocation67_spill] sm:$0xff]  ;;  %v21763_v39 = vld [vmem:[#allocation44_spill] sm:$0xff] }
 0xccf   :  { %12621 = vmatprep.mubr.msk.f32.mxu0 %vm14707_vm2, %v21626_v48 }
 0xcd1   :  { %v8173_v15 = vpop.f32.mrb[110].mxu0 }
 0xcd2   :  { %v20606_v9 = vadd.f32 %v8173_v15, %v21747_v52  ;;  %v8175_v42 = vpop.f32.mrb[111].mxu0  ;;  %12622 = vmatmul.mubr.msk.f32.gmra.mrb[148].mxu0 %vm272_vm0, %v21748_v28 }
 0xcd3   :  { %12624 = vmatprep.mubr.msk.f32.mxu0 %vm14707_vm2, %v21626_v48  ;;  %v21764_v42 = vld [vmem:[#allocation68_spill] sm:$0xff] }
 0xcd5   :  { %v8178_v62 = vpop.f32.mrb[112].mxu0 }
 0xcd6   :  { %v20613_v57 = vadd.f32 %v8178_v62, %v21749_v10  ;;  %v8180_v6 = vpop.f32.mrb[113].mxu0  ;;  %12625 = vmatmul.mubr.msk.f32.gmra.mrb[150].mxu0 %vm272_vm0, %v21750_v36  ;;  %v21765_v62 = vld [vmem:[#allocation46_spill] sm:$0xff]  ;;  %v21766_v36 = vld [vmem:[#allocation69_spill] sm:$0xff] }
 0xcd7   :  { %12627 = vmatprep.mubr.msk.f32.mxu0 %vm14707_vm2, %v21626_v48 }
 0xcd9   :  { %v8183_v33 = vpop.f32.mrb[114].mxu0 }
 0xcda   :  { %v20620_v54 = vadd.f32 %v8183_v33, %v21751_v20  ;;  %v8185_v8 = vpop.f32.mrb[115].mxu0  ;;  %12628 = vmatmul.mubr.msk.f32.gmra.mrb[152].mxu0 %vm272_vm0, %v21752_v47  ;;  %v21767_v20 = vld [vmem:[#allocation73_spill] sm:$0xff] }
 0xcdb   :  { %12630 = vmatprep.mubr.msk.f32.mxu0 %vm14707_vm2, %v21626_v48 }
 0xcdd   :  { %v8188_v19 = vpop.f32.mrb[116].mxu0 }
 0xcde   :  { %v20627_v63 = vadd.f32 %v8188_v19, %v21753_v16  ;;  %v8190_v7 = vpop.f32.mrb[117].mxu0  ;;  %12631 = vmatmul.mubr.msk.f32.gmra.mrb[154].mxu0 %vm272_vm0, %v21754_v17  ;;  %v21768_v19 = vld [vmem:[#allocation70_spill] sm:$0xff] }
 0xcdf   :  { %12633 = vmatprep.mubr.msk.f32.mxu0 %vm14707_vm2, %v21626_v48  ;;  %v21769_v7 = vld [vmem:[#allocation74_spill] sm:$0xff] }
 0xce1   :  { %v8193_v58 = vpop.f32.mrb[118].mxu0 }
 0xce2   :  { %v20634_v50 = vadd.f32 %v8193_v58, %v21755_v35  ;;  %v8195_v49 = vpop.f32.mrb[119].mxu0  ;;  %12634 = vmatmul.mubr.msk.f32.gmra.mrb[156].mxu0 %vm272_vm0, %v21756_v2  ;;  %v21770_v35 = vld [vmem:[#allocation71_spill] sm:$0xff] }
 0xce3   :  { %12636 = vmatprep.mubr.msk.f32.mxu0 %vm14707_vm2, %v21626_v48 }
 0xce5   :  { %v8198_v14 = vpop.f32.mrb[120].mxu0 }
 0xce6   :  { %v20641_v56 = vadd.f32 %v8198_v14, %v21757_v13  ;;  %v8200_v5 = vpop.f32.mrb[121].mxu0  ;;  %12637 = vmatmul.mubr.msk.f32.gmra.mrb[28].mxu0 %vm272_vm0, %v21758_v37  ;;  %v21771_v13 = vld [vmem:[#allocation72_spill] sm:$0xff]  ;;  %v21772_v37 = vld [vmem:[#allocation75_spill] sm:$0xff] }
 0xce7   :  { %12639 = vmatprep.mubr.msk.f32.mxu0 %vm14707_vm2, %v21626_v48 }
 0xce9   :  { %v8203_v4 = vpop.f32.mrb[122].mxu0 }
 0xcea   :  { %v20648_v12 = vadd.f32 %v8203_v4, %v21759_v21  ;;  %v8205_v44 = vpop.f32.mrb[123].mxu0  ;;  %12640 = vmatmul.mubr.msk.f32.gmra.mrb[30].mxu0 %vm272_vm0, %v21760_v30  ;;  %v21773_v30 = vld [vmem:[#allocation76_spill] sm:$0xff] }
 0xceb   :  { %12642 = vmatprep.mubr.msk.f32.mxu0 %vm14707_vm2, %v21626_v48 }
 0xced   :  { %v8208_v31 = vpop.f32.mrb[124].mxu0 }
 0xcee   :  { %v20655_v3 = vadd.f32 %v8208_v31, %v21761_v41  ;;  %v8210_v40 = vpop.f32.mrb[125].mxu0  ;;  %12643 = vmatmul.mubr.msk.f32.gmra.mrb[32].mxu0 %vm272_vm0, %v21762_v51 }
 0xcef   :  { %12645 = vmatprep.mubr.msk.f32.mxu0 %vm14707_vm2, %v21626_v48 }
 0xcf1   :  { %v8213_v43 = vpop.f32.mrb[126].mxu0 }
 0xcf2   :  { %v20662_v15 = vadd.f32 %v8213_v43, %v21763_v39  ;;  %v8215_v52 = vpop.f32.mrb[127].mxu0  ;;  %12646 = vmatmul.mubr.msk.f32.gmra.mrb[34].mxu0 %vm272_vm0, %v21764_v42 }
 0xcf3   :  { %12648 = vmatprep.mubr.msk.f32.mxu0 %vm14707_vm2, %v21626_v48 }
 0xcf5   :  { %v8218_v28 = vpop.f32.mrb[128].mxu0 }
 0xcf6   :  { %v20669_v10 = vadd.f32 %v8218_v28, %v21765_v62  ;;  %v8220_v6 = vpop.f32.mrb[129].mxu0  ;;  %12649 = vmatmul.mubr.msk.f32.gmra.mrb[36].mxu0 %vm272_vm0, %v21766_v36 }
 0xcf7   :  { %12651 = vmatprep.mubr.msk.f32.mxu0 %vm14707_vm2, %v21626_v48 }
 0xcf9   :  { %v8223_v33 = vpop.f32.mrb[130].mxu0 }
 0xcfa   :  { %v20676_v8 = vadd.f32 %v8223_v33, %v21767_v20  ;;  %v8225_v47 = vpop.f32.mrb[131].mxu0  ;;  %12652 = vmatmul.mubr.msk.f32.gmra.mrb[38].mxu0 %vm272_vm0, %v21768_v19 }
 0xcfb   :  { %12654 = vmatprep.mubr.msk.f32.mxu0 %vm14707_vm2, %v21626_v48 }
 0xcfd   :  { %v8228_v16 = vpop.f32.mrb[132].mxu0 }
 0xcfe   :  { %v20683_v17 = vadd.f32 %v8228_v16, %v21769_v7  ;;  %v8230_v58 = vpop.f32.mrb[133].mxu0  ;;  %12655 = vmatmul.mubr.msk.f32.gmra.mrb[40].mxu0 %vm272_vm0, %v21770_v35 }
 0xcff   :  { %12657 = vmatprep.mubr.msk.f32.mxu0 %vm14707_vm2, %v21626_v48 }
 0xd01   :  { %v8233_v49 = vpop.f32.mrb[134].mxu0 }
 0xd02   :  { %v20690_v2 = vadd.f32 %v8233_v49, %v19975_v55  ;;  %v8235_v14 = vpop.f32.mrb[135].mxu0  ;;  %12658 = vmatmul.mubr.msk.f32.gmra.mrb[42].mxu0 %vm272_vm0, %v21771_v13  ;;  %v11326_v55 = vld [vmem:[%s21455_s8 + $0x668] sm:$0xff] }
 0xd03   :  { %12759 = vmatprep.mubr.msk.f32.mxu0 %vm14707_vm2, %v21626_v48  ;;  %11394 = vmatprep.mubr.msk.f32.mxu1 %vm6639_vm3, %v11326_v55 }
 0xd05   :  { %v8238_v5 = vpop.f32.mrb[136].mxu0 }
 0xd06   :  { %v20697_v4 = vadd.f32 %v8238_v5, %v21772_v37  ;;  %v8240_v21 = vpop.f32.mrb[137].mxu0 }
 0xd09   :  { %v8243_v44 = vpop.f32.mrb[138].mxu0 }
 0xd0a   :  { %v20700_v31 = vadd.f32 %v8243_v44, %v21773_v30  ;;  %v8245_v41 = vpop.f32.mrb[139].mxu0 }
 0xd95   :  { %v8714_v40 = vpop.f32.mrb[140].mxu0 }
 0xd96   :  { %v12611_v51 = vpop.f32.mrb[141].mxu0 }
 0xd99   :  { %v8719_v43 = vpop.f32.mrb[142].mxu0 }
 0xd9a   :  { %v14007_v39 = vpack.c.bf16 %v8719_v43, %v8714_v40  ;;  %v12614_v52 = vpop.f32.mrb[143].mxu0 }
 0xd9c   :  { %14008 = vmatpush1.bf16.msra.mxu1 %v14007_v39 }
 0xd9d   :  { %v8724_v42 = vpop.f32.mrb[144].mxu0  ;;  %14009 = vmatprep.subr.bf16.mxu1 %v21591_v59 }
 0xd9e   :  { %v12617_v28 = vpop.f32.mrb[145].mxu0 }
 0xda1   :  { %v8729_v62 = vpop.f32.mrb[146].mxu0 }
 0xda2   :  { %v14010_v6 = vpack.c.bf16 %v8729_v62, %v8724_v42  ;;  %v12620_v36 = vpop.f32.mrb[147].mxu0 }
 0xda4   :  { %14011 = vmatpush1.bf16.msra.mxu1 %v14010_v6 }
 0xda5   :  { %v8734_v33 = vpop.f32.mrb[148].mxu0  ;;  %14012 = vmatprep.subr.bf16.mxu1 %v21591_v59 }
 0xda6   :  { %v12623_v20 = vpop.f32.mrb[149].mxu0 }
 0xda9   :  { %v8739_v47 = vpop.f32.mrb[150].mxu0 }
 0xdaa   :  { %v14013_v19 = vpack.c.bf16 %v8739_v47, %v8734_v33  ;;  %v12626_v16 = vpop.f32.mrb[151].mxu0 }
 0xdab   :  { %v11325_v16 = vld [vmem:[%s21455_s8 + $0x660] sm:$0xff] }
 0xdac   :  { %14014 = vmatpush1.bf16.msra.mxu1 %v14013_v19 }
 0xdad   :  { %v8744_v7 = vpop.f32.mrb[152].mxu0  ;;  %14015 = vmatprep.subr.bf16.mxu1 %v21591_v59 }
 0xdae   :  { %v12629_v58 = vpop.f32.mrb[153].mxu0 }
 0xdaf   :  { %v11327_v58 = vld [vmem:[%s21455_s8 + $0x670] sm:$0xff] }
 0xdb1   :  { %v8749_v35 = vpop.f32.mrb[154].mxu0 }
 0xdb2   :  { %v14016_v49 = vpack.c.bf16 %v8749_v35, %v8744_v7  ;;  %v12632_v14 = vpop.f32.mrb[155].mxu0  ;;  %v11328_v7 = vld [vmem:[%s21455_s8 + $0x678] sm:$0xff]  ;;  %v11330_v35 = vld [vmem:[%s21455_s8 + $0x688] sm:$0xff] }
 0xdb3   :  { %v11332_v14 = vld [vmem:[%s21455_s8 + $0x698] sm:$0xff] }
 0xdb4   :  { %14017 = vmatpush1.bf16.msra.mxu1 %v14016_v49  ;;  %v11329_v49 = vld [vmem:[%s21455_s8 + $0x680] sm:$0xff] }
 0xdb5   :  { %v8754_v13 = vpop.f32.mrb[156].mxu0  ;;  %14018 = vmatprep.subr.bf16.mxu1 %v21591_v59 }
 0xdb6   :  { %v12635_v5 = vpop.f32.mrb[157].mxu0 }
 0xdb7   :  { %v11334_v5 = vld [vmem:[%s21455_s8 + $0x6a8] sm:$0xff] }
 0xdb9   :  { %v8759_v37 = vpop.f32.mrb[28].mxu0 }
 0xdba   :  { %v14019_v21 = vpack.c.bf16 %v8759_v37, %v8754_v13  ;;  %v12638_v44 = vpop.f32.mrb[29].mxu0  ;;  %v11331_v13 = vld [vmem:[%s21455_s8 + $0x690] sm:$0xff]  ;;  %v11333_v37 = vld [vmem:[%s21455_s8 + $0x6a0] sm:$0xff] }
 0xdbb   :  { %v11335_v44 = vld [vmem:[%s21455_s8 + $0x6b0] sm:$0xff] }
 0xdbc   :  { %14020 = vmatpush1.bf16.msra.mxu1 %v14019_v21  ;;  %v11336_v21 = vld [vmem:[%s21455_s8 + $0x6b8] sm:$0xff] }
 0xdbd   :  { %v8764_v30 = vpop.f32.mrb[30].mxu0  ;;  %14021 = vmatprep.subr.bf16.mxu1 %v21591_v59 }
 0xdbe   :  { %v12641_v41 = vpop.f32.mrb[31].mxu0 }
 0xdbf   :  { %v11337_v41 = vld [vmem:[%s21455_s8 + $0x6c0] sm:$0xff] }
 0xdc1   :  { %v8769_v55 = vpop.f32.mrb[32].mxu0 }
 0xdc2   :  { %v14022_v40 = vpack.c.bf16 %v8769_v55, %v8764_v30  ;;  %v12644_v51 = vpop.f32.mrb[33].mxu0  ;;  %v11338_v30 = vld [vmem:[%s21455_s8 + $0x6c8] sm:$0xff]  ;;  %v11340_v55 = vld [vmem:[%s21455_s8 + $0x6d8] sm:$0xff] }
 0xdc3   :  { %v11342_v51 = vld [vmem:[%s21455_s8 + $0x6e8] sm:$0xff] }
 0xdc4   :  { %14023 = vmatpush1.bf16.msra.mxu1 %v14022_v40  ;;  %v11339_v40 = vld [vmem:[%s21455_s8 + $0x6d0] sm:$0xff] }
 0xdc5   :  { %v8774_v43 = vpop.f32.mrb[34].mxu0  ;;  %14024 = vmatprep.subr.bf16.mxu1 %v21591_v59 }
 0xdc6   :  { %v12647_v39 = vpop.f32.mrb[35].mxu0 }
 0xdc7   :  { %v11344_v39 = vld [vmem:[%s21455_s8 + $0x6f8] sm:$0xff] }
 0xdc9   :  { %v8779_v52 = vpop.f32.mrb[36].mxu0 }
 0xdca   :  { %v14025_v42 = vpack.c.bf16 %v8779_v52, %v8774_v43  ;;  %v12650_v28 = vpop.f32.mrb[37].mxu0  ;;  %v11341_v43 = vld [vmem:[%s21455_s8 + $0x6e0] sm:$0xff]  ;;  %v11343_v52 = vld [vmem:[%s21455_s8 + $0x6f0] sm:$0xff] }
 0xdcb   :  { %v11345_v28 = vld [vmem:[%s21455_s8 + $0x700] sm:$0xff] }
 0xdcc   :  { %14026 = vmatpush1.bf16.msra.mxu1 %v14025_v42  ;;  %v11346_v42 = vld [vmem:[%s21455_s8 + $0x708] sm:$0xff] }
 0xdcd   :  { %v8784_v62 = vpop.f32.mrb[38].mxu0  ;;  %14027 = vmatprep.subr.bf16.mxu1 %v21591_v59 }
 0xdce   :  { %v12653_v6 = vpop.f32.mrb[39].mxu0 }
 0xdcf   :  { %v11347_v6 = vld [vmem:[%s21455_s8 + $0x710] sm:$0xff] }
 0xdd1   :  { %v8789_v36 = vpop.f32.mrb[40].mxu0 }
 0xdd2   :  { %v14028_v33 = vpack.c.bf16 %v8789_v36, %v8784_v62  ;;  %v12656_v20 = vpop.f32.mrb[41].mxu0  ;;  %v11348_v62 = vld [vmem:[%s21455_s8 + $0x718] sm:$0xff]  ;;  %v11350_v36 = vld [vmem:[%s21455_s8 + $0x728] sm:$0xff] }
 0xdd3   :  { %v11352_v20 = vld [vmem:[%s21455_s8 + $0x738] sm:$0xff] }
 0xdd4   :  { %14029 = vmatpush1.bf16.msra.mxu1 %v14028_v33  ;;  %v11349_v33 = vld [vmem:[%s21455_s8 + $0x720] sm:$0xff] }
 0xdd5   :  { %v8794_v47 = vpop.f32.mrb[42].mxu0  ;;  %9004 = vmatprep.subr.mxu1 %v21626_v48 }
 0xdd6   :  { %v12659_v19 = vpop.f32.mrb[43].mxu0 }
 0xdd7   :  { %v11354_v19 = vld [vmem:[%s21455_s8 + $0x748] sm:$0xff] }
 0xdd8   :  { %11393 = vmatpush1.msk.msra.mxu1 %vm6742_vm4, %v8794_v47  ;;  %v11351_v47 = vld [vmem:[%s21455_s8 + $0x730] sm:$0xff] }
 0xdd9   :  { %9037 = vmatmul.mubr.f32.vlgmr.msra.gmra.mrb[76].mxu1 %v11325_v16  ;;  %14030 = vmatprep.subr.bf16.mxu1 %v21591_v59  ;;  %v11353_v16 = vld [vmem:[%s21455_s8 + $0x740] sm:$0xff] }
 0xdda   :  { %11395 = vmatprep.mubr.msk.f32.mxu1 %vm6639_vm3, %v11328_v7  ;;  %v11356_v7 = vld [vmem:[%s21455_s8 + $0x758] sm:$0xff] }
 0xddd   :  { %9042 = vmatmul.mubr.f32.gmra.mrb[78].mxu1 %v11327_v58  ;;  %v11355_v58 = vld [vmem:[%s21455_s8 + $0x750] sm:$0xff] }
 0xdde   :  { %11396 = vmatprep.mubr.msk.f32.mxu1 %vm6639_vm3, %v11330_v35  ;;  %v11358_v35 = vld [vmem:[%s21455_s8 + $0x768] sm:$0xff] }
 0xde1   :  { %9047 = vmatmul.mubr.f32.gmra.mrb[80].mxu1 %v11329_v49  ;;  %v11357_v49 = vld [vmem:[%s21455_s8 + $0x760] sm:$0xff] }
 0xde2   :  { %11397 = vmatprep.mubr.msk.f32.mxu1 %vm6639_vm3, %v11332_v14  ;;  %v11360_v14 = vld [vmem:[%s21455_s8 + $0x778] sm:$0xff] }
 0xde5   :  { %9052 = vmatmul.mubr.f32.gmra.mrb[82].mxu1 %v11331_v13  ;;  %v11359_v13 = vld [vmem:[%s21455_s8 + $0x770] sm:$0xff] }
 0xde6   :  { %11398 = vmatprep.mubr.msk.f32.mxu1 %vm6639_vm3, %v11334_v5  ;;  %v11362_v5 = vld [vmem:[%s21455_s8 + $0x788] sm:$0xff] }
 0xde9   :  { %9057 = vmatmul.mubr.f32.gmra.mrb[84].mxu1 %v11333_v37  ;;  %v11361_v37 = vld [vmem:[%s21455_s8 + $0x780] sm:$0xff] }
 0xdea   :  { %11399 = vmatprep.mubr.msk.f32.mxu1 %vm6639_vm3, %v11336_v21  ;;  %v11364_v21 = vld [vmem:[%s21455_s8 + $0x798] sm:$0xff] }
 0xded   :  { %9062 = vmatmul.mubr.f32.gmra.mrb[86].mxu1 %v11335_v44  ;;  %v11363_v44 = vld [vmem:[%s21455_s8 + $0x790] sm:$0xff] }
 0xdee   :  { %11400 = vmatprep.mubr.msk.f32.mxu1 %vm6639_vm3, %v11338_v30  ;;  %v11366_v30 = vld [vmem:[%s21455_s8 + $0x7a8] sm:$0xff] }
 0xdf1   :  { %9067 = vmatmul.mubr.f32.gmra.mrb[88].mxu1 %v11337_v41  ;;  %v11365_v41 = vld [vmem:[%s21455_s8 + $0x7a0] sm:$0xff] }
 0xdf2   :  { %11401 = vmatprep.mubr.msk.f32.mxu1 %vm6639_vm3, %v11340_v55  ;;  %v11368_v55 = vld [vmem:[%s21455_s8 + $0x7b8] sm:$0xff] }
 0xdf5   :  { %9072 = vmatmul.mubr.f32.gmra.mrb[90].mxu1 %v11339_v40  ;;  %v11367_v40 = vld [vmem:[%s21455_s8 + $0x7b0] sm:$0xff] }
 0xdf6   :  { %11402 = vmatprep.mubr.msk.f32.mxu1 %vm6639_vm3, %v11342_v51  ;;  %v11370_v51 = vld [vmem:[%s21455_s8 + $0x7c8] sm:$0xff] }
 0xdf9   :  { %9077 = vmatmul.mubr.f32.gmra.mrb[92].mxu1 %v11341_v43  ;;  %v11369_v43 = vld [vmem:[%s21455_s8 + $0x7c0] sm:$0xff] }
 0xdfa   :  { %11403 = vmatprep.mubr.msk.f32.mxu1 %vm6639_vm3, %v11344_v39  ;;  %v11372_v39 = vld [vmem:[%s21455_s8 + $0x7d8] sm:$0xff] }
 0xdfd   :  { %9082 = vmatmul.mubr.f32.gmra.mrb[94].mxu1 %v11343_v52  ;;  %v11371_v52 = vld [vmem:[%s21455_s8 + $0x7d0] sm:$0xff] }
 0xdfe   :  { %11404 = vmatprep.mubr.msk.f32.mxu1 %vm6639_vm3, %v11346_v42  ;;  %v11374_v42 = vld [vmem:[%s21455_s8 + $0x7e8] sm:$0xff] }
 0xe01   :  { %9087 = vmatmul.mubr.f32.gmra.mrb[96].mxu1 %v11345_v28  ;;  %v11373_v28 = vld [vmem:[%s21455_s8 + $0x7e0] sm:$0xff] }
 0xe02   :  { %11405 = vmatprep.mubr.msk.f32.mxu1 %vm6639_vm3, %v11348_v62  ;;  %v11376_v62 = vld [vmem:[%s21455_s8 + $0x7f8] sm:$0xff] }
 0xe05   :  { %9092 = vmatmul.mubr.f32.gmra.mrb[98].mxu1 %v11347_v6  ;;  %v11375_v6 = vld [vmem:[%s21455_s8 + $0x7f0] sm:$0xff] }
 0xe06   :  { %11406 = vmatprep.mubr.msk.f32.mxu1 %vm6639_vm3, %v11350_v36  ;;  %v11378_v36 = vld [vmem:[%s21455_s8 + $0x808] sm:$0xff] }
 0xe09   :  { %9097 = vmatmul.mubr.f32.gmra.mrb[100].mxu1 %v11349_v33  ;;  %v11377_v33 = vld [vmem:[%s21455_s8 + $0x800] sm:$0xff] }
 0xe0a   :  { %11407 = vmatprep.mubr.msk.f32.mxu1 %vm6639_vm3, %v11352_v20  ;;  %v11380_v20 = vld [vmem:[%s21455_s8 + $0x818] sm:$0xff] }
 0xe0d   :  { %9102 = vmatmul.mubr.f32.gmra.mrb[102].mxu1 %v11351_v47  ;;  %v11379_v47 = vld [vmem:[%s21455_s8 + $0x810] sm:$0xff] }
 0xe0e   :  { %11408 = vmatprep.mubr.msk.f32.mxu1 %vm6639_vm3, %v11354_v19  ;;  %v11382_v19 = vld [vmem:[%s21455_s8 + $0x828] sm:$0xff] }
 0xe11   :  { %9107 = vmatmul.mubr.f32.gmra.mrb[104].mxu1 %v11353_v16  ;;  %v11381_v16 = vld [vmem:[%s21455_s8 + $0x820] sm:$0xff] }
 0xe12   :  { %11409 = vmatprep.mubr.msk.f32.mxu1 %vm6639_vm3, %v11356_v7  ;;  %v11384_v7 = vld [vmem:[%s21455_s8 + $0x838] sm:$0xff] }
 0xe15   :  { %9112 = vmatmul.mubr.f32.gmra.mrb[106].mxu1 %v11355_v58  ;;  %v11383_v58 = vld [vmem:[%s21455_s8 + $0x830] sm:$0xff] }
 0xe16   :  { %11410 = vmatprep.mubr.msk.f32.mxu1 %vm6639_vm3, %v11358_v35  ;;  %v11386_v35 = vld [vmem:[%s21455_s8 + $0x848] sm:$0xff] }
 0xe19   :  { %9117 = vmatmul.mubr.f32.gmra.mrb[108].mxu1 %v11357_v49  ;;  %v11385_v49 = vld [vmem:[%s21455_s8 + $0x840] sm:$0xff] }
 0xe1a   :  { %11411 = vmatprep.mubr.msk.f32.mxu1 %vm6639_vm3, %v11360_v14  ;;  %v11388_v14 = vld [vmem:[%s21455_s8 + $0x858] sm:$0xff] }
 0xe1d   :  { %9122 = vmatmul.mubr.f32.gmra.mrb[110].mxu1 %v11359_v13  ;;  %v11387_v13 = vld [vmem:[%s21455_s8 + $0x850] sm:$0xff] }
 0xe1e   :  { %11412 = vmatprep.mubr.msk.f32.mxu1 %vm6639_vm3, %v11362_v5  ;;  %v11390_v5 = vld [vmem:[%s21455_s8 + $0x868] sm:$0xff] }
 0xe21   :  { %9127 = vmatmul.mubr.f32.gmra.mrb[112].mxu1 %v11361_v37  ;;  %v11389_v37 = vld [vmem:[%s21455_s8 + $0x860] sm:$0xff] }
 0xe22   :  { %11413 = vmatprep.mubr.msk.f32.mxu1 %vm6639_vm3, %v11364_v21  ;;  %v11392_v21 = vld [vmem:[%s21455_s8 + $0x878] sm:$0xff] }
 0xe25   :  { %9132 = vmatmul.mubr.f32.gmra.mrb[114].mxu1 %v11363_v44  ;;  %v11391_v44 = vld [vmem:[%s21455_s8 + $0x870] sm:$0xff] }
 0xe26   :  { %11414 = vmatprep.mubr.msk.f32.mxu1 %vm6639_vm3, %v11366_v30 }
 0xe29   :  { %9137 = vmatmul.mubr.f32.gmra.mrb[116].mxu1 %v11365_v41  ;;  %v20955_v41 = vld [vmem:[%s21456_s9] ss:$0 sm:$0xff]  ;;  %s14708_s9 = smov [#allocation2]  }
 0xe2a   :  { %11415 = vmatprep.mubr.msk.f32.mxu1 %vm6639_vm3, %v11368_v55  ;;  %s10115_s18 = sshll.u32 %s14708_s9, 4  ;;  %s10116_s18 = int_to_ptr.vmem [resolvable:$true] %s10115_s18 }
 0xe2b   :  { %s14681_s19 = scalar_lea.vmem %s10116_s18, 4352  ;;  %p14686_p1 = scmp.lt.s32.totalorder %s10116_s18, %s10116_s18 }
 0xe2c   :  { %p14682_p0 = scmp.ne.s32.totalorder %s10116_s18, %s14681_s19  ;;  %p14687_p2 = scmp.lt.s32.totalorder %s14681_s19, %s14681_s19 }
 0xe2d   :  { %9142 = vmatmul.mubr.f32.gmra.mrb[118].mxu1 %v11367_v40 }
 0xe2e   :  { %11416 = vmatprep.mubr.msk.f32.mxu1 %vm6639_vm3, %v11370_v51  ;;  %p14688_p3 = por %p14687_p2, %p14686_p1 }
 0xe30   :  { %p14689_p4 = pnand %p14688_p3, %p14682_p0 }
 0xe31   :  { %9147 = vmatmul.mubr.f32.gmra.mrb[120].mxu1 %v11369_v43 }
 0xe32   :  { %11417 = vmatprep.mubr.msk.f32.mxu1 %vm6639_vm3, %v11372_v39 }
 0xe35   :  { %9152 = vmatmul.mubr.f32.gmra.mrb[122].mxu1 %v11371_v52 }
 0xe36   :  { %11418 = vmatprep.mubr.msk.f32.mxu1 %vm6639_vm3, %v11374_v42 }
 0xe39   :  { %9157 = vmatmul.mubr.f32.gmra.mrb[124].mxu1 %v11373_v28 }
 0xe3a   :  { %11419 = vmatprep.mubr.msk.f32.mxu1 %vm6639_vm3, %v11376_v62 }
 0xe3d   :  { %9162 = vmatmul.mubr.f32.gmra.mrb[126].mxu1 %v11375_v6 }
 0xe3e   :  { %11420 = vmatprep.mubr.msk.f32.mxu1 %vm6639_vm3, %v11378_v36 }
 0xe41   :  { %9167 = vmatmul.mubr.f32.gmra.mrb[128].mxu1 %v11377_v33  ;;  %v9321_v33 = vld [vmem:[%s21458_s11 + $0x8] sm:$0xff] }
 0xe42   :  { %11421 = vmatprep.mubr.msk.f32.mxu1 %vm6639_vm3, %v11380_v20 }
 0xe45   :  { %9172 = vmatmul.mubr.f32.gmra.mrb[130].mxu1 %v11379_v47  ;;  %v9322_v47 = vld [vmem:[%s21458_s11 + $0x10] sm:$0xff] }
 0xe46   :  { %11422 = vmatprep.mubr.msk.f32.mxu1 %vm6639_vm3, %v11382_v19 }
 0xe49   :  { %9177 = vmatmul.mubr.f32.gmra.mrb[132].mxu1 %v11381_v16 }
 0xe4a   :  { %11423 = vmatprep.mubr.msk.f32.mxu1 %vm6639_vm3, %v11384_v7 }
 0xe4d   :  { %9182 = vmatmul.mubr.f32.gmra.mrb[134].mxu1 %v11383_v58 }
 0xe4e   :  { %11424 = vmatprep.mubr.msk.f32.mxu1 %vm6639_vm3, %v11386_v35 }
 0xe51   :  { %9187 = vmatmul.mubr.f32.gmra.mrb[136].mxu1 %v11385_v49  ;;  %v9324_v49 = vld [vmem:[%s21458_s11 + $0x20] sm:$0xff] }
 0xe52   :  { %11425 = vmatprep.mubr.msk.f32.mxu1 %vm6639_vm3, %v11388_v14  ;;  %v9325_v14 = vld [vmem:[%s21458_s11 + $0x28] sm:$0xff] }
 0xe55   :  { %9192 = vmatmul.mubr.f32.gmra.mrb[138].mxu1 %v11387_v13 }
 0xe56   :  { %11426 = vmatprep.mubr.msk.f32.mxu1 %vm6639_vm3, %v11390_v5 }
 0xe59   :  { %9197 = vmatmul.mubr.f32.gmra.mrb[140].mxu1 %v11389_v37 }
 0xe5a   :  { %11427 = vmatprep.mubr.msk.f32.mxu1 %vm6639_vm3, %v11392_v21  ;;  %v20997_v21 = vpack.c.bf16 %v9325_v14, %v9324_v49  ;;  %v21040_v49 = vld [vmem:[%s21457_s10] sm:$0xff] }
 0xe5d   :  { %9202 = vmatmul.mubr.f32.gmra.mrb[142].mxu1 %v11391_v44 }
 0xe5e   :  { %12678 = vmatprep.mubr.msk.f32.mxu1 %vm14707_vm2, %v21626_v48 }
 0xeac   :  { %v9038_v30 = vpop.f32.mrb[76].mxu1 }
 0xead   :  { %v9207_v55 = vadd.f32 %v9038_v30, %v20502_v61  ;;  %v9040_v40 = vpop.f32.mrb[77].mxu1  ;;  %v9320_v61 = vld [vmem:[%s21458_s11] sm:$0xff]  ;;  %v9326_v30 = vld [vmem:[%s21458_s11 + $0x30] sm:$0xff] }
 0xeae   :  { %v20970_v20 = vpack.c.bf16 %v9321_v33, %v9320_v61 }
 0xeaf   :  { %v9248_v51 = vadd.f32 %v20955_v41, %v9207_v55  ;;  %v9327_v55 = vld [vmem:[%s21458_s11 + $0x38] sm:$0xff] }
 0xeb0   :  { %v9043_v43 = vpop.f32.mrb[78].mxu1  ;;  %14068 = vmatpush3.bf16.msra.mxu0 %v20970_v20 }
 0xeb1   :  { %9283 = vst.msk [vmem:[#allocation2] sm:$0xff] %vm9282_vm5, %v9248_v51  ;;  %v9208_v39 = vadd.f32 %v9043_v43, %v20507_v38  ;;  %v9045_v52 = vpop.f32.mrb[79].mxu1  ;;  %14069 = vmatprep.subr.bf16.mxu0 %v21591_v59  ;;  %v21011_v43 = vpack.c.bf16 %v9327_v55, %v9326_v30 }
 0xeb3   :  { %v9249_v42 = vadd.f32 %v20955_v41, %v9208_v39 }
 0xeb4   :  { %v9048_v28 = vpop.f32.mrb[80].mxu1 }
 0xeb5   :  { %9284 = vst.msk [vmem:[#allocation2 + $0x8] sm:$0xff] %vm9282_vm5, %v9249_v42  ;;  %v14031_v62 = vpack.c.bf16 %v9249_v42, %v9248_v51  ;;  %v9209_v6 = vadd.f32 %v9048_v28, %v20512_v32  ;;  %v9050_v36 = vpop.f32.mrb[81].mxu1  ;;  %v9323_v32 = vld [vmem:[%s21458_s11 + $0x18] sm:$0xff] }
 0xeb6   :  { %v20984_v58 = vpack.c.bf16 %v9323_v32, %v9322_v47 }
 0xeb7   :  { %v9250_v38 = vadd.f32 %v20955_v41, %v9209_v6  ;;  %14032 = vmatpush3.bf16.msra.mxu1 %v14031_v62  ;;  %v21022_v6 = vld [vmem:[%s21458_s11 + $0x40] sm:$0xf] }
 0xeb8   :  { %v9053_v19 = vpop.f32.mrb[82].mxu1  ;;  %14033 = vmatprep.subr.bf16.mxu1 %v21591_v59  ;;  %14071 = vmatpush3.bf16.msra.mxu0 %v20984_v58 }
 0xeb9   :  { %9285 = vst.msk [vmem:[#allocation2 + $0x10] sm:$0xff] %vm9282_vm5, %v9250_v38  ;;  %v9210_v16 = vadd.f32 %v9053_v19, %v20517_v45  ;;  %v9055_v7 = vpop.f32.mrb[83].mxu1  ;;  %14072 = vmatprep.subr.bf16.mxu0 %v21591_v59 }
 0xebb   :  { %v9251_v35 = vadd.f32 %v20955_v41, %v9210_v16 }
 0xebc   :  { %v9058_v13 = vpop.f32.mrb[84].mxu1  ;;  %14074 = vmatpush3.bf16.msra.mxu0 %v20997_v21 }
 0xebd   :  { %9286 = vst.msk [vmem:[#allocation2 + $0x18] sm:$0xff] %vm9282_vm5, %v9251_v35  ;;  %v14034_v45 = vpack.c.bf16 %v9251_v35, %v9250_v38  ;;  %v9211_v5 = vadd.f32 %v9058_v13, %v20522_v22  ;;  %v9060_v37 = vpop.f32.mrb[85].mxu1  ;;  %14075 = vmatprep.subr.bf16.mxu0 %v21591_v59 }
 0xebe   :  { %v21054_v37 = vld [vmem:[%s21457_s10 + $0x8] sm:$0xff] }
 0xebf   :  { %v9252_v44 = vadd.f32 %v20955_v41, %v9211_v5  ;;  %14035 = vmatpush3.bf16.msra.mxu1 %v14034_v45 }
 0xec0   :  { %v9063_v40 = vpop.f32.mrb[86].mxu1  ;;  %14036 = vmatprep.subr.bf16.mxu1 %v21591_v59  ;;  %14077 = vmatpush3.bf16.msra.mxu0 %v21011_v43 }
 0xec1   :  { %9287 = vst.msk [vmem:[#allocation2 + $0x20] sm:$0xff] %vm9282_vm5, %v9252_v44  ;;  %v9212_v22 = vadd.f32 %v9063_v40, %v20527_v23  ;;  %v9065_v51 = vpop.f32.mrb[87].mxu1  ;;  %12757 = vmatprep.subr.mxu0 %v21626_v48 }
 0xec2   :  { %v21071_v51 = vld [vmem:[%s21457_s10 + $0x10] sm:$0x1] }
 0xec3   :  { %v9253_v39 = vadd.f32 %v20955_v41, %v9212_v22 }
 0xec4   :  { %v9068_v52 = vpop.f32.mrb[88].mxu1  ;;  %12758 = vmatpush3.msk.msra.mxu0 %vm6742_vm4, %v21022_v6 }
 0xec5   :  { %9288 = vst.msk [vmem:[#allocation2 + $0x28] sm:$0xff] %vm9282_vm5, %v9253_v39  ;;  %v14037_v42 = vpack.c.bf16 %v9253_v39, %v9252_v44  ;;  %v9213_v28 = vadd.f32 %v9068_v52, %v20532_v27  ;;  %v9070_v62 = vpop.f32.mrb[89].mxu1  ;;  %14090 = vmatprep.subr.bf16.mxu0 %v21591_v59 }
 0xec7   :  { %v9254_v23 = vadd.f32 %v20955_v41, %v9213_v28  ;;  %14038 = vmatpush3.bf16.msra.mxu1 %v14037_v42 }
 0xec8   :  { %v9073_v36 = vpop.f32.mrb[90].mxu1  ;;  %14039 = vmatprep.subr.bf16.mxu1 %v21591_v59 }
 0xec9   :  { %9289 = vst.msk [vmem:[#allocation2 + $0x30] sm:$0xff] %vm9282_vm5, %v9254_v23  ;;  %v9214_v27 = vadd.f32 %v9073_v36, %v20537_v0  ;;  %v9075_v61 = vpop.f32.mrb[91].mxu1 }
 0xecb   :  { %v9255_v33 = vadd.f32 %v20955_v41, %v9214_v27 }
 0xecc   :  { %v9078_v38 = vpop.f32.mrb[92].mxu1 }
 0xecd   :  { %9290 = vst.msk [vmem:[#allocation2 + $0x38] sm:$0xff] %vm9282_vm5, %v9255_v33  ;;  %v14040_v47 = vpack.c.bf16 %v9255_v33, %v9254_v23  ;;  %v9215_v32 = vadd.f32 %v9078_v38, %v20542_v18  ;;  %v9080_v19 = vpop.f32.mrb[93].mxu1 }
 0xecf   :  { %v9256_v16 = vadd.f32 %v20955_v41, %v9215_v32  ;;  %14041 = vmatpush3.bf16.msra.mxu1 %v14040_v47 }
 0xed0   :  { %v9083_v7 = vpop.f32.mrb[94].mxu1  ;;  %12676 = vmatprep.subr.mxu1 %v21626_v48 }
 0xed1   :  { %9291 = vst.msk [vmem:[#allocation2 + $0x40] sm:$0xff] %vm9282_vm5, %v9256_v16  ;;  %v9216_v0 = vadd.f32 %v9083_v7, %v20547_v29  ;;  %v9085_v35 = vpop.f32.mrb[95].mxu1  ;;  %v9526_v13 = vrot.slane %v9256_v16, 4 }
 0xed3   :  { %v9257_v14 = vadd.f32 %v20955_v41, %v9216_v0  ;;  %12677 = vmatpush3.msk.msra.mxu1 %vm6742_vm4, %v9256_v16 }
 0xed4   :  { %v9088_v18 = vpop.f32.mrb[96].mxu1  ;;  %12679 = vmatmul.mubr.msk.f32.vlgmr.msra.gmra.mrb[144].mxu1 %vm9282_vm5, %v21040_v49  ;;  %14042 = vmatprep.subr.bf16.mxu1 %v21591_v59 }
 0xed5   :  { %9292 = vst.msk [vmem:[#allocation2 + $0x48] sm:$0xff] %vm9282_vm5, %v9257_v14  ;;  %v9527_v29 = vrot.slane %v9257_v14, 4  ;;  %v9217_v45 = vadd.f32 %v9088_v18, %v20552_v11  ;;  %v9090_v5 = vpop.f32.mrb[97].mxu1  ;;  %12681 = vmatprep.mubr.msk.f32.mxu1 %vm14707_vm2, %v21626_v48  ;;  %14044 = vmatpush3.bf16.msra.mxu1 %v20970_v20 }
 0xed6   :  { %14045 = vmatprep.subr.bf16.mxu1 %v21591_v59 }
 0xed7   :  { %v9258_v44 = vadd.f32 %v20955_v41, %v9217_v45  ;;  %v21060_v30 = vsel %vm6742_vm4, %v9526_v13, %v9527_v29 }
 0xed8   :  { %v9093_v55 = vpop.f32.mrb[98].mxu1  ;;  %12682 = vmatmul.mubr.msk.f32.gmra.mrb[146].mxu1 %vm9282_vm5, %v21054_v37 }
 0xed9   :  { %9293 = vst.msk [vmem:[#allocation2 + $0x50] sm:$0xff] %vm9282_vm5, %v9258_v44  ;;  %v9529_v11 = vrot.slane %v9258_v44, 4  ;;  %v9218_v40 = vadd.f32 %v9093_v55, %v20557_v25  ;;  %v9095_v22 = vpop.f32.mrb[99].mxu1  ;;  %12684 = vmatprep.mubr.msk.f32.mxu1 %vm14707_vm2, %v21626_v48  ;;  %14047 = vmatpush3.bf16.msra.mxu1 %v20984_v58 }
 0xeda   :  { %14048 = vmatprep.subr.bf16.mxu1 %v21591_v59 }
 0xedb   :  { %v9259_v39 = vadd.f32 %v20955_v41, %v9218_v40  ;;  %v21077_v52 = vsel %vm6742_vm4, %v9527_v29, %v9529_v11 }
 0xedc   :  { %v9098_v42 = vpop.f32.mrb[100].mxu1  ;;  %12685 = vmatmul.mubr.msk.f32.gmra.mrb[148].mxu1 %vm9282_vm5, %v21071_v51  ;;  %v14055_v25 = vpack.c.bf16 %v21077_v52, %v21060_v30 }
 0xedd   :  { %9294 = vst.msk [vmem:[#allocation2 + $0x58] sm:$0xff] %vm9282_vm5, %v9259_v39  ;;  %v9531_v28 = vrot.slane %v9259_v39, 4  ;;  %v9219_v62 = vadd.f32 %v9098_v42, %v20562_v24  ;;  %v9100_v23 = vpop.f32.mrb[101].mxu1  ;;  %14050 = vmatpush3.bf16.msra.mxu1 %v20997_v21  ;;  %12705 = vmatprep.mubr.msk.f32.mxu1 %vm14707_vm2, %v21626_v48 }
 0xede   :  { %14051 = vmatprep.subr.bf16.mxu1 %v21591_v59 }
 0xedf   :  { %v9260_v36 = vadd.f32 %v20955_v41, %v9219_v62  ;;  %v21091_v27 = vsel %vm6742_vm4, %v9529_v11, %v9531_v28 }
 0xee0   :  { %v9103_v61 = vpop.f32.mrb[102].mxu1 }
 0xee1   :  { %9295 = vst.msk [vmem:[#allocation2 + $0x60] sm:$0xff] %vm9282_vm5, %v9260_v36  ;;  %v9533_v33 = vrot.slane %v9260_v36, 4  ;;  %v9220_v38 = vadd.f32 %v9103_v61, %v20567_v53  ;;  %v9105_v24 = vpop.f32.mrb[103].mxu1  ;;  %14053 = vmatpush3.bf16.msra.mxu1 %v21011_v43 }
 0xee2   :  { %12703 = vmatprep.subr.mxu1 %v21626_v48 }
 0xee3   :  { %v9261_v47 = vadd.f32 %v20955_v41, %v9220_v38  ;;  %v21099_v32 = vsel %vm6742_vm4, %v9531_v28, %v9533_v33 }
 0xee4   :  { %v9108_v19 = vpop.f32.mrb[104].mxu1  ;;  %v14058_v16 = vpack.c.bf16 %v21099_v32, %v21091_v27 }
 0xee5   :  { %9296 = vst.msk [vmem:[#allocation2 + $0x68] sm:$0xff] %vm9282_vm5, %v9261_v47  ;;  %v9535_v7 = vrot.slane %v9261_v47, 4  ;;  %v9221_v0 = vadd.f32 %v9108_v19, %v20572_v34  ;;  %v9110_v53 = vpop.f32.mrb[105].mxu1  ;;  %12704 = vmatpush3.msk.msra.mxu1 %vm6742_vm4, %v21022_v6 }
 0xee6   :  { %14054 = vmatprep.subr.bf16.mxu1 %v21591_v59 }
 0xee7   :  { %v9262_v35 = vadd.f32 %v20955_v41, %v9221_v0  ;;  %v21110_v14 = vsel %vm6742_vm4, %v9533_v33, %v9535_v7 }
 0xee8   :  { %v9113_v18 = vpop.f32.mrb[106].mxu1 }
 0xee9   :  { %9297 = vst.msk [vmem:[#allocation2 + $0x70] sm:$0xff] %vm9282_vm5, %v9262_v35  ;;  %v9537_v13 = vrot.slane %v9262_v35, 4  ;;  %v9222_v29 = vadd.f32 %v9113_v18, %v20578_v60  ;;  %v9115_v45 = vpop.f32.mrb[107].mxu1 }
 0xeeb   :  { %v9263_v34 = vadd.f32 %v20955_v41, %v9222_v29  ;;  %v21116_v5 = vsel %vm6742_vm4, %v9535_v7, %v9537_v13 }
 0xeec   :  { %v9118_v44 = vpop.f32.mrb[108].mxu1  ;;  %v14061_v55 = vpack.c.bf16 %v21116_v5, %v21110_v14 }
 0xeed   :  { %9298 = vst.msk [vmem:[#allocation2 + $0x78] sm:$0xff] %vm9282_vm5, %v9263_v34  ;;  %v9539_v11 = vrot.slane %v9263_v34, 4  ;;  %v9223_v40 = vadd.f32 %v9118_v44, %v20585_v1  ;;  %v9120_v22 = vpop.f32.mrb[109].mxu1 }
 0xeef   :  { %v21123_v39 = vadd.f32 %v20955_v41, %v9223_v40  ;;  %v21126_v60 = vsel %vm6742_vm4, %v9537_v13, %v9539_v11 }
 0xef0   :  { %v9123_v42 = vpop.f32.mrb[110].mxu1 }
 0xef1   :  { %9299 = vst.msk [vmem:[#allocation2 + $0x80] sm:$0xff] %vm9282_vm5, %v21123_v39  ;;  %v9541_v28 = vrot.slane %v21123_v39, 4  ;;  %v9224_v62 = vadd.f32 %v9123_v42, %v20592_v26  ;;  %v9125_v23 = vpop.f32.mrb[111].mxu1 }
 0xef3   :  { %v21133_v36 = vadd.f32 %v20955_v41, %v9224_v62  ;;  %v21138_v1 = vsel %vm6742_vm4, %v9539_v11, %v9541_v28 }
 0xef4   :  { %v9128_v61 = vpop.f32.mrb[112].mxu1  ;;  %v14064_v33 = vpack.c.bf16 %v21138_v1, %v21126_v60 }
 0xef5   :  { %9300 = vst.msk [vmem:[#allocation2 + $0x88] sm:$0xff] %vm9282_vm5, %v21133_v36  ;;  %v9225_v38 = vadd.f32 %v9128_v61, %v20599_v46  ;;  %v9130_v24 = vpop.f32.mrb[113].mxu1 }
 0xef7   :  { %v21146_v26 = vadd.f32 %v20955_v41, %v9225_v38 }
 0xef8   :  { %v9133_v47 = vpop.f32.mrb[114].mxu1 }
 0xef9   :  { %9301 = vst.msk [vmem:[#allocation2 + $0x90] sm:$0xff] %vm9282_vm5, %v21146_v26  ;;  %v14079_v19 = vpack.c.bf16 %v21146_v26, %v21133_v36  ;;  %v9226_v7 = vadd.f32 %v9133_v47, %v20606_v9  ;;  %v9135_v0 = vpop.f32.mrb[115].mxu1 }
 0xefb   :  { %v21154_v53 = vadd.f32 %v20955_v41, %v9226_v7 }
 0xefc   :  { %v9138_v35 = vpop.f32.mrb[116].mxu1 }
 0xefd   :  { %9302 = vst.msk [vmem:[#allocation2 + $0x98] sm:$0xff] %vm9282_vm5, %v21154_v53  ;;  %v9227_v46 = vadd.f32 %v9138_v35, %v20613_v57  ;;  %v9140_v18 = vpop.f32.mrb[117].mxu1 }
 0xeff   :  { %v21160_v13 = vadd.f32 %v20955_v41, %v9227_v46 }
 0xf00   :  { %v9143_v29 = vpop.f32.mrb[118].mxu1 }
 0xf01   :  { %9303 = vst.msk [vmem:[#allocation2 + $0xa0] sm:$0xff] %vm9282_vm5, %v21160_v13  ;;  %v14082_v9 = vpack.c.bf16 %v21160_v13, %v21154_v53  ;;  %v9228_v45 = vadd.f32 %v9143_v29, %v20620_v54  ;;  %v9145_v34 = vpop.f32.mrb[119].mxu1 }
 0xf03   :  { %v21168_v44 = vadd.f32 %v20955_v41, %v9228_v45 }
 0xf04   :  { %v9148_v11 = vpop.f32.mrb[120].mxu1 }
 0xf05   :  { %9304 = vst.msk [vmem:[#allocation2 + $0xa8] sm:$0xff] %vm9282_vm5, %v21168_v44  ;;  %v9229_v57 = vadd.f32 %v9148_v11, %v20627_v63  ;;  %v9150_v40 = vpop.f32.mrb[121].mxu1 }
 0xf07   :  { %v21174_v22 = vadd.f32 %v20955_v41, %v9229_v57 }
 0xf08   :  { %v9153_v42 = vpop.f32.mrb[122].mxu1 }
 0xf09   :  { %9305 = vst.msk [vmem:[#allocation2 + $0xb0] sm:$0xff] %vm9282_vm5, %v21174_v22  ;;  %v14085_v54 = vpack.c.bf16 %v21174_v22, %v21168_v44  ;;  %v9230_v62 = vadd.f32 %v9153_v42, %v20634_v50  ;;  %v9155_v23 = vpop.f32.mrb[123].mxu1 }
 0xf0b   :  { %v21182_v61 = vadd.f32 %v20955_v41, %v9230_v62 }
 0xf0c   :  { %v9158_v38 = vpop.f32.mrb[124].mxu1 }
 0xf0d   :  { %9306 = vst.msk [vmem:[#allocation2 + $0xb8] sm:$0xff] %vm9282_vm5, %v21182_v61  ;;  %v9231_v63 = vadd.f32 %v9158_v38, %v20641_v56  ;;  %v9160_v24 = vpop.f32.mrb[125].mxu1 }
 0xf0f   :  { %v21188_v47 = vadd.f32 %v20955_v41, %v9231_v63 }
 0xf10   :  { %v9163_v7 = vpop.f32.mrb[126].mxu1 }
 0xf11   :  { %9307 = vst.msk [vmem:[#allocation2 + $0xc0] sm:$0xff] %vm9282_vm5, %v21188_v47  ;;  %v14088_v50 = vpack.c.bf16 %v21188_v47, %v21182_v61  ;;  %v9232_v0 = vadd.f32 %v9163_v7, %v20648_v12  ;;  %v9165_v35 = vpop.f32.mrb[127].mxu1 }
 0xf13   :  { %v21196_v46 = vadd.f32 %v20955_v41, %v9232_v0 }
 0xf14   :  { %v9168_v18 = vpop.f32.mrb[128].mxu1 }
 0xf15   :  { %9308 = vst.msk [vmem:[#allocation2 + $0xc8] sm:$0xff] %vm9282_vm5, %v21196_v46  ;;  %v9233_v56 = vadd.f32 %v9168_v18, %v20655_v3  ;;  %v9170_v29 = vpop.f32.mrb[129].mxu1  ;;  %v9910_v62 = vrot.slane %v21196_v46, 4 }
 0xf17   :  { %v9274_v45 = vadd.f32 %v20955_v41, %v9233_v56 }
 0xf18   :  { %v9173_v34 = vpop.f32.mrb[130].mxu1 }
 0xf19   :  { %9309 = vst.msk [vmem:[#allocation2 + $0xd0] sm:$0xff] %vm9282_vm5, %v9274_v45  ;;  %v9234_v11 = vadd.f32 %v9173_v34, %v20662_v15  ;;  %v9175_v57 = vpop.f32.mrb[131].mxu1  ;;  %v9911_v12 = vrot.slane %v9274_v45, 4 }
 0xf1b   :  { %v9275_v40 = vadd.f32 %v20955_v41, %v9234_v11  ;;  %v21210_v24 = vsel %vm6742_vm4, %v9910_v62, %v9911_v12 }
 0xf1c   :  { %v9178_v42 = vpop.f32.mrb[132].mxu1 }
 0xf1d   :  { %9310 = vst.msk [vmem:[#allocation2 + $0xd8] sm:$0xff] %vm9282_vm5, %v9275_v40  ;;  %v9913_v23 = vrot.slane %v9275_v40, 4  ;;  %v9235_v3 = vadd.f32 %v9178_v42, %v20669_v10  ;;  %v9180_v38 = vpop.f32.mrb[133].mxu1 }
 0xf1f   :  { %v9276_v63 = vadd.f32 %v20955_v41, %v9235_v3  ;;  %v21213_v15 = vsel %vm6742_vm4, %v9911_v12, %v9913_v23 }
 0xf20   :  { %v9183_v7 = vpop.f32.mrb[134].mxu1  ;;  %v14103_v0 = vpack.c.bf16 %v21213_v15, %v21210_v24 }
 0xf21   :  { %9311 = vst.msk [vmem:[#allocation2 + $0xe0] sm:$0xff] %vm9282_vm5, %v9276_v63  ;;  %v9915_v35 = vrot.slane %v9276_v63, 4  ;;  %v9236_v18 = vadd.f32 %v9183_v7, %v20676_v8  ;;  %v9185_v56 = vpop.f32.mrb[135].mxu1 }
 0xf23   :  { %v9277_v10 = vadd.f32 %v20955_v41, %v9236_v18  ;;  %v21221_v29 = vsel %vm6742_vm4, %v9913_v23, %v9915_v35 }
 0xf24   :  { %v9188_v45 = vpop.f32.mrb[136].mxu1 }
 0xf25   :  { %9312 = vst.msk [vmem:[#allocation2 + $0xe8] sm:$0xff] %vm9282_vm5, %v9277_v10  ;;  %v9917_v34 = vrot.slane %v9277_v10, 4  ;;  %v9237_v11 = vadd.f32 %v9188_v45, %v20683_v17  ;;  %v9190_v57 = vpop.f32.mrb[137].mxu1 }
 0xf27   :  { %v9278_v12 = vadd.f32 %v20955_v41, %v9237_v11  ;;  %v21227_v40 = vsel %vm6742_vm4, %v9915_v35, %v9917_v34 }
 0xf28   :  { %v9193_v42 = vpop.f32.mrb[138].mxu1  ;;  %v14106_v8 = vpack.c.bf16 %v21227_v40, %v21221_v29 }
 0xf29   :  { %9313 = vst.msk [vmem:[#allocation2 + $0xf0] sm:$0xff] %vm9282_vm5, %v9278_v12  ;;  %v9919_v62 = vrot.slane %v9278_v12, 4  ;;  %v9238_v23 = vadd.f32 %v9193_v42, %v20690_v2  ;;  %v9195_v3 = vpop.f32.mrb[139].mxu1 }
 0xf2b   :  { %v9279_v38 = vadd.f32 %v20955_v41, %v9238_v23  ;;  %v21235_v17 = vsel %vm6742_vm4, %v9917_v34, %v9919_v62 }
 0xf2c   :  { %v9198_v63 = vpop.f32.mrb[140].mxu1 }
 0xf2d   :  { %9314 = vst.msk [vmem:[#allocation2 + $0xf8] sm:$0xff] %vm9282_vm5, %v9279_v38  ;;  %v9921_v7 = vrot.slane %v9279_v38, 4  ;;  %v9239_v35 = vadd.f32 %v9198_v63, %v20697_v4  ;;  %v9200_v18 = vpop.f32.mrb[141].mxu1 }
 0xf2f   :  { %v9280_v56 = vadd.f32 %v20955_v41, %v9239_v35  ;;  %v9922_v10 = vsel %vm6742_vm4, %v9919_v62, %v9921_v7 }
 0xf30   :  { %v9203_v45 = vpop.f32.mrb[142].mxu1  ;;  %v14109_v2 = vpack.c.bf16 %v9922_v10, %v21235_v17 }
 0xf31   :  { %9315 = vst.msk [vmem:[#allocation2 + $0x100] sm:$0xff] %vm9282_vm5, %v9280_v56  ;;  %v9923_v11 = vrot.slane %v9280_v56, 4  ;;  %v9240_v34 = vadd.f32 %v9203_v45, %v20700_v31  ;;  %v9205_v57 = vpop.f32.mrb[143].mxu1 }
 0xf33   :  { %v9281_v12 = vadd.f32 %v20955_v41, %v9240_v34  ;;  %v9924_v42 = vsel %vm6742_vm4, %v9921_v7, %v9923_v11 }
 0xf35   :  { %9316 = vst.msk [vmem:[#allocation2 + $0x108] sm:$0xff] %vm9282_vm5, %v9281_v12  ;;  %v9925_v4 = vrot.slane %v9281_v12, 4 }
 0xf37   :  { %v9926_v23 = vsel %vm6742_vm4, %v9923_v11, %v9925_v4 }
 0xf38   :  { %v14112_v3 = vpack.c.bf16 %v9926_v23, %v9924_v42 }
 0xfa7   :  { %v9407_v62 = vpop.f32.mrb[144].mxu1 }
 0xfa8   :  { %12706 = vmatmul.mubr.msk.f32.vlgmr.msra.gmra.mrb[150].mxu1 %vm9282_vm5, %v9407_v62  ;;  %v12680_v38 = vpop.f32.mrb[145].mxu1 }
 0xfa9   :  { %14056 = vmatpush3.bf16.msra.mxu1 %v14055_v25  ;;  %12708 = vmatprep.mubr.msk.f32.mxu1 %vm14707_vm2, %v21626_v48 }
 0xfaa   :  { %14057 = vmatprep.subr.bf16.mxu1 %v21591_v59 }
 0xfab   :  { %v9412_v31 = vpop.f32.mrb[146].mxu1 }
 0xfac   :  { %12709 = vmatmul.mubr.msk.f32.gmra.mrb[152].mxu1 %vm9282_vm5, %v9412_v31  ;;  %v12683_v41 = vpop.f32.mrb[147].mxu1 }
 0xfad   :  { %14059 = vmatpush3.bf16.msra.mxu1 %v14058_v16  ;;  %12711 = vmatprep.mubr.msk.f32.mxu1 %vm14707_vm2, %v21626_v48 }
 0xfae   :  { %14060 = vmatprep.subr.bf16.mxu1 %v21591_v59 }
 0xfaf   :  { %v9417_v30 = vpop.f32.mrb[148].mxu1 }
 0xfb0   :  { %12712 = vmatmul.mubr.msk.f32.gmra.mrb[154].mxu1 %vm9282_vm5, %v9417_v30  ;;  %v12686_v52 = vpop.f32.mrb[149].mxu1 }
 0xfb1   :  { %14062 = vmatpush3.bf16.msra.mxu1 %v14061_v55  ;;  %12732 = vmatprep.mubr.msk.f32.mxu1 %vm14707_vm2, %v21626_v48 }
 0xfb2   :  { %14063 = vmatprep.subr.bf16.mxu1 %v21591_v59 }
 0xfb5   :  { %14065 = vmatpush3.bf16.msra.mxu1 %v14064_v33 }
 0xfb6   :  { %12730 = vmatprep.subr.mxu1 %v21626_v48 }
 0xfb9   :  { %12731 = vmatpush3.msk.msra.mxu1 %vm6742_vm4, %v9541_v28 }
 0xfba   :  { %14078 = vmatprep.subr.bf16.mxu1 %v21591_v59  ;;  %12733 = vmatmul.mubr.msk.f32.vlgmr.msra.gmra.mrb[156].mxu1 %vm9282_vm5, %v21040_v49 }
 0xfbb   :  { %14080 = vmatpush3.bf16.msra.mxu1 %v14079_v19  ;;  %12735 = vmatprep.mubr.msk.f32.mxu1 %vm14707_vm2, %v21626_v48 }
 0xfbc   :  { %14081 = vmatprep.subr.bf16.mxu1 %v21591_v59 }
 0xfbe   :  { %12736 = vmatmul.mubr.msk.f32.gmra.mrb[158].mxu1 %vm9282_vm5, %v21054_v37 }
 0xfbf   :  { %14083 = vmatpush3.bf16.msra.mxu1 %v14082_v9  ;;  %12738 = vmatprep.mubr.msk.f32.mxu1 %vm14707_vm2, %v21626_v48 }
 0xfc0   :  { %14084 = vmatprep.subr.bf16.mxu1 %v21591_v59 }
 0xfc2   :  { %12739 = vmatmul.mubr.msk.f32.gmra.mrb[160].mxu1 %vm9282_vm5, %v21071_v51 }
 0xfc3   :  { %14086 = vmatpush3.bf16.msra.mxu1 %v14085_v54  ;;  %12786 = vmatprep.mubr.msk.f32.mxu1 %vm14707_vm2, %v21626_v48 }
 0xfc4   :  { %14087 = vmatprep.subr.bf16.mxu1 %v21591_v59 }
 0xfc7   :  { %14089 = vmatpush3.bf16.msra.mxu1 %v14088_v50 }
 0xfc8   :  { %12784 = vmatprep.subr.mxu1 %v21626_v48 }
 0xfcb   :  { %12785 = vmatpush3.msk.msra.mxu1 %vm6742_vm4, %v21196_v46 }
 0xfcc   :  { %14102 = vmatprep.subr.bf16.mxu1 %v21591_v59  ;;  %12787 = vmatmul.mubr.msk.f32.vlgmr.msra.gmra.mrb[28].mxu1 %vm9282_vm5, %v21040_v49 }
 0xfcd   :  { %14104 = vmatpush3.bf16.msra.mxu1 %v14103_v0  ;;  %12789 = vmatprep.mubr.msk.f32.mxu1 %vm14707_vm2, %v21626_v48 }
 0xfce   :  { %14105 = vmatprep.subr.bf16.mxu1 %v21591_v59 }
 0xfd0   :  { %12790 = vmatmul.mubr.msk.f32.gmra.mrb[30].mxu1 %vm9282_vm5, %v21054_v37 }
 0xfd1   :  { %14107 = vmatpush3.bf16.msra.mxu1 %v14106_v8  ;;  %12792 = vmatprep.mubr.msk.f32.mxu1 %vm14707_vm2, %v21626_v48 }
 0xfd2   :  { %14108 = vmatprep.subr.bf16.mxu1 %v21591_v59 }
 0xfd4   :  { %12793 = vmatmul.mubr.msk.f32.gmra.mrb[32].mxu1 %vm9282_vm5, %v21071_v51 }
 0xfd5   :  { %14110 = vmatpush3.bf16.msra.mxu1 %v14109_v2  ;;  %12840 = vmatprep.mubr.msk.f32.mxu1 %vm14707_vm2, %v21626_v48 }
 0xfd6   :  { %14111 = vmatprep.subr.bf16.mxu1 %v21591_v59 }
 0xfd9   :  { %14113 = vmatpush3.bf16.msra.mxu1 %v14112_v3 }
 0xfda   :  { %12838 = vmatprep.subr.mxu1 %v21626_v48 }
 0xfdd   :  { %12839 = vmatpush3.msk.msra.mxu1 %vm6742_vm4, %v9925_v4 }
 0xfde   :  { %12841 = vmatmul.mubr.msk.f32.vlgmr.msra.gmra.mrb[34].mxu1 %vm9282_vm5, %v21040_v49 }
 0xfdf   :  { %12843 = vmatprep.mubr.msk.f32.mxu1 %vm14707_vm2, %v21626_v48 }
 0xfe2   :  { %12844 = vmatmul.mubr.msk.f32.gmra.mrb[36].mxu1 %vm9282_vm5, %v21054_v37 }
 0xfe3   :  { %12846 = vmatprep.mubr.msk.f32.mxu1 %vm14707_vm2, %v21626_v48 }
 0xfe6   :  { %12847 = vmatmul.mubr.msk.f32.gmra.mrb[38].mxu1 %vm9282_vm5, %v21071_v51 }
0x107b   :  { %v9499_v25 = vpop.f32.mrb[150].mxu1 }
0x107c   :  { %9514 = vst.msk [vmem:[%s21460_s13] sm:$0xff] %vm9513_vm6, %v9499_v25  ;;  %v12707_v49 = vpop.f32.mrb[151].mxu1 }
0x107f   :  { %v9504_v27 = vpop.f32.mrb[152].mxu1 }
0x1080   :  { %9515 = vst.msk [vmem:[%s21460_s13 + $0x8] sm:$0xff] %vm9513_vm6, %v9504_v27  ;;  %v12710_v37 = vpop.f32.mrb[153].mxu1 }
0x1083   :  { %v9509_v32 = vpop.f32.mrb[154].mxu1 }
0x1084   :  { %9517 = vst.msk [vmem:[%s21460_s13 + $0x10] sm:$0x1] %vm9516_vm7, %v9509_v32  ;;  %v12713_v51 = vpop.f32.mrb[155].mxu1 }
0x108d   :  { %v9619_v16 = vpop.f32.mrb[156].mxu1 }
0x108e   :  { %v12734_v14 = vpop.f32.mrb[157].mxu1  ;;  %12760 = vmatmul.mubr.msk.f32.vlgmr.msra.gmra.mrb[44].mxu0 %vm9282_vm5, %v9619_v16 }
0x108f   :  { %14092 = vmatpush3.bf16.msra.mxu0 %v20970_v20  ;;  %12762 = vmatprep.mubr.msk.f32.mxu0 %vm14707_vm2, %v21626_v48 }
0x1090   :  { %14093 = vmatprep.subr.bf16.mxu0 %v21591_v59 }
0x1091   :  { %v9624_v5 = vpop.f32.mrb[158].mxu1 }
0x1092   :  { %v12737_v55 = vpop.f32.mrb[159].mxu1  ;;  %12763 = vmatmul.mubr.msk.f32.gmra.mrb[46].mxu0 %vm9282_vm5, %v9624_v5 }
0x1093   :  { %14095 = vmatpush3.bf16.msra.mxu0 %v20984_v58  ;;  %12765 = vmatprep.mubr.msk.f32.mxu0 %vm14707_vm2, %v21626_v48 }
0x1094   :  { %14096 = vmatprep.subr.bf16.mxu0 %v21591_v59 }
0x1095   :  { %v9629_v39 = vpop.f32.mrb[160].mxu1 }
0x1096   :  { %v12740_v60 = vpop.f32.mrb[161].mxu1  ;;  %12766 = vmatmul.mubr.msk.f32.gmra.mrb[48].mxu0 %vm9282_vm5, %v9629_v39 }
0x1097   :  { %14098 = vmatpush3.bf16.msra.mxu0 %v20997_v21  ;;  %12813 = vmatprep.mubr.msk.f32.mxu0 %vm14707_vm2, %v21626_v48 }
0x1098   :  { %14099 = vmatprep.subr.bf16.mxu0 %v21591_v59 }
0x109b   :  { %14101 = vmatpush3.bf16.msra.mxu0 %v21011_v43 }
0x109c   :  { %12811 = vmatprep.subr.mxu0 %v21626_v48 }
0x109f   :  { %v9795_v28 = vpop.f32.mrb[28].mxu1  ;;  %12812 = vmatpush3.msk.msra.mxu0 %vm6742_vm4, %v21022_v6 }
0x10a0   :  { %v12788_v36 = vpop.f32.mrb[29].mxu1  ;;  %12814 = vmatmul.mubr.msk.f32.vlgmr.msra.gmra.mrb[50].mxu0 %vm9282_vm5, %v9795_v28  ;;  %14114 = vmatprep.subr.bf16.mxu0 %v21591_v59 }
0x10a1   :  { %14116 = vmatpush3.bf16.msra.mxu0 %v20970_v20  ;;  %12816 = vmatprep.mubr.msk.f32.mxu0 %vm14707_vm2, %v21626_v48 }
0x10a2   :  { %14117 = vmatprep.subr.bf16.mxu0 %v21591_v59 }
0x10a3   :  { %v9800_v1 = vpop.f32.mrb[30].mxu1 }
0x10a4   :  { %v12791_v33 = vpop.f32.mrb[31].mxu1  ;;  %12817 = vmatmul.mubr.msk.f32.gmra.mrb[52].mxu0 %vm9282_vm5, %v9800_v1 }
0x10a5   :  { %14119 = vmatpush3.bf16.msra.mxu0 %v20984_v58  ;;  %12819 = vmatprep.mubr.msk.f32.mxu0 %vm14707_vm2, %v21626_v48 }
0x10a6   :  { %14120 = vmatprep.subr.bf16.mxu0 %v21591_v59 }
0x10a7   :  { %v9805_v26 = vpop.f32.mrb[32].mxu1 }
0x10a8   :  { %v12794_v19 = vpop.f32.mrb[33].mxu1  ;;  %12820 = vmatmul.mubr.msk.f32.gmra.mrb[54].mxu0 %vm9282_vm5, %v9805_v26 }
0x10a9   :  { %14122 = vmatpush3.bf16.msra.mxu0 %v20997_v21  ;;  %12867 = vmatprep.mubr.msk.f32.mxu0 %vm14707_vm2, %v21626_v48 }
0x10aa   :  { %14123 = vmatprep.subr.bf16.mxu0 %v21591_v59 }
0x10ad   :  { %14125 = vmatpush3.bf16.msra.mxu0 %v21011_v43 }
0x10ae   :  { %12865 = vmatprep.subr.mxu0 %v21626_v48 }
0x10b1   :  { %v10003_v20 = vpop.f32.mrb[34].mxu1  ;;  %12866 = vmatpush3.msk.msra.mxu0 %vm6742_vm4, %v21022_v6 }
0x10b2   :  { %v12842_v58 = vpop.f32.mrb[35].mxu1  ;;  %12868 = vmatmul.mubr.msk.f32.vlgmr.msra.gmra.mrb[56].mxu0 %vm9282_vm5, %v10003_v20 }
0x10b3   :  { %12870 = vmatprep.mubr.msk.f32.mxu0 %vm14707_vm2, %v21626_v48 }
0x10b5   :  { %v10008_v21 = vpop.f32.mrb[36].mxu1 }
0x10b6   :  { %v12845_v53 = vpop.f32.mrb[37].mxu1  ;;  %12871 = vmatmul.mubr.msk.f32.gmra.mrb[58].mxu0 %vm9282_vm5, %v10008_v21 }
0x10b7   :  { %12873 = vmatprep.mubr.msk.f32.mxu0 %vm14707_vm2, %v21626_v48 }
0x10b9   :  { %v10013_v59 = vpop.f32.mrb[38].mxu1 }
0x10ba   :  { %v12848_v43 = vpop.f32.mrb[39].mxu1  ;;  %12874 = vmatmul.mubr.msk.f32.gmra.mrb[60].mxu0 %vm9282_vm5, %v10013_v59 }
0x10bb   :  { %14692 = shalt.err (!%p14689_p4)
}
0x10bc   :  { %s14693_s22 = scalar_lea.hbm %s21459_s12, 4352 }
0x10bd   :  { %p14694_p5 = scmp.ne.s32.totalorder %s21459_s12, %s14693_s22  ;;  %p14697_p6 = scmp.lt.u32.totalorder %s14693_s22, %s21459_s12 }
0x10bf   :  { %p14699_p7 = pnand %p14697_p6, %p14694_p5 }
0x10c1   :  { %14702 = shalt.err (!%p14699_p7)
}
0x10c2   :  { %s14709_s25 = smov 128   ;;  %s14710_s26 = smov 8  }
0x10c3   :  { %10121 = dma.vmem_to_hbm [thread:$0]  %s10116_s18, 4352, %s21459_s12, [#allocation3], %s14709_s25, %s14709_s25, %s14710_s26  }
0x1161   :  { %v9708_v48 = vpop.f32.mrb[44].mxu0 }
0x1162   :  { %11445 = vst.msk [vmem:[%s21460_s13 + $0x18] sm:$0xff] %vm9513_vm6, %v9708_v48  ;;  %v12761_v6 = vpop.f32.mrb[45].mxu0 }
0x1165   :  { %v9713_v13 = vpop.f32.mrb[46].mxu0 }
0x1166   :  { %11446 = vst.msk [vmem:[%s21460_s13 + $0x20] sm:$0xff] %vm9513_vm6, %v9713_v13  ;;  %v12764_v9 = vpop.f32.mrb[47].mxu0 }
0x1169   :  { %v9718_v44 = vpop.f32.mrb[48].mxu0 }
0x116a   :  { %11447 = vst.msk [vmem:[%s21460_s13 + $0x28] sm:$0x1] %vm9516_vm7, %v9718_v44  ;;  %v12767_v22 = vpop.f32.mrb[49].mxu0 }
0x1173   :  { %v9884_v54 = vpop.f32.mrb[50].mxu0 }
0x1174   :  { %11456 = vst.msk [vmem:[%s21460_s13 + $0x30] sm:$0xff] %vm9513_vm6, %v9884_v54  ;;  %v12815_v61 = vpop.f32.mrb[51].mxu0 }
0x1177   :  { %v9889_v47 = vpop.f32.mrb[52].mxu0 }
0x1178   :  { %11457 = vst.msk [vmem:[%s21460_s13 + $0x38] sm:$0xff] %vm9513_vm6, %v9889_v47  ;;  %v12818_v50 = vpop.f32.mrb[53].mxu0 }
0x117b   :  { %v9894_v46 = vpop.f32.mrb[54].mxu0 }
0x117c   :  { %11458 = vst.msk [vmem:[%s21460_s13 + $0x40] sm:$0x1] %vm9516_vm7, %v9894_v46  ;;  %v12821_v24 = vpop.f32.mrb[55].mxu0 }
0x1185   :  { %v10092_v15 = vpop.f32.mrb[56].mxu0 }
0x1186   :  { %11467 = vst.msk [vmem:[%s21460_s13 + $0x48] sm:$0xff] %vm9513_vm6, %v10092_v15  ;;  %v12869_v0 = vpop.f32.mrb[57].mxu0 }
0x1189   :  { %v10097_v29 = vpop.f32.mrb[58].mxu0 }
0x118a   :  { %11468 = vst.msk [vmem:[%s21460_s13 + $0x50] sm:$0xff] %vm9513_vm6, %v10097_v29  ;;  %v12872_v40 = vpop.f32.mrb[59].mxu0 }
0x118d   :  { %v10102_v8 = vpop.f32.mrb[60].mxu0 }
0x118e   :  { %11469 = vst.msk [vmem:[%s21460_s13 + $0x58] sm:$0x1] %vm9516_vm7, %v10102_v8  ;;  %v12875_v17 = vpop.f32.mrb[61].mxu0 }
0x118f   :  { %14703 = dma.done.wait [#allocation3], 4352  }
0x1190   :  { %14704 = vsyncadd [#allocation3], 4294962944 }
0x1191   :  { %10129 = vsyncpa [#allocation3], 1 }

</bundles_post_ra>
